<compile_context>
chip_gen: v7x
topology: tpu7x:2x2x1
jax: 0.10.0
libtpu: 0.0.40
codegen_flags: <defaults>
</compile_context>

<pallas_src>
import jax
import jax.numpy as jnp
from jax.experimental import pallas as pl
from jax.experimental.pallas import tpu as pltpu


def _round_up(x, m):
    return ((x + m - 1) // m) * m


# ------------- Flat_linear: Linear -> LayerNorm -> Linear -> LayerNorm -------------
def flat_linear_kernel(x_ref, w1_ref, b1_ref, g1_ref, be1_ref,
                       w2_ref, b2_ref, g2_ref, be2_ref, o_ref):
    eps = 1e-6  # module uses partial(nn.LayerNorm, eps=1e-06)
    # bf16 MXU operands, f32 accumulation; LayerNorm math stays f32 (v5e-safe).
    x = x_ref[...].astype(jnp.bfloat16)
    h = jnp.dot(x, w1_ref[...], preferred_element_type=jnp.float32) + b1_ref[...]
    mu = jnp.mean(h, axis=-1, keepdims=True)
    var = jnp.mean(jnp.square(h - mu), axis=-1, keepdims=True)
    h = (h - mu) * jax.lax.rsqrt(var + eps) * g1_ref[...] + be1_ref[...]
    y = jnp.dot(h.astype(jnp.bfloat16), w2_ref[...],
                preferred_element_type=jnp.float32) + b2_ref[...]
    mu2 = jnp.mean(y, axis=-1, keepdims=True)
    var2 = jnp.mean(jnp.square(y - mu2), axis=-1, keepdims=True)
    y = (y - mu2) * jax.lax.rsqrt(var2 + eps) * g2_ref[...] + be2_ref[...]
    o_ref[...] = y.astype(o_ref.dtype)


def flat_linear(x_nhwc, p):
    """x: (B,H,W,Cin) -> (B,H,W,Cout). Matches Flat_linear(re_construct=True)."""
    B, H, W, Cin = x_nhwc.shape
    Ch = p["w1"].shape[1]
    Cout = p["w2"].shape[1]
    M = B * H * W
    tokens = x_nhwc.reshape(M, Cin)            # free reshape (contiguous)
    Mp = _round_up(M, 8)
    if Mp != M:                                # rare: keep sublane alignment
        tokens = jnp.pad(tokens, ((0, Mp - M), (0, 0)))
    # Large token tiles (per-grid-step overhead ~0.35us); rely on cdiv grid +
    # Pallas partial-block masking instead of pad/slice round trips.
    tm = 1024 if Mp >= 2048 else (256 if Mp >= 512 else Mp)
    # TODO(synk): channel dims (16/32/80/160) are left unpadded; padding them to
    # 128 lanes (with masked LN stats) would make stores unmasked but cascades
    # through every stage's weights.
    w1 = p["w1"].astype(jnp.bfloat16)
    w2 = p["w2"].astype(jnp.bfloat16)
    out = pl.pallas_call(
        flat_linear_kernel,
        out_shape=jax.ShapeDtypeStruct((Mp, Cout), jnp.float32),
        grid=(pl.cdiv(Mp, tm),),
        in_specs=[
            pl.BlockSpec((tm, Cin), lambda i: (i, 0)),
            pl.BlockSpec((Cin, Ch), lambda i: (0, 0)),
            pl.BlockSpec((1, Ch), lambda i: (0, 0)),
            pl.BlockSpec((1, Ch), lambda i: (0, 0)),
            pl.BlockSpec((1, Ch), lambda i: (0, 0)),
            pl.BlockSpec((Ch, Cout), lambda i: (0, 0)),
            pl.BlockSpec((1, Cout), lambda i: (0, 0)),
            pl.BlockSpec((1, Cout), lambda i: (0, 0)),
            pl.BlockSpec((1, Cout), lambda i: (0, 0)),
        ],
        out_specs=pl.BlockSpec((tm, Cout), lambda i: (i, 0)),
        compiler_params=pltpu.CompilerParams(dimension_semantics=("parallel",)),
    )(tokens, w1, p["b1"], p["g1"], p["be1"], w2, p["b2"], p["g2"], p["be2"])
    if Mp != M:
        out = out[:M]
    return out.reshape(B, H, W, Cout)


# ---- fused: skip-add + depthwise 3x3 conv (stride 1, pad 1) + bias + residual ----
def add_dwconv_res_kernel(a_ref, b_ref, w_ref, bias_ref, o_ref, spad_ref):
    # a/b: (1, H, W, C) UNPADDED skip and upsampled feature; halo built in VMEM.
    _, H, W, C = o_ref.shape
    s = a_ref[0] + b_ref[0]                       # (H, W, C) f32
    spad_ref[...] = jnp.zeros_like(spad_ref)      # zero border (interior rewritten)
    spad_ref[1:1 + H, 1:1 + W, :] = s
    sp = spad_ref[...]                            # (H+2, W+2, C)
    w = w_ref[...]                                # (9, C)
    acc = s + bias_ref[0]                         # residual + conv bias
    for ky in range(3):
        for kx in range(3):
            acc = acc + sp[ky:ky + H, kx:kx + W, :] * w[ky * 3 + kx]
    o_ref[...] = acc[None].astype(o_ref.dtype)


def add_dwconv_residual(skip, up, w9c, bias):
    """y = dwconv3x3(skip + up) + (skip + up), NHWC. No XLA-level padding."""
    B, H, W, C = skip.shape
    # TODO(synk): for very large resolutions on v7x (64 MiB VMEM) this whole-image
    # per-batch block should be split into row bands with a 1-row halo.
    return pl.pallas_call(
        add_dwconv_res_kernel,
        out_shape=jax.ShapeDtypeStruct((B, H, W, C), jnp.float32),
        grid=(B,),
        in_specs=[
            pl.BlockSpec((1, H, W, C), lambda b: (b, 0, 0, 0)),
            pl.BlockSpec((1, H, W, C), lambda b: (b, 0, 0, 0)),
            pl.BlockSpec((9, C), lambda b: (0, 0)),
            pl.BlockSpec((1, C), lambda b: (0, 0)),
        ],
        out_specs=pl.BlockSpec((1, H, W, C), lambda b: (b, 0, 0, 0)),
        scratch_shapes=[pltpu.VMEM((H + 2, W + 2, C), jnp.float32)],
        compiler_params=pltpu.CompilerParams(dimension_semantics=("parallel",)),
    )(skip, up, w9c, bias)


# -- fused last stage: skip-add + dwconv3x3 + residual + 3x3 pred conv (MXU) --------
def add_dwconv_res_pred_kernel(a_ref, b_ref, wdw_ref, bdw_ref, wp_ref, bp_ref,
                               o_ref, spad_ref, ypad_ref):
    _, H, W, C = a_ref.shape
    K = wp_ref.shape[-1]
    # skip + up, halo in VMEM scratch
    s = a_ref[0] + b_ref[0]                       # (H, W, C)
    spad_ref[...] = jnp.zeros_like(spad_ref)
    spad_ref[1:1 + H, 1:1 + W, :] = s
    sp = spad_ref[...]
    # depthwise 3x3 + bias + residual
    wdw = wdw_ref[...]
    y = s + bdw_ref[0]
    for ky in range(3):
        for kx in range(3):
            y = y + sp[ky:ky + H, kx:kx + W, :] * wdw[ky * 3 + kx]
    # 3x3 prediction conv on the MXU: accumulate 9 tap matmuls (H*W,C)@(C,K)
    ypad_ref[...] = jnp.zeros_like(ypad_ref)
    ypad_ref[1:1 + H, 1:1 + W, :] = y
    yp = ypad_ref[...]
    wp = wp_ref[...].astype(jnp.float32)          # (9, C, K)
    acc = jnp.zeros((H * W, K), jnp.float32)
    for ky in range(3):
        for kx in range(3):
            tap = yp[ky:ky + H, kx:kx + W, :].reshape(H * W, C)
            acc = acc + jnp.dot(tap, wp[ky * 3 + kx],
                                preferred_element_type=jnp.float32)
    acc = acc + bp_ref[...]
    # lane-dense store: (K, H*W) with H*W on the lane axis (K=num_classes is tiny)
    o_ref[...] = acc.T[None].astype(o_ref.dtype)


def add_dwconv_residual_pred(skip, up, wdw, bdw, wpred, bpred):
    """Fused: conv_decoder1(skip+up)+(skip+up) followed by linear_pred 3x3 conv.
    Returns NHWC prediction (B, H, W, K)."""
    B, H, W, C = skip.shape
    K = wpred.shape[-1]
    out = pl.pallas_call(
        add_dwconv_res_pred_kernel,
        out_shape=jax.ShapeDtypeStruct((B, K, H * W), jnp.float32),
        grid=(B,),
        in_specs=[
            pl.BlockSpec((1, H, W, C), lambda b: (b, 0, 0, 0)),
            pl.BlockSpec((1, H, W, C), lambda b: (b, 0, 0, 0)),
            pl.BlockSpec((9, C), lambda b: (0, 0)),
            pl.BlockSpec((1, C), lambda b: (0, 0)),
            pl.BlockSpec((9, C, K), lambda b: (0, 0, 0)),
            pl.BlockSpec((1, K), lambda b: (0, 0)),
        ],
        out_specs=pl.BlockSpec((1, K, H * W), lambda b: (b, 0, 0)),
        scratch_shapes=[pltpu.VMEM((H + 2, W + 2, C), jnp.float32),
                        pltpu.VMEM((H + 2, W + 2, C), jnp.float32)],
        compiler_params=pltpu.CompilerParams(dimension_semantics=("parallel",)),
    )(skip, up, wdw, bdw, wpred, bpred)
    # tiny relayout of the (B,K,H*W) logits back to NHWC (K==num_classes is small)
    return jnp.transpose(out.reshape(B, K, H, W), (0, 2, 3, 1))


# ------------------------------ glue (plain JAX) ----------------------------------
def resize_bilinear(x, scale):
    # TODO(synk): matches F.interpolate(mode='bilinear', align_corners=False) for
    # integer factors; kept in XLA rather than fused into the Pallas stages.
    B, H, W, C = x.shape
    return jax.image.resize(x, (B, H * scale, W * scale, C), method="bilinear")


def shformer_best_forward(c1, c2, c3, c4, params):
    _c4 = flat_linear(c4, params["linear_decoder3"])
    _c4 = resize_bilinear(_c4, 2)
    _c3 = add_dwconv_residual(c3, _c4,
                              params["conv_decoder3"]["w"], params["conv_decoder3"]["b"])
    _c3 = flat_linear(_c3, params["linear_decoder2"])
    _c3 = resize_bilinear(_c3, 2)
    _c2 = add_dwconv_residual(c2, _c3,
                              params["conv_decoder2"]["w"], params["conv_decoder2"]["b"])
    _c2 = flat_linear(_c2, params["linear_decoder1"])
    _c2 = resize_bilinear(_c2, 2)
    pred = add_dwconv_residual_pred(
        c1, _c2,
        params["conv_decoder1"]["w"], params["conv_decoder1"]["b"],
        params["linear_pred"]["w"], params["linear_pred"]["b"])
    return resize_bilinear(pred, 4)


# ------------------------------ parameter init ------------------------------------
def init_params(key, embed_dims=(32, 64, 160, 256), num_classes=1):
    keys = jax.random.split(key, 7)

    def lin(k, cin, cout):
        kw, kb = jax.random.split(k)
        return (jax.random.normal(kw, (cin, cout), jnp.float32) / jnp.sqrt(cin),
                jax.random.normal(kb, (1, cout), jnp.float32) * 0.01)

    def flat(k, cin, cout):
        h = cout // 2
        k1, k2 = jax.random.split(k)
        w1, b1 = lin(k1, cin, h)
        w2, b2 = lin(k2, h, cout)
        return {"w1": w1, "b1": b1,
                "g1": jnp.ones((1, h), jnp.float32), "be1": jnp.zeros((1, h), jnp.float32),
                "w2": w2, "b2": b2,
                "g2": jnp.ones((1, cout), jnp.float32), "be2": jnp.zeros((1, cout), jnp.float32)}

    def dw(k, c):
        kw, kb = jax.random.split(k)
        return {"w": jax.random.normal(kw, (9, c), jnp.float32) / 3.0,
                "b": jax.random.normal(kb, (1, c), jnp.float32) * 0.01}

    def conv(k, cin, cout):
        kw, kb = jax.random.split(k)
        return {"w": jax.random.normal(kw, (9, cin, cout), jnp.float32) / jnp.sqrt(9.0 * cin),
                "b": jax.random.normal(kb, (1, cout), jnp.float32) * 0.01}

    e0, e1, e2, e3 = embed_dims
    return {
        "linear_decoder3": flat(keys[0], e3, e2),
        "conv_decoder3": dw(keys[1], e2),
        "linear_decoder2": flat(keys[2], e2, e1),
        "conv_decoder2": dw(keys[3], e1),
        "linear_decoder1": flat(keys[4], e1, e0),
        "conv_decoder1": dw(keys[5], e0),
        "linear_pred": conv(keys[6], e0, num_classes),
    }


if __name__ == "__main__":
    key = jax.random.PRNGKey(0)
    kp, k1, k2, k3, k4 = jax.random.split(key, 5)
    B, Himg, Wimg = 2, 64, 64
    embed_dims = (32, 64, 160, 256)
    # pyramid features at strides 4/8/16/32 (NHWC)
    c1 = jax.random.normal(k1, (B, Himg // 4, Wimg // 4, embed_dims[0]), jnp.float32)
    c2 = jax.random.normal(k2, (B, Himg // 8, Wimg // 8, embed_dims[1]), jnp.float32)
    c3 = jax.random.normal(k3, (B, Himg // 16, Wimg // 16, embed_dims[2]), jnp.float32)
    c4 = jax.random.normal(k4, (B, Himg // 32, Wimg // 32, embed_dims[3]), jnp.float32)
    params = init_params(kp, embed_dims, num_classes=1)

    out = jax.jit(shformer_best_forward)(c1, c2, c3, c4, params)
    out = jax.block_until_ready(out)
    assert out.shape == (B, Himg, Wimg, 1), out.shape
    assert bool(jnp.all(jnp.isfinite(out)))
    print("KERNEL_OK")
</pallas_src>

<mosaic_0001>
module attributes {stable_mosaic.version = 11 : i64} {
  func.func @add_dwconv_res_kernel(%arg0: i32, %arg1: memref<1x4x4x160xf32, #tpu.memory_space<vmem>>, %arg2: memref<1x4x4x160xf32, #tpu.memory_space<vmem>>, %arg3: memref<9x160xf32, #tpu.memory_space<vmem>>, %arg4: memref<1x160xf32, #tpu.memory_space<vmem>>, %arg5: memref<1x4x4x160xf32, #tpu.memory_space<vmem>>, %arg6: memref<6x6x160xf32, #tpu.memory_space<vmem>>) attributes {dimension_semantics = [#tpu.dimension_semantics<parallel>], iteration_bounds = array<i64: 2>, scalar_prefetch = 0 : i64, scratch_operands = 1 : i64, tpu.core_type = #tpu.core_type<tc>, window_params = [{transform_indices = @transform_0, window_bounds = array<i64: 1, 4, 4, 160>}, {transform_indices = @transform_1, window_bounds = array<i64: 1, 4, 4, 160>}, {pipeline_mode = #tpu.pipeline_mode<synchronous>, transform_indices = @transform_2, window_bounds = array<i64: 9, 160>}, {pipeline_mode = #tpu.pipeline_mode<synchronous>, transform_indices = @transform_3, window_bounds = array<i64: 1, 160>}, {transform_indices = @transform_4, window_bounds = array<i64: 1, 4, 4, 160>}]} {
    %c0 = arith.constant 0 : index
    %c0_0 = arith.constant 0 : index
    %c0_1 = arith.constant 0 : index
    %c0_2 = arith.constant 0 : index
    %0 = vector.load %arg1[%c0, %c0_0, %c0_1, %c0_2] : memref<1x4x4x160xf32, #tpu.memory_space<vmem>>, vector<1x4x4x160xf32>
    %1 = vector.shape_cast %0 : vector<1x4x4x160xf32> to vector<4x4x160xf32>
    %c0_3 = arith.constant 0 : index
    %c0_4 = arith.constant 0 : index
    %c0_5 = arith.constant 0 : index
    %c0_6 = arith.constant 0 : index
    %2 = vector.load %arg2[%c0_3, %c0_4, %c0_5, %c0_6] : memref<1x4x4x160xf32, #tpu.memory_space<vmem>>, vector<1x4x4x160xf32>
    %3 = vector.shape_cast %2 : vector<1x4x4x160xf32> to vector<4x4x160xf32>
    %4 = arith.addf %1, %3 : vector<4x4x160xf32>
    %cst = arith.constant 0.000000e+00 : f32
    %5 = vector.broadcast %cst : f32 to vector<6x6x160xf32>
    %c0_7 = arith.constant 0 : index
    %c0_8 = arith.constant 0 : index
    %c0_9 = arith.constant 0 : index
    %6 = vector.load %arg6[%c0_7, %c0_8, %c0_9] : memref<6x6x160xf32, #tpu.memory_space<vmem>>, vector<6x6x160xf32>
    tpu.vector_store %arg6[%c0_7, %c0_8, %c0_9], %5 {strides = array<i32>} : memref<6x6x160xf32, #tpu.memory_space<vmem>>, vector<6x6x160xf32>,
    %c1 = arith.constant 1 : index
    %c1_10 = arith.constant 1 : index
    %c0_11 = arith.constant 0 : index
    %7 = vector.load %arg6[%c1, %c1_10, %c0_11] : memref<6x6x160xf32, #tpu.memory_space<vmem>>, vector<4x4x160xf32>
    tpu.vector_store %arg6[%c1, %c1_10, %c0_11], %4 {strides = array<i32>} : memref<6x6x160xf32, #tpu.memory_space<vmem>>, vector<4x4x160xf32>,
    %c0_12 = arith.constant 0 : index
    %c0_13 = arith.constant 0 : index
    %c0_14 = arith.constant 0 : index
    %8 = vector.load %arg6[%c0_12, %c0_13, %c0_14] : memref<6x6x160xf32, #tpu.memory_space<vmem>>, vector<6x6x160xf32>
    %c0_15 = arith.constant 0 : index
    %c0_16 = arith.constant 0 : index
    %9 = vector.load %arg3[%c0_15, %c0_16] : memref<9x160xf32, #tpu.memory_space<vmem>>, vector<9x160xf32>
    %c0_17 = arith.constant 0 : index
    %c0_18 = arith.constant 0 : index
    %10 = vector.load %arg4[%c0_17, %c0_18] : memref<1x160xf32, #tpu.memory_space<vmem>>, vector<1x160xf32>
    %11 = vector.shape_cast %10 : vector<1x160xf32> to vector<160xf32>
    %12 = vector.shape_cast %11 : vector<160xf32> to vector<1x1x160xf32>
    %13 = vector.broadcast %12 : vector<1x1x160xf32> to vector<4x4x160xf32>
    %14 = arith.addf %4, %13 : vector<4x4x160xf32>
    %15 = vector.extract_strided_slice %8 {offsets = [0, 0, 0], sizes = [4, 4, 160], strides = [1, 1, 1]} : vector<6x6x160xf32> to vector<4x4x160xf32>
    %16 = vector.extract_strided_slice %9 {offsets = [0, 0], sizes = [1, 160], strides = [1, 1]} : vector<9x160xf32> to vector<1x160xf32>
    %17 = vector.shape_cast %16 : vector<1x160xf32> to vector<160xf32>
    %18 = vector.shape_cast %17 : vector<160xf32> to vector<1x1x160xf32>
    %19 = vector.broadcast %18 : vector<1x1x160xf32> to vector<4x4x160xf32>
    %20 = arith.mulf %15, %19 : vector<4x4x160xf32>
    %21 = arith.addf %14, %20 : vector<4x4x160xf32>
    %22 = vector.extract_strided_slice %8 {offsets = [0, 1, 0], sizes = [4, 4, 160], strides = [1, 1, 1]} : vector<6x6x160xf32> to vector<4x4x160xf32>
    %23 = vector.extract_strided_slice %9 {offsets = [1, 0], sizes = [1, 160], strides = [1, 1]} : vector<9x160xf32> to vector<1x160xf32>
    %24 = vector.shape_cast %23 : vector<1x160xf32> to vector<160xf32>
    %25 = vector.shape_cast %24 : vector<160xf32> to vector<1x1x160xf32>
    %26 = vector.broadcast %25 : vector<1x1x160xf32> to vector<4x4x160xf32>
    %27 = arith.mulf %22, %26 : vector<4x4x160xf32>
    %28 = arith.addf %21, %27 : vector<4x4x160xf32>
    %29 = vector.extract_strided_slice %8 {offsets = [0, 2, 0], sizes = [4, 4, 160], strides = [1, 1, 1]} : vector<6x6x160xf32> to vector<4x4x160xf32>
    %30 = vector.extract_strided_slice %9 {offsets = [2, 0], sizes = [1, 160], strides = [1, 1]} : vector<9x160xf32> to vector<1x160xf32>
    %31 = vector.shape_cast %30 : vector<1x160xf32> to vector<160xf32>
    %32 = vector.shape_cast %31 : vector<160xf32> to vector<1x1x160xf32>
    %33 = vector.broadcast %32 : vector<1x1x160xf32> to vector<4x4x160xf32>
    %34 = arith.mulf %29, %33 : vector<4x4x160xf32>
    %35 = arith.addf %28, %34 : vector<4x4x160xf32>
    %36 = vector.extract_strided_slice %8 {offsets = [1, 0, 0], sizes = [4, 4, 160], strides = [1, 1, 1]} : vector<6x6x160xf32> to vector<4x4x160xf32>
    %37 = vector.extract_strided_slice %9 {offsets = [3, 0], sizes = [1, 160], strides = [1, 1]} : vector<9x160xf32> to vector<1x160xf32>
    %38 = vector.shape_cast %37 : vector<1x160xf32> to vector<160xf32>
    %39 = vector.shape_cast %38 : vector<160xf32> to vector<1x1x160xf32>
    %40 = vector.broadcast %39 : vector<1x1x160xf32> to vector<4x4x160xf32>
    %41 = arith.mulf %36, %40 : vector<4x4x160xf32>
    %42 = arith.addf %35, %41 : vector<4x4x160xf32>
    %43 = vector.extract_strided_slice %8 {offsets = [1, 1, 0], sizes = [4, 4, 160], strides = [1, 1, 1]} : vector<6x6x160xf32> to vector<4x4x160xf32>
    %44 = vector.extract_strided_slice %9 {offsets = [4, 0], sizes = [1, 160], strides = [1, 1]} : vector<9x160xf32> to vector<1x160xf32>
    %45 = vector.shape_cast %44 : vector<1x160xf32> to vector<160xf32>
    %46 = vector.shape_cast %45 : vector<160xf32> to vector<1x1x160xf32>
    %47 = vector.broadcast %46 : vector<1x1x160xf32> to vector<4x4x160xf32>
    %48 = arith.mulf %43, %47 : vector<4x4x160xf32>
    %49 = arith.addf %42, %48 : vector<4x4x160xf32>
    %50 = vector.extract_strided_slice %8 {offsets = [1, 2, 0], sizes = [4, 4, 160], strides = [1, 1, 1]} : vector<6x6x160xf32> to vector<4x4x160xf32>
    %51 = vector.extract_strided_slice %9 {offsets = [5, 0], sizes = [1, 160], strides = [1, 1]} : vector<9x160xf32> to vector<1x160xf32>
    %52 = vector.shape_cast %51 : vector<1x160xf32> to vector<160xf32>
    %53 = vector.shape_cast %52 : vector<160xf32> to vector<1x1x160xf32>
    %54 = vector.broadcast %53 : vector<1x1x160xf32> to vector<4x4x160xf32>
    %55 = arith.mulf %50, %54 : vector<4x4x160xf32>
    %56 = arith.addf %49, %55 : vector<4x4x160xf32>
    %57 = vector.extract_strided_slice %8 {offsets = [2, 0, 0], sizes = [4, 4, 160], strides = [1, 1, 1]} : vector<6x6x160xf32> to vector<4x4x160xf32>
    %58 = vector.extract_strided_slice %9 {offsets = [6, 0], sizes = [1, 160], strides = [1, 1]} : vector<9x160xf32> to vector<1x160xf32>
    %59 = vector.shape_cast %58 : vector<1x160xf32> to vector<160xf32>
    %60 = vector.shape_cast %59 : vector<160xf32> to vector<1x1x160xf32>
    %61 = vector.broadcast %60 : vector<1x1x160xf32> to vector<4x4x160xf32>
    %62 = arith.mulf %57, %61 : vector<4x4x160xf32>
    %63 = arith.addf %56, %62 : vector<4x4x160xf32>
    %64 = vector.extract_strided_slice %8 {offsets = [2, 1, 0], sizes = [4, 4, 160], strides = [1, 1, 1]} : vector<6x6x160xf32> to vector<4x4x160xf32>
    %65 = vector.extract_strided_slice %9 {offsets = [7, 0], sizes = [1, 160], strides = [1, 1]} : vector<9x160xf32> to vector<1x160xf32>
    %66 = vector.shape_cast %65 : vector<1x160xf32> to vector<160xf32>
    %67 = vector.shape_cast %66 : vector<160xf32> to vector<1x1x160xf32>
    %68 = vector.broadcast %67 : vector<1x1x160xf32> to vector<4x4x160xf32>
    %69 = arith.mulf %64, %68 : vector<4x4x160xf32>
    %70 = arith.addf %63, %69 : vector<4x4x160xf32>
    %71 = vector.extract_strided_slice %8 {offsets = [2, 2, 0], sizes = [4, 4, 160], strides = [1, 1, 1]} : vector<6x6x160xf32> to vector<4x4x160xf32>
    %72 = vector.extract_strided_slice %9 {offsets = [8, 0], sizes = [1, 160], strides = [1, 1]} : vector<9x160xf32> to vector<1x160xf32>
    %73 = vector.shape_cast %72 : vector<1x160xf32> to vector<160xf32>
    %74 = vector.shape_cast %73 : vector<160xf32> to vector<1x1x160xf32>
    %75 = vector.broadcast %74 : vector<1x1x160xf32> to vector<4x4x160xf32>
    %76 = arith.mulf %71, %75 : vector<4x4x160xf32>
    %77 = arith.addf %70, %76 : vector<4x4x160xf32>
    %78 = vector.shape_cast %77 : vector<4x4x160xf32> to vector<1x4x4x160xf32>
    %c0_19 = arith.constant 0 : index
    %c0_20 = arith.constant 0 : index
    %c0_21 = arith.constant 0 : index
    %c0_22 = arith.constant 0 : index
    %79 = vector.load %arg5[%c0_19, %c0_20, %c0_21, %c0_22] : memref<1x4x4x160xf32, #tpu.memory_space<vmem>>, vector<1x4x4x160xf32>
    tpu.vector_store %arg5[%c0_19, %c0_20, %c0_21, %c0_22], %78 {strides = array<i32>} : memref<1x4x4x160xf32, #tpu.memory_space<vmem>>, vector<1x4x4x160xf32>,
    return
  }
  func.func @transform_0(%arg0: i32) -> (i32, i32, i32, i32) {
    %c0_i32 = arith.constant 0 : i32
    %c0_i32_0 = arith.constant 0 : i32
    %c0_i32_1 = arith.constant 0 : i32
    %c0_i32_2 = arith.constant 0 : i32
    return %arg0, %c0_i32, %c0_i32_0, %c0_i32_1 : i32, i32, i32, i32
  }
  func.func @transform_1(%arg0: i32) -> (i32, i32, i32, i32) {
    %c0_i32 = arith.constant 0 : i32
    %c0_i32_0 = arith.constant 0 : i32
    %c0_i32_1 = arith.constant 0 : i32
    %c0_i32_2 = arith.constant 0 : i32
    return %arg0, %c0_i32, %c0_i32_0, %c0_i32_1 : i32, i32, i32, i32
  }
  func.func @transform_2(%arg0: i32) -> (i32, i32) {
    %c0_i32 = arith.constant 0 : i32
    %c0_i32_0 = arith.constant 0 : i32
    %c0_i32_1 = arith.constant 0 : i32
    return %c0_i32, %c0_i32_0 : i32, i32
  }
  func.func @transform_3(%arg0: i32) -> (i32, i32) {
    %c0_i32 = arith.constant 0 : i32
    %c0_i32_0 = arith.constant 0 : i32
    %c0_i32_1 = arith.constant 0 : i32
    return %c0_i32, %c0_i32_0 : i32, i32
  }
  func.func @transform_4(%arg0: i32) -> (i32, i32, i32, i32) {
    %c0_i32 = arith.constant 0 : i32
    %c0_i32_0 = arith.constant 0 : i32
    %c0_i32_1 = arith.constant 0 : i32
    %c0_i32_2 = arith.constant 0 : i32
    return %arg0, %c0_i32, %c0_i32_0, %c0_i32_1 : i32, i32, i32, i32
  }
}

module attributes {stable_mosaic.version = 11 : i64} {
  func.func @flat_linear_kernel(%arg0: i32, %arg1: memref<8x256xf32, #tpu.memory_space<vmem>>, %arg2: memref<256x80xbf16, #tpu.memory_space<vmem>>, %arg3: memref<1x80xf32, #tpu.memory_space<vmem>>, %arg4: memref<1x80xf32, #tpu.memory_space<vmem>>, %arg5: memref<1x80xf32, #tpu.memory_space<vmem>>, %arg6: memref<80x160xbf16, #tpu.memory_space<vmem>>, %arg7: memref<1x160xf32, #tpu.memory_space<vmem>>, %arg8: memref<1x160xf32, #tpu.memory_space<vmem>>, %arg9: memref<1x160xf32, #tpu.memory_space<vmem>>, %arg10: memref<8x160xf32, #tpu.memory_space<vmem>>) attributes {dimension_semantics = [#tpu.dimension_semantics<parallel>], iteration_bounds = array<i64: 1>, scalar_prefetch = 0 : i64, scratch_operands = 0 : i64, tpu.core_type = #tpu.core_type<tc>, window_params = [{transform_indices = @transform_0, window_bounds = array<i64: 8, 256>}, {pipeline_mode = #tpu.pipeline_mode<synchronous>, transform_indices = @transform_1, window_bounds = array<i64: 256, 80>}, {pipeline_mode = #tpu.pipeline_mode<synchronous>, transform_indices = @transform_2, window_bounds = array<i64: 1, 80>}, {pipeline_mode = #tpu.pipeline_mode<synchronous>, transform_indices = @transform_3, window_bounds = array<i64: 1, 80>}, {pipeline_mode = #tpu.pipeline_mode<synchronous>, transform_indices = @transform_4, window_bounds = array<i64: 1, 80>}, {pipeline_mode = #tpu.pipeline_mode<synchronous>, transform_indices = @transform_5, window_bounds = array<i64: 80, 160>}, {pipeline_mode = #tpu.pipeline_mode<synchronous>, transform_indices = @transform_6, window_bounds = array<i64: 1, 160>}, {pipeline_mode = #tpu.pipeline_mode<synchronous>, transform_indices = @transform_7, window_bounds = array<i64: 1, 160>}, {pipeline_mode = #tpu.pipeline_mode<synchronous>, transform_indices = @transform_8, window_bounds = array<i64: 1, 160>}, {transform_indices = @transform_9, window_bounds = array<i64: 8, 160>}]} {
    %c0 = arith.constant 0 : index
    %c0_0 = arith.constant 0 : index
    %0 = vector.load %arg1[%c0, %c0_0] : memref<8x256xf32, #tpu.memory_space<vmem>>, vector<8x256xf32>
    %1 = arith.truncf %0 : vector<8x256xf32> to vector<8x256xbf16>
    %c0_1 = arith.constant 0 : index
    %c0_2 = arith.constant 0 : index
    %2 = vector.load %arg2[%c0_1, %c0_2] : memref<256x80xbf16, #tpu.memory_space<vmem>>, vector<256x80xbf16>
    %cst = arith.constant dense<0.000000e+00> : vector<8x80xf32>
    %3 = tpu.matmul %1, %2, %cst {dimension_numbers = #tpu.dot_dimension_numbers<[1], [0], [0], [1], [0, 0, 1, 1], [], []>} : vector<8x256xbf16>, vector<256x80xbf16>, vector<8x80xf32> -> vector<8x80xf32>
    %c0_3 = arith.constant 0 : index
    %c0_4 = arith.constant 0 : index
    %4 = vector.load %arg3[%c0_3, %c0_4] : memref<1x80xf32, #tpu.memory_space<vmem>>, vector<1x80xf32>
    %5 = vector.broadcast %4 : vector<1x80xf32> to vector<8x80xf32>
    %6 = arith.addf %3, %5 : vector<8x80xf32>
    %cst_5 = arith.constant dense<0.000000e+00> : vector<8xf32>
    %7 = vector.multi_reduction <add>, %6, %cst_5 [1] : vector<8x80xf32> to vector<8xf32>
    %8 = vector.shape_cast %7 : vector<8xf32> to vector<8x1xf32>
    %cst_6 = arith.constant 8.000000e+01 : f32
    %9 = vector.broadcast %cst_6 : f32 to vector<8x1xf32>
    %10 = arith.divf %8, %9 : vector<8x1xf32>
    %11 = vector.broadcast %10 : vector<8x1xf32> to vector<8x80xf32>
    %12 = arith.subf %6, %11 : vector<8x80xf32>
    %13 = arith.mulf %12, %12 : vector<8x80xf32>
    %cst_7 = arith.constant dense<0.000000e+00> : vector<8xf32>
    %14 = vector.multi_reduction <add>, %13, %cst_7 [1] : vector<8x80xf32> to vector<8xf32>
    %15 = vector.shape_cast %14 : vector<8xf32> to vector<8x1xf32>
    %cst_8 = arith.constant 8.000000e+01 : f32
    %16 = vector.broadcast %cst_8 : f32 to vector<8x1xf32>
    %17 = arith.divf %15, %16 : vector<8x1xf32>
    %18 = vector.broadcast %10 : vector<8x1xf32> to vector<8x80xf32>
    %19 = arith.subf %6, %18 : vector<8x80xf32>
    %cst_9 = arith.constant 9.99999997E-7 : f32
    %20 = vector.broadcast %cst_9 : f32 to vector<8x1xf32>
    %21 = arith.addf %17, %20 : vector<8x1xf32>
    %22 = math.rsqrt %21 : vector<8x1xf32>
    %23 = vector.broadcast %22 : vector<8x1xf32> to vector<8x80xf32>
    %24 = arith.mulf %19, %23 : vector<8x80xf32>
    %c0_10 = arith.constant 0 : index
    %c0_11 = arith.constant 0 : index
    %25 = vector.load %arg4[%c0_10, %c0_11] : memref<1x80xf32, #tpu.memory_space<vmem>>, vector<1x80xf32>
    %26 = vector.broadcast %25 : vector<1x80xf32> to vector<8x80xf32>
    %27 = arith.mulf %24, %26 : vector<8x80xf32>
    %c0_12 = arith.constant 0 : index
    %c0_13 = arith.constant 0 : index
    %28 = vector.load %arg5[%c0_12, %c0_13] : memref<1x80xf32, #tpu.memory_space<vmem>>, vector<1x80xf32>
    %29 = vector.broadcast %28 : vector<1x80xf32> to vector<8x80xf32>
    %30 = arith.addf %27, %29 : vector<8x80xf32>
    %31 = arith.truncf %30 : vector<8x80xf32> to vector<8x80xbf16>
    %c0_14 = arith.constant 0 : index
    %c0_15 = arith.constant 0 : index
    %32 = vector.load %arg6[%c0_14, %c0_15] : memref<80x160xbf16, #tpu.memory_space<vmem>>, vector<80x160xbf16>
    %cst_16 = arith.constant dense<0.000000e+00> : vector<8x160xf32>
    %33 = tpu.matmul %31, %32, %cst_16 {dimension_numbers = #tpu.dot_dimension_numbers<[1], [0], [0], [1], [0, 0, 1, 1], [], []>} : vector<8x80xbf16>, vector<80x160xbf16>, vector<8x160xf32> -> vector<8x160xf32>
    %c0_17 = arith.constant 0 : index
    %c0_18 = arith.constant 0 : index
    %34 = vector.load %arg7[%c0_17, %c0_18] : memref<1x160xf32, #tpu.memory_space<vmem>>, vector<1x160xf32>
    %35 = vector.broadcast %34 : vector<1x160xf32> to vector<8x160xf32>
    %36 = arith.addf %33, %35 : vector<8x160xf32>
    %cst_19 = arith.constant dense<0.000000e+00> : vector<8xf32>
    %37 = vector.multi_reduction <add>, %36, %cst_19 [1] : vector<8x160xf32> to vector<8xf32>
    %38 = vector.shape_cast %37 : vector<8xf32> to vector<8x1xf32>
    %cst_20 = arith.constant 1.600000e+02 : f32
    %39 = vector.broadcast %cst_20 : f32 to vector<8x1xf32>
    %40 = arith.divf %38, %39 : vector<8x1xf32>
    %41 = vector.broadcast %40 : vector<8x1xf32> to vector<8x160xf32>
    %42 = arith.subf %36, %41 : vector<8x160xf32>
    %43 = arith.mulf %42, %42 : vector<8x160xf32>
    %cst_21 = arith.constant dense<0.000000e+00> : vector<8xf32>
    %44 = vector.multi_reduction <add>, %43, %cst_21 [1] : vector<8x160xf32> to vector<8xf32>
    %45 = vector.shape_cast %44 : vector<8xf32> to vector<8x1xf32>
    %cst_22 = arith.constant 1.600000e+02 : f32
    %46 = vector.broadcast %cst_22 : f32 to vector<8x1xf32>
    %47 = arith.divf %45, %46 : vector<8x1xf32>
    %48 = vector.broadcast %40 : vector<8x1xf32> to vector<8x160xf32>
    %49 = arith.subf %36, %48 : vector<8x160xf32>
    %cst_23 = arith.constant 9.99999997E-7 : f32
    %50 = vector.broadcast %cst_23 : f32 to vector<8x1xf32>
    %51 = arith.addf %47, %50 : vector<8x1xf32>
    %52 = math.rsqrt %51 : vector<8x1xf32>
    %53 = vector.broadcast %52 : vector<8x1xf32> to vector<8x160xf32>
    %54 = arith.mulf %49, %53 : vector<8x160xf32>
    %c0_24 = arith.constant 0 : index
    %c0_25 = arith.constant 0 : index
    %55 = vector.load %arg8[%c0_24, %c0_25] : memref<1x160xf32, #tpu.memory_space<vmem>>, vector<1x160xf32>
    %56 = vector.broadcast %55 : vector<1x160xf32> to vector<8x160xf32>
    %57 = arith.mulf %54, %56 : vector<8x160xf32>
    %c0_26 = arith.constant 0 : index
    %c0_27 = arith.constant 0 : index
    %58 = vector.load %arg9[%c0_26, %c0_27] : memref<1x160xf32, #tpu.memory_space<vmem>>, vector<1x160xf32>
    %59 = vector.broadcast %58 : vector<1x160xf32> to vector<8x160xf32>
    %60 = arith.addf %57, %59 : vector<8x160xf32>
    %c0_28 = arith.constant 0 : index
    %c0_29 = arith.constant 0 : index
    %61 = vector.load %arg10[%c0_28, %c0_29] : memref<8x160xf32, #tpu.memory_space<vmem>>, vector<8x160xf32>
    tpu.vector_store %arg10[%c0_28, %c0_29], %60 {strides = array<i32>} : memref<8x160xf32, #tpu.memory_space<vmem>>, vector<8x160xf32>,
    return
  }
  func.func @transform_0(%arg0: i32) -> (i32, i32) {
    %c0_i32 = arith.constant 0 : i32
    %c0_i32_0 = arith.constant 0 : i32
    return %arg0, %c0_i32 : i32, i32
  }
  func.func @transform_1(%arg0: i32) -> (i32, i32) {
    %c0_i32 = arith.constant 0 : i32
    %c0_i32_0 = arith.constant 0 : i32
    %c0_i32_1 = arith.constant 0 : i32
    return %c0_i32, %c0_i32_0 : i32, i32
  }
  func.func @transform_2(%arg0: i32) -> (i32, i32) {
    %c0_i32 = arith.constant 0 : i32
    %c0_i32_0 = arith.constant 0 : i32
    %c0_i32_1 = arith.constant 0 : i32
    return %c0_i32, %c0_i32_0 : i32, i32
  }
  func.func @transform_3(%arg0: i32) -> (i32, i32) {
    %c0_i32 = arith.constant 0 : i32
    %c0_i32_0 = arith.constant 0 : i32
    %c0_i32_1 = arith.constant 0 : i32
    return %c0_i32, %c0_i32_0 : i32, i32
  }
  func.func @transform_4(%arg0: i32) -> (i32, i32) {
    %c0_i32 = arith.constant 0 : i32
    %c0_i32_0 = arith.constant 0 : i32
    %c0_i32_1 = arith.constant 0 : i32
    return %c0_i32, %c0_i32_0 : i32, i32
  }
  func.func @transform_5(%arg0: i32) -> (i32, i32) {
    %c0_i32 = arith.constant 0 : i32
    %c0_i32_0 = arith.constant 0 : i32
    %c0_i32_1 = arith.constant 0 : i32
    return %c0_i32, %c0_i32_0 : i32, i32
  }
  func.func @transform_6(%arg0: i32) -> (i32, i32) {
    %c0_i32 = arith.constant 0 : i32
    %c0_i32_0 = arith.constant 0 : i32
    %c0_i32_1 = arith.constant 0 : i32
    return %c0_i32, %c0_i32_0 : i32, i32
  }
  func.func @transform_7(%arg0: i32) -> (i32, i32) {
    %c0_i32 = arith.constant 0 : i32
    %c0_i32_0 = arith.constant 0 : i32
    %c0_i32_1 = arith.constant 0 : i32
    return %c0_i32, %c0_i32_0 : i32, i32
  }
  func.func @transform_8(%arg0: i32) -> (i32, i32) {
    %c0_i32 = arith.constant 0 : i32
    %c0_i32_0 = arith.constant 0 : i32
    %c0_i32_1 = arith.constant 0 : i32
    return %c0_i32, %c0_i32_0 : i32, i32
  }
  func.func @transform_9(%arg0: i32) -> (i32, i32) {
    %c0_i32 = arith.constant 0 : i32
    %c0_i32_0 = arith.constant 0 : i32
    return %arg0, %c0_i32 : i32, i32
  }
}

module attributes {stable_mosaic.version = 11 : i64} {
  func.func @flat_linear_kernel(%arg0: i32, %arg1: memref<32x160xf32, #tpu.memory_space<vmem>>, %arg2: memref<160x32xbf16, #tpu.memory_space<vmem>>, %arg3: memref<1x32xf32, #tpu.memory_space<vmem>>, %arg4: memref<1x32xf32, #tpu.memory_space<vmem>>, %arg5: memref<1x32xf32, #tpu.memory_space<vmem>>, %arg6: memref<32x64xbf16, #tpu.memory_space<vmem>>, %arg7: memref<1x64xf32, #tpu.memory_space<vmem>>, %arg8: memref<1x64xf32, #tpu.memory_space<vmem>>, %arg9: memref<1x64xf32, #tpu.memory_space<vmem>>, %arg10: memref<32x64xf32, #tpu.memory_space<vmem>>) attributes {dimension_semantics = [#tpu.dimension_semantics<parallel>], iteration_bounds = array<i64: 1>, scalar_prefetch = 0 : i64, scratch_operands = 0 : i64, tpu.core_type = #tpu.core_type<tc>, window_params = [{transform_indices = @transform_0, window_bounds = array<i64: 32, 160>}, {pipeline_mode = #tpu.pipeline_mode<synchronous>, transform_indices = @transform_1, window_bounds = array<i64: 160, 32>}, {pipeline_mode = #tpu.pipeline_mode<synchronous>, transform_indices = @transform_2, window_bounds = array<i64: 1, 32>}, {pipeline_mode = #tpu.pipeline_mode<synchronous>, transform_indices = @transform_3, window_bounds = array<i64: 1, 32>}, {pipeline_mode = #tpu.pipeline_mode<synchronous>, transform_indices = @transform_4, window_bounds = array<i64: 1, 32>}, {pipeline_mode = #tpu.pipeline_mode<synchronous>, transform_indices = @transform_5, window_bounds = array<i64: 32, 64>}, {pipeline_mode = #tpu.pipeline_mode<synchronous>, transform_indices = @transform_6, window_bounds = array<i64: 1, 64>}, {pipeline_mode = #tpu.pipeline_mode<synchronous>, transform_indices = @transform_7, window_bounds = array<i64: 1, 64>}, {pipeline_mode = #tpu.pipeline_mode<synchronous>, transform_indices = @transform_8, window_bounds = array<i64: 1, 64>}, {transform_indices = @transform_9, window_bounds = array<i64: 32, 64>}]} {
    %c0 = arith.constant 0 : index
    %c0_0 = arith.constant 0 : index
    %0 = vector.load %arg1[%c0, %c0_0] : memref<32x160xf32, #tpu.memory_space<vmem>>, vector<32x160xf32>
    %1 = arith.truncf %0 : vector<32x160xf32> to vector<32x160xbf16>
    %c0_1 = arith.constant 0 : index
    %c0_2 = arith.constant 0 : index
    %2 = vector.load %arg2[%c0_1, %c0_2] : memref<160x32xbf16, #tpu.memory_space<vmem>>, vector<160x32xbf16>
    %cst = arith.constant dense<0.000000e+00> : vector<32x32xf32>
    %3 = tpu.matmul %1, %2, %cst {dimension_numbers = #tpu.dot_dimension_numbers<[1], [0], [0], [1], [0, 0, 1, 1], [], []>} : vector<32x160xbf16>, vector<160x32xbf16>, vector<32x32xf32> -> vector<32x32xf32>
    %c0_3 = arith.constant 0 : index
    %c0_4 = arith.constant 0 : index
    %4 = vector.load %arg3[%c0_3, %c0_4] : memref<1x32xf32, #tpu.memory_space<vmem>>, vector<1x32xf32>
    %5 = vector.broadcast %4 : vector<1x32xf32> to vector<32x32xf32>
    %6 = arith.addf %3, %5 : vector<32x32xf32>
    %cst_5 = arith.constant dense<0.000000e+00> : vector<32xf32>
    %7 = vector.multi_reduction <add>, %6, %cst_5 [1] : vector<32x32xf32> to vector<32xf32>
    %8 = vector.shape_cast %7 : vector<32xf32> to vector<32x1xf32>
    %cst_6 = arith.constant 3.200000e+01 : f32
    %9 = vector.broadcast %cst_6 : f32 to vector<32x1xf32>
    %10 = arith.divf %8, %9 : vector<32x1xf32>
    %11 = vector.broadcast %10 : vector<32x1xf32> to vector<32x32xf32>
    %12 = arith.subf %6, %11 : vector<32x32xf32>
    %13 = arith.mulf %12, %12 : vector<32x32xf32>
    %cst_7 = arith.constant dense<0.000000e+00> : vector<32xf32>
    %14 = vector.multi_reduction <add>, %13, %cst_7 [1] : vector<32x32xf32> to vector<32xf32>
    %15 = vector.shape_cast %14 : vector<32xf32> to vector<32x1xf32>
    %cst_8 = arith.constant 3.200000e+01 : f32
    %16 = vector.broadcast %cst_8 : f32 to vector<32x1xf32>
    %17 = arith.divf %15, %16 : vector<32x1xf32>
    %18 = vector.broadcast %10 : vector<32x1xf32> to vector<32x32xf32>
    %19 = arith.subf %6, %18 : vector<32x32xf32>
    %cst_9 = arith.constant 9.99999997E-7 : f32
    %20 = vector.broadcast %cst_9 : f32 to vector<32x1xf32>
    %21 = arith.addf %17, %20 : vector<32x1xf32>
    %22 = math.rsqrt %21 : vector<32x1xf32>
    %23 = vector.broadcast %22 : vector<32x1xf32> to vector<32x32xf32>
    %24 = arith.mulf %19, %23 : vector<32x32xf32>
    %c0_10 = arith.constant 0 : index
    %c0_11 = arith.constant 0 : index
    %25 = vector.load %arg4[%c0_10, %c0_11] : memref<1x32xf32, #tpu.memory_space<vmem>>, vector<1x32xf32>
    %26 = vector.broadcast %25 : vector<1x32xf32> to vector<32x32xf32>
    %27 = arith.mulf %24, %26 : vector<32x32xf32>
    %c0_12 = arith.constant 0 : index
    %c0_13 = arith.constant 0 : index
    %28 = vector.load %arg5[%c0_12, %c0_13] : memref<1x32xf32, #tpu.memory_space<vmem>>, vector<1x32xf32>
    %29 = vector.broadcast %28 : vector<1x32xf32> to vector<32x32xf32>
    %30 = arith.addf %27, %29 : vector<32x32xf32>
    %31 = arith.truncf %30 : vector<32x32xf32> to vector<32x32xbf16>
    %c0_14 = arith.constant 0 : index
    %c0_15 = arith.constant 0 : index
    %32 = vector.load %arg6[%c0_14, %c0_15] : memref<32x64xbf16, #tpu.memory_space<vmem>>, vector<32x64xbf16>
    %cst_16 = arith.constant dense<0.000000e+00> : vector<32x64xf32>
    %33 = tpu.matmul %31, %32, %cst_16 {dimension_numbers = #tpu.dot_dimension_numbers<[1], [0], [0], [1], [0, 0, 1, 1], [], []>} : vector<32x32xbf16>, vector<32x64xbf16>, vector<32x64xf32> -> vector<32x64xf32>
    %c0_17 = arith.constant 0 : index
    %c0_18 = arith.constant 0 : index
    %34 = vector.load %arg7[%c0_17, %c0_18] : memref<1x64xf32, #tpu.memory_space<vmem>>, vector<1x64xf32>
    %35 = vector.broadcast %34 : vector<1x64xf32> to vector<32x64xf32>
    %36 = arith.addf %33, %35 : vector<32x64xf32>
    %cst_19 = arith.constant dense<0.000000e+00> : vector<32xf32>
    %37 = vector.multi_reduction <add>, %36, %cst_19 [1] : vector<32x64xf32> to vector<32xf32>
    %38 = vector.shape_cast %37 : vector<32xf32> to vector<32x1xf32>
    %cst_20 = arith.constant 6.400000e+01 : f32
    %39 = vector.broadcast %cst_20 : f32 to vector<32x1xf32>
    %40 = arith.divf %38, %39 : vector<32x1xf32>
    %41 = vector.broadcast %40 : vector<32x1xf32> to vector<32x64xf32>
    %42 = arith.subf %36, %41 : vector<32x64xf32>
    %43 = arith.mulf %42, %42 : vector<32x64xf32>
    %cst_21 = arith.constant dense<0.000000e+00> : vector<32xf32>
    %44 = vector.multi_reduction <add>, %43, %cst_21 [1] : vector<32x64xf32> to vector<32xf32>
    %45 = vector.shape_cast %44 : vector<32xf32> to vector<32x1xf32>
    %cst_22 = arith.constant 6.400000e+01 : f32
    %46 = vector.broadcast %cst_22 : f32 to vector<32x1xf32>
    %47 = arith.divf %45, %46 : vector<32x1xf32>
    %48 = vector.broadcast %40 : vector<32x1xf32> to vector<32x64xf32>
    %49 = arith.subf %36, %48 : vector<32x64xf32>
    %cst_23 = arith.constant 9.99999997E-7 : f32
    %50 = vector.broadcast %cst_23 : f32 to vector<32x1xf32>
    %51 = arith.addf %47, %50 : vector<32x1xf32>
    %52 = math.rsqrt %51 : vector<32x1xf32>
    %53 = vector.broadcast %52 : vector<32x1xf32> to vector<32x64xf32>
    %54 = arith.mulf %49, %53 : vector<32x64xf32>
    %c0_24 = arith.constant 0 : index
    %c0_25 = arith.constant 0 : index
    %55 = vector.load %arg8[%c0_24, %c0_25] : memref<1x64xf32, #tpu.memory_space<vmem>>, vector<1x64xf32>
    %56 = vector.broadcast %55 : vector<1x64xf32> to vector<32x64xf32>
    %57 = arith.mulf %54, %56 : vector<32x64xf32>
    %c0_26 = arith.constant 0 : index
    %c0_27 = arith.constant 0 : index
    %58 = vector.load %arg9[%c0_26, %c0_27] : memref<1x64xf32, #tpu.memory_space<vmem>>, vector<1x64xf32>
    %59 = vector.broadcast %58 : vector<1x64xf32> to vector<32x64xf32>
    %60 = arith.addf %57, %59 : vector<32x64xf32>
    %c0_28 = arith.constant 0 : index
    %c0_29 = arith.constant 0 : index
    %61 = vector.load %arg10[%c0_28, %c0_29] : memref<32x64xf32, #tpu.memory_space<vmem>>, vector<32x64xf32>
    tpu.vector_store %arg10[%c0_28, %c0_29], %60 {strides = array<i32>} : memref<32x64xf32, #tpu.memory_space<vmem>>, vector<32x64xf32>,
    return
  }
  func.func @transform_0(%arg0: i32) -> (i32, i32) {
    %c0_i32 = arith.constant 0 : i32
    %c0_i32_0 = arith.constant 0 : i32
    return %arg0, %c0_i32 : i32, i32
  }
  func.func @transform_1(%arg0: i32) -> (i32, i32) {
    %c0_i32 = arith.constant 0 : i32
    %c0_i32_0 = arith.constant 0 : i32
    %c0_i32_1 = arith.constant 0 : i32
    return %c0_i32, %c0_i32_0 : i32, i32
  }
  func.func @transform_2(%arg0: i32) -> (i32, i32) {
    %c0_i32 = arith.constant 0 : i32
    %c0_i32_0 = arith.constant 0 : i32
    %c0_i32_1 = arith.constant 0 : i32
    return %c0_i32, %c0_i32_0 : i32, i32
  }
  func.func @transform_3(%arg0: i32) -> (i32, i32) {
    %c0_i32 = arith.constant 0 : i32
    %c0_i32_0 = arith.constant 0 : i32
    %c0_i32_1 = arith.constant 0 : i32
    return %c0_i32, %c0_i32_0 : i32, i32
  }
  func.func @transform_4(%arg0: i32) -> (i32, i32) {
    %c0_i32 = arith.constant 0 : i32
    %c0_i32_0 = arith.constant 0 : i32
    %c0_i32_1 = arith.constant 0 : i32
    return %c0_i32, %c0_i32_0 : i32, i32
  }
  func.func @transform_5(%arg0: i32) -> (i32, i32) {
    %c0_i32 = arith.constant 0 : i32
    %c0_i32_0 = arith.constant 0 : i32
    %c0_i32_1 = arith.constant 0 : i32
    return %c0_i32, %c0_i32_0 : i32, i32
  }
  func.func @transform_6(%arg0: i32) -> (i32, i32) {
    %c0_i32 = arith.constant 0 : i32
    %c0_i32_0 = arith.constant 0 : i32
    %c0_i32_1 = arith.constant 0 : i32
    return %c0_i32, %c0_i32_0 : i32, i32
  }
  func.func @transform_7(%arg0: i32) -> (i32, i32) {
    %c0_i32 = arith.constant 0 : i32
    %c0_i32_0 = arith.constant 0 : i32
    %c0_i32_1 = arith.constant 0 : i32
    return %c0_i32, %c0_i32_0 : i32, i32
  }
  func.func @transform_8(%arg0: i32) -> (i32, i32) {
    %c0_i32 = arith.constant 0 : i32
    %c0_i32_0 = arith.constant 0 : i32
    %c0_i32_1 = arith.constant 0 : i32
    return %c0_i32, %c0_i32_0 : i32, i32
  }
  func.func @transform_9(%arg0: i32) -> (i32, i32) {
    %c0_i32 = arith.constant 0 : i32
    %c0_i32_0 = arith.constant 0 : i32
    return %arg0, %c0_i32 : i32, i32
  }
}

module attributes {stable_mosaic.version = 11 : i64} {
  func.func @add_dwconv_res_kernel(%arg0: i32, %arg1: memref<1x8x8x64xf32, #tpu.memory_space<vmem>>, %arg2: memref<1x8x8x64xf32, #tpu.memory_space<vmem>>, %arg3: memref<9x64xf32, #tpu.memory_space<vmem>>, %arg4: memref<1x64xf32, #tpu.memory_space<vmem>>, %arg5: memref<1x8x8x64xf32, #tpu.memory_space<vmem>>, %arg6: memref<10x10x64xf32, #tpu.memory_space<vmem>>) attributes {dimension_semantics = [#tpu.dimension_semantics<parallel>], iteration_bounds = array<i64: 2>, scalar_prefetch = 0 : i64, scratch_operands = 1 : i64, tpu.core_type = #tpu.core_type<tc>, window_params = [{transform_indices = @transform_0, window_bounds = array<i64: 1, 8, 8, 64>}, {transform_indices = @transform_1, window_bounds = array<i64: 1, 8, 8, 64>}, {pipeline_mode = #tpu.pipeline_mode<synchronous>, transform_indices = @transform_2, window_bounds = array<i64: 9, 64>}, {pipeline_mode = #tpu.pipeline_mode<synchronous>, transform_indices = @transform_3, window_bounds = array<i64: 1, 64>}, {transform_indices = @transform_4, window_bounds = array<i64: 1, 8, 8, 64>}]} {
    %c0 = arith.constant 0 : index
    %c0_0 = arith.constant 0 : index
    %c0_1 = arith.constant 0 : index
    %c0_2 = arith.constant 0 : index
    %0 = vector.load %arg1[%c0, %c0_0, %c0_1, %c0_2] : memref<1x8x8x64xf32, #tpu.memory_space<vmem>>, vector<1x8x8x64xf32>
    %1 = vector.shape_cast %0 : vector<1x8x8x64xf32> to vector<8x8x64xf32>
    %c0_3 = arith.constant 0 : index
    %c0_4 = arith.constant 0 : index
    %c0_5 = arith.constant 0 : index
    %c0_6 = arith.constant 0 : index
    %2 = vector.load %arg2[%c0_3, %c0_4, %c0_5, %c0_6] : memref<1x8x8x64xf32, #tpu.memory_space<vmem>>, vector<1x8x8x64xf32>
    %3 = vector.shape_cast %2 : vector<1x8x8x64xf32> to vector<8x8x64xf32>
    %4 = arith.addf %1, %3 : vector<8x8x64xf32>
    %cst = arith.constant 0.000000e+00 : f32
    %5 = vector.broadcast %cst : f32 to vector<10x10x64xf32>
    %c0_7 = arith.constant 0 : index
    %c0_8 = arith.constant 0 : index
    %c0_9 = arith.constant 0 : index
    %6 = vector.load %arg6[%c0_7, %c0_8, %c0_9] : memref<10x10x64xf32, #tpu.memory_space<vmem>>, vector<10x10x64xf32>
    tpu.vector_store %arg6[%c0_7, %c0_8, %c0_9], %5 {strides = array<i32>} : memref<10x10x64xf32, #tpu.memory_space<vmem>>, vector<10x10x64xf32>,
    %c1 = arith.constant 1 : index
    %c1_10 = arith.constant 1 : index
    %c0_11 = arith.constant 0 : index
    %7 = vector.load %arg6[%c1, %c1_10, %c0_11] : memref<10x10x64xf32, #tpu.memory_space<vmem>>, vector<8x8x64xf32>
    tpu.vector_store %arg6[%c1, %c1_10, %c0_11], %4 {strides = array<i32>} : memref<10x10x64xf32, #tpu.memory_space<vmem>>, vector<8x8x64xf32>,
    %c0_12 = arith.constant 0 : index
    %c0_13 = arith.constant 0 : index
    %c0_14 = arith.constant 0 : index
    %8 = vector.load %arg6[%c0_12, %c0_13, %c0_14] : memref<10x10x64xf32, #tpu.memory_space<vmem>>, vector<10x10x64xf32>
    %c0_15 = arith.constant 0 : index
    %c0_16 = arith.constant 0 : index
    %9 = vector.load %arg3[%c0_15, %c0_16] : memref<9x64xf32, #tpu.memory_space<vmem>>, vector<9x64xf32>
    %c0_17 = arith.constant 0 : index
    %c0_18 = arith.constant 0 : index
    %10 = vector.load %arg4[%c0_17, %c0_18] : memref<1x64xf32, #tpu.memory_space<vmem>>, vector<1x64xf32>
    %11 = vector.shape_cast %10 : vector<1x64xf32> to vector<64xf32>
    %12 = vector.shape_cast %11 : vector<64xf32> to vector<1x1x64xf32>
    %13 = vector.broadcast %12 : vector<1x1x64xf32> to vector<8x8x64xf32>
    %14 = arith.addf %4, %13 : vector<8x8x64xf32>
    %15 = vector.extract_strided_slice %8 {offsets = [0, 0, 0], sizes = [8, 8, 64], strides = [1, 1, 1]} : vector<10x10x64xf32> to vector<8x8x64xf32>
    %16 = vector.extract_strided_slice %9 {offsets = [0, 0], sizes = [1, 64], strides = [1, 1]} : vector<9x64xf32> to vector<1x64xf32>
    %17 = vector.shape_cast %16 : vector<1x64xf32> to vector<64xf32>
    %18 = vector.shape_cast %17 : vector<64xf32> to vector<1x1x64xf32>
    %19 = vector.broadcast %18 : vector<1x1x64xf32> to vector<8x8x64xf32>
    %20 = arith.mulf %15, %19 : vector<8x8x64xf32>
    %21 = arith.addf %14, %20 : vector<8x8x64xf32>
    %22 = vector.extract_strided_slice %8 {offsets = [0, 1, 0], sizes = [8, 8, 64], strides = [1, 1, 1]} : vector<10x10x64xf32> to vector<8x8x64xf32>
    %23 = vector.extract_strided_slice %9 {offsets = [1, 0], sizes = [1, 64], strides = [1, 1]} : vector<9x64xf32> to vector<1x64xf32>
    %24 = vector.shape_cast %23 : vector<1x64xf32> to vector<64xf32>
    %25 = vector.shape_cast %24 : vector<64xf32> to vector<1x1x64xf32>
    %26 = vector.broadcast %25 : vector<1x1x64xf32> to vector<8x8x64xf32>
    %27 = arith.mulf %22, %26 : vector<8x8x64xf32>
    %28 = arith.addf %21, %27 : vector<8x8x64xf32>
    %29 = vector.extract_strided_slice %8 {offsets = [0, 2, 0], sizes = [8, 8, 64], strides = [1, 1, 1]} : vector<10x10x64xf32> to vector<8x8x64xf32>
    %30 = vector.extract_strided_slice %9 {offsets = [2, 0], sizes = [1, 64], strides = [1, 1]} : vector<9x64xf32> to vector<1x64xf32>
    %31 = vector.shape_cast %30 : vector<1x64xf32> to vector<64xf32>
    %32 = vector.shape_cast %31 : vector<64xf32> to vector<1x1x64xf32>
    %33 = vector.broadcast %32 : vector<1x1x64xf32> to vector<8x8x64xf32>
    %34 = arith.mulf %29, %33 : vector<8x8x64xf32>
    %35 = arith.addf %28, %34 : vector<8x8x64xf32>
    %36 = vector.extract_strided_slice %8 {offsets = [1, 0, 0], sizes = [8, 8, 64], strides = [1, 1, 1]} : vector<10x10x64xf32> to vector<8x8x64xf32>
    %37 = vector.extract_strided_slice %9 {offsets = [3, 0], sizes = [1, 64], strides = [1, 1]} : vector<9x64xf32> to vector<1x64xf32>
    %38 = vector.shape_cast %37 : vector<1x64xf32> to vector<64xf32>
    %39 = vector.shape_cast %38 : vector<64xf32> to vector<1x1x64xf32>
    %40 = vector.broadcast %39 : vector<1x1x64xf32> to vector<8x8x64xf32>
    %41 = arith.mulf %36, %40 : vector<8x8x64xf32>
    %42 = arith.addf %35, %41 : vector<8x8x64xf32>
    %43 = vector.extract_strided_slice %8 {offsets = [1, 1, 0], sizes = [8, 8, 64], strides = [1, 1, 1]} : vector<10x10x64xf32> to vector<8x8x64xf32>
    %44 = vector.extract_strided_slice %9 {offsets = [4, 0], sizes = [1, 64], strides = [1, 1]} : vector<9x64xf32> to vector<1x64xf32>
    %45 = vector.shape_cast %44 : vector<1x64xf32> to vector<64xf32>
    %46 = vector.shape_cast %45 : vector<64xf32> to vector<1x1x64xf32>
    %47 = vector.broadcast %46 : vector<1x1x64xf32> to vector<8x8x64xf32>
    %48 = arith.mulf %43, %47 : vector<8x8x64xf32>
    %49 = arith.addf %42, %48 : vector<8x8x64xf32>
    %50 = vector.extract_strided_slice %8 {offsets = [1, 2, 0], sizes = [8, 8, 64], strides = [1, 1, 1]} : vector<10x10x64xf32> to vector<8x8x64xf32>
    %51 = vector.extract_strided_slice %9 {offsets = [5, 0], sizes = [1, 64], strides = [1, 1]} : vector<9x64xf32> to vector<1x64xf32>
    %52 = vector.shape_cast %51 : vector<1x64xf32> to vector<64xf32>
    %53 = vector.shape_cast %52 : vector<64xf32> to vector<1x1x64xf32>
    %54 = vector.broadcast %53 : vector<1x1x64xf32> to vector<8x8x64xf32>
    %55 = arith.mulf %50, %54 : vector<8x8x64xf32>
    %56 = arith.addf %49, %55 : vector<8x8x64xf32>
    %57 = vector.extract_strided_slice %8 {offsets = [2, 0, 0], sizes = [8, 8, 64], strides = [1, 1, 1]} : vector<10x10x64xf32> to vector<8x8x64xf32>
    %58 = vector.extract_strided_slice %9 {offsets = [6, 0], sizes = [1, 64], strides = [1, 1]} : vector<9x64xf32> to vector<1x64xf32>
    %59 = vector.shape_cast %58 : vector<1x64xf32> to vector<64xf32>
    %60 = vector.shape_cast %59 : vector<64xf32> to vector<1x1x64xf32>
    %61 = vector.broadcast %60 : vector<1x1x64xf32> to vector<8x8x64xf32>
    %62 = arith.mulf %57, %61 : vector<8x8x64xf32>
    %63 = arith.addf %56, %62 : vector<8x8x64xf32>
    %64 = vector.extract_strided_slice %8 {offsets = [2, 1, 0], sizes = [8, 8, 64], strides = [1, 1, 1]} : vector<10x10x64xf32> to vector<8x8x64xf32>
    %65 = vector.extract_strided_slice %9 {offsets = [7, 0], sizes = [1, 64], strides = [1, 1]} : vector<9x64xf32> to vector<1x64xf32>
    %66 = vector.shape_cast %65 : vector<1x64xf32> to vector<64xf32>
    %67 = vector.shape_cast %66 : vector<64xf32> to vector<1x1x64xf32>
    %68 = vector.broadcast %67 : vector<1x1x64xf32> to vector<8x8x64xf32>
    %69 = arith.mulf %64, %68 : vector<8x8x64xf32>
    %70 = arith.addf %63, %69 : vector<8x8x64xf32>
    %71 = vector.extract_strided_slice %8 {offsets = [2, 2, 0], sizes = [8, 8, 64], strides = [1, 1, 1]} : vector<10x10x64xf32> to vector<8x8x64xf32>
    %72 = vector.extract_strided_slice %9 {offsets = [8, 0], sizes = [1, 64], strides = [1, 1]} : vector<9x64xf32> to vector<1x64xf32>
    %73 = vector.shape_cast %72 : vector<1x64xf32> to vector<64xf32>
    %74 = vector.shape_cast %73 : vector<64xf32> to vector<1x1x64xf32>
    %75 = vector.broadcast %74 : vector<1x1x64xf32> to vector<8x8x64xf32>
    %76 = arith.mulf %71, %75 : vector<8x8x64xf32>
    %77 = arith.addf %70, %76 : vector<8x8x64xf32>
    %78 = vector.shape_cast %77 : vector<8x8x64xf32> to vector<1x8x8x64xf32>
    %c0_19 = arith.constant 0 : index
    %c0_20 = arith.constant 0 : index
    %c0_21 = arith.constant 0 : index
    %c0_22 = arith.constant 0 : index
    %79 = vector.load %arg5[%c0_19, %c0_20, %c0_21, %c0_22] : memref<1x8x8x64xf32, #tpu.memory_space<vmem>>, vector<1x8x8x64xf32>
    tpu.vector_store %arg5[%c0_19, %c0_20, %c0_21, %c0_22], %78 {strides = array<i32>} : memref<1x8x8x64xf32, #tpu.memory_space<vmem>>, vector<1x8x8x64xf32>,
    return
  }
  func.func @transform_0(%arg0: i32) -> (i32, i32, i32, i32) {
    %c0_i32 = arith.constant 0 : i32
    %c0_i32_0 = arith.constant 0 : i32
    %c0_i32_1 = arith.constant 0 : i32
    %c0_i32_2 = arith.constant 0 : i32
    return %arg0, %c0_i32, %c0_i32_0, %c0_i32_1 : i32, i32, i32, i32
  }
  func.func @transform_1(%arg0: i32) -> (i32, i32, i32, i32) {
    %c0_i32 = arith.constant 0 : i32
    %c0_i32_0 = arith.constant 0 : i32
    %c0_i32_1 = arith.constant 0 : i32
    %c0_i32_2 = arith.constant 0 : i32
    return %arg0, %c0_i32, %c0_i32_0, %c0_i32_1 : i32, i32, i32, i32
  }
  func.func @transform_2(%arg0: i32) -> (i32, i32) {
    %c0_i32 = arith.constant 0 : i32
    %c0_i32_0 = arith.constant 0 : i32
    %c0_i32_1 = arith.constant 0 : i32
    return %c0_i32, %c0_i32_0 : i32, i32
  }
  func.func @transform_3(%arg0: i32) -> (i32, i32) {
    %c0_i32 = arith.constant 0 : i32
    %c0_i32_0 = arith.constant 0 : i32
    %c0_i32_1 = arith.constant 0 : i32
    return %c0_i32, %c0_i32_0 : i32, i32
  }
  func.func @transform_4(%arg0: i32) -> (i32, i32, i32, i32) {
    %c0_i32 = arith.constant 0 : i32
    %c0_i32_0 = arith.constant 0 : i32
    %c0_i32_1 = arith.constant 0 : i32
    %c0_i32_2 = arith.constant 0 : i32
    return %arg0, %c0_i32, %c0_i32_0, %c0_i32_1 : i32, i32, i32, i32
  }
}

module attributes {stable_mosaic.version = 11 : i64} {
  func.func @flat_linear_kernel(%arg0: i32, %arg1: memref<128x64xf32, #tpu.memory_space<vmem>>, %arg2: memref<64x16xbf16, #tpu.memory_space<vmem>>, %arg3: memref<1x16xf32, #tpu.memory_space<vmem>>, %arg4: memref<1x16xf32, #tpu.memory_space<vmem>>, %arg5: memref<1x16xf32, #tpu.memory_space<vmem>>, %arg6: memref<16x32xbf16, #tpu.memory_space<vmem>>, %arg7: memref<1x32xf32, #tpu.memory_space<vmem>>, %arg8: memref<1x32xf32, #tpu.memory_space<vmem>>, %arg9: memref<1x32xf32, #tpu.memory_space<vmem>>, %arg10: memref<128x32xf32, #tpu.memory_space<vmem>>) attributes {dimension_semantics = [#tpu.dimension_semantics<parallel>], iteration_bounds = array<i64: 1>, scalar_prefetch = 0 : i64, scratch_operands = 0 : i64, tpu.core_type = #tpu.core_type<tc>, window_params = [{transform_indices = @transform_0, window_bounds = array<i64: 128, 64>}, {pipeline_mode = #tpu.pipeline_mode<synchronous>, transform_indices = @transform_1, window_bounds = array<i64: 64, 16>}, {pipeline_mode = #tpu.pipeline_mode<synchronous>, transform_indices = @transform_2, window_bounds = array<i64: 1, 16>}, {pipeline_mode = #tpu.pipeline_mode<synchronous>, transform_indices = @transform_3, window_bounds = array<i64: 1, 16>}, {pipeline_mode = #tpu.pipeline_mode<synchronous>, transform_indices = @transform_4, window_bounds = array<i64: 1, 16>}, {pipeline_mode = #tpu.pipeline_mode<synchronous>, transform_indices = @transform_5, window_bounds = array<i64: 16, 32>}, {pipeline_mode = #tpu.pipeline_mode<synchronous>, transform_indices = @transform_6, window_bounds = array<i64: 1, 32>}, {pipeline_mode = #tpu.pipeline_mode<synchronous>, transform_indices = @transform_7, window_bounds = array<i64: 1, 32>}, {pipeline_mode = #tpu.pipeline_mode<synchronous>, transform_indices = @transform_8, window_bounds = array<i64: 1, 32>}, {transform_indices = @transform_9, window_bounds = array<i64: 128, 32>}]} {
    %c0 = arith.constant 0 : index
    %c0_0 = arith.constant 0 : index
    %0 = vector.load %arg1[%c0, %c0_0] : memref<128x64xf32, #tpu.memory_space<vmem>>, vector<128x64xf32>
    %1 = arith.truncf %0 : vector<128x64xf32> to vector<128x64xbf16>
    %c0_1 = arith.constant 0 : index
    %c0_2 = arith.constant 0 : index
    %2 = vector.load %arg2[%c0_1, %c0_2] : memref<64x16xbf16, #tpu.memory_space<vmem>>, vector<64x16xbf16>
    %cst = arith.constant dense<0.000000e+00> : vector<128x16xf32>
    %3 = tpu.matmul %1, %2, %cst {dimension_numbers = #tpu.dot_dimension_numbers<[1], [0], [0], [1], [0, 0, 1, 1], [], []>} : vector<128x64xbf16>, vector<64x16xbf16>, vector<128x16xf32> -> vector<128x16xf32>
    %c0_3 = arith.constant 0 : index
    %c0_4 = arith.constant 0 : index
    %4 = vector.load %arg3[%c0_3, %c0_4] : memref<1x16xf32, #tpu.memory_space<vmem>>, vector<1x16xf32>
    %5 = vector.broadcast %4 : vector<1x16xf32> to vector<128x16xf32>
    %6 = arith.addf %3, %5 : vector<128x16xf32>
    %cst_5 = arith.constant dense<0.000000e+00> : vector<128xf32>
    %7 = vector.multi_reduction <add>, %6, %cst_5 [1] : vector<128x16xf32> to vector<128xf32>
    %8 = vector.shape_cast %7 : vector<128xf32> to vector<128x1xf32>
    %cst_6 = arith.constant 1.600000e+01 : f32
    %9 = vector.broadcast %cst_6 : f32 to vector<128x1xf32>
    %10 = arith.divf %8, %9 : vector<128x1xf32>
    %11 = vector.broadcast %10 : vector<128x1xf32> to vector<128x16xf32>
    %12 = arith.subf %6, %11 : vector<128x16xf32>
    %13 = arith.mulf %12, %12 : vector<128x16xf32>
    %cst_7 = arith.constant dense<0.000000e+00> : vector<128xf32>
    %14 = vector.multi_reduction <add>, %13, %cst_7 [1] : vector<128x16xf32> to vector<128xf32>
    %15 = vector.shape_cast %14 : vector<128xf32> to vector<128x1xf32>
    %cst_8 = arith.constant 1.600000e+01 : f32
    %16 = vector.broadcast %cst_8 : f32 to vector<128x1xf32>
    %17 = arith.divf %15, %16 : vector<128x1xf32>
    %18 = vector.broadcast %10 : vector<128x1xf32> to vector<128x16xf32>
    %19 = arith.subf %6, %18 : vector<128x16xf32>
    %cst_9 = arith.constant 9.99999997E-7 : f32
    %20 = vector.broadcast %cst_9 : f32 to vector<128x1xf32>
    %21 = arith.addf %17, %20 : vector<128x1xf32>
    %22 = math.rsqrt %21 : vector<128x1xf32>
    %23 = vector.broadcast %22 : vector<128x1xf32> to vector<128x16xf32>
    %24 = arith.mulf %19, %23 : vector<128x16xf32>
    %c0_10 = arith.constant 0 : index
    %c0_11 = arith.constant 0 : index
    %25 = vector.load %arg4[%c0_10, %c0_11] : memref<1x16xf32, #tpu.memory_space<vmem>>, vector<1x16xf32>
    %26 = vector.broadcast %25 : vector<1x16xf32> to vector<128x16xf32>
    %27 = arith.mulf %24, %26 : vector<128x16xf32>
    %c0_12 = arith.constant 0 : index
    %c0_13 = arith.constant 0 : index
    %28 = vector.load %arg5[%c0_12, %c0_13] : memref<1x16xf32, #tpu.memory_space<vmem>>, vector<1x16xf32>
    %29 = vector.broadcast %28 : vector<1x16xf32> to vector<128x16xf32>
    %30 = arith.addf %27, %29 : vector<128x16xf32>
    %31 = arith.truncf %30 : vector<128x16xf32> to vector<128x16xbf16>
    %c0_14 = arith.constant 0 : index
    %c0_15 = arith.constant 0 : index
    %32 = vector.load %arg6[%c0_14, %c0_15] : memref<16x32xbf16, #tpu.memory_space<vmem>>, vector<16x32xbf16>
    %cst_16 = arith.constant dense<0.000000e+00> : vector<128x32xf32>
    %33 = tpu.matmul %31, %32, %cst_16 {dimension_numbers = #tpu.dot_dimension_numbers<[1], [0], [0], [1], [0, 0, 1, 1], [], []>} : vector<128x16xbf16>, vector<16x32xbf16>, vector<128x32xf32> -> vector<128x32xf32>
    %c0_17 = arith.constant 0 : index
    %c0_18 = arith.constant 0 : index
    %34 = vector.load %arg7[%c0_17, %c0_18] : memref<1x32xf32, #tpu.memory_space<vmem>>, vector<1x32xf32>
    %35 = vector.broadcast %34 : vector<1x32xf32> to vector<128x32xf32>
    %36 = arith.addf %33, %35 : vector<128x32xf32>
    %cst_19 = arith.constant dense<0.000000e+00> : vector<128xf32>
    %37 = vector.multi_reduction <add>, %36, %cst_19 [1] : vector<128x32xf32> to vector<128xf32>
    %38 = vector.shape_cast %37 : vector<128xf32> to vector<128x1xf32>
    %cst_20 = arith.constant 3.200000e+01 : f32
    %39 = vector.broadcast %cst_20 : f32 to vector<128x1xf32>
    %40 = arith.divf %38, %39 : vector<128x1xf32>
    %41 = vector.broadcast %40 : vector<128x1xf32> to vector<128x32xf32>
    %42 = arith.subf %36, %41 : vector<128x32xf32>
    %43 = arith.mulf %42, %42 : vector<128x32xf32>
    %cst_21 = arith.constant dense<0.000000e+00> : vector<128xf32>
    %44 = vector.multi_reduction <add>, %43, %cst_21 [1] : vector<128x32xf32> to vector<128xf32>
    %45 = vector.shape_cast %44 : vector<128xf32> to vector<128x1xf32>
    %cst_22 = arith.constant 3.200000e+01 : f32
    %46 = vector.broadcast %cst_22 : f32 to vector<128x1xf32>
    %47 = arith.divf %45, %46 : vector<128x1xf32>
    %48 = vector.broadcast %40 : vector<128x1xf32> to vector<128x32xf32>
    %49 = arith.subf %36, %48 : vector<128x32xf32>
    %cst_23 = arith.constant 9.99999997E-7 : f32
    %50 = vector.broadcast %cst_23 : f32 to vector<128x1xf32>
    %51 = arith.addf %47, %50 : vector<128x1xf32>
    %52 = math.rsqrt %51 : vector<128x1xf32>
    %53 = vector.broadcast %52 : vector<128x1xf32> to vector<128x32xf32>
    %54 = arith.mulf %49, %53 : vector<128x32xf32>
    %c0_24 = arith.constant 0 : index
    %c0_25 = arith.constant 0 : index
    %55 = vector.load %arg8[%c0_24, %c0_25] : memref<1x32xf32, #tpu.memory_space<vmem>>, vector<1x32xf32>
    %56 = vector.broadcast %55 : vector<1x32xf32> to vector<128x32xf32>
    %57 = arith.mulf %54, %56 : vector<128x32xf32>
    %c0_26 = arith.constant 0 : index
    %c0_27 = arith.constant 0 : index
    %58 = vector.load %arg9[%c0_26, %c0_27] : memref<1x32xf32, #tpu.memory_space<vmem>>, vector<1x32xf32>
    %59 = vector.broadcast %58 : vector<1x32xf32> to vector<128x32xf32>
    %60 = arith.addf %57, %59 : vector<128x32xf32>
    %c0_28 = arith.constant 0 : index
    %c0_29 = arith.constant 0 : index
    %61 = vector.load %arg10[%c0_28, %c0_29] : memref<128x32xf32, #tpu.memory_space<vmem>>, vector<128x32xf32>
    tpu.vector_store %arg10[%c0_28, %c0_29], %60 {strides = array<i32>} : memref<128x32xf32, #tpu.memory_space<vmem>>, vector<128x32xf32>,
    return
  }
  func.func @transform_0(%arg0: i32) -> (i32, i32) {
    %c0_i32 = arith.constant 0 : i32
    %c0_i32_0 = arith.constant 0 : i32
    return %arg0, %c0_i32 : i32, i32
  }
  func.func @transform_1(%arg0: i32) -> (i32, i32) {
    %c0_i32 = arith.constant 0 : i32
    %c0_i32_0 = arith.constant 0 : i32
    %c0_i32_1 = arith.constant 0 : i32
    return %c0_i32, %c0_i32_0 : i32, i32
  }
  func.func @transform_2(%arg0: i32) -> (i32, i32) {
    %c0_i32 = arith.constant 0 : i32
    %c0_i32_0 = arith.constant 0 : i32
    %c0_i32_1 = arith.constant 0 : i32
    return %c0_i32, %c0_i32_0 : i32, i32
  }
  func.func @transform_3(%arg0: i32) -> (i32, i32) {
    %c0_i32 = arith.constant 0 : i32
    %c0_i32_0 = arith.constant 0 : i32
    %c0_i32_1 = arith.constant 0 : i32
    return %c0_i32, %c0_i32_0 : i32, i32
  }
  func.func @transform_4(%arg0: i32) -> (i32, i32) {
    %c0_i32 = arith.constant 0 : i32
    %c0_i32_0 = arith.constant 0 : i32
    %c0_i32_1 = arith.constant 0 : i32
    return %c0_i32, %c0_i32_0 : i32, i32
  }
  func.func @transform_5(%arg0: i32) -> (i32, i32) {
    %c0_i32 = arith.constant 0 : i32
    %c0_i32_0 = arith.constant 0 : i32
    %c0_i32_1 = arith.constant 0 : i32
    return %c0_i32, %c0_i32_0 : i32, i32
  }
  func.func @transform_6(%arg0: i32) -> (i32, i32) {
    %c0_i32 = arith.constant 0 : i32
    %c0_i32_0 = arith.constant 0 : i32
    %c0_i32_1 = arith.constant 0 : i32
    return %c0_i32, %c0_i32_0 : i32, i32
  }
  func.func @transform_7(%arg0: i32) -> (i32, i32) {
    %c0_i32 = arith.constant 0 : i32
    %c0_i32_0 = arith.constant 0 : i32
    %c0_i32_1 = arith.constant 0 : i32
    return %c0_i32, %c0_i32_0 : i32, i32
  }
  func.func @transform_8(%arg0: i32) -> (i32, i32) {
    %c0_i32 = arith.constant 0 : i32
    %c0_i32_0 = arith.constant 0 : i32
    %c0_i32_1 = arith.constant 0 : i32
    return %c0_i32, %c0_i32_0 : i32, i32
  }
  func.func @transform_9(%arg0: i32) -> (i32, i32) {
    %c0_i32 = arith.constant 0 : i32
    %c0_i32_0 = arith.constant 0 : i32
    return %arg0, %c0_i32 : i32, i32
  }
}

module attributes {stable_mosaic.version = 11 : i64} {
  func.func @add_dwconv_res_pred_kernel(%arg0: i32, %arg1: memref<1x16x16x32xf32, #tpu.memory_space<vmem>>, %arg2: memref<1x16x16x32xf32, #tpu.memory_space<vmem>>, %arg3: memref<9x32xf32, #tpu.memory_space<vmem>>, %arg4: memref<1x32xf32, #tpu.memory_space<vmem>>, %arg5: memref<9x32x1xf32, #tpu.memory_space<vmem>>, %arg6: memref<1x1xf32, #tpu.memory_space<vmem>>, %arg7: memref<1x1x256xf32, #tpu.memory_space<vmem>>, %arg8: memref<18x18x32xf32, #tpu.memory_space<vmem>>, %arg9: memref<18x18x32xf32, #tpu.memory_space<vmem>>) attributes {dimension_semantics = [#tpu.dimension_semantics<parallel>], iteration_bounds = array<i64: 2>, scalar_prefetch = 0 : i64, scratch_operands = 2 : i64, tpu.core_type = #tpu.core_type<tc>, window_params = [{transform_indices = @transform_0, window_bounds = array<i64: 1, 16, 16, 32>}, {transform_indices = @transform_1, window_bounds = array<i64: 1, 16, 16, 32>}, {pipeline_mode = #tpu.pipeline_mode<synchronous>, transform_indices = @transform_2, window_bounds = array<i64: 9, 32>}, {pipeline_mode = #tpu.pipeline_mode<synchronous>, transform_indices = @transform_3, window_bounds = array<i64: 1, 32>}, {pipeline_mode = #tpu.pipeline_mode<synchronous>, transform_indices = @transform_4, window_bounds = array<i64: 9, 32, 1>}, {pipeline_mode = #tpu.pipeline_mode<synchronous>, transform_indices = @transform_5, window_bounds = array<i64: 1, 1>}, {transform_indices = @transform_6, window_bounds = array<i64: 1, 1, 256>}]} {
    %c0 = arith.constant 0 : index
    %c0_0 = arith.constant 0 : index
    %c0_1 = arith.constant 0 : index
    %c0_2 = arith.constant 0 : index
    %0 = vector.load %arg1[%c0, %c0_0, %c0_1, %c0_2] : memref<1x16x16x32xf32, #tpu.memory_space<vmem>>, vector<1x16x16x32xf32>
    %1 = vector.shape_cast %0 : vector<1x16x16x32xf32> to vector<16x16x32xf32>
    %c0_3 = arith.constant 0 : index
    %c0_4 = arith.constant 0 : index
    %c0_5 = arith.constant 0 : index
    %c0_6 = arith.constant 0 : index
    %2 = vector.load %arg2[%c0_3, %c0_4, %c0_5, %c0_6] : memref<1x16x16x32xf32, #tpu.memory_space<vmem>>, vector<1x16x16x32xf32>
    %3 = vector.shape_cast %2 : vector<1x16x16x32xf32> to vector<16x16x32xf32>
    %4 = arith.addf %1, %3 : vector<16x16x32xf32>
    %cst = arith.constant 0.000000e+00 : f32
    %5 = vector.broadcast %cst : f32 to vector<18x18x32xf32>
    %c0_7 = arith.constant 0 : index
    %c0_8 = arith.constant 0 : index
    %c0_9 = arith.constant 0 : index
    %6 = vector.load %arg8[%c0_7, %c0_8, %c0_9] : memref<18x18x32xf32, #tpu.memory_space<vmem>>, vector<18x18x32xf32>
    tpu.vector_store %arg8[%c0_7, %c0_8, %c0_9], %5 {strides = array<i32>} : memref<18x18x32xf32, #tpu.memory_space<vmem>>, vector<18x18x32xf32>,
    %c1 = arith.constant 1 : index
    %c1_10 = arith.constant 1 : index
    %c0_11 = arith.constant 0 : index
    %7 = vector.load %arg8[%c1, %c1_10, %c0_11] : memref<18x18x32xf32, #tpu.memory_space<vmem>>, vector<16x16x32xf32>
    tpu.vector_store %arg8[%c1, %c1_10, %c0_11], %4 {strides = array<i32>} : memref<18x18x32xf32, #tpu.memory_space<vmem>>, vector<16x16x32xf32>,
    %c0_12 = arith.constant 0 : index
    %c0_13 = arith.constant 0 : index
    %c0_14 = arith.constant 0 : index
    %8 = vector.load %arg8[%c0_12, %c0_13, %c0_14] : memref<18x18x32xf32, #tpu.memory_space<vmem>>, vector<18x18x32xf32>
    %c0_15 = arith.constant 0 : index
    %c0_16 = arith.constant 0 : index
    %9 = vector.load %arg3[%c0_15, %c0_16] : memref<9x32xf32, #tpu.memory_space<vmem>>, vector<9x32xf32>
    %c0_17 = arith.constant 0 : index
    %c0_18 = arith.constant 0 : index
    %10 = vector.load %arg4[%c0_17, %c0_18] : memref<1x32xf32, #tpu.memory_space<vmem>>, vector<1x32xf32>
    %11 = vector.shape_cast %10 : vector<1x32xf32> to vector<32xf32>
    %12 = vector.shape_cast %11 : vector<32xf32> to vector<1x1x32xf32>
    %13 = vector.broadcast %12 : vector<1x1x32xf32> to vector<16x16x32xf32>
    %14 = arith.addf %4, %13 : vector<16x16x32xf32>
    %15 = vector.extract_strided_slice %8 {offsets = [0, 0, 0], sizes = [16, 16, 32], strides = [1, 1, 1]} : vector<18x18x32xf32> to vector<16x16x32xf32>
    %16 = vector.extract_strided_slice %9 {offsets = [0, 0], sizes = [1, 32], strides = [1, 1]} : vector<9x32xf32> to vector<1x32xf32>
    %17 = vector.shape_cast %16 : vector<1x32xf32> to vector<32xf32>
    %18 = vector.shape_cast %17 : vector<32xf32> to vector<1x1x32xf32>
    %19 = vector.broadcast %18 : vector<1x1x32xf32> to vector<16x16x32xf32>
    %20 = arith.mulf %15, %19 : vector<16x16x32xf32>
    %21 = arith.addf %14, %20 : vector<16x16x32xf32>
    %22 = vector.extract_strided_slice %8 {offsets = [0, 1, 0], sizes = [16, 16, 32], strides = [1, 1, 1]} : vector<18x18x32xf32> to vector<16x16x32xf32>
    %23 = vector.extract_strided_slice %9 {offsets = [1, 0], sizes = [1, 32], strides = [1, 1]} : vector<9x32xf32> to vector<1x32xf32>
    %24 = vector.shape_cast %23 : vector<1x32xf32> to vector<32xf32>
    %25 = vector.shape_cast %24 : vector<32xf32> to vector<1x1x32xf32>
    %26 = vector.broadcast %25 : vector<1x1x32xf32> to vector<16x16x32xf32>
    %27 = arith.mulf %22, %26 : vector<16x16x32xf32>
    %28 = arith.addf %21, %27 : vector<16x16x32xf32>
    %29 = vector.extract_strided_slice %8 {offsets = [0, 2, 0], sizes = [16, 16, 32], strides = [1, 1, 1]} : vector<18x18x32xf32> to vector<16x16x32xf32>
    %30 = vector.extract_strided_slice %9 {offsets = [2, 0], sizes = [1, 32], strides = [1, 1]} : vector<9x32xf32> to vector<1x32xf32>
    %31 = vector.shape_cast %30 : vector<1x32xf32> to vector<32xf32>
    %32 = vector.shape_cast %31 : vector<32xf32> to vector<1x1x32xf32>
    %33 = vector.broadcast %32 : vector<1x1x32xf32> to vector<16x16x32xf32>
    %34 = arith.mulf %29, %33 : vector<16x16x32xf32>
    %35 = arith.addf %28, %34 : vector<16x16x32xf32>
    %36 = vector.extract_strided_slice %8 {offsets = [1, 0, 0], sizes = [16, 16, 32], strides = [1, 1, 1]} : vector<18x18x32xf32> to vector<16x16x32xf32>
    %37 = vector.extract_strided_slice %9 {offsets = [3, 0], sizes = [1, 32], strides = [1, 1]} : vector<9x32xf32> to vector<1x32xf32>
    %38 = vector.shape_cast %37 : vector<1x32xf32> to vector<32xf32>
    %39 = vector.shape_cast %38 : vector<32xf32> to vector<1x1x32xf32>
    %40 = vector.broadcast %39 : vector<1x1x32xf32> to vector<16x16x32xf32>
    %41 = arith.mulf %36, %40 : vector<16x16x32xf32>
    %42 = arith.addf %35, %41 : vector<16x16x32xf32>
    %43 = vector.extract_strided_slice %8 {offsets = [1, 1, 0], sizes = [16, 16, 32], strides = [1, 1, 1]} : vector<18x18x32xf32> to vector<16x16x32xf32>
    %44 = vector.extract_strided_slice %9 {offsets = [4, 0], sizes = [1, 32], strides = [1, 1]} : vector<9x32xf32> to vector<1x32xf32>
    %45 = vector.shape_cast %44 : vector<1x32xf32> to vector<32xf32>
    %46 = vector.shape_cast %45 : vector<32xf32> to vector<1x1x32xf32>
    %47 = vector.broadcast %46 : vector<1x1x32xf32> to vector<16x16x32xf32>
    %48 = arith.mulf %43, %47 : vector<16x16x32xf32>
    %49 = arith.addf %42, %48 : vector<16x16x32xf32>
    %50 = vector.extract_strided_slice %8 {offsets = [1, 2, 0], sizes = [16, 16, 32], strides = [1, 1, 1]} : vector<18x18x32xf32> to vector<16x16x32xf32>
    %51 = vector.extract_strided_slice %9 {offsets = [5, 0], sizes = [1, 32], strides = [1, 1]} : vector<9x32xf32> to vector<1x32xf32>
    %52 = vector.shape_cast %51 : vector<1x32xf32> to vector<32xf32>
    %53 = vector.shape_cast %52 : vector<32xf32> to vector<1x1x32xf32>
    %54 = vector.broadcast %53 : vector<1x1x32xf32> to vector<16x16x32xf32>
    %55 = arith.mulf %50, %54 : vector<16x16x32xf32>
    %56 = arith.addf %49, %55 : vector<16x16x32xf32>
    %57 = vector.extract_strided_slice %8 {offsets = [2, 0, 0], sizes = [16, 16, 32], strides = [1, 1, 1]} : vector<18x18x32xf32> to vector<16x16x32xf32>
    %58 = vector.extract_strided_slice %9 {offsets = [6, 0], sizes = [1, 32], strides = [1, 1]} : vector<9x32xf32> to vector<1x32xf32>
    %59 = vector.shape_cast %58 : vector<1x32xf32> to vector<32xf32>
    %60 = vector.shape_cast %59 : vector<32xf32> to vector<1x1x32xf32>
    %61 = vector.broadcast %60 : vector<1x1x32xf32> to vector<16x16x32xf32>
    %62 = arith.mulf %57, %61 : vector<16x16x32xf32>
    %63 = arith.addf %56, %62 : vector<16x16x32xf32>
    %64 = vector.extract_strided_slice %8 {offsets = [2, 1, 0], sizes = [16, 16, 32], strides = [1, 1, 1]} : vector<18x18x32xf32> to vector<16x16x32xf32>
    %65 = vector.extract_strided_slice %9 {offsets = [7, 0], sizes = [1, 32], strides = [1, 1]} : vector<9x32xf32> to vector<1x32xf32>
    %66 = vector.shape_cast %65 : vector<1x32xf32> to vector<32xf32>
    %67 = vector.shape_cast %66 : vector<32xf32> to vector<1x1x32xf32>
    %68 = vector.broadcast %67 : vector<1x1x32xf32> to vector<16x16x32xf32>
    %69 = arith.mulf %64, %68 : vector<16x16x32xf32>
    %70 = arith.addf %63, %69 : vector<16x16x32xf32>
    %71 = vector.extract_strided_slice %8 {offsets = [2, 2, 0], sizes = [16, 16, 32], strides = [1, 1, 1]} : vector<18x18x32xf32> to vector<16x16x32xf32>
    %72 = vector.extract_strided_slice %9 {offsets = [8, 0], sizes = [1, 32], strides = [1, 1]} : vector<9x32xf32> to vector<1x32xf32>
    %73 = vector.shape_cast %72 : vector<1x32xf32> to vector<32xf32>
    %74 = vector.shape_cast %73 : vector<32xf32> to vector<1x1x32xf32>
    %75 = vector.broadcast %74 : vector<1x1x32xf32> to vector<16x16x32xf32>
    %76 = arith.mulf %71, %75 : vector<16x16x32xf32>
    %77 = arith.addf %70, %76 : vector<16x16x32xf32>
    %cst_19 = arith.constant 0.000000e+00 : f32
    %78 = vector.broadcast %cst_19 : f32 to vector<18x18x32xf32>
    %c0_20 = arith.constant 0 : index
    %c0_21 = arith.constant 0 : index
    %c0_22 = arith.constant 0 : index
    %79 = vector.load %arg9[%c0_20, %c0_21, %c0_22] : memref<18x18x32xf32, #tpu.memory_space<vmem>>, vector<18x18x32xf32>
    tpu.vector_store %arg9[%c0_20, %c0_21, %c0_22], %78 {strides = array<i32>} : memref<18x18x32xf32, #tpu.memory_space<vmem>>, vector<18x18x32xf32>,
    %c1_23 = arith.constant 1 : index
    %c1_24 = arith.constant 1 : index
    %c0_25 = arith.constant 0 : index
    %80 = vector.load %arg9[%c1_23, %c1_24, %c0_25] : memref<18x18x32xf32, #tpu.memory_space<vmem>>, vector<16x16x32xf32>
    tpu.vector_store %arg9[%c1_23, %c1_24, %c0_25], %77 {strides = array<i32>} : memref<18x18x32xf32, #tpu.memory_space<vmem>>, vector<16x16x32xf32>,
    %c0_26 = arith.constant 0 : index
    %c0_27 = arith.constant 0 : index
    %c0_28 = arith.constant 0 : index
    %81 = vector.load %arg9[%c0_26, %c0_27, %c0_28] : memref<18x18x32xf32, #tpu.memory_space<vmem>>, vector<18x18x32xf32>
    %c0_29 = arith.constant 0 : index
    %c0_30 = arith.constant 0 : index
    %c0_31 = arith.constant 0 : index
    %82 = vector.load %arg5[%c0_29, %c0_30, %c0_31] : memref<9x32x1xf32, #tpu.memory_space<vmem>>, vector<9x32x1xf32>
    %cst_32 = arith.constant 0.000000e+00 : f32
    %83 = vector.broadcast %cst_32 : f32 to vector<256x1xf32>
    %84 = vector.extract_strided_slice %81 {offsets = [0, 0, 0], sizes = [16, 16, 32], strides = [1, 1, 1]} : vector<18x18x32xf32> to vector<16x16x32xf32>
    %85 = vector.shape_cast %84 : vector<16x16x32xf32> to vector<256x32xf32>
    %86 = vector.extract_strided_slice %82 {offsets = [0, 0, 0], sizes = [1, 32, 1], strides = [1, 1, 1]} : vector<9x32x1xf32> to vector<1x32x1xf32>
    %87 = vector.shape_cast %86 : vector<1x32x1xf32> to vector<32x1xf32>
    %cst_33 = arith.constant dense<0.000000e+00> : vector<256x1xf32>
    %88 = tpu.matmul %85, %87, %cst_33 {dimension_numbers = #tpu.dot_dimension_numbers<[1], [0], [0], [1], [0, 0, 1, 1], [], []>} : vector<256x32xf32>, vector<32x1xf32>, vector<256x1xf32> -> vector<256x1xf32>
    %89 = arith.addf %83, %88 : vector<256x1xf32>
    %90 = vector.extract_strided_slice %81 {offsets = [0, 1, 0], sizes = [16, 16, 32], strides = [1, 1, 1]} : vector<18x18x32xf32> to vector<16x16x32xf32>
    %91 = vector.shape_cast %90 : vector<16x16x32xf32> to vector<256x32xf32>
    %92 = vector.extract_strided_slice %82 {offsets = [1, 0, 0], sizes = [1, 32, 1], strides = [1, 1, 1]} : vector<9x32x1xf32> to vector<1x32x1xf32>
    %93 = vector.shape_cast %92 : vector<1x32x1xf32> to vector<32x1xf32>
    %cst_34 = arith.constant dense<0.000000e+00> : vector<256x1xf32>
    %94 = tpu.matmul %91, %93, %cst_34 {dimension_numbers = #tpu.dot_dimension_numbers<[1], [0], [0], [1], [0, 0, 1, 1], [], []>} : vector<256x32xf32>, vector<32x1xf32>, vector<256x1xf32> -> vector<256x1xf32>
    %95 = arith.addf %89, %94 : vector<256x1xf32>
    %96 = vector.extract_strided_slice %81 {offsets = [0, 2, 0], sizes = [16, 16, 32], strides = [1, 1, 1]} : vector<18x18x32xf32> to vector<16x16x32xf32>
    %97 = vector.shape_cast %96 : vector<16x16x32xf32> to vector<256x32xf32>
    %98 = vector.extract_strided_slice %82 {offsets = [2, 0, 0], sizes = [1, 32, 1], strides = [1, 1, 1]} : vector<9x32x1xf32> to vector<1x32x1xf32>
    %99 = vector.shape_cast %98 : vector<1x32x1xf32> to vector<32x1xf32>
    %cst_35 = arith.constant dense<0.000000e+00> : vector<256x1xf32>
    %100 = tpu.matmul %97, %99, %cst_35 {dimension_numbers = #tpu.dot_dimension_numbers<[1], [0], [0], [1], [0, 0, 1, 1], [], []>} : vector<256x32xf32>, vector<32x1xf32>, vector<256x1xf32> -> vector<256x1xf32>
    %101 = arith.addf %95, %100 : vector<256x1xf32>
    %102 = vector.extract_strided_slice %81 {offsets = [1, 0, 0], sizes = [16, 16, 32], strides = [1, 1, 1]} : vector<18x18x32xf32> to vector<16x16x32xf32>
    %103 = vector.shape_cast %102 : vector<16x16x32xf32> to vector<256x32xf32>
    %104 = vector.extract_strided_slice %82 {offsets = [3, 0, 0], sizes = [1, 32, 1], strides = [1, 1, 1]} : vector<9x32x1xf32> to vector<1x32x1xf32>
    %105 = vector.shape_cast %104 : vector<1x32x1xf32> to vector<32x1xf32>
    %cst_36 = arith.constant dense<0.000000e+00> : vector<256x1xf32>
    %106 = tpu.matmul %103, %105, %cst_36 {dimension_numbers = #tpu.dot_dimension_numbers<[1], [0], [0], [1], [0, 0, 1, 1], [], []>} : vector<256x32xf32>, vector<32x1xf32>, vector<256x1xf32> -> vector<256x1xf32>
    %107 = arith.addf %101, %106 : vector<256x1xf32>
    %108 = vector.extract_strided_slice %81 {offsets = [1, 1, 0], sizes = [16, 16, 32], strides = [1, 1, 1]} : vector<18x18x32xf32> to vector<16x16x32xf32>
    %109 = vector.shape_cast %108 : vector<16x16x32xf32> to vector<256x32xf32>
    %110 = vector.extract_strided_slice %82 {offsets = [4, 0, 0], sizes = [1, 32, 1], strides = [1, 1, 1]} : vector<9x32x1xf32> to vector<1x32x1xf32>
    %111 = vector.shape_cast %110 : vector<1x32x1xf32> to vector<32x1xf32>
    %cst_37 = arith.constant dense<0.000000e+00> : vector<256x1xf32>
    %112 = tpu.matmul %109, %111, %cst_37 {dimension_numbers = #tpu.dot_dimension_numbers<[1], [0], [0], [1], [0, 0, 1, 1], [], []>} : vector<256x32xf32>, vector<32x1xf32>, vector<256x1xf32> -> vector<256x1xf32>
    %113 = arith.addf %107, %112 : vector<256x1xf32>
    %114 = vector.extract_strided_slice %81 {offsets = [1, 2, 0], sizes = [16, 16, 32], strides = [1, 1, 1]} : vector<18x18x32xf32> to vector<16x16x32xf32>
    %115 = vector.shape_cast %114 : vector<16x16x32xf32> to vector<256x32xf32>
    %116 = vector.extract_strided_slice %82 {offsets = [5, 0, 0], sizes = [1, 32, 1], strides = [1, 1, 1]} : vector<9x32x1xf32> to vector<1x32x1xf32>
    %117 = vector.shape_cast %116 : vector<1x32x1xf32> to vector<32x1xf32>
    %cst_38 = arith.constant dense<0.000000e+00> : vector<256x1xf32>
    %118 = tpu.matmul %115, %117, %cst_38 {dimension_numbers = #tpu.dot_dimension_numbers<[1], [0], [0], [1], [0, 0, 1, 1], [], []>} : vector<256x32xf32>, vector<32x1xf32>, vector<256x1xf32> -> vector<256x1xf32>
    %119 = arith.addf %113, %118 : vector<256x1xf32>
    %120 = vector.extract_strided_slice %81 {offsets = [2, 0, 0], sizes = [16, 16, 32], strides = [1, 1, 1]} : vector<18x18x32xf32> to vector<16x16x32xf32>
    %121 = vector.shape_cast %120 : vector<16x16x32xf32> to vector<256x32xf32>
    %122 = vector.extract_strided_slice %82 {offsets = [6, 0, 0], sizes = [1, 32, 1], strides = [1, 1, 1]} : vector<9x32x1xf32> to vector<1x32x1xf32>
    %123 = vector.shape_cast %122 : vector<1x32x1xf32> to vector<32x1xf32>
    %cst_39 = arith.constant dense<0.000000e+00> : vector<256x1xf32>
    %124 = tpu.matmul %121, %123, %cst_39 {dimension_numbers = #tpu.dot_dimension_numbers<[1], [0], [0], [1], [0, 0, 1, 1], [], []>} : vector<256x32xf32>, vector<32x1xf32>, vector<256x1xf32> -> vector<256x1xf32>
    %125 = arith.addf %119, %124 : vector<256x1xf32>
    %126 = vector.extract_strided_slice %81 {offsets = [2, 1, 0], sizes = [16, 16, 32], strides = [1, 1, 1]} : vector<18x18x32xf32> to vector<16x16x32xf32>
    %127 = vector.shape_cast %126 : vector<16x16x32xf32> to vector<256x32xf32>
    %128 = vector.extract_strided_slice %82 {offsets = [7, 0, 0], sizes = [1, 32, 1], strides = [1, 1, 1]} : vector<9x32x1xf32> to vector<1x32x1xf32>
    %129 = vector.shape_cast %128 : vector<1x32x1xf32> to vector<32x1xf32>
    %cst_40 = arith.constant dense<0.000000e+00> : vector<256x1xf32>
    %130 = tpu.matmul %127, %129, %cst_40 {dimension_numbers = #tpu.dot_dimension_numbers<[1], [0], [0], [1], [0, 0, 1, 1], [], []>} : vector<256x32xf32>, vector<32x1xf32>, vector<256x1xf32> -> vector<256x1xf32>
    %131 = arith.addf %125, %130 : vector<256x1xf32>
    %132 = vector.extract_strided_slice %81 {offsets = [2, 2, 0], sizes = [16, 16, 32], strides = [1, 1, 1]} : vector<18x18x32xf32> to vector<16x16x32xf32>
    %133 = vector.shape_cast %132 : vector<16x16x32xf32> to vector<256x32xf32>
    %134 = vector.extract_strided_slice %82 {offsets = [8, 0, 0], sizes = [1, 32, 1], strides = [1, 1, 1]} : vector<9x32x1xf32> to vector<1x32x1xf32>
    %135 = vector.shape_cast %134 : vector<1x32x1xf32> to vector<32x1xf32>
    %cst_41 = arith.constant dense<0.000000e+00> : vector<256x1xf32>
    %136 = tpu.matmul %133, %135, %cst_41 {dimension_numbers = #tpu.dot_dimension_numbers<[1], [0], [0], [1], [0, 0, 1, 1], [], []>} : vector<256x32xf32>, vector<32x1xf32>, vector<256x1xf32> -> vector<256x1xf32>
    %137 = arith.addf %131, %136 : vector<256x1xf32>
    %c0_42 = arith.constant 0 : index
    %c0_43 = arith.constant 0 : index
    %138 = vector.load %arg6[%c0_42, %c0_43] : memref<1x1xf32, #tpu.memory_space<vmem>>, vector<1x1xf32>
    %139 = vector.broadcast %138 : vector<1x1xf32> to vector<256x1xf32>
    %140 = arith.addf %137, %139 : vector<256x1xf32>
    %141 = tpu.transpose %140, [1, 0] : vector<256x1xf32> -> vector<1x256xf32>
    %142 = vector.shape_cast %141 : vector<1x256xf32> to vector<1x1x256xf32>
    %c0_44 = arith.constant 0 : index
    %c0_45 = arith.constant 0 : index
    %c0_46 = arith.constant 0 : index
    %143 = vector.load %arg7[%c0_44, %c0_45, %c0_46] : memref<1x1x256xf32, #tpu.memory_space<vmem>>, vector<1x1x256xf32>
    tpu.vector_store %arg7[%c0_44, %c0_45, %c0_46], %142 {strides = array<i32>} : memref<1x1x256xf32, #tpu.memory_space<vmem>>, vector<1x1x256xf32>,
    return
  }
  func.func @transform_0(%arg0: i32) -> (i32, i32, i32, i32) {
    %c0_i32 = arith.constant 0 : i32
    %c0_i32_0 = arith.constant 0 : i32
    %c0_i32_1 = arith.constant 0 : i32
    %c0_i32_2 = arith.constant 0 : i32
    return %arg0, %c0_i32, %c0_i32_0, %c0_i32_1 : i32, i32, i32, i32
  }
  func.func @transform_1(%arg0: i32) -> (i32, i32, i32, i32) {
    %c0_i32 = arith.constant 0 : i32
    %c0_i32_0 = arith.constant 0 : i32
    %c0_i32_1 = arith.constant 0 : i32
    %c0_i32_2 = arith.constant 0 : i32
    return %arg0, %c0_i32, %c0_i32_0, %c0_i32_1 : i32, i32, i32, i32
  }
  func.func @transform_2(%arg0: i32) -> (i32, i32) {
    %c0_i32 = arith.constant 0 : i32
    %c0_i32_0 = arith.constant 0 : i32
    %c0_i32_1 = arith.constant 0 : i32
    return %c0_i32, %c0_i32_0 : i32, i32
  }
  func.func @transform_3(%arg0: i32) -> (i32, i32) {
    %c0_i32 = arith.constant 0 : i32
    %c0_i32_0 = arith.constant 0 : i32
    %c0_i32_1 = arith.constant 0 : i32
    return %c0_i32, %c0_i32_0 : i32, i32
  }
  func.func @transform_4(%arg0: i32) -> (i32, i32, i32) {
    %c0_i32 = arith.constant 0 : i32
    %c0_i32_0 = arith.constant 0 : i32
    %c0_i32_1 = arith.constant 0 : i32
    %c0_i32_2 = arith.constant 0 : i32
    return %c0_i32, %c0_i32_0, %c0_i32_1 : i32, i32, i32
  }
  func.func @transform_5(%arg0: i32) -> (i32, i32) {
    %c0_i32 = arith.constant 0 : i32
    %c0_i32_0 = arith.constant 0 : i32
    %c0_i32_1 = arith.constant 0 : i32
    return %c0_i32, %c0_i32_0 : i32, i32
  }
  func.func @transform_6(%arg0: i32) -> (i32, i32, i32) {
    %c0_i32 = arith.constant 0 : i32
    %c0_i32_0 = arith.constant 0 : i32
    %c0_i32_1 = arith.constant 0 : i32
    return %arg0, %c0_i32, %c0_i32_0 : i32, i32, i32
  }
}

</mosaic_0001>

<bundles_post_ra>
// kernel: shformer_best_forward.7
= control target key start
LH: loop header
LB: loop body
LE: loop exit
PB: predicated region body
PF: predicated region fallthrough
CT: control target
= control target key end

     0   :  { %s918_s15 = smov 0   ;;  %s1289_s0 = inlined_call_operand.vmem [shape: f32[2,4,4,160], index: 0, kind: input, shape index: {}]   ;;  %s1290_s1 = inlined_call_operand.vmem [shape: f32[2,4,4,160], index: 1, kind: input, shape index: {}]   ;;  %s1291_s2 = inlined_call_operand.vmem [shape: f32[9,160], index: 2, kind: input, shape index: {}]   ;;  %s1292_s3 = inlined_call_operand.vmem [shape: f32[1,160], index: 3, kind: input, shape index: {}]   ;;  %s1293_s4 = inlined_call_operand.vmem [shape: f32[2,4,4,160], index: 4, kind: output, shape index: {}]  }
   0x1 LB: > { %s833_s16 = sadd.s32 4294967295, %s890_s15   ;;  %p837_p0 = scmp.ge.s32.totalorder %s890_s15, 1  ;;  %s890_s15 = sphi %s918_s15, %s14_s15  }
   0x2   : > { %p172_p1 = scmp.lt.s32.totalorder %s890_s15, 3 }
   0x4   : > { %p173_p2 = pnand %p837_p0, %p172_p1 }
   0x5   : > { %vm231_vm0 = vcmask (!%p173_p2), 259072   ;;  %p926_p3 = scmp.lt.s32.totalorder (!%p173_p2), %s833_s16, 1  ;;  %v295_v0 = vlaneseq (!%p173_p2)  ;;  %v892_v1 = vmov (!%p173_p2), 0.0   ;;  %v937_v3 = vld [vmem:[%s1291_s2] sm:$0xff] (!%p173_p2)  ;;  %v942_v4 = vld [vmem:[%s1291_s2 + $0x8] sm:$0xff] (!%p173_p2)  ;;  %vm377_vm1 = vcmask (!%p173_p2), 1042432  }
   0x6   : > { %176 = sbr.rel (%p173_p2) target bundleno = 93 (0x5d), region = 36  ;;  %230 = vst [vmem:[#allocation2] sm:$0x3f] (!%p173_p2), %v892_v1  ;;  %233 = vst [vmem:[#allocation2 + $0x10] sm:$0x3f] (!%p173_p2), %v892_v1  ;;  %vm378_vm2 = vcmask (!%p173_p2), 1046532  }
   0x7   : > { %235 = vst [vmem:[#allocation2 + $0x20] sm:$0x3f] (!%p173_p2), %v892_v1  ;;  %237 = vst [vmem:[#allocation2 + $0x30] sm:$0x3f] (!%p173_p2), %v892_v1  ;;  %v932_v2 = vshrl.u32 (!%p173_p2), %v295_v0, 7  ;;  %vm269_vm3 = vcmask (!%p173_p2), 258049  }
   0x8   : > { %239 = vst [vmem:[#allocation2 + $0x40] sm:$0x3f] (!%p173_p2), %v892_v1  ;;  %241 = vst [vmem:[#allocation2 + $0x50] sm:$0x3f] (!%p173_p2), %v892_v1  ;;  %v293_v5 = vld [vmem:[%s1292_s3] sm:$0x3] (!%p173_p2) }
   0x9   : > { %232 = vst.msk [vmem:[#allocation2 + $0x8] sm:$0x3f] (!%p173_p2), %vm231_vm0, %v892_v1  ;;  %234 = vst.msk [vmem:[#allocation2 + $0x18] sm:$0x3f] (!%p173_p2), %vm231_vm0, %v892_v1  ;;  %v297_v6 = vsub.s32 (!%p173_p2), 0, %v932_v2  ;;  %v301_v7 = vsub.s32 (!%p173_p2), 1, %v932_v2 }
   0xa   : > { %236 = vst.msk [vmem:[#allocation2 + $0x28] sm:$0x3f] (!%p173_p2), %vm231_vm0, %v892_v1  ;;  %238 = vst.msk [vmem:[#allocation2 + $0x38] sm:$0x3f] (!%p173_p2), %vm231_vm0, %v892_v1  ;;  %v406_v8 = vsub.s32 (!%p173_p2), 2, %v932_v2  ;;  %v465_v9 = vsub.s32 (!%p173_p2), 3, %v932_v2 }
   0xb   : > { %240 = vst.msk [vmem:[#allocation2 + $0x48] sm:$0x3f] (!%p173_p2), %vm231_vm0, %v892_v1  ;;  %242 = vst.msk [vmem:[#allocation2 + $0x58] sm:$0x3f] (!%p173_p2), %vm231_vm0, %v892_v1  ;;  %v501_v10 = vsub.s32 (!%p173_p2), 4, %v932_v2  ;;  %v557_v11 = vsub.s32 (!%p173_p2), 5, %v932_v2  ;;  %v298_v16 = vrot.slane (!%p173_p2), %v293_v5, %v297_v6  ;;  %v302_v17 = vrot.slane (!%p173_p2), %v293_v5, %v301_v7 }
   0xc   : > { %v613_v12 = vsub.s32 (!%p173_p2), 6, %v932_v2  ;;  %v649_v13 = vsub.s32 (!%p173_p2), 7, %v932_v2  ;;  %v972_v18 = vrot.slane (!%p173_p2), %v937_v3, %v297_v6  ;;  %v975_v19 = vrot.slane (!%p173_p2), %v942_v4, %v297_v6  ;;  %vm1007_vm6 = vmor (!%p173_p2), %vm377_vm1, %vm378_vm2 }
   0xd   : > { %s1302_s16 = smov (!%p926_p3, %s833_s16), 1  ;;  %vm436_vm4 = vcmask 1041408   ;;  %vm437_vm5 = vcmask 1045508   ;;  %v979_v22 = vrot.slane %v937_v3, %v301_v7  ;;  %v982_v23 = vrot.slane %v942_v4, %v301_v7  ;;  %v277_v28 = vld [vmem:[#allocation2] sm:$0x3f] }
   0xe   : > { %s947_s24 = sshll.u32 %s1302_s16, 5  ;;  %v985_v24 = vrot.slane %v937_v3, %v406_v8  ;;  %v303_v30 = vcombine.low %v298_v16, %v302_v17  ;;  %v991_v31 = vrot.slane %v942_v4, %v406_v8  ;;  %v317_v35 = vmul.f32 %v972_v18, %v277_v28  ;;  %vm1020_vm7 = vmor %vm436_vm4, %vm437_vm5 }
   0xf   : > { %s957_s27 = scalar_lea.vmem %s1289_s0, %s947_s24  ;;  %s963_s30 = scalar_lea.vmem %s1290_s1, %s947_s24  ;;  %v353_v37 = vmul.f32 %v979_v22, %v277_v28  ;;  %v1032_v16 = vrot.slane %v942_v4, %v465_v9  ;;  %v1037_v17 = vrot.slane %v937_v3, %v501_v10  ;;  %vm759_vm8 = vcmask 1043456  }
  0x10   : > { %v218_v14 = vld [vmem:[%s957_s27] sm:$0xff]  ;;  %v219_v20 = vld [vmem:[%s957_s27 + $0x8] sm:$0xff]  ;;  %v220_v26 = vld [vmem:[%s957_s27 + $0x10] sm:$0xff]  ;;  %v412_v40 = vmul.f32 %v985_v24, %v277_v28  ;;  %vm760_vm9 = vcmask 261124   ;;  %s1166_s11 = scalar_lea.vmem %s1293_s4, %s947_s24 }
  0x11   : > { %v222_v15 = vld [vmem:[%s963_s30] sm:$0xff]  ;;  %v223_v25 = vld [vmem:[%s963_s30 + $0x8] sm:$0xff]  ;;  %v224_v27 = vld [vmem:[%s963_s30 + $0x10] sm:$0xff] }
  0x12   : > { %v226_v21 = vadd.f32 %v222_v15, %v218_v14  ;;  %v278_v29 = vld [vmem:[#allocation2 + $0x8] sm:$0x3f]  ;;  %v227_v32 = vadd.f32 %v223_v25, %v219_v20  ;;  %v228_v33 = vadd.f32 %v224_v27, %v220_v26  ;;  %v221_v42 = vld [vmem:[%s957_s27 + $0x18] sm:$0xff]  ;;  %v1027_v15 = vrot.slane %v937_v3, %v465_v9  ;;  %v1052_v9 = vld [vmem:[%s1291_s2 + $0x10] ss:$0 sm:$0xff] }
  0x13   : > { %v318_v36 = vmul.f32 %v975_v19, %v278_v29  ;;  %v354_v39 = vmul.f32 %v982_v23, %v278_v29  ;;  %v413_v41 = vmul.f32 %v991_v31, %v278_v29  ;;  %v225_v43 = vld [vmem:[%s963_s30 + $0x18] sm:$0xff]  ;;  %v1042_v26 = vrot.slane %v942_v4, %v501_v10  ;;  %vm1170_vm10 = vmor %vm760_vm9, %vm759_vm8 }
  0x14   : > { %v251_v34 = vrot.slane %v226_v21, 7  ;;  %v305_v38 = vadd.f32 %v303_v30, %v226_v21  ;;  %v253_v45 = vrot.slane %v227_v32, 7  ;;  %v1001_v46 = vadd.f32 %v303_v30, %v227_v32 }
  0x15   : > { %v333_v44 = vcombine.low %v317_v35, %v318_v36  ;;  %v255_v47 = vrot.slane %v228_v33, 7  ;;  %v369_v48 = vcombine.low %v353_v37, %v354_v39  ;;  %v370_v49 = vcombine.high %v353_v37, %v354_v39 }
  0x16   : > { %268 = vst [vmem:[#allocation2 + $0x10] sm:$0x1e] %v251_v34  ;;  %v1003_v50 = vadd.f32 %v303_v30, %v228_v33  ;;  %v247_v51 = vcombine.high %v226_v21, %v226_v21  ;;  %271 = vst [vmem:[#allocation2 + $0x20] sm:$0x1e] %v253_v45  ;;  %v248_v54 = vcombine.high %v227_v32, %v227_v32 }
  0x17   : > { %v341_v52 = vadd.f32 %v333_v44, %v305_v38  ;;  %273 = vst [vmem:[#allocation2 + $0x30] sm:$0x1e] %v255_v47  ;;  %v249_v55 = vcombine.high %v228_v33, %v228_v33  ;;  %v229_v56 = vadd.f32 %v225_v43, %v221_v42  ;;  %v844_v57 = vrot.slane %v369_v48, 9 }
  0x18   : > { %v382_v58 = vrot.slane %v370_v49, 5  ;;  %v252_v59 = vrot.slane %v247_v51, 7  ;;  %v428_v60 = vcombine.low %v412_v40, %v413_v41  ;;  %v254_v61 = vrot.slane %v248_v54, 7 }
  0x19   : > { %v256_v62 = vrot.slane %v249_v55, 7  ;;  %v257_v63 = vrot.slane %v229_v56, 7  ;;  %v1011_v0 = vadd.f32 %v303_v30, %v229_v56  ;;  %v250_v5 = vcombine.high %v229_v56, %v229_v56 }
  0x1a   : > { %v383_v1 = vsel %vm1007_vm6, %v844_v57, %v382_v58  ;;  %270 = vst.msk [vmem:[#allocation2 + $0x18] sm:$0x1e] %vm269_vm3, %v252_v59  ;;  %v429_v6 = vcombine.high %v412_v40, %v413_v41  ;;  %v848_v7 = vrot.slane %v428_v60, 10  ;;  %272 = vst.msk [vmem:[#allocation2 + $0x28] sm:$0x1e] %vm269_vm3, %v254_v61  ;;  %v1047_v27 = vrot.slane %v937_v3, %v557_v11 }
  0x1b   : > { %v400_v8 = vadd.f32 %v383_v1, %v341_v52  ;;  %274 = vst.msk [vmem:[#allocation2 + $0x38] sm:$0x1e] %vm269_vm3, %v256_v62  ;;  %275 = vst [vmem:[#allocation2 + $0x40] sm:$0x1e] %v257_v63  ;;  %v258_v20 = vrot.slane %v250_v5, 7  ;;  %v1059_v30 = vrot.slane %v942_v4, %v557_v11  ;;  %v1064_v10 = vrot.slane %v937_v3, %v613_v12 }
  0x1c   : > { %v441_v25 = vrot.slane %v429_v6, 6  ;;  %v1077_v11 = vrot.slane %v942_v4, %v613_v12  ;;  %v1082_v36 = vrot.slane %v937_v3, %v649_v13  ;;  %v1093_v12 = vrot.slane %v942_v4, %v649_v13  ;;  %v1133_v6 = vld [vmem:[%s1291_s2 + $0x18] ss:$0 sm:$0xff] }
  0x1d   : > { %v279_v21 = vld [vmem:[#allocation2 + $0x10] sm:$0x3f]  ;;  %v1066_v32 = vld [vmem:[#allocation2 + $0x20] sm:$0x3f]  ;;  %276 = vst.msk [vmem:[#allocation2 + $0x48] sm:$0x1e] %vm269_vm3, %v258_v20 }
  0x1e   : > { %v471_v28 = vmul.f32 %v1027_v15, %v279_v21  ;;  %v507_v29 = vmul.f32 %v1037_v17, %v279_v21  ;;  %v1068_v33 = vld [vmem:[#allocation2 + $0x30] sm:$0x3f]  ;;  %v442_v34 = vsel %vm1020_vm7, %v848_v7, %v441_v25  ;;  %v563_v35 = vmul.f32 %v1047_v27, %v279_v21 }
  0x1f   : > { %v323_v37 = vmul.f32 %v972_v18, %v1068_v33  ;;  %v359_v38 = vmul.f32 %v979_v22, %v1068_v33  ;;  %v459_v39 = vadd.f32 %v442_v34, %v400_v8  ;;  %v619_v40 = vmul.f32 %v1064_v10, %v1066_v32 }
  0x20   : > { %v655_v41 = vmul.f32 %v1082_v36, %v1066_v32  ;;  %v711_v3 = vmul.f32 %v1052_v9, %v1066_v32  ;;  %v319_v42 = vmul.f32 %v972_v18, %v279_v21  ;;  %v1101_v44 = vmul.f32 %v979_v22, %v279_v21 }
  0x21   : > { %v280_v43 = vld [vmem:[#allocation2 + $0x18] sm:$0x3f]  ;;  %v1104_v45 = vmul.f32 %v985_v24, %v279_v21  ;;  %v1108_v2 = vmul.f32 %v1027_v15, %v1066_v32  ;;  %v1112_v4 = vmul.f32 %v1037_v17, %v1066_v32  ;;  %v1114_v13 = vld [vmem:[#allocation2 + $0x28] sm:$0x3f] }
  0x22   : > { %v1116_v47 = vld [vmem:[#allocation2 + $0x38] sm:$0x3f]  ;;  %v472_v48 = vmul.f32 %v1032_v16, %v280_v43  ;;  %v508_v49 = vmul.f32 %v1042_v26, %v280_v43  ;;  %v564_v51 = vmul.f32 %v1059_v30, %v280_v43  ;;  %v320_v52 = vmul.f32 %v975_v19, %v280_v43 }
  0x23   : > { %v324_v54 = vmul.f32 %v975_v19, %v1116_v47  ;;  %v360_v55 = vmul.f32 %v982_v23, %v1116_v47  ;;  %v620_v56 = vmul.f32 %v1077_v11, %v1114_v13  ;;  %v656_v57 = vmul.f32 %v1093_v12, %v1114_v13 }
  0x24   : > { %v487_v58 = vcombine.low %v471_v28, %v472_v48  ;;  %v523_v59 = vcombine.low %v507_v29, %v508_v49  ;;  %v524_v60 = vcombine.high %v507_v29, %v508_v49  ;;  %v579_v61 = vcombine.low %v563_v35, %v564_v51 }
  0x25   : > { %v336_v62 = vcombine.low %v323_v37, %v324_v54  ;;  %v375_v63 = vcombine.low %v359_v38, %v360_v55  ;;  %v376_v1 = vcombine.high %v359_v38, %v360_v55  ;;  %v580_v5 = vcombine.high %v563_v35, %v564_v51 }
  0x26   : > { %v495_v7 = vadd.f32 %v487_v58, %v459_v39  ;;  %v852_v8 = vrot.slane %v523_v59, 9  ;;  %v533_v20 = vrot.slane %v524_v60, 5  ;;  %v856_v21 = vrot.slane %v579_v61, 10 }
  0x27   : > { %v344_v25 = vadd.f32 %v336_v62, %v1011_v0  ;;  %v847_v28 = vrot.slane %v375_v63, 9  ;;  %v394_v29 = vrot.slane %v376_v1, 5  ;;  %v589_v34 = vrot.slane %v580_v5, 6 }
  0x28   : > { %v534_v37 = vsel %vm1007_vm6, %v852_v8, %v533_v20  ;;  %v635_v35 = vcombine.low %v619_v40, %v620_v56  ;;  %v671_v38 = vcombine.low %v655_v41, %v656_v57  ;;  %v672_v48 = vcombine.high %v655_v41, %v656_v57 }
  0x29   : > { %v395_v49 = vsel %vm1007_vm6, %v847_v28, %v394_v29  ;;  %v551_v51 = vadd.f32 %v534_v37, %v495_v7  ;;  %v590_v39 = vsel %vm1020_vm7, %v856_v21, %v589_v34  ;;  %v712_v54 = vmul.f32 %v1133_v6, %v1114_v13 }
  0x2a   : > { %v1144_v0 = vadd.f32 %v395_v49, %v344_v25  ;;  %v860_v55 = vrot.slane %v671_v38, 9  ;;  %v681_v58 = vrot.slane %v672_v48, 5  ;;  %v334_v59 = vcombine.low %v319_v42, %v320_v52 }
  0x2b   : > { %v607_v60 = vadd.f32 %v590_v39, %v551_v51  ;;  %v727_v61 = vcombine.low %v711_v3, %v712_v54  ;;  %v728_v40 = vcombine.high %v711_v3, %v712_v54  ;;  %v356_v41 = vmul.f32 %v982_v23, %v280_v43 }
  0x2c   : > { %v682_v56 = vsel %vm1007_vm6, %v860_v55, %v681_v58  ;;  %v342_v57 = vadd.f32 %v334_v59, %v1001_v46  ;;  %v415_v62 = vmul.f32 %v991_v31, %v280_v43  ;;  %v474_v63 = vmul.f32 %v1032_v16, %v1114_v13 }
  0x2d   : > { %v643_v1 = vadd.f32 %v635_v35, %v607_v60  ;;  %v866_v5 = vrot.slane %v727_v61, 10  ;;  %v737_v7 = vrot.slane %v728_v40, 6  ;;  %v371_v42 = vcombine.low %v1101_v44, %v356_v41 }
  0x2e   : > { %v372_v3 = vcombine.high %v1101_v44, %v356_v41  ;;  %v430_v52 = vcombine.low %v1104_v45, %v415_v62  ;;  %v431_v8 = vcombine.high %v1104_v45, %v415_v62  ;;  %v488_v20 = vcombine.low %v1108_v2, %v474_v63 }
  0x2f   : > { %v699_v21 = vadd.f32 %v682_v56, %v643_v1  ;;  %v738_v46 = vsel %vm1020_vm7, %v866_v5, %v737_v7  ;;  %v845_v43 = vrot.slane %v371_v42, 9  ;;  %v510_v25 = vmul.f32 %v1042_v26, %v1114_v13 }
  0x30   : > { %v386_v45 = vrot.slane %v372_v3, 5  ;;  %v849_v2 = vrot.slane %v430_v52, 10  ;;  %v445_v28 = vrot.slane %v431_v8, 6  ;;  %v565_v29 = vmul.f32 %v1047_v27, %v1066_v32 }
  0x31   : > { %v755_v34 = vadd.f32 %v738_v46, %v699_v21  ;;  %v525_v37 = vcombine.low %v1112_v4, %v510_v25  ;;  %v526_v35 = vcombine.high %v1112_v4, %v510_v25  ;;  %v566_v38 = vmul.f32 %v1059_v30, %v1114_v13 }
  0x32   : > { %v387_v48 = vsel %vm1007_vm6, %v845_v43, %v386_v45  ;;  %v446_v49 = vsel %vm1020_vm7, %v849_v2, %v445_v28  ;;  %v621_v51 = vmul.f32 %v1064_v10, %v1068_v33  ;;  %v622_v39 = vmul.f32 %v1077_v11, %v1116_v47 }
  0x33   : > { %762 = vst.msk [vmem:[%s1166_s11] sm:$0xff] %vm1170_vm10, %v755_v34  ;;  %v401_v54 = vadd.f32 %v387_v48, %v342_v57  ;;  %v853_v4 = vrot.slane %v525_v37, 9  ;;  %v537_v55 = vrot.slane %v526_v35, 5  ;;  %v581_v58 = vcombine.low %v565_v29, %v566_v38 }
  0x34   : > { %v582_v59 = vcombine.high %v565_v29, %v566_v38  ;;  %v636_v60 = vcombine.low %v621_v51, %v622_v39  ;;  %v657_v61 = vmul.f32 %v1082_v36, %v1068_v33  ;;  %v658_v40 = vmul.f32 %v1093_v12, %v1116_v47 }
  0x35   : > { %v460_v41 = vadd.f32 %v446_v49, %v401_v54  ;;  %v538_v56 = vsel %vm1007_vm6, %v853_v4, %v537_v55  ;;  %v857_v62 = vrot.slane %v581_v58, 10  ;;  %v713_v63 = vmul.f32 %v1052_v9, %v1068_v33  ;;  %v285_v4 = vld [vmem:[#allocation2 + $0x40] sm:$0x3f] }
  0x36   : > { %v593_v57 = vrot.slane %v582_v59, 6  ;;  %v673_v1 = vcombine.low %v657_v61, %v658_v40  ;;  %v674_v5 = vcombine.high %v657_v61, %v658_v40  ;;  %v714_v7 = vmul.f32 %v1133_v6, %v1116_v47  ;;  %v286_v40 = vld [vmem:[#allocation2 + $0x48] sm:$0x3f] }
  0x37   : > { %v496_v42 = vadd.f32 %v488_v20, %v460_v41  ;;  %v321_v3 = vmul.f32 %v972_v18, %v1066_v32  ;;  %v322_v52 = vmul.f32 %v975_v19, %v1114_v13  ;;  %v357_v8 = vmul.f32 %v979_v22, %v1066_v32 }
  0x38   : > { %v594_v21 = vsel %vm1020_vm7, %v857_v62, %v593_v57  ;;  %v861_v46 = vrot.slane %v673_v1, 9  ;;  %v685_v43 = vrot.slane %v674_v5, 5  ;;  %v729_v25 = vcombine.low %v713_v63, %v714_v7 }
  0x39   : > { %v552_v45 = vadd.f32 %v538_v56, %v496_v42  ;;  %v730_v2 = vcombine.high %v713_v63, %v714_v7  ;;  %v335_v28 = vcombine.low %v321_v3, %v322_v52  ;;  %v358_v20 = vmul.f32 %v982_v23, %v1114_v13 }
  0x3a   : > { %v686_v18 = vsel %vm1007_vm6, %v861_v46, %v685_v43  ;;  %v867_v29 = vrot.slane %v729_v25, 10  ;;  %v416_v19 = vmul.f32 %v985_v24, %v1066_v32  ;;  %v417_v22 = vmul.f32 %v991_v31, %v1114_v13 }
  0x3b   : > { %v608_v34 = vadd.f32 %v594_v21, %v552_v45  ;;  %v741_v37 = vrot.slane %v730_v2, 6  ;;  %v343_v35 = vadd.f32 %v335_v28, %v1003_v50  ;;  %v373_v38 = vcombine.low %v357_v8, %v358_v20 }
  0x3c   : > { %v374_v48 = vcombine.high %v357_v8, %v358_v20  ;;  %v432_v49 = vcombine.low %v416_v19, %v417_v22  ;;  %v433_v51 = vcombine.high %v416_v19, %v417_v22  ;;  %v475_v23 = vmul.f32 %v1027_v15, %v1068_v33 }
  0x3d   : > { %v644_v39 = vadd.f32 %v636_v60, %v608_v34  ;;  %v742_v54 = vsel %vm1020_vm7, %v867_v29, %v741_v37  ;;  %v846_v32 = vrot.slane %v373_v38, 9  ;;  %v476_v13 = vmul.f32 %v1032_v16, %v1116_v47 }
  0x3e   : > { %v390_v55 = vrot.slane %v374_v48, 5  ;;  %v850_v58 = vrot.slane %v432_v49, 10  ;;  %v449_v59 = vrot.slane %v433_v51, 6  ;;  %v511_v50 = vmul.f32 %v1037_v17, %v1068_v33 }
  0x3f   : > { %v700_v61 = vadd.f32 %v686_v18, %v644_v39  ;;  %v489_v41 = vcombine.low %v475_v23, %v476_v13  ;;  %v512_v60 = vmul.f32 %v1042_v26, %v1116_v47  ;;  %v567_v56 = vmul.f32 %v1047_v27, %v1068_v33 }
  0x40   : > { %v391_v62 = vsel %vm1007_vm6, %v846_v32, %v390_v55  ;;  %v450_v63 = vsel %vm1020_vm7, %v850_v58, %v449_v59  ;;  %v568_v57 = vmul.f32 %v1059_v30, %v1116_v47  ;;  %v623_v1 = vmul.f32 %v1064_v10, %v285_v4 }
  0x41   : > { %v756_v5 = vadd.f32 %v742_v54, %v700_v61  ;;  %v402_v7 = vadd.f32 %v391_v62, %v343_v35  ;;  %v527_v42 = vcombine.low %v511_v50, %v512_v60  ;;  %v528_v3 = vcombine.high %v511_v50, %v512_v60  ;;  %v287_v61 = vld [vmem:[#allocation2 + $0x50] sm:$0x3f]  ;;  %v288_v62 = vld [vmem:[#allocation2 + $0x58] sm:$0x3f] }
  0x42   : > { %v583_v52 = vcombine.low %v567_v56, %v568_v57  ;;  %v584_v8 = vcombine.high %v567_v56, %v568_v57  ;;  %v624_v21 = vmul.f32 %v1077_v11, %v286_v40  ;;  %v659_v46 = vmul.f32 %v1082_v36, %v285_v4 }
  0x43   : > { %763 = vst.msk [vmem:[%s1166_s11 + $0x8] sm:$0xff] %vm1170_vm10, %v756_v5  ;;  %v461_v43 = vadd.f32 %v450_v63, %v402_v7  ;;  %v854_v25 = vrot.slane %v527_v42, 9  ;;  %v541_v45 = vrot.slane %v528_v3, 5  ;;  %v660_v2 = vmul.f32 %v1093_v12, %v286_v40 }
  0x44   : > { %v858_v28 = vrot.slane %v583_v52, 10  ;;  %v597_v20 = vrot.slane %v584_v8, 6  ;;  %v637_v18 = vcombine.low %v623_v1, %v624_v21  ;;  %v715_v29 = vmul.f32 %v1052_v9, %v285_v4 }
  0x45   : > { %v497_v19 = vadd.f32 %v489_v41, %v461_v43  ;;  %v542_v22 = vsel %vm1007_vm6, %v854_v25, %v541_v45  ;;  %v675_v34 = vcombine.low %v659_v46, %v660_v2  ;;  %v676_v37 = vcombine.high %v659_v46, %v660_v2 }
  0x46   : > { %v598_v35 = vsel %vm1020_vm7, %v858_v28, %v597_v20  ;;  %v716_v38 = vmul.f32 %v1133_v6, %v286_v40  ;;  %v418_v48 = vmul.f32 %v985_v24, %v1068_v33  ;;  %v419_v49 = vmul.f32 %v991_v31, %v1116_v47 }
  0x47   : > { %v553_v51 = vadd.f32 %v542_v22, %v497_v19  ;;  %v862_v23 = vrot.slane %v675_v34, 9  ;;  %v689_v39 = vrot.slane %v676_v37, 5  ;;  %v477_v54 = vmul.f32 %v1027_v15, %v285_v4 }
  0x48   : > { %v731_v32 = vcombine.low %v715_v29, %v716_v38  ;;  %v732_v13 = vcombine.high %v715_v29, %v716_v38  ;;  %v434_v55 = vcombine.low %v418_v48, %v419_v49  ;;  %v435_v58 = vcombine.high %v418_v48, %v419_v49 }
  0x49   : > { %v609_v59 = vadd.f32 %v598_v35, %v553_v51  ;;  %v690_v50 = vsel %vm1007_vm6, %v862_v23, %v689_v39  ;;  %v478_v41 = vmul.f32 %v1032_v16, %v286_v40  ;;  %v513_v24 = vmul.f32 %v1037_v17, %v285_v4 }
  0x4a   : > { %v868_v33 = vrot.slane %v731_v32, 10  ;;  %v745_v31 = vrot.slane %v732_v13, 6  ;;  %v851_v47 = vrot.slane %v434_v55, 10  ;;  %v453_v60 = vrot.slane %v435_v58, 6 }
  0x4b   : > { %v645_v56 = vadd.f32 %v637_v18, %v609_v59  ;;  %v490_v15 = vcombine.low %v477_v54, %v478_v41  ;;  %v514_v63 = vmul.f32 %v1042_v26, %v286_v40  ;;  %v569_v57 = vmul.f32 %v1047_v27, %v285_v4 }
  0x4c   : > { %v746_v1 = vsel %vm1020_vm7, %v868_v33, %v745_v31  ;;  %v454_v5 = vsel %vm1020_vm7, %v851_v47, %v453_v60  ;;  %v570_v16 = vmul.f32 %v1059_v30, %v286_v40  ;;  %v625_v17 = vmul.f32 %v1064_v10, %v287_v61 }
  0x4d   : > { %v701_v7 = vadd.f32 %v690_v50, %v645_v56  ;;  %v462_v42 = vadd.f32 %v454_v5, %v1144_v0  ;;  %v529_v3 = vcombine.low %v513_v24, %v514_v63  ;;  %v530_v52 = vcombine.high %v513_v24, %v514_v63 }
  0x4e   : > { %v585_v8 = vcombine.low %v569_v57, %v570_v16  ;;  %v586_v26 = vcombine.high %v569_v57, %v570_v16  ;;  %v626_v27 = vmul.f32 %v1077_v11, %v288_v62  ;;  %v661_v4 = vmul.f32 %v1082_v36, %v287_v61 }
  0x4f   : > { %v757_v21 = vadd.f32 %v746_v1, %v701_v7  ;;  %v498_v46 = vadd.f32 %v490_v15, %v462_v42  ;;  %v855_v43 = vrot.slane %v529_v3, 9  ;;  %v545_v25 = vrot.slane %v530_v52, 5 }
  0x50   : > { %v859_v45 = vrot.slane %v585_v8, 10  ;;  %v601_v30 = vrot.slane %v586_v26, 6  ;;  %v662_v10 = vmul.f32 %v1093_v12, %v288_v62  ;;  %v717_v40 = vmul.f32 %v1052_v9, %v287_v61 }
  0x51   : > { %764 = vst.msk [vmem:[%s1166_s11 + $0x10] sm:$0xff] %vm1170_vm10, %v757_v21  ;;  %v546_v0 = vsel %vm1007_vm6, %v855_v43, %v545_v25  ;;  %v718_v11 = vmul.f32 %v1133_v6, %v288_v62  ;;  %v638_v36 = vcombine.low %v625_v17, %v626_v27 }
  0x52   : > { %v554_v2 = vadd.f32 %v546_v0, %v498_v46  ;;  %v677_v28 = vcombine.low %v661_v4, %v662_v10  ;;  %v678_v20 = vcombine.high %v661_v4, %v662_v10  ;;  %v602_v18 = vsel %vm1020_vm7, %v859_v45, %v601_v30 }
  0x53   : > { %v733_v29 = vcombine.low %v717_v40, %v718_v11  ;;  %v734_v12 = vcombine.high %v717_v40, %v718_v11 }
  0x54   : > { %v610_v19 = vadd.f32 %v602_v18, %v554_v2  ;;  %v863_v22 = vrot.slane %v677_v28, 9  ;;  %v693_v34 = vrot.slane %v678_v20, 5 }
  0x55   : > { %v869_v37 = vrot.slane %v733_v29, 10  ;;  %v749_v35 = vrot.slane %v734_v12, 6 }
  0x56   : > { %v646_v38 = vadd.f32 %v638_v36, %v610_v19  ;;  %v694_v9 = vsel %vm1007_vm6, %v863_v22, %v693_v34 }
  0x57   : > { %v750_v48 = vsel %vm1020_vm7, %v869_v37, %v749_v35 }
  0x58   : > { %v702_v6 = vadd.f32 %v694_v9, %v646_v38 }
  0x5a   : > { %v758_v49 = vadd.f32 %v750_v48, %v702_v6 }
  0x5c   : > { %765 = vst.msk [vmem:[%s1166_s11 + $0x18] sm:$0xff] %vm1170_vm10, %v758_v49 }
  0x5d PF: > { %s14_s15 = sadd.s32 1, %s890_s15  }
  0x5e   : > { %p11_p4 = scmp.ge.s32.totalorder %s14_s15, 4  }
  0x60   :  { %13 = sbr.rel (!%p11_p4) target bundleno = 1 (0x1), region = 70 }

// kernel: shformer_best_forward.8
= control target key start
LH: loop header
LB: loop body
LE: loop exit
PB: predicated region body
PF: predicated region fallthrough
CT: control target
= control target key end

     0   :  { %v490_v0 = vmov 0   ;;  %vm132_vm0 = vcmask 261120   ;;  %vm343_vm1 = vcmask 523264   ;;  %s655_s1 = inlined_call_operand.vmem [shape: bf16[160,32], index: 1, kind: input, shape index: {}]   ;;  %s656_s0 = inlined_call_operand.vmem [shape: f32[32,160], index: 0, kind: input, shape index: {}]   ;;  %s657_s2 = inlined_call_operand.vmem [shape: f32[1,32], index: 2, kind: input, shape index: {}]   ;;  %s658_s5 = inlined_call_operand.vmem [shape: bf16[32,64], index: 5, kind: input, shape index: {}]   ;;  %s659_s3 = inlined_call_operand.vmem [shape: f32[1,32], index: 3, kind: input, shape index: {}]   ;;  %s660_s4 = inlined_call_operand.vmem [shape: f32[1,32], index: 4, kind: input, shape index: {}]   ;;  %s661_s6 = inlined_call_operand.vmem [shape: f32[1,64], index: 6, kind: input, shape index: {}]   ;;  %s662_s7 = inlined_call_operand.vmem [shape: f32[1,64], index: 7, kind: input, shape index: {}]   ;;  %s663_s8 = inlined_call_operand.vmem [shape: f32[1,64], index: 8, kind: input, shape index: {}]   ;;  %s664_s9 = inlined_call_operand.vmem [shape: f32[32,64], index: 9, kind: output, shape index: {}]  }
   0x1   :  { %139 = vmatprep.subr.bf16.mxu0 %v490_v0  ;;  %v462_v1 = vld [vmem:[%s655_s1] sm:$0xff]   ;;  %v463_v2 = vld [vmem:[%s655_s1 + $0x8] sm:$0xff]   ;;  %v464_v3 = vld [vmem:[%s655_s1 + $0x10] sm:$0xff]  }
   0x2   :  { %140 = vmatpush1.bf16.msra.mxu0 %v462_v1  ;;  %v465_v4 = vld [vmem:[%s655_s1 + $0x18] sm:$0xff]   ;;  %v34_v5 = vld [vmem:[%s656_s0 + $0x8] sm:$0xff]  ;;  %v466_v8 = vld [vmem:[%s655_s1 + $0x20] sm:$0xff]  }
   0x3   :  { %141 = vmatprep.subr.bf16.mxu0 %v490_v0  ;;  %v36_v6 = vld [vmem:[%s656_s0 + $0x18] sm:$0xff]  ;;  %v467_v9 = vld [vmem:[%s655_s1 + $0x28] sm:$0xff]   ;;  %v468_v10 = vld [vmem:[%s655_s1 + $0x30] sm:$0xff]  }
   0x4   :  { %v42_v7 = vpack.c.bf16 %v36_v6, %v34_v5  ;;  %v469_v11 = vld [vmem:[%s655_s1 + $0x38] sm:$0xff]   ;;  %v470_v12 = vld [vmem:[%s655_s1 + $0x40] sm:$0xff]   ;;  %v471_v13 = vld [vmem:[%s655_s1 + $0x48] sm:$0xff]  }
   0x5   :  { %v33_v14 = vld [vmem:[%s656_s0] sm:$0xff]  ;;  %v35_v15 = vld [vmem:[%s656_s0 + $0x10] sm:$0xff]  ;;  %v38_v16 = vld [vmem:[%s656_s0 + $0x28] sm:$0xff] }
   0x6   :  { %142 = vmatpush1.bf16.msra.mxu0 %v463_v2  ;;  %438 = vmatprep.mubr.msk.bf16.mxu0 %vm132_vm0, %v42_v7  ;;  %v40_v17 = vld [vmem:[%s656_s0 + $0x38] sm:$0xff]  ;;  %v41_v18 = vpack.c.bf16 %v35_v15, %v33_v14  ;;  %v37_v20 = vld [vmem:[%s656_s0 + $0x20] sm:$0xff]  ;;  %v39_v21 = vld [vmem:[%s656_s0 + $0x30] sm:$0xff] }
   0x7   :  { %143 = vmatprep.subr.bf16.mxu0 %v490_v0  ;;  %v44_v19 = vpack.c.bf16 %v40_v17, %v38_v16  ;;  %v43_v22 = vpack.c.bf16 %v39_v21, %v37_v20  ;;  %v427_v23 = vld [vmem:[%s657_s2] ss:$0 sm:$0xff]  ;;  %v473_v61 = vld [vmem:[%s658_s5 + $0x8] sm:$0xff]  }
   0x8   :  { %v472_v60 = vld [vmem:[%s658_s5] sm:$0xff]  }
   0x9   :  { %453 = vmatprep.subr.bf16.mxu1 %v472_v60  ;;  %v441_v16 = vld [vmem:[%s660_s4] ss:$0 sm:$0xff] }
   0xa   :  { %144 = vmatpush1.bf16.msra.mxu0 %v464_v3  ;;  %454 = vmatpush3.bf16.msra.mxu1 %v472_v60 }
   0xb   :  { %145 = vmatprep.subr.bf16.mxu0 %v490_v0  ;;  %455 = vmatprep.subr.bf16.mxu1 %v473_v61 }
   0xe   :  { %146 = vmatpush1.bf16.msra.mxu0 %v465_v4  ;;  %456 = vmatpush3.bf16.msra.mxu1 %v473_v61 }
   0xf   :  { %147 = vmatprep.subr.bf16.mxu0 %v490_v0 }
  0x12   :  { %148 = vmatpush1.bf16.msra.mxu0 %v466_v8 }
  0x13   :  { %149 = vmatprep.subr.bf16.mxu0 %v490_v0 }
  0x16   :  { %150 = vmatpush1.bf16.msra.mxu0 %v467_v9 }
  0x17   :  { %151 = vmatprep.subr.bf16.mxu0 %v490_v0 }
  0x1a   :  { %152 = vmatpush1.bf16.msra.mxu0 %v468_v10 }
  0x1b   :  { %153 = vmatprep.subr.bf16.mxu0 %v490_v0 }
  0x1e   :  { %154 = vmatpush1.bf16.msra.mxu0 %v469_v11 }
  0x1f   :  { %155 = vmatprep.subr.bf16.mxu0 %v490_v0 }
  0x22   :  { %156 = vmatpush1.bf16.msra.mxu0 %v470_v12  ;;  %v440_v12 = vld [vmem:[%s659_s3] ss:$0 sm:$0xff] }
  0x23   :  { %157 = vmatprep.subr.bf16.mxu0 %v490_v0 }
  0x26   :  { %158 = vmatpush1.bf16.msra.mxu0 %v471_v13 }
  0x29   :  { %172 = vmatmul.mubr.bf16.vlgmr.msra.gmra.mrb[0].mxu0 %v41_v18 }
  0x2a   :  { %439 = vmatprep.mubr.msk.bf16.mxu0 %vm132_vm0, %v44_v19 }
  0x31   :  { %180 = vmatmul.mubr.bf16.gmra.mrb[4].mxu0 %v43_v22 }
  0xfc   :  { %v173_v24 = vpop.f32.mrb[0].mxu0 }
  0xfd   :  { %v174_v25 = vadd.f32 %v427_v23, %v173_v24  ;;  %v175_v26 = vpop.f32.mrb[1].mxu0 }
  0xfe   :  { %v176_v27 = vpop.f32.mrb[2].mxu0 }
  0xff   :  { %v177_v28 = vadd.f32 %v427_v23, %v176_v27  ;;  %v178_v29 = vpop.f32.mrb[3].mxu0  ;;  %v188_v30 = vsel %vm132_vm0, %v174_v25, 0.0 }
 0x100   :  { %189 = vadd.xlane.f32.xlu0 %v188_v30  ;;  %v442_v30 = vld [vmem:[%s661_s6] ss:$0 sm:$0xff] }
 0x101   :  { %v191_v31 = vsel %vm132_vm0, %v177_v28, 0.0 }
 0x104   :  { %v181_v32 = vpop.f32.mrb[4].mxu0  ;;  %192 = vadd.xlane.f32.xlu0 %v191_v31 }
 0x105   :  { %v182_v33 = vadd.f32 %v427_v23, %v181_v32  ;;  %v183_v34 = vpop.f32.mrb[5].mxu0 }
 0x106   :  { %v184_v35 = vpop.f32.mrb[6].mxu0 }
 0x107   :  { %v185_v36 = vadd.f32 %v427_v23, %v184_v35  ;;  %v186_v37 = vpop.f32.mrb[7].mxu0  ;;  %v194_v38 = vsel %vm132_vm0, %v182_v33, 0.0 }
 0x108   :  { %195 = vadd.xlane.f32.xlu1 %v194_v38 }
 0x109   :  { %v197_v39 = vsel %vm132_vm0, %v185_v36, 0.0 }
 0x10c   :  { %198 = vadd.xlane.f32.xlu1 %v197_v39 }
 0x18d   :  { %v190_v40 = vpop.xlane.xlu0 %189 }
 0x18e   :  { %v201_v41 = vmul.f32 0.03125, %v190_v40 }
 0x190   :  { %v205_v42 = vsub.f32 %v174_v25, %v201_v41 }
 0x191   :  { %v193_v43 = vpop.xlane.xlu0 %192 }
 0x192   :  { %v202_v44 = vmul.f32 0.03125, %v193_v43  ;;  %v209_v45 = vmul.f32 %v205_v42, %v205_v42 }
 0x194   :  { %v206_v46 = vsub.f32 %v177_v28, %v202_v44  ;;  %v213_v47 = vsel %vm132_vm0, %v209_v45, 0.0 }
 0x195   :  { %v196_v48 = vpop.xlane.xlu1 %195  ;;  %214 = vadd.xlane.f32.xlu0 %v213_v47 }
 0x196   :  { %v203_v49 = vmul.f32 0.03125, %v196_v48  ;;  %v210_v50 = vmul.f32 %v206_v46, %v206_v46 }
 0x198   :  { %v207_v51 = vsub.f32 %v182_v33, %v203_v49  ;;  %v216_v52 = vsel %vm132_vm0, %v210_v50, 0.0 }
 0x199   :  { %v199_v53 = vpop.xlane.xlu1 %198  ;;  %217 = vadd.xlane.f32.xlu1 %v216_v52 }
 0x19a   :  { %v204_v54 = vmul.f32 0.03125, %v199_v53  ;;  %v211_v55 = vmul.f32 %v207_v51, %v207_v51 }
 0x19c   :  { %v208_v56 = vsub.f32 %v185_v36, %v204_v54  ;;  %v219_v57 = vsel %vm132_vm0, %v211_v55, 0.0 }
 0x19d   :  { %220 = vadd.xlane.f32.xlu0 %v219_v57 }
 0x19e   :  { %v212_v58 = vmul.f32 %v208_v56, %v208_v56 }
 0x1a0   :  { %v222_v59 = vsel %vm132_vm0, %v212_v58, 0.0 }
 0x1a1   :  { %223 = vadd.xlane.f32.xlu1 %v222_v59 }
 0x222   :  { %v215_v62 = vpop.xlane.xlu0 %214 }
 0x223   :  { %v225_v63 = vmul.f32 0.03125, %v215_v62 }
 0x225   :  { %v229_v0 = vadd.f32 1e-06, %v225_v63 }
 0x226   :  { %v218_v1 = vpop.xlane.xlu1 %217 }
 0x227   :  { %474 = vrsqrt.f32 %v229_v0  ;;  %v226_v2 = vmul.f32 0.03125, %v218_v1 }
 0x229   :  { %v230_v3 = vadd.f32 1e-06, %v226_v2 }
 0x22a   :  { %v221_v4 = vpop.xlane.xlu0 %220 }
 0x22b   :  { %476 = vrsqrt.f32 %v230_v3  ;;  %v227_v5 = vmul.f32 0.03125, %v221_v4 }
 0x22d   :  { %v231_v6 = vadd.f32 1e-06, %v227_v5 }
 0x22e   :  { %v224_v7 = vpop.xlane.xlu1 %223 }
 0x22f   :  { %478 = vrsqrt.f32 %v231_v6  ;;  %v228_v8 = vmul.f32 0.03125, %v224_v7 }
 0x231   :  { %v475_v9 = vpop.eup %474  ;;  %v232_v10 = vadd.f32 1e-06, %v228_v8 }
 0x232   :  { %v237_v11 = vmul.f32 %v475_v9, %v205_v42 }
 0x233   :  { %480 = vrsqrt.f32 %v232_v10 }
 0x234   :  { %v248_v15 = vmul.f32 %v440_v12, %v237_v11 }
 0x235   :  { %v477_v13 = vpop.eup %476 }
 0x236   :  { %v238_v14 = vmul.f32 %v477_v13, %v206_v46  ;;  %v259_v20 = vadd.f32 %v441_v16, %v248_v15  ;;  %v448_v15 = vld [vmem:[%s663_s8] ss:$0 sm:$0xff] }
 0x238   :  { %v249_v17 = vmul.f32 %v440_v12, %v238_v14 }
 0x239   :  { %v479_v18 = vpop.eup %478 }
 0x23a   :  { %v239_v19 = vmul.f32 %v479_v18, %v207_v51  ;;  %v260_v21 = vadd.f32 %v441_v16, %v249_v17 }
 0x23c   :  { %v263_v22 = vpack.c.bf16 %v260_v21, %v259_v20  ;;  %v250_v25 = vmul.f32 %v440_v12, %v239_v19 }
 0x23d   :  { %v481_v23 = vpop.eup %480 }
 0x23e   :  { %v240_v24 = vmul.f32 %v481_v23, %v208_v56  ;;  %457 = vmatprep.mubr.msk.bf16.mxu1 %vm132_vm0, %v263_v22  ;;  %v261_v27 = vadd.f32 %v441_v16, %v250_v25 }
 0x240   :  { %v251_v26 = vmul.f32 %v440_v12, %v240_v24  ;;  %v447_v12 = vld [vmem:[%s662_s7] ss:$0 sm:$0xff] }
 0x242   :  { %v262_v28 = vadd.f32 %v441_v16, %v251_v26 }
 0x244   :  { %v264_v29 = vpack.c.bf16 %v262_v28, %v261_v27 }
 0x246   :  { %458 = vmatmul.mubr.msk.bf16.vlgmr.msra.gmra.mrb[0].mxu1 %vm132_vm0, %v264_v29 }
 0x319   :  { %v459_v31 = vpop.f32.mrb[0].mxu1 }
 0x31a   :  { %v328_v32 = vpop.f32.mrb[1].mxu1  ;;  %v337_v36 = vadd.f32 %v459_v31, %v442_v30 }
 0x31b   :  { %v329_v33 = vadd.f32 %v442_v30, %v328_v32  ;;  %v460_v34 = vpop.f32.mrb[2].mxu1 }
 0x31c   :  { %v331_v35 = vpop.f32.mrb[3].mxu1  ;;  %v340_v39 = vadd.f32 %v460_v34, %v442_v30  ;;  %v350_v41 = vsel %vm343_vm1, %v337_v36, 0.0 }
 0x31d   :  { %v332_v37 = vadd.f32 %v442_v30, %v331_v35  ;;  %v344_v38 = vsel %vm343_vm1, %v329_v33, 0.0 }
 0x31e   :  { %345 = vadd.xlane.f32.xlu0 %v344_v38  ;;  %v353_v42 = vsel %vm343_vm1, %v340_v39, 0.0 }
 0x31f   :  { %v347_v40 = vsel %vm343_vm1, %v332_v37, 0.0 }
 0x320   :  { %348 = vadd.xlane.f32.xlu1 %v347_v40 }
 0x322   :  { %351 = vadd.xlane.f32.xlu0 %v350_v41 }
 0x324   :  { %354 = vadd.xlane.f32.xlu1 %v353_v42 }
 0x3ab   :  { %v346_v43 = vpop.xlane.xlu0 %345 }
 0x3ac   :  { %v357_v44 = vmul.f32 0.015625, %v346_v43 }
 0x3ad   :  { %v349_v45 = vpop.xlane.xlu1 %348 }
 0x3ae   :  { %v361_v46 = vsub.f32 %v329_v33, %v357_v44  ;;  %v358_v47 = vmul.f32 0.015625, %v349_v45 }
 0x3af   :  { %v352_v48 = vpop.xlane.xlu0 %351 }
 0x3b0   :  { %v362_v49 = vsub.f32 %v332_v37, %v358_v47  ;;  %v359_v50 = vmul.f32 0.015625, %v352_v48  ;;  %v365_v51 = vmul.f32 %v361_v46, %v361_v46 }
 0x3b1   :  { %v355_v52 = vpop.xlane.xlu1 %354 }
 0x3b2   :  { %v363_v53 = vsub.f32 %v337_v36, %v359_v50  ;;  %v360_v54 = vmul.f32 0.015625, %v355_v52  ;;  %v369_v55 = vsel %vm343_vm1, %v365_v51, 0.0  ;;  %v366_v56 = vmul.f32 %v362_v49, %v362_v49 }
 0x3b3   :  { %370 = vadd.xlane.f32.xlu0 %v369_v55 }
 0x3b4   :  { %v364_v57 = vsub.f32 %v340_v39, %v360_v54  ;;  %v372_v58 = vsel %vm343_vm1, %v366_v56, 0.0  ;;  %v367_v59 = vmul.f32 %v363_v53, %v363_v53 }
 0x3b5   :  { %373 = vadd.xlane.f32.xlu1 %v372_v58 }
 0x3b6   :  { %v375_v60 = vsel %vm343_vm1, %v367_v59, 0.0  ;;  %v368_v61 = vmul.f32 %v364_v57, %v364_v57 }
 0x3b7   :  { %376 = vadd.xlane.f32.xlu0 %v375_v60 }
 0x3b8   :  { %v378_v62 = vsel %vm343_vm1, %v368_v61, 0.0 }
 0x3b9   :  { %379 = vadd.xlane.f32.xlu1 %v378_v62 }
 0x440   :  { %v371_v63 = vpop.xlane.xlu0 %370 }
 0x441   :  { %v381_v0 = vmul.f32 0.015625, %v371_v63 }
 0x442   :  { %v374_v1 = vpop.xlane.xlu1 %373 }
 0x443   :  { %v385_v2 = vadd.f32 1e-06, %v381_v0  ;;  %v382_v3 = vmul.f32 0.015625, %v374_v1 }
 0x444   :  { %v377_v4 = vpop.xlane.xlu0 %376 }
 0x445   :  { %482 = vrsqrt.f32 %v385_v2  ;;  %v386_v5 = vadd.f32 1e-06, %v382_v3  ;;  %v383_v6 = vmul.f32 0.015625, %v377_v4 }
 0x446   :  { %v380_v7 = vpop.xlane.xlu1 %379 }
 0x447   :  { %484 = vrsqrt.f32 %v386_v5  ;;  %v387_v8 = vadd.f32 1e-06, %v383_v6  ;;  %v384_v9 = vmul.f32 0.015625, %v380_v7 }
 0x449   :  { %486 = vrsqrt.f32 %v387_v8  ;;  %v388_v10 = vadd.f32 1e-06, %v384_v9 }
 0x44b   :  { %488 = vrsqrt.f32 %v388_v10 }
 0x44f   :  { %v483_v11 = vpop.eup %482 }
 0x450   :  { %v393_v13 = vmul.f32 %v483_v11, %v361_v46 }
 0x451   :  { %v485_v14 = vpop.eup %484 }
 0x452   :  { %v404_v16 = vmul.f32 %v447_v12, %v393_v13  ;;  %v394_v17 = vmul.f32 %v485_v14, %v362_v49 }
 0x453   :  { %v487_v18 = vpop.eup %486 }
 0x454   :  { %v415_v19 = vadd.f32 %v448_v15, %v404_v16  ;;  %v405_v20 = vmul.f32 %v447_v12, %v394_v17  ;;  %v395_v21 = vmul.f32 %v487_v18, %v363_v53 }
 0x455   :  { %v489_v22 = vpop.eup %488 }
 0x456   :  { %419 = vst.msk [vmem:[%s664_s9] sm:$0xff] %vm343_vm1, %v415_v19  ;;  %v416_v23 = vadd.f32 %v448_v15, %v405_v20  ;;  %v406_v24 = vmul.f32 %v447_v12, %v395_v21  ;;  %v396_v25 = vmul.f32 %v489_v22, %v364_v57 }
 0x458   :  { %420 = vst.msk [vmem:[%s664_s9 + $0x8] sm:$0xff] %vm343_vm1, %v416_v23  ;;  %v417_v26 = vadd.f32 %v448_v15, %v406_v24  ;;  %v407_v27 = vmul.f32 %v447_v12, %v396_v25 }
 0x45a   :  { %421 = vst.msk [vmem:[%s664_s9 + $0x10] sm:$0xff] %vm343_vm1, %v417_v26  ;;  %v418_v28 = vadd.f32 %v448_v15, %v407_v27 }
 0x45c   :  { %422 = vst.msk [vmem:[%s664_s9 + $0x18] sm:$0xff] %vm343_vm1, %v418_v28 }

// kernel: shformer_best_forward.6
= control target key start
LH: loop header
LB: loop body
LE: loop exit
PB: predicated region body
PF: predicated region fallthrough
CT: control target
= control target key end

     0   :  { %vm212_vm0 = vcmask 654336   ;;  %v502_v43 = vmov 0   ;;  %v256_v54 = vlaneseq  ;;  %vm360_vm1 = vcmask 261120   ;;  %s667_s1 = inlined_call_operand.vmem [shape: bf16[256,80], index: 1, kind: input, shape index: {}]   ;;  %s668_s0 = inlined_call_operand.vmem [shape: f32[8,256], index: 0, kind: input, shape index: {}]   ;;  %s669_s2 = inlined_call_operand.vmem [shape: f32[1,80], index: 2, kind: input, shape index: {}]   ;;  %s670_s5 = inlined_call_operand.vmem [shape: bf16[80,160], index: 5, kind: input, shape index: {}]   ;;  %s671_s3 = inlined_call_operand.vmem [shape: f32[1,80], index: 3, kind: input, shape index: {}]   ;;  %s672_s4 = inlined_call_operand.vmem [shape: f32[1,80], index: 4, kind: input, shape index: {}]   ;;  %s673_s6 = inlined_call_operand.vmem [shape: f32[1,160], index: 6, kind: input, shape index: {}]   ;;  %s674_s7 = inlined_call_operand.vmem [shape: f32[1,160], index: 7, kind: input, shape index: {}]   ;;  %s675_s8 = inlined_call_operand.vmem [shape: f32[1,160], index: 8, kind: input, shape index: {}]   ;;  %s676_s9 = inlined_call_operand.vmem [shape: f32[8,160], index: 9, kind: output, shape index: {}]  }
   0x1   :  { %v467_v0 = vld [vmem:[%s667_s1 + $0x40] sm:$0xff]   ;;  %v469_v2 = vld [vmem:[%s667_s1 + $0x48] sm:$0xff]   ;;  %v471_v4 = vld [vmem:[%s667_s1 + $0x50] sm:$0xff]   ;;  %351 = vmatprep.mubr.bf16.mxu1 %v502_v43 }
   0x2   :  { %v468_v1 = vld [vmem:[%s667_s1] sm:$0xff]   ;;  %444 = vmatprep.subr.bf16.mxu0 %v467_v0  ;;  %v470_v3 = vld [vmem:[%s667_s1 + $0x8] sm:$0xff]   ;;  %v472_v5 = vld [vmem:[%s667_s1 + $0x10] sm:$0xff]   ;;  %v257_v55 = vshrl.u32 %v256_v54, 7 }
   0x3   :  { %445 = vmatpush3.bf16.msra.mxu0 %v468_v1  ;;  %v473_v6 = vld [vmem:[%s667_s1 + $0x58] sm:$0xff]   ;;  %v475_v8 = vld [vmem:[%s667_s1 + $0x60] sm:$0xff]   ;;  %v477_v10 = vld [vmem:[%s667_s1 + $0x68] sm:$0xff]  }
   0x4   :  { %446 = vmatprep.subr.bf16.mxu0 %v469_v2  ;;  %v474_v7 = vld [vmem:[%s667_s1 + $0x18] sm:$0xff]   ;;  %v476_v9 = vld [vmem:[%s667_s1 + $0x20] sm:$0xff]   ;;  %v34_v11 = vld [vmem:[%s668_s0 + $0x8] sm:$0xff]  ;;  %v262_v56 = vsub.s32 1, %v257_v55  ;;  %v258_v58 = vsub.s32 0, %v257_v55 }
   0x5   :  { %v36_v12 = vpack.c.bf16 %v34_v11, %v34_v11  ;;  %v478_v13 = vld [vmem:[%s667_s1 + $0x28] sm:$0xff]   ;;  %v479_v14 = vld [vmem:[%s667_s1 + $0x70] sm:$0xff]   ;;  %v481_v16 = vld [vmem:[%s667_s1 + $0x78] sm:$0xff]  }
   0x6   :  { %v480_v15 = vld [vmem:[%s667_s1 + $0x30] sm:$0xff]   ;;  %v482_v17 = vld [vmem:[%s667_s1 + $0x38] sm:$0xff]   ;;  %v33_v18 = vld [vmem:[%s668_s0] sm:$0xff] }
   0x7   :  { %447 = vmatpush3.bf16.msra.mxu0 %v470_v3  ;;  %204 = vmatprep.mubr.bf16.mxu0 %v36_v12  ;;  %v35_v19 = vpack.c.bf16 %v33_v18, %v33_v18  ;;  %v414_v22 = vld [vmem:[%s669_s2] ss:$0 sm:$0xff]  ;;  %v483_v33 = vld [vmem:[%s670_s5 + $0x4] ss:$8 sps:$4 sm:$0xff]   ;;  %v486_v35 = vld [vmem:[%s670_s5 + $0x14] ss:$8 sps:$4 sm:$0xff]  }
   0x8   :  { %448 = vmatprep.subr.bf16.mxu0 %v471_v4  ;;  %v485_v34 = vld [vmem:[%s670_s5] ss:$8 sps:$4 sm:$0xff]   ;;  %319 = vmatprep.subr.bf16.mxu1 %v483_v33  ;;  %v488_v36 = vld [vmem:[%s670_s5 + $0x10] ss:$8 sps:$4 sm:$0xff]   ;;  %v489_v37 = vld [vmem:[%s670_s5 + $0x24] ss:$8 sps:$4 sm:$0xff]  }
   0x9   :  { %320 = vmatpush1.bf16.msra.mxu1 %v485_v34  ;;  %v491_v38 = vld [vmem:[%s670_s5 + $0x20] ss:$8 sps:$4 sm:$0xff]   ;;  %v492_v39 = vld [vmem:[%s670_s5 + $0x34] ss:$8 sps:$4 sm:$0xff]   ;;  %v494_v40 = vld [vmem:[%s670_s5 + $0x30] ss:$8 sps:$4 sm:$0xff]  }
   0xa   :  { %321 = vmatprep.subr.bf16.mxu1 %v486_v35  ;;  %v495_v41 = vld [vmem:[%s670_s5 + $0x44] ss:$8 sps:$4 sm:$0xff]   ;;  %v497_v42 = vld [vmem:[%s670_s5 + $0x40] ss:$8 sps:$4 sm:$0xff]  }
   0xb   :  { %449 = vmatpush3.bf16.msra.mxu0 %v472_v5  ;;  %v431_v48 = vld [vmem:[%s671_s3] ss:$0 sm:$0xff] }
   0xc   :  { %450 = vmatprep.subr.bf16.mxu0 %v473_v6  ;;  %v432_v50 = vld [vmem:[%s672_s4] ss:$0 sm:$0xff] }
   0xd   :  { %322 = vmatpush1.bf16.msra.mxu1 %v488_v36  ;;  %v254_v57 = vld [vmem:[%s673_s6] sm:$0x3] }
   0xe   :  { %323 = vmatprep.subr.bf16.mxu1 %v489_v37  ;;  %v263_v59 = vrot.slane %v254_v57, %v262_v56  ;;  %v259_v60 = vrot.slane %v254_v57, %v258_v58 }
   0xf   :  { %451 = vmatpush3.bf16.msra.mxu0 %v474_v7 }
  0x10   :  { %452 = vmatprep.subr.bf16.mxu0 %v475_v8 }
  0x11   :  { %324 = vmatpush1.bf16.msra.mxu1 %v491_v38 }
  0x12   :  { %325 = vmatprep.subr.bf16.mxu1 %v492_v39 }
  0x13   :  { %453 = vmatpush3.bf16.msra.mxu0 %v476_v9 }
  0x14   :  { %454 = vmatprep.subr.bf16.mxu0 %v477_v10 }
  0x15   :  { %326 = vmatpush1.bf16.msra.mxu1 %v494_v40 }
  0x16   :  { %327 = vmatprep.subr.bf16.mxu1 %v495_v41 }
  0x17   :  { %455 = vmatpush3.bf16.msra.mxu0 %v478_v13 }
  0x18   :  { %456 = vmatprep.subr.bf16.mxu0 %v479_v14 }
  0x19   :  { %328 = vmatpush1.bf16.msra.mxu1 %v497_v42 }
  0x1b   :  { %457 = vmatpush3.bf16.msra.mxu0 %v480_v15 }
  0x1c   :  { %458 = vmatprep.subr.bf16.mxu0 %v481_v16  ;;  %v380_v16 = vld [vmem:[%s674_s7] sm:$0x3] }
  0x1d   :  { %v385_v18 = vrot.slane %v380_v16, %v258_v58 }
  0x1f   :  { %459 = vmatpush3.bf16.msra.mxu0 %v482_v17  ;;  %v394_v17 = vld [vmem:[%s675_s8] sm:$0x3] }
  0x22   :  { %205 = vmatmul.mubr.bf16.vlgmr.msra.gmra.mrb[0].mxu0 %v35_v19  ;;  %v389_v19 = vrot.slane %v380_v16, %v262_v56 }
  0xf5   :  { %v460_v20 = vpop.f32.mrb[0].mxu0 }
  0xf6   :  { %v461_v21 = vpop.f32.mrb[1].mxu0 }
  0xf7   :  { %v462_v23 = vadd.f32 %v461_v21, %v460_v20  ;;  %v463_v24 = vpop.f32.mrb[2].mxu0  ;;  %v399_v21 = vrot.slane %v394_v17, %v258_v58 }
  0xf8   :  { %v464_v25 = vpop.f32.mrb[3].mxu0 }
  0xf9   :  { %v207_v26 = vadd.f32 %v462_v23, %v414_v22  ;;  %v403_v22 = vrot.slane %v394_v17, %v262_v56 }
  0xfb   :  { %v213_v27 = vsel %vm212_vm0, %v207_v26, 0.0 }
  0xfc   :  { %214 = vadd.xlane.f32.xlu0 %v213_v27 }
 0x189   :  { %v215_v28 = vpop.xlane.xlu0 %214 }
 0x18a   :  { %v217_v29 = vmul.f32 0.0125, %v215_v28 }
 0x18c   :  { %v218_v30 = vsub.f32 %v207_v26, %v217_v29 }
 0x18e   :  { %v219_v31 = vmul.f32 %v218_v30, %v218_v30 }
 0x190   :  { %v220_v32 = vsel %vm212_vm0, %v219_v31, 0.0 }
 0x191   :  { %221 = vadd.xlane.f32.xlu0 %v220_v32 }
 0x21e   :  { %v222_v44 = vpop.xlane.xlu0 %221 }
 0x21f   :  { %v223_v45 = vmul.f32 0.0125, %v222_v44 }
 0x221   :  { %v224_v46 = vadd.f32 1e-06, %v223_v45 }
 0x223   :  { %498 = vrsqrt.f32 %v224_v46 }
 0x22d   :  { %v499_v47 = vpop.eup %498 }
 0x22e   :  { %v226_v49 = vmul.f32 %v499_v47, %v218_v30 }
 0x230   :  { %v234_v51 = vmul.f32 %v431_v48, %v226_v49 }
 0x232   :  { %v242_v52 = vadd.f32 %v432_v50, %v234_v51 }
 0x234   :  { %v243_v53 = vpack.c.bf16 %v242_v52, %v242_v52 }
 0x236   :  { %443 = vmatmul.mubr.msk.bf16.vlgmr.msra.gmra.mrb[0].mxu1 %vm212_vm0, %v243_v53 }
 0x309   :  { %v353_v61 = vpop.f32.mrb[0].mxu1 }
 0x30a   :  { %v355_v62 = vpop.f32.mrb[1].mxu1  ;;  %v354_v1 = vadd.f32 %v353_v61, %v259_v60 }
 0x30b   :  { %v356_v63 = vadd.f32 %v355_v62, %v263_v59  ;;  %v357_v0 = vpop.f32.mrb[2].mxu1 }
 0x30c   :  { %v358_v2 = vpop.f32.mrb[3].mxu1 }
 0x30d   :  { %v361_v3 = vsel %vm360_vm1, %v356_v63, 0.0 }
 0x30e   :  { %v362_v4 = vadd.f32 %v361_v3, %v354_v1 }
 0x310   :  { %363 = vadd.xlane.f32.xlu1 %v362_v4 }
 0x39d   :  { %v364_v5 = vpop.xlane.xlu1 %363 }
 0x39e   :  { %v366_v6 = vmul.f32 0.00625, %v364_v5 }
 0x3a0   :  { %v367_v7 = vsub.f32 %v354_v1, %v366_v6  ;;  %v368_v8 = vsub.f32 %v356_v63, %v366_v6 }
 0x3a2   :  { %v369_v9 = vmul.f32 %v367_v7, %v367_v7  ;;  %v370_v10 = vmul.f32 %v368_v8, %v368_v8 }
 0x3a4   :  { %v371_v11 = vsel %vm360_vm1, %v370_v10, 0.0 }
 0x3a5   :  { %v372_v12 = vadd.f32 %v371_v11, %v369_v9 }
 0x3a7   :  { %373 = vadd.xlane.f32.xlu1 %v372_v12 }
 0x434   :  { %v374_v13 = vpop.xlane.xlu1 %373 }
 0x435   :  { %v375_v14 = vmul.f32 0.00625, %v374_v13 }
 0x437   :  { %v376_v15 = vadd.f32 1e-06, %v375_v14 }
 0x439   :  { %500 = vrsqrt.f32 %v376_v15 }
 0x443   :  { %v501_v20 = vpop.eup %500 }
 0x444   :  { %v378_v23 = vmul.f32 %v501_v20, %v367_v7  ;;  %v379_v24 = vmul.f32 %v501_v20, %v368_v8 }
 0x446   :  { %v392_v25 = vmul.f32 %v385_v18, %v378_v23  ;;  %v393_v26 = vmul.f32 %v389_v19, %v379_v24 }
 0x448   :  { %v406_v27 = vadd.f32 %v399_v21, %v392_v25  ;;  %v407_v28 = vadd.f32 %v403_v22, %v393_v26 }
 0x44a   :  { %408 = vst [vmem:[%s676_s9] sm:$0xff] %v406_v27  ;;  %409 = vst.msk [vmem:[%s676_s9 + $0x8] sm:$0xff] %vm360_vm1, %v407_v28 }

// kernel: shformer_best_forward.9
= control target key start
LH: loop header
LB: loop body
LE: loop exit
PB: predicated region body
PF: predicated region fallthrough
CT: control target
= control target key end

     0   :  { %s964_s15 = smov 0   ;;  %s1485_s0 = inlined_call_operand.vmem [shape: f32[2,8,8,64], index: 0, kind: input, shape index: {}]   ;;  %s1486_s1 = inlined_call_operand.vmem [shape: f32[2,8,8,64], index: 1, kind: input, shape index: {}]   ;;  %s1487_s2 = inlined_call_operand.vmem [shape: f32[9,64], index: 2, kind: input, shape index: {}]   ;;  %s1488_s3 = inlined_call_operand.vmem [shape: f32[1,64], index: 3, kind: input, shape index: {}]   ;;  %s1489_s4 = inlined_call_operand.vmem [shape: f32[2,8,8,64], index: 4, kind: output, shape index: {}]  }
   0x1 LB: > { %s903_s16 = sadd.s32 4294967295, %s936_s15   ;;  %p907_p0 = scmp.ge.s32.totalorder %s936_s15, 1  ;;  %s936_s15 = sphi %s964_s15, %s14_s15  }
   0x2   : > { %p172_p1 = scmp.lt.s32.totalorder %s936_s15, 3 }
   0x4   : > { %p173_p2 = pnand %p907_p0, %p172_p1 }
   0x5   : > { %vm242_vm0 = vcmask (!%p173_p2), 523264   ;;  %vm244_vm1 = vcmask (!%p173_p2), 517120   ;;  %p974_p3 = scmp.lt.s32.totalorder (!%p173_p2), %s903_s16, 1  ;;  %v310_v0 = vlaneseq (!%p173_p2)  ;;  %v938_v1 = vmov (!%p173_p2), 0.0   ;;  %v1007_v3 = vld [vmem:[%s1487_s2] sm:$0xff] (!%p173_p2) }
   0x6   : > { %176 = sbr.rel (%p173_p2) target bundleno = 116 (0x74), region = 36  ;;  %243 = vst.msk [vmem:[#allocation2] sm:$0xff] (!%p173_p2), %vm242_vm0, %v938_v1  ;;  %246 = vst.msk [vmem:[#allocation2 + $0x10] sm:$0xff] (!%p173_p2), %vm242_vm0, %v938_v1  ;;  %v1030_v8 = vld [vmem:[%s1488_s3] ss:$0 sm:$0xff] (!%p173_p2)  ;;  %vm366_vm2 = vcmask (!%p173_p2), 1046528  }
   0x7   : > { %248 = vst.msk [vmem:[#allocation2 + $0x20] sm:$0xff] (!%p173_p2), %vm242_vm0, %v938_v1  ;;  %250 = vst.msk [vmem:[#allocation2 + $0x30] sm:$0xff] (!%p173_p2), %vm242_vm0, %v938_v1  ;;  %v1002_v2 = vshrl.u32 (!%p173_p2), %v310_v0, 7  ;;  %vm443_vm3 = vcmask (!%p173_p2), 1045504  }
   0x8   : > { %252 = vst.msk [vmem:[#allocation2 + $0x40] sm:$0xff] (!%p173_p2), %vm242_vm0, %v938_v1  ;;  %254 = vst.msk [vmem:[#allocation2 + $0x50] sm:$0xff] (!%p173_p2), %vm242_vm0, %v938_v1 }
   0x9   : > { %256 = vst.msk [vmem:[#allocation2 + $0x60] sm:$0xff] (!%p173_p2), %vm242_vm0, %v938_v1  ;;  %258 = vst.msk [vmem:[#allocation2 + $0x70] sm:$0xff] (!%p173_p2), %vm242_vm0, %v938_v1  ;;  %v312_v4 = vsub.s32 (!%p173_p2), 0, %v1002_v2  ;;  %v332_v5 = vsub.s32 (!%p173_p2), 1, %v1002_v2  ;;  %v409_v6 = vsub.s32 (!%p173_p2), 2, %v1002_v2  ;;  %v486_v7 = vsub.s32 (!%p173_p2), 3, %v1002_v2 }
   0xa   : > { %260 = vst.msk [vmem:[#allocation2 + $0x80] sm:$0xff] (!%p173_p2), %vm242_vm0, %v938_v1  ;;  %262 = vst.msk [vmem:[#allocation2 + $0x90] sm:$0xff] (!%p173_p2), %vm242_vm0, %v938_v1  ;;  %v506_v9 = vsub.s32 (!%p173_p2), 4, %v1002_v2  ;;  %v582_v16 = vsub.s32 (!%p173_p2), 5, %v1002_v2  ;;  %v658_v21 = vsub.s32 (!%p173_p2), 6, %v1002_v2  ;;  %v678_v28 = vsub.s32 (!%p173_p2), 7, %v1002_v2 }
   0xb   : > { %245 = vst.msk [vmem:[#allocation2 + $0x8] sm:$0x3] (!%p173_p2), %vm244_vm1, %v938_v1  ;;  %247 = vst.msk [vmem:[#allocation2 + $0x18] sm:$0x3] (!%p173_p2), %vm244_vm1, %v938_v1  ;;  %v1036_v12 = vrot.slane (!%p173_p2), %v1007_v3, %v312_v4  ;;  %v1039_v13 = vrot.slane (!%p173_p2), %v1007_v3, %v332_v5  ;;  %v1042_v14 = vrot.slane (!%p173_p2), %v1007_v3, %v409_v6 }
   0xc   : > { %249 = vst.msk [vmem:[#allocation2 + $0x28] sm:$0x3] (!%p173_p2), %vm244_vm1, %v938_v1  ;;  %251 = vst.msk [vmem:[#allocation2 + $0x38] sm:$0x3] (!%p173_p2), %vm244_vm1, %v938_v1  ;;  %v1052_v27 = vrot.slane (!%p173_p2), %v1007_v3, %v486_v7  ;;  %v1071_v41 = vrot.slane (!%p173_p2), %v1007_v3, %v506_v9  ;;  %v1074_v42 = vrot.slane (!%p173_p2), %v1007_v3, %v582_v16 }
   0xd   : > { %253 = vst.msk [vmem:[#allocation2 + $0x48] sm:$0x3] %vm244_vm1, %v938_v1  ;;  %255 = vst.msk [vmem:[#allocation2 + $0x58] sm:$0x3] %vm244_vm1, %v938_v1  ;;  %s1492_s16 = smov (!%p974_p3, %s903_s16), 1  ;;  %v273_v22 = vld [vmem:[#allocation2] sm:$0xff]  ;;  %v1082_v57 = vrot.slane %v1007_v3, %v658_v21  ;;  %v1091_v62 = vrot.slane %v1007_v3, %v678_v28 }
   0xe   : > { %257 = vst.msk [vmem:[#allocation2 + $0x68] sm:$0x3] %vm244_vm1, %v938_v1  ;;  %259 = vst.msk [vmem:[#allocation2 + $0x78] sm:$0x3] %vm244_vm1, %v938_v1  ;;  %s1009_s20 = sshll.u32 %s1492_s16, 6  ;;  %v314_v30 = vmul.f32 %v1036_v12, %v273_v22  ;;  %v334_v31 = vmul.f32 %v1039_v13, %v273_v22  ;;  %v411_v36 = vmul.f32 %v1042_v14, %v273_v22 }
   0xf   : > { %261 = vst.msk [vmem:[#allocation2 + $0x88] sm:$0x3] %vm244_vm1, %v938_v1  ;;  %263 = vst.msk [vmem:[#allocation2 + $0x98] sm:$0x3] %vm244_vm1, %v938_v1  ;;  %s1019_s23 = scalar_lea.vmem %s1485_s0, %s1009_s20  ;;  %s1025_s26 = scalar_lea.vmem %s1486_s1, %s1009_s20 }
  0x10   : > { %v218_v10 = vld [vmem:[%s1019_s23] sm:$0xff]  ;;  %v219_v15 = vld [vmem:[%s1019_s23 + $0x8] sm:$0xff]  ;;  %v220_v19 = vld [vmem:[%s1019_s23 + $0x10] sm:$0xff]  ;;  %v367_v44 = vrot.slane %v334_v31, 1  ;;  %v444_v50 = vrot.slane %v411_v36, 2  ;;  %s1314_s7 = scalar_lea.vmem %s1489_s4, %s1009_s20 }
  0x11   : > { %v226_v11 = vld [vmem:[%s1025_s26] sm:$0xff]  ;;  %v227_v18 = vld [vmem:[%s1025_s26 + $0x8] sm:$0xff]  ;;  %v228_v20 = vld [vmem:[%s1025_s26 + $0x10] sm:$0xff] }
  0x12   : > { %v234_v17 = vadd.f32 %v226_v11, %v218_v10  ;;  %v274_v23 = vld [vmem:[#allocation2 + $0x8] sm:$0x3]  ;;  %v235_v24 = vadd.f32 %v227_v18, %v219_v15  ;;  %v236_v25 = vadd.f32 %v228_v20, %v220_v19  ;;  %v221_v26 = vld [vmem:[%s1019_s23 + $0x18] sm:$0xff]  ;;  %v222_v34 = vld [vmem:[%s1019_s23 + $0x20] sm:$0xff] }
  0x13   : > { %v335_v32 = vmul.f32 %v1039_v13, %v274_v23  ;;  %v229_v33 = vld [vmem:[%s1025_s26 + $0x18] sm:$0xff]  ;;  %v230_v35 = vld [vmem:[%s1025_s26 + $0x20] sm:$0xff]  ;;  %v412_v37 = vmul.f32 %v1042_v14, %v274_v23  ;;  %v223_v38 = vld [vmem:[%s1019_s23 + $0x28] sm:$0xff] }
  0x14   : > { %265 = vst.msk [vmem:[#allocation2 + $0x11] sm:$0xff] %vm242_vm0, %v234_v17  ;;  %v302_v29 = vadd.f32 %v1030_v8, %v234_v17  ;;  %266 = vst.msk [vmem:[#allocation2 + $0x21] sm:$0xff] %vm242_vm0, %v235_v24  ;;  %v231_v39 = vld [vmem:[%s1025_s26 + $0x28] sm:$0xff]  ;;  %v224_v40 = vld [vmem:[%s1019_s23 + $0x30] sm:$0xff]  ;;  %v237_v46 = vadd.f32 %v229_v33, %v221_v26  ;;  %v238_v52 = vadd.f32 %v230_v35, %v222_v34 }
  0x15   : > { %267 = vst.msk [vmem:[#allocation2 + $0x31] sm:$0xff] %vm242_vm0, %v236_v25  ;;  %v368_v45 = vrot.slane %v335_v32, 1  ;;  %v232_v47 = vld [vmem:[%s1025_s26 + $0x30] sm:$0xff]  ;;  %v225_v48 = vld [vmem:[%s1019_s23 + $0x38] sm:$0xff]  ;;  %v445_v51 = vrot.slane %v412_v37, 2  ;;  %v239_v53 = vadd.f32 %v231_v39, %v223_v38  ;;  %v303_v61 = vadd.f32 %v1030_v8, %v235_v24 }
  0x16   : > { %v322_v43 = vadd.f32 %v314_v30, %v302_v29  ;;  %v233_v49 = vld [vmem:[%s1025_s26 + $0x38] sm:$0xff]  ;;  %268 = vst.msk [vmem:[#allocation2 + $0x41] sm:$0xff] %vm242_vm0, %v237_v46  ;;  %v240_v55 = vadd.f32 %v232_v47, %v224_v40  ;;  %v1084_v58 = vld [vmem:[#allocation2 + $0x90] sm:$0xff]  ;;  %269 = vst.msk [vmem:[#allocation2 + $0x51] sm:$0xff] %vm242_vm0, %v238_v52  ;;  %v304_v63 = vadd.f32 %v1030_v8, %v236_v25 }
  0x17   : > { %v369_v54 = vsel %vm366_vm2, %v367_v44, %v368_v45  ;;  %v241_v56 = vadd.f32 %v233_v49, %v225_v48  ;;  %v446_v60 = vsel %vm443_vm3, %v444_v50, %v445_v51  ;;  %270 = vst.msk [vmem:[#allocation2 + $0x61] sm:$0xff] %vm242_vm0, %v239_v53  ;;  %v305_v0 = vadd.f32 %v1030_v8, %v237_v46  ;;  %v1141_v28 = vld [vmem:[#allocation2 + $0x98] sm:$0x3]  ;;  %v1160_v44 = vld [vmem:[%s1487_s2 + $0x8] ss:$0 sm:$0xff] }
  0x18   : > { %v399_v59 = vadd.f32 %v369_v54, %v322_v43  ;;  %v1096_v1 = vadd.f32 %v1030_v8, %v238_v52  ;;  %v1099_v2 = vadd.f32 %v1030_v8, %v239_v53  ;;  %271 = vst.msk [vmem:[#allocation2 + $0x71] sm:$0xff] %vm242_vm0, %v240_v55  ;;  %v1110_v6 = vadd.f32 %v1030_v8, %v240_v55 }
  0x19   : > { %272 = vst.msk [vmem:[#allocation2 + $0x81] sm:$0xff] %vm242_vm0, %v241_v56  ;;  %v1113_v7 = vadd.f32 %v1030_v8, %v241_v56  ;;  %v1117_v9 = vmul.f32 %v1091_v62, %v1084_v58  ;;  %v1164_v45 = vmul.f32 %v1091_v62, %v1141_v28  ;;  %v1171_v50 = vmul.f32 %v1160_v44, %v1084_v58 }
  0x1a   : > { %v1103_v4 = vadd.f32 %v446_v60, %v399_v59 }
  0x1b   : > { %v1105_v5 = vld [vmem:[#allocation2 + $0x10] sm:$0xff]  ;;  %v1107_v3 = vld [vmem:[#allocation2 + $0x18] sm:$0x3]  ;;  %v1119_v10 = vld [vmem:[#allocation2 + $0x20] sm:$0xff] }
  0x1c   : > { %v315_v11 = vmul.f32 %v1036_v12, %v1105_v5  ;;  %v336_v15 = vmul.f32 %v1039_v13, %v1105_v5  ;;  %v337_v16 = vmul.f32 %v1039_v13, %v1107_v3  ;;  %v413_v17 = vmul.f32 %v1042_v14, %v1105_v5  ;;  %v1129_v8 = vld [vmem:[#allocation2 + $0x28] sm:$0x3]  ;;  %v1133_v19 = vld [vmem:[#allocation2 + $0x30] sm:$0xff]  ;;  %v1148_v36 = vld [vmem:[#allocation2 + $0x38] sm:$0x3] }
  0x1d   : > { %v414_v18 = vmul.f32 %v1042_v14, %v1107_v3  ;;  %v316_v20 = vmul.f32 %v1036_v12, %v1119_v10  ;;  %v338_v21 = vmul.f32 %v1039_v13, %v1119_v10  ;;  %v339_v22 = vmul.f32 %v1039_v13, %v1129_v8  ;;  %v1153_v40 = vld [vmem:[#allocation2 + $0x40] sm:$0xff]  ;;  %v1167_v49 = vld [vmem:[#allocation2 + $0x48] sm:$0x3]  ;;  %v1179_v59 = vld [vmem:[#allocation2 + $0x50] sm:$0xff] }
  0x1e   : > { %v323_v23 = vadd.f32 %v315_v11, %v303_v61  ;;  %v370_v24 = vrot.slane %v336_v15, 1  ;;  %v371_v25 = vrot.slane %v337_v16, 1  ;;  %v447_v26 = vrot.slane %v413_v17, 2 }
  0x1f   : > { %v448_v29 = vrot.slane %v414_v18, 2  ;;  %v324_v30 = vadd.f32 %v316_v20, %v304_v63  ;;  %v373_v31 = vrot.slane %v338_v21, 1  ;;  %v374_v32 = vrot.slane %v339_v22, 1  ;;  %v1192_v21 = vld [vmem:[#allocation2 + $0x58] sm:$0x3] }
  0x20   : > { %v372_v33 = vsel %vm366_vm2, %v370_v24, %v371_v25  ;;  %v415_v34 = vmul.f32 %v1042_v14, %v1119_v10  ;;  %v416_v35 = vmul.f32 %v1042_v14, %v1129_v8  ;;  %v317_v37 = vmul.f32 %v1036_v12, %v1133_v19 }
  0x21   : > { %v400_v38 = vadd.f32 %v372_v33, %v323_v23  ;;  %v375_v39 = vsel %vm366_vm2, %v373_v31, %v374_v32  ;;  %v340_v43 = vmul.f32 %v1039_v13, %v1133_v19  ;;  %v449_v46 = vsel %vm443_vm3, %v447_v26, %v448_v29  ;;  %v1202_v31 = vld [vmem:[#allocation2 + $0x60] sm:$0xff] }
  0x22   : > { %v450_v47 = vrot.slane %v415_v34, 2  ;;  %v451_v48 = vrot.slane %v416_v35, 2  ;;  %v401_v51 = vadd.f32 %v375_v39, %v324_v30  ;;  %v341_v52 = vmul.f32 %v1039_v13, %v1148_v36 }
  0x23   : > { %v376_v53 = vrot.slane %v340_v43, 1  ;;  %v417_v54 = vmul.f32 %v1042_v14, %v1133_v19  ;;  %v325_v55 = vadd.f32 %v317_v37, %v305_v0  ;;  %v418_v56 = vmul.f32 %v1042_v14, %v1148_v36 }
  0x24   : > { %v318_v60 = vmul.f32 %v1036_v12, %v1153_v40  ;;  %v342_v61 = vmul.f32 %v1039_v13, %v1153_v40  ;;  %v1185_v63 = vadd.f32 %v449_v46, %v400_v38  ;;  %v377_v11 = vrot.slane %v341_v52, 1  ;;  %v1210_v38 = vld [vmem:[#allocation2 + $0x68] sm:$0x3] }
  0x25   : > { %v453_v15 = vrot.slane %v417_v54, 2  ;;  %v343_v16 = vmul.f32 %v1039_v13, %v1167_v49  ;;  %v452_v0 = vsel %vm443_vm3, %v450_v47, %v451_v48  ;;  %v454_v17 = vrot.slane %v418_v56, 2 }
  0x26   : > { %v379_v18 = vrot.slane %v342_v61, 1  ;;  %v419_v20 = vmul.f32 %v1042_v14, %v1153_v40  ;;  %v378_v22 = vsel %vm366_vm2, %v376_v53, %v377_v11  ;;  %v420_v24 = vmul.f32 %v1042_v14, %v1167_v49 }
  0x27   : > { %v380_v23 = vrot.slane %v343_v16, 1  ;;  %v319_v25 = vmul.f32 %v1036_v12, %v1179_v59  ;;  %v1199_v26 = vadd.f32 %v452_v0, %v401_v51  ;;  %v402_v29 = vadd.f32 %v378_v22, %v325_v55  ;;  %v1221_v55 = vld [vmem:[#allocation2 + $0x70] sm:$0xff]  ;;  %v1231_v16 = vld [vmem:[#allocation2 + $0x78] sm:$0x3] }
  0x28   : > { %v326_v30 = vadd.f32 %v318_v60, %v1096_v1  ;;  %v344_v32 = vmul.f32 %v1039_v13, %v1179_v59  ;;  %v455_v33 = vsel %vm443_vm3, %v453_v15, %v454_v17  ;;  %v456_v35 = vrot.slane %v419_v20, 2 }
  0x29   : > { %v381_v34 = vsel %vm366_vm2, %v379_v18, %v380_v23  ;;  %v345_v37 = vmul.f32 %v1039_v13, %v1192_v21  ;;  %v457_v39 = vrot.slane %v420_v24, 2  ;;  %v327_v43 = vadd.f32 %v319_v25, %v1099_v2 }
  0x2a   : > { %v382_v46 = vrot.slane %v344_v32, 1  ;;  %v421_v1 = vmul.f32 %v1042_v14, %v1179_v59  ;;  %v1215_v47 = vadd.f32 %v455_v33, %v402_v29  ;;  %v422_v51 = vmul.f32 %v1042_v14, %v1192_v21 }
  0x2b   : > { %v383_v48 = vrot.slane %v345_v37, 1  ;;  %v320_v52 = vmul.f32 %v1036_v12, %v1202_v31  ;;  %v403_v53 = vadd.f32 %v381_v34, %v326_v30  ;;  %v346_v2 = vmul.f32 %v1039_v13, %v1202_v31 }
  0x2c   : > { %v459_v54 = vrot.slane %v421_v1, 2  ;;  %v347_v56 = vmul.f32 %v1039_v13, %v1210_v38  ;;  %v460_v61 = vrot.slane %v422_v51, 2  ;;  %v423_v15 = vmul.f32 %v1042_v14, %v1202_v31 }
  0x2d   : > { %v384_v60 = vsel %vm366_vm2, %v382_v46, %v383_v48  ;;  %v328_v11 = vadd.f32 %v320_v52, %v1110_v6  ;;  %v458_v0 = vsel %vm443_vm3, %v456_v35, %v457_v39  ;;  %v385_v17 = vrot.slane %v346_v2, 1 }
  0x2e   : > { %v386_v18 = vrot.slane %v347_v56, 1  ;;  %v424_v20 = vmul.f32 %v1042_v14, %v1210_v38  ;;  %v404_v22 = vadd.f32 %v384_v60, %v327_v43  ;;  %v462_v23 = vrot.slane %v423_v15, 2 }
  0x2f   : > { %v321_v24 = vmul.f32 %v1036_v12, %v1221_v55  ;;  %v348_v6 = vmul.f32 %v1039_v13, %v1221_v55  ;;  %v1240_v25 = vadd.f32 %v458_v0, %v403_v53  ;;  %v349_v32 = vmul.f32 %v1039_v13, %v1231_v16 }
  0x30   : > { %v387_v29 = vsel %vm366_vm2, %v385_v17, %v386_v18  ;;  %v463_v30 = vrot.slane %v424_v20, 2  ;;  %v461_v33 = vsel %vm443_vm3, %v459_v54, %v460_v61  ;;  %v1248_v37 = vmul.f32 %v1042_v14, %v1221_v55 }
  0x31   : > { %v405_v34 = vadd.f32 %v387_v29, %v328_v11  ;;  %v388_v35 = vrot.slane %v348_v6, 1  ;;  %v329_v12 = vadd.f32 %v321_v24, %v1113_v7  ;;  %v389_v39 = vrot.slane %v349_v32, 1 }
  0x32   : > { %v1253_v43 = vmul.f32 %v1042_v14, %v1231_v16  ;;  %v488_v46 = vmul.f32 %v1052_v27, %v1105_v5  ;;  %v1257_v1 = vadd.f32 %v461_v33, %v404_v22  ;;  %v464_v13 = vsel %vm443_vm3, %v462_v23, %v463_v30 }
  0x33   : > { %v508_v48 = vmul.f32 %v1071_v41, %v1105_v5  ;;  %v509_v51 = vmul.f32 %v1071_v41, %v1107_v3  ;;  %v1264_v52 = vadd.f32 %v464_v13, %v405_v34  ;;  %v390_v7 = vsel %vm366_vm2, %v388_v35, %v389_v39 }
  0x34   : > { %v496_v14 = vadd.f32 %v488_v46, %v1103_v4  ;;  %v584_v53 = vmul.f32 %v1074_v42, %v1105_v5  ;;  %v465_v54 = vrot.slane %v1248_v37, 2  ;;  %v585_v60 = vmul.f32 %v1074_v42, %v1107_v3 }
  0x35   : > { %v540_v2 = vrot.slane %v508_v48, 1  ;;  %v541_v56 = vrot.slane %v509_v51, 1  ;;  %v1273_v61 = vadd.f32 %v390_v7, %v329_v12  ;;  %v466_v11 = vrot.slane %v1253_v43, 2 }
  0x36   : > { %v616_v15 = vrot.slane %v584_v53, 2  ;;  %v680_v0 = vmul.f32 %v1091_v62, %v1119_v10  ;;  %v617_v17 = vrot.slane %v585_v60, 2  ;;  %v660_v5 = vmul.f32 %v1082_v57, %v1119_v10 }
  0x37   : > { %v542_v4 = vsel %vm366_vm2, %v540_v2, %v541_v56  ;;  %v681_v18 = vmul.f32 %v1091_v62, %v1129_v8  ;;  %v756_v3 = vmul.f32 %v1160_v44, %v1119_v10  ;;  %v757_v23 = vmul.f32 %v1160_v44, %v1129_v8 }
  0x38   : > { %v572_v20 = vadd.f32 %v542_v4, %v496_v14  ;;  %v712_v22 = vrot.slane %v680_v0, 1  ;;  %v618_v24 = vsel %vm443_vm3, %v616_v15, %v617_v17  ;;  %v489_v29 = vmul.f32 %v1052_v27, %v1119_v10 }
  0x39   : > { %v713_v6 = vrot.slane %v681_v18, 1  ;;  %v510_v30 = vmul.f32 %v1071_v41, %v1119_v10  ;;  %v788_v33 = vrot.slane %v756_v3, 2  ;;  %v789_v34 = vrot.slane %v757_v23, 2 }
  0x3a   : > { %v648_v32 = vadd.f32 %v618_v24, %v572_v20  ;;  %v511_v35 = vmul.f32 %v1071_v41, %v1129_v8  ;;  %v497_v39 = vadd.f32 %v489_v29, %v1185_v63  ;;  %v586_v13 = vmul.f32 %v1074_v42, %v1119_v10 }
  0x3b   : > { %v714_v12 = vsel %vm366_vm2, %v712_v22, %v713_v6  ;;  %v543_v46 = vrot.slane %v510_v30, 1  ;;  %v790_v51 = vsel %vm443_vm3, %v788_v33, %v789_v34  ;;  %v587_v14 = vmul.f32 %v1074_v42, %v1129_v8 }
  0x3c   : > { %v668_v48 = vadd.f32 %v660_v5, %v648_v32  ;;  %v544_v7 = vrot.slane %v511_v35, 1  ;;  %v619_v53 = vrot.slane %v586_v13, 2  ;;  %v661_v2 = vmul.f32 %v1082_v57, %v1133_v19 }
  0x3d   : > { %v682_v56 = vmul.f32 %v1091_v62, %v1133_v19  ;;  %v683_v63 = vmul.f32 %v1091_v62, %v1148_v36  ;;  %v620_v15 = vrot.slane %v587_v14, 2  ;;  %v758_v0 = vmul.f32 %v1160_v44, %v1133_v19 }
  0x3e   : > { %v744_v60 = vadd.f32 %v714_v12, %v668_v48  ;;  %v545_v10 = vsel %vm366_vm2, %v543_v46, %v544_v7  ;;  %v759_v5 = vmul.f32 %v1160_v44, %v1148_v36  ;;  %v490_v3 = vmul.f32 %v1052_v27, %v1133_v19 }
  0x3f   : > { %v573_v8 = vadd.f32 %v545_v10, %v497_v39  ;;  %v715_v4 = vrot.slane %v682_v56, 1  ;;  %v716_v17 = vrot.slane %v683_v63, 1  ;;  %v621_v20 = vsel %vm443_vm3, %v619_v53, %v620_v15 }
  0x40   : > { %v820_v18 = vadd.f32 %v790_v51, %v744_v60  ;;  %v791_v22 = vrot.slane %v758_v0, 2  ;;  %v792_v6 = vrot.slane %v759_v5, 2  ;;  %v512_v29 = vmul.f32 %v1071_v41, %v1133_v19 }
  0x41   : > { %v649_v23 = vadd.f32 %v621_v20, %v573_v8  ;;  %v717_v24 = vsel %vm366_vm2, %v715_v4, %v716_v17  ;;  %v498_v30 = vadd.f32 %v490_v3, %v1199_v26  ;;  %v513_v32 = vmul.f32 %v1071_v41, %v1148_v36 }
  0x42   : > { %828 = vst.msk [vmem:[%s1314_s7] sm:$0xff] %vm242_vm0, %v820_v18  ;;  %v588_v33 = vmul.f32 %v1074_v42, %v1133_v19  ;;  %v589_v34 = vmul.f32 %v1074_v42, %v1148_v36  ;;  %v793_v12 = vsel %vm443_vm3, %v791_v22, %v792_v6  ;;  %v546_v39 = vrot.slane %v512_v29, 1 }
  0x43   : > { %v669_v35 = vadd.f32 %v661_v2, %v649_v23  ;;  %v662_v46 = vmul.f32 %v1082_v57, %v1153_v40  ;;  %v547_v13 = vrot.slane %v513_v32, 1  ;;  %v684_v26 = vmul.f32 %v1091_v62, %v1153_v40 }
  0x44   : > { %v622_v48 = vrot.slane %v588_v33, 2  ;;  %v623_v51 = vrot.slane %v589_v34, 2  ;;  %v685_v19 = vmul.f32 %v1091_v62, %v1167_v49  ;;  %v760_v36 = vmul.f32 %v1160_v44, %v1153_v40 }
  0x45   : > { %v745_v7 = vadd.f32 %v717_v24, %v669_v35  ;;  %v761_v14 = vmul.f32 %v1160_v44, %v1167_v49  ;;  %v548_v53 = vsel %vm366_vm2, %v546_v39, %v547_v13  ;;  %v718_v56 = vrot.slane %v684_v26, 1 }
  0x46   : > { %v624_v2 = vsel %vm443_vm3, %v622_v48, %v623_v51  ;;  %v491_v63 = vmul.f32 %v1052_v27, %v1153_v40  ;;  %v574_v10 = vadd.f32 %v548_v53, %v498_v30  ;;  %v719_v15 = vrot.slane %v685_v19, 1 }
  0x47   : > { %v821_v60 = vadd.f32 %v793_v12, %v745_v7  ;;  %v794_v0 = vrot.slane %v760_v36, 2  ;;  %v795_v8 = vrot.slane %v761_v14, 2  ;;  %v514_v17 = vmul.f32 %v1071_v41, %v1153_v40 }
  0x48   : > { %v499_v4 = vadd.f32 %v491_v63, %v1215_v47  ;;  %v515_v5 = vmul.f32 %v1071_v41, %v1167_v49  ;;  %v650_v18 = vadd.f32 %v624_v2, %v574_v10  ;;  %v720_v20 = vsel %vm366_vm2, %v718_v56, %v719_v15 }
  0x49   : > { %829 = vst.msk [vmem:[%s1314_s7 + $0x8] sm:$0xff] %vm242_vm0, %v821_v60  ;;  %v590_v22 = vmul.f32 %v1074_v42, %v1153_v40  ;;  %v591_v3 = vmul.f32 %v1074_v42, %v1167_v49  ;;  %v796_v23 = vsel %vm443_vm3, %v794_v0, %v795_v8  ;;  %v549_v47 = vrot.slane %v514_v17, 1 }
  0x4a   : > { %v550_v24 = vrot.slane %v515_v5, 1  ;;  %v663_v6 = vmul.f32 %v1082_v57, %v1179_v59  ;;  %v670_v29 = vadd.f32 %v662_v46, %v650_v18  ;;  %v686_v33 = vmul.f32 %v1091_v62, %v1179_v59 }
  0x4b   : > { %v625_v30 = vrot.slane %v590_v22, 2  ;;  %v626_v32 = vrot.slane %v591_v3, 2  ;;  %v687_v40 = vmul.f32 %v1091_v62, %v1192_v21  ;;  %v762_v49 = vmul.f32 %v1160_v44, %v1179_v59 }
  0x4c   : > { %v551_v34 = vsel %vm366_vm2, %v549_v47, %v550_v24  ;;  %v763_v35 = vmul.f32 %v1160_v44, %v1192_v21  ;;  %v746_v12 = vadd.f32 %v720_v20, %v670_v29  ;;  %v721_v13 = vrot.slane %v686_v33, 1 }
  0x4d   : > { %v575_v39 = vadd.f32 %v551_v34, %v499_v4  ;;  %v627_v46 = vsel %vm443_vm3, %v625_v30, %v626_v32  ;;  %v722_v48 = vrot.slane %v687_v40, 1  ;;  %v797_v51 = vrot.slane %v762_v49, 2 }
  0x4e   : > { %v798_v26 = vrot.slane %v763_v35, 2  ;;  %v492_v7 = vmul.f32 %v1052_v27, %v1179_v59  ;;  %v822_v19 = vadd.f32 %v796_v23, %v746_v12  ;;  %v516_v14 = vmul.f32 %v1071_v41, %v1179_v59 }
  0x4f   : > { %v651_v36 = vadd.f32 %v627_v46, %v575_v39  ;;  %v517_v53 = vmul.f32 %v1071_v41, %v1192_v21  ;;  %v1384_v2 = vsel %vm443_vm3, %v465_v54, %v466_v11  ;;  %v723_v56 = vsel %vm366_vm2, %v721_v13, %v722_v48 }
  0x50   : > { %v500_v63 = vadd.f32 %v492_v7, %v1240_v25  ;;  %v592_v60 = vmul.f32 %v1074_v42, %v1179_v59  ;;  %830 = vst.msk [vmem:[%s1314_s7 + $0x10] sm:$0xff] %vm242_vm0, %v822_v19  ;;  %v552_v15 = vrot.slane %v516_v14, 1  ;;  %v593_v43 = vmul.f32 %v1074_v42, %v1192_v21 }
  0x51   : > { %v671_v10 = vadd.f32 %v663_v6, %v651_v36  ;;  %v553_v0 = vrot.slane %v517_v53, 1  ;;  %v799_v37 = vsel %vm443_vm3, %v797_v51, %v798_v26  ;;  %v688_v54 = vmul.f32 %v1091_v62, %v1202_v31 }
  0x52   : > { %v628_v8 = vrot.slane %v592_v60, 2  ;;  %v689_v25 = vmul.f32 %v1091_v62, %v1210_v38  ;;  %v629_v4 = vrot.slane %v593_v43, 2  ;;  %v764_v17 = vmul.f32 %v1160_v44, %v1202_v31 }
  0x53   : > { %v747_v11 = vadd.f32 %v723_v56, %v671_v10  ;;  %v554_v59 = vsel %vm366_vm2, %v552_v15, %v553_v0  ;;  %v724_v18 = vrot.slane %v688_v54, 1  ;;  %v765_v20 = vmul.f32 %v1160_v44, %v1210_v38  ;;  %v289_v0 = vld [vmem:[#allocation2 + $0x80] sm:$0xff]  ;;  %v290_v54 = vld [vmem:[#allocation2 + $0x88] sm:$0x3] }
  0x54   : > { %v576_v5 = vadd.f32 %v554_v59, %v500_v63  ;;  %v725_v21 = vrot.slane %v689_v25, 1  ;;  %v630_v3 = vsel %vm443_vm3, %v628_v8, %v629_v4  ;;  %v664_v23 = vmul.f32 %v1082_v57, %v1202_v31 }
  0x55   : > { %v823_v22 = vadd.f32 %v799_v37, %v747_v11  ;;  %v800_v47 = vrot.slane %v764_v17, 2  ;;  %v801_v6 = vrot.slane %v765_v20, 2  ;;  %v493_v29 = vmul.f32 %v1052_v27, %v1202_v31 }
  0x56   : > { %v652_v24 = vadd.f32 %v630_v3, %v576_v5  ;;  %v518_v30 = vmul.f32 %v1071_v41, %v1202_v31  ;;  %v726_v32 = vsel %vm366_vm2, %v724_v18, %v725_v21  ;;  %v519_v33 = vmul.f32 %v1071_v41, %v1210_v38 }
  0x57   : > { %831 = vst.msk [vmem:[%s1314_s7 + $0x18] sm:$0xff] %vm242_vm0, %v823_v22  ;;  %v594_v34 = vmul.f32 %v1074_v42, %v1202_v31  ;;  %v595_v40 = vmul.f32 %v1074_v42, %v1210_v38  ;;  %v802_v35 = vsel %vm443_vm3, %v800_v47, %v801_v6  ;;  %v501_v12 = vadd.f32 %v493_v29, %v1257_v1 }
  0x58   : > { %v672_v49 = vadd.f32 %v664_v23, %v652_v24  ;;  %v555_v39 = vrot.slane %v518_v30, 1  ;;  %v556_v46 = vrot.slane %v519_v33, 1  ;;  %v690_v51 = vmul.f32 %v1091_v62, %v1221_v55 }
  0x59   : > { %v631_v13 = vrot.slane %v594_v34, 2  ;;  %v632_v48 = vrot.slane %v595_v40, 2  ;;  %v691_v7 = vmul.f32 %v1091_v62, %v1231_v16  ;;  %v766_v31 = vmul.f32 %v1160_v44, %v1221_v55 }
  0x5a   : > { %v748_v26 = vadd.f32 %v726_v32, %v672_v49  ;;  %v767_v38 = vmul.f32 %v1160_v44, %v1231_v16  ;;  %v557_v1 = vsel %vm366_vm2, %v555_v39, %v556_v46  ;;  %v665_v36 = vmul.f32 %v1082_v57, %v1221_v55 }
  0x5b   : > { %v633_v19 = vsel %vm443_vm3, %v631_v13, %v632_v48  ;;  %v727_v14 = vrot.slane %v690_v51, 1  ;;  %v577_v56 = vadd.f32 %v557_v1, %v501_v12  ;;  %v728_v63 = vrot.slane %v691_v7, 1 }
  0x5c   : > { %v824_v53 = vadd.f32 %v802_v35, %v748_v26  ;;  %v494_v60 = vmul.f32 %v1052_v27, %v1221_v55  ;;  %v803_v10 = vrot.slane %v766_v31, 2  ;;  %v804_v15 = vrot.slane %v767_v38, 2 }
  0x5d   : > { %v520_v43 = vmul.f32 %v1071_v41, %v1221_v55  ;;  %v521_v37 = vmul.f32 %v1071_v41, %v1231_v16  ;;  %v653_v8 = vadd.f32 %v633_v19, %v577_v56  ;;  %v596_v11 = vmul.f32 %v1074_v42, %v1221_v55 }
  0x5e   : > { %832 = vst.msk [vmem:[%s1314_s7 + $0x20] sm:$0xff] %vm242_vm0, %v824_v53  ;;  %v502_v25 = vadd.f32 %v494_v60, %v1264_v52  ;;  %v597_v59 = vmul.f32 %v1074_v42, %v1231_v16  ;;  %v483_v4 = vadd.f32 %v1384_v2, %v1273_v61  ;;  %v729_v17 = vsel %vm366_vm2, %v727_v14, %v728_v63 }
  0x5f   : > { %v558_v5 = vrot.slane %v520_v43, 1  ;;  %v559_v18 = vrot.slane %v521_v37, 1  ;;  %v673_v21 = vadd.f32 %v665_v36, %v653_v8  ;;  %v634_v20 = vrot.slane %v596_v11, 2 }
  0x60   : > { %v635_v22 = vrot.slane %v597_v59, 2  ;;  %v692_v3 = vmul.f32 %v1091_v62, %v289_v0  ;;  %v693_v23 = vmul.f32 %v1091_v62, %v290_v54  ;;  %v768_v55 = vmul.f32 %v1160_v44, %v289_v0 }
  0x61   : > { %v560_v52 = vsel %vm366_vm2, %v558_v5, %v559_v18  ;;  %v769_v16 = vmul.f32 %v1160_v44, %v290_v54  ;;  %v749_v47 = vadd.f32 %v729_v17, %v673_v21  ;;  %v805_v61 = vsel %vm443_vm3, %v803_v10, %v804_v15 }
  0x62   : > { %v578_v2 = vadd.f32 %v560_v52, %v502_v25  ;;  %v666_v24 = vmul.f32 %v1082_v57, %v289_v0  ;;  %v636_v6 = vsel %vm443_vm3, %v634_v20, %v635_v22  ;;  %v730_v29 = vrot.slane %v692_v3, 1 }
  0x63   : > { %v731_v30 = vrot.slane %v693_v23, 1  ;;  %v495_v32 = vmul.f32 %v1052_v27, %v289_v0  ;;  %v825_v33 = vadd.f32 %v805_v61, %v749_v47  ;;  %v522_v62 = vmul.f32 %v1071_v41, %v289_v0 }
  0x64   : > { %v654_v34 = vadd.f32 %v636_v6, %v578_v2  ;;  %v523_v40 = vmul.f32 %v1071_v41, %v290_v54  ;;  %v806_v49 = vrot.slane %v768_v55, 2  ;;  %v807_v35 = vrot.slane %v769_v16, 2 }
  0x65   : > { %v503_v12 = vadd.f32 %v495_v32, %v483_v4  ;;  %v598_v39 = vmul.f32 %v1074_v42, %v289_v0  ;;  %833 = vst.msk [vmem:[%s1314_s7 + $0x28] sm:$0xff] %vm242_vm0, %v825_v33  ;;  %v561_v13 = vrot.slane %v522_v62, 1  ;;  %v599_v51 = vmul.f32 %v1074_v42, %v290_v54 }
  0x66   : > { %v674_v46 = vadd.f32 %v666_v24, %v654_v34  ;;  %v562_v48 = vrot.slane %v523_v40, 1  ;;  %v732_v27 = vsel %vm366_vm2, %v730_v29, %v731_v30  ;;  %v733_v7 = vrot.slane %v1117_v9, 1 }
  0x67   : > { %v637_v26 = vrot.slane %v598_v39, 2  ;;  %v771_v41 = vmul.f32 %v1160_v44, %v1141_v28  ;;  %v638_v1 = vrot.slane %v599_v51, 2  ;;  %v734_v19 = vrot.slane %v1164_v45, 1 }
  0x68   : > { %v750_v31 = vadd.f32 %v732_v27, %v674_v46  ;;  %v563_v38 = vsel %vm366_vm2, %v561_v13, %v562_v48  ;;  %v808_v36 = vsel %vm443_vm3, %v806_v49, %v807_v35  ;;  %v667_v42 = vmul.f32 %v1082_v57, %v1084_v58 }
  0x69   : > { %v579_v14 = vadd.f32 %v563_v38, %v503_v12  ;;  %v639_v56 = vsel %vm443_vm3, %v637_v26, %v638_v1  ;;  %v735_v28 = vsel %vm366_vm2, %v733_v7, %v734_v19  ;;  %v809_v44 = vrot.slane %v1171_v50, 2 }
  0x6a   : > { %v826_v53 = vadd.f32 %v808_v36, %v750_v31  ;;  %v810_v63 = vrot.slane %v771_v41, 2 }
  0x6b   : > { %v655_v9 = vadd.f32 %v639_v56, %v579_v14 }
  0x6c   : > { %834 = vst.msk [vmem:[%s1314_s7 + $0x30] sm:$0xff] %vm242_vm0, %v826_v53  ;;  %v811_v45 = vsel %vm443_vm3, %v809_v44, %v810_v63 }
  0x6d   : > { %v675_v60 = vadd.f32 %v667_v42, %v655_v9 }
  0x6f   : > { %v751_v10 = vadd.f32 %v735_v28, %v675_v60 }
  0x71   : > { %v827_v15 = vadd.f32 %v811_v45, %v751_v10 }
  0x73   : > { %835 = vst.msk [vmem:[%s1314_s7 + $0x38] sm:$0xff] %vm242_vm0, %v827_v15 }
  0x74 PF: > { %s14_s15 = sadd.s32 1, %s936_s15  }
  0x75   : > { %p11_p4 = scmp.ge.s32.totalorder %s14_s15, 4  }
  0x77   :  { %13 = sbr.rel (!%p11_p4) target bundleno = 1 (0x1), region = 70 }

// kernel: shformer_best_forward.10
= control target key start
LH: loop header
LB: loop body
LE: loop exit
PB: predicated region body
PF: predicated region fallthrough
CT: control target
= control target key end

     0   :  { %vm96_vm0 = vcmask 523264   ;;  %vm218_vm1 = vcmask 130048   ;;  %vm618_vm2 = vcmask 261120   ;;  %s1688_s1 = inlined_call_operand.vmem [shape: bf16[64,16], index: 1, kind: input, shape index: {}]   ;;  %s1689_s0 = inlined_call_operand.vmem [shape: f32[128,64], index: 0, kind: input, shape index: {}]   ;;  %s1690_s2 = inlined_call_operand.vmem [shape: f32[1,16], index: 2, kind: input, shape index: {}]   ;;  %s1691_s5 = inlined_call_operand.vmem [shape: bf16[16,32], index: 5, kind: input, shape index: {}]   ;;  %s1692_s3 = inlined_call_operand.vmem [shape: f32[1,16], index: 3, kind: input, shape index: {}]   ;;  %s1693_s4 = inlined_call_operand.vmem [shape: f32[1,16], index: 4, kind: input, shape index: {}]   ;;  %s1694_s6 = inlined_call_operand.vmem [shape: f32[1,32], index: 6, kind: input, shape index: {}]   ;;  %s1695_s7 = inlined_call_operand.vmem [shape: f32[1,32], index: 7, kind: input, shape index: {}]   ;;  %s1696_s8 = inlined_call_operand.vmem [shape: f32[1,32], index: 8, kind: input, shape index: {}]   ;;  %s1697_s9 = inlined_call_operand.vmem [shape: f32[128,32], index: 9, kind: output, shape index: {}]  }
   0x1   :  { %v984_v0 = vld [vmem:[%s1688_s1] sm:$0xff]   ;;  %v985_v1 = vld [vmem:[%s1688_s1 + $0x8] sm:$0xff]   ;;  %v986_v2 = vld [vmem:[%s1688_s1 + $0x10] sm:$0xff]  }
   0x2   :  { %942 = vmatprep.subr.bf16.mxu0 %v984_v0  ;;  %v33_v3 = vld [vmem:[%s1689_s0] sm:$0xff]  ;;  %v34_v4 = vld [vmem:[%s1689_s0 + $0x8] sm:$0xff]  ;;  %v987_v6 = vld [vmem:[%s1688_s1 + $0x18] sm:$0xff]  }
   0x3   :  { %943 = vmatpush3.bf16.msra.mxu0 %v984_v0  ;;  %v49_v5 = vpack.c.bf16 %v34_v4, %v33_v3  ;;  %v35_v7 = vld [vmem:[%s1689_s0 + $0x10] sm:$0xff]  ;;  %v36_v8 = vld [vmem:[%s1689_s0 + $0x18] sm:$0xff]  ;;  %v37_v9 = vld [vmem:[%s1689_s0 + $0x20] sm:$0xff] }
   0x4   :  { %944 = vmatprep.subr.bf16.mxu0 %v985_v1  ;;  %v38_v10 = vld [vmem:[%s1689_s0 + $0x28] sm:$0xff]  ;;  %v50_v11 = vpack.c.bf16 %v36_v8, %v35_v7  ;;  %v39_v13 = vld [vmem:[%s1689_s0 + $0x30] sm:$0xff]  ;;  %v40_v14 = vld [vmem:[%s1689_s0 + $0x38] sm:$0xff] }
   0x5   :  { %950 = vmatprep.mubr.msk.bf16.mxu0 %vm96_vm0, %v49_v5  ;;  %v51_v12 = vpack.c.bf16 %v38_v10, %v37_v9  ;;  %v41_v15 = vld [vmem:[%s1689_s0 + $0x40] sm:$0xff]  ;;  %v42_v16 = vld [vmem:[%s1689_s0 + $0x48] sm:$0xff]  ;;  %v52_v17 = vpack.c.bf16 %v40_v14, %v39_v13  ;;  %v43_v19 = vld [vmem:[%s1689_s0 + $0x50] sm:$0xff] }
   0x6   :  { %v53_v18 = vpack.c.bf16 %v42_v16, %v41_v15  ;;  %v44_v20 = vld [vmem:[%s1689_s0 + $0x58] sm:$0xff]  ;;  %v45_v21 = vld [vmem:[%s1689_s0 + $0x60] sm:$0xff]  ;;  %v46_v22 = vld [vmem:[%s1689_s0 + $0x68] sm:$0xff] }
   0x7   :  { %945 = vmatpush3.bf16.msra.mxu0 %v985_v1  ;;  %v54_v23 = vpack.c.bf16 %v44_v20, %v43_v19  ;;  %v55_v24 = vpack.c.bf16 %v46_v22, %v45_v21  ;;  %v47_v25 = vld [vmem:[%s1689_s0 + $0x70] sm:$0xff]  ;;  %v48_v26 = vld [vmem:[%s1689_s0 + $0x78] sm:$0xff]  ;;  %v894_v28 = vld [vmem:[%s1690_s2] ss:$0 sm:$0xff] }
   0x8   :  { %946 = vmatprep.subr.bf16.mxu0 %v986_v2  ;;  %v56_v27 = vpack.c.bf16 %v48_v26, %v47_v25 }
   0xb   :  { %947 = vmatpush3.bf16.msra.mxu0 %v986_v2 }
   0xc   :  { %948 = vmatprep.subr.bf16.mxu0 %v987_v6 }
   0xf   :  { %949 = vmatpush3.bf16.msra.mxu0 %v987_v6 }
  0x12   :  { %951 = vmatmul.mubr.msk.bf16.vlgmr.msra.gmra.mrb[0].mxu0 %vm96_vm0, %v50_v11 }
  0x13   :  { %954 = vmatprep.mubr.msk.bf16.mxu0 %vm96_vm0, %v51_v12 }
  0x1a   :  { %955 = vmatmul.mubr.msk.bf16.gmra.mrb[4].mxu0 %vm96_vm0, %v52_v17 }
  0x1b   :  { %958 = vmatprep.mubr.msk.bf16.mxu0 %vm96_vm0, %v53_v18 }
  0x22   :  { %959 = vmatmul.mubr.msk.bf16.gmra.mrb[8].mxu0 %vm96_vm0, %v54_v23 }
  0x23   :  { %962 = vmatprep.mubr.msk.bf16.mxu0 %vm96_vm0, %v55_v24 }
  0x2a   :  { %963 = vmatmul.mubr.msk.bf16.gmra.mrb[12].mxu0 %vm96_vm0, %v56_v27 }
  0xe5   :  { %v952_v29 = vpop.f32.mrb[0].mxu0 }
  0xe6   :  { %v1174_v30 = vadd.f32 %v952_v29, %v894_v28  ;;  %v155_v31 = vpop.f32.mrb[1].mxu0 }
  0xe7   :  { %v1176_v32 = vadd.f32 %v894_v28, %v155_v31  ;;  %v953_v33 = vpop.f32.mrb[2].mxu0 }
  0xe8   :  { %v1178_v34 = vadd.f32 %v953_v33, %v894_v28  ;;  %v158_v35 = vpop.f32.mrb[3].mxu0  ;;  %v225_v36 = vsel %vm218_vm1, %v1174_v30, 0.0 }
  0xe9   :  { %v1182_v37 = vadd.f32 %v894_v28, %v158_v35  ;;  %226 = vadd.xlane.f32.xlu1 %v225_v36  ;;  %v219_v38 = vsel %vm218_vm1, %v1176_v32, 0.0 }
  0xea   :  { %220 = vadd.xlane.f32.xlu0 %v219_v38  ;;  %v228_v39 = vsel %vm218_vm1, %v1178_v34, 0.0 }
  0xeb   :  { %v222_v41 = vsel %vm218_vm1, %v1182_v37, 0.0 }
  0xed   :  { %229 = vadd.xlane.f32.xlu1 %v228_v39  ;;  %v956_v40 = vpop.f32.mrb[4].mxu0 }
  0xee   :  { %v171_v42 = vpop.f32.mrb[5].mxu0  ;;  %223 = vadd.xlane.f32.xlu0 %v222_v41  ;;  %v1192_v46 = vadd.f32 %v956_v40, %v894_v28 }
  0xef   :  { %v1190_v43 = vadd.f32 %v894_v28, %v171_v42  ;;  %v957_v44 = vpop.f32.mrb[6].mxu0 }
  0xf0   :  { %v174_v45 = vpop.f32.mrb[7].mxu0  ;;  %v1198_v49 = vadd.f32 %v957_v44, %v894_v28  ;;  %v237_v52 = vsel %vm218_vm1, %v1192_v46, 0.0 }
  0xf1   :  { %v1194_v47 = vadd.f32 %v894_v28, %v174_v45  ;;  %v231_v48 = vsel %vm218_vm1, %v1190_v43, 0.0 }
  0xf2   :  { %232 = vadd.xlane.f32.xlu0 %v231_v48  ;;  %v240_v56 = vsel %vm218_vm1, %v1198_v49, 0.0 }
  0xf3   :  { %v234_v50 = vsel %vm218_vm1, %v1194_v47, 0.0 }
  0xf4   :  { %235 = vadd.xlane.f32.xlu1 %v234_v50 }
  0xf5   :  { %v960_v51 = vpop.f32.mrb[8].mxu0 }
  0xf6   :  { %v187_v53 = vpop.f32.mrb[9].mxu0  ;;  %238 = vadd.xlane.f32.xlu0 %v237_v52  ;;  %v1208_v58 = vadd.f32 %v960_v51, %v894_v28 }
  0xf7   :  { %v1204_v54 = vadd.f32 %v894_v28, %v187_v53  ;;  %v961_v55 = vpop.f32.mrb[10].mxu0 }
  0xf8   :  { %v190_v57 = vpop.f32.mrb[11].mxu0  ;;  %241 = vadd.xlane.f32.xlu1 %v240_v56  ;;  %v1214_v61 = vadd.f32 %v961_v55, %v894_v28  ;;  %v249_v0 = vsel %vm218_vm1, %v1208_v58, 0.0 }
  0xf9   :  { %v1210_v59 = vadd.f32 %v894_v28, %v190_v57  ;;  %v243_v60 = vsel %vm218_vm1, %v1204_v54, 0.0 }
  0xfa   :  { %244 = vadd.xlane.f32.xlu0 %v243_v60  ;;  %v252_v4 = vsel %vm218_vm1, %v1214_v61, 0.0 }
  0xfb   :  { %v246_v62 = vsel %vm218_vm1, %v1210_v59, 0.0 }
  0xfc   :  { %247 = vadd.xlane.f32.xlu1 %v246_v62 }
  0xfd   :  { %v964_v63 = vpop.f32.mrb[12].mxu0 }
  0xfe   :  { %v203_v1 = vpop.f32.mrb[13].mxu0  ;;  %250 = vadd.xlane.f32.xlu0 %v249_v0  ;;  %v1224_v6 = vadd.f32 %v964_v63, %v894_v28 }
  0xff   :  { %v1220_v2 = vadd.f32 %v894_v28, %v203_v1  ;;  %v965_v3 = vpop.f32.mrb[14].mxu0 }
 0x100   :  { %v206_v5 = vpop.f32.mrb[15].mxu0  ;;  %253 = vadd.xlane.f32.xlu1 %v252_v4  ;;  %v1230_v9 = vadd.f32 %v965_v3, %v894_v28  ;;  %v261_v11 = vsel %vm218_vm1, %v1224_v6, 0.0 }
 0x101   :  { %v1226_v7 = vadd.f32 %v894_v28, %v206_v5  ;;  %v255_v8 = vsel %vm218_vm1, %v1220_v2, 0.0 }
 0x102   :  { %256 = vadd.xlane.f32.xlu0 %v255_v8  ;;  %v264_v12 = vsel %vm218_vm1, %v1230_v9, 0.0 }
 0x103   :  { %v258_v10 = vsel %vm218_vm1, %v1226_v7, 0.0 }
 0x104   :  { %259 = vadd.xlane.f32.xlu1 %v258_v10 }
 0x106   :  { %262 = vadd.xlane.f32.xlu0 %v261_v11 }
 0x108   :  { %265 = vadd.xlane.f32.xlu1 %v264_v12 }
 0x176   :  { %v227_v13 = vpop.xlane.xlu1 %226 }
 0x177   :  { %v270_v14 = vmul.f32 0.0625, %v227_v13  ;;  %v221_v15 = vpop.xlane.xlu0 %220 }
 0x178   :  { %v268_v16 = vmul.f32 0.0625, %v221_v15 }
 0x179   :  { %v1239_v17 = vsub.f32 %v1174_v30, %v270_v14 }
 0x17a   :  { %v1242_v18 = vsub.f32 %v1176_v32, %v268_v16  ;;  %v230_v19 = vpop.xlane.xlu1 %229 }
 0x17b   :  { %v271_v20 = vmul.f32 0.0625, %v230_v19  ;;  %v224_v21 = vpop.xlane.xlu0 %223  ;;  %v302_v27 = vmul.f32 %v1239_v17, %v1239_v17 }
 0x17c   :  { %v269_v22 = vmul.f32 0.0625, %v224_v21  ;;  %v300_v23 = vmul.f32 %v1242_v18, %v1242_v18 }
 0x17d   :  { %v1247_v24 = vsub.f32 %v1178_v34, %v271_v20  ;;  %v322_v35 = vsel %vm218_vm1, %v302_v27, 0.0 }
 0x17e   :  { %v1250_v25 = vsub.f32 %v1182_v37, %v269_v22  ;;  %v316_v26 = vsel %vm218_vm1, %v300_v23, 0.0 }
 0x17f   :  { %317 = vadd.xlane.f32.xlu0 %v316_v26  ;;  %v233_v28 = vpop.xlane.xlu0 %232  ;;  %v303_v32 = vmul.f32 %v1247_v24, %v1247_v24 }
 0x180   :  { %v272_v29 = vmul.f32 0.0625, %v233_v28  ;;  %v301_v30 = vmul.f32 %v1250_v25, %v1250_v25 }
 0x181   :  { %v236_v31 = vpop.xlane.xlu1 %235  ;;  %v325_v42 = vsel %vm218_vm1, %v303_v32, 0.0 }
 0x182   :  { %v1260_v33 = vsub.f32 %v1190_v43, %v272_v29  ;;  %v273_v34 = vmul.f32 0.0625, %v236_v31  ;;  %v319_v36 = vsel %vm218_vm1, %v301_v30, 0.0 }
 0x183   :  { %323 = vadd.xlane.f32.xlu0 %v322_v35  ;;  %320 = vadd.xlane.f32.xlu1 %v319_v36  ;;  %v239_v37 = vpop.xlane.xlu0 %238 }
 0x184   :  { %v1265_v38 = vsub.f32 %v1194_v47, %v273_v34  ;;  %v274_v39 = vmul.f32 0.0625, %v239_v37  ;;  %v304_v40 = vmul.f32 %v1260_v33, %v1260_v33 }
 0x185   :  { %v242_v41 = vpop.xlane.xlu1 %241 }
 0x186   :  { %v1271_v43 = vsub.f32 %v1192_v46, %v274_v39  ;;  %v275_v44 = vmul.f32 0.0625, %v242_v41  ;;  %v328_v45 = vsel %vm218_vm1, %v304_v40, 0.0  ;;  %v305_v48 = vmul.f32 %v1265_v38, %v1265_v38 }
 0x187   :  { %326 = vadd.xlane.f32.xlu1 %v325_v42  ;;  %329 = vadd.xlane.f32.xlu0 %v328_v45  ;;  %v245_v47 = vpop.xlane.xlu0 %244 }
 0x188   :  { %v1277_v50 = vsub.f32 %v1198_v49, %v275_v44  ;;  %v276_v51 = vmul.f32 0.0625, %v245_v47  ;;  %v306_v52 = vmul.f32 %v1271_v43, %v1271_v43  ;;  %v331_v46 = vsel %vm218_vm1, %v305_v48, 0.0 }
 0x189   :  { %v248_v53 = vpop.xlane.xlu1 %247 }
 0x18a   :  { %v1283_v55 = vsub.f32 %v1204_v54, %v276_v51  ;;  %v277_v56 = vmul.f32 0.0625, %v248_v53  ;;  %v334_v57 = vsel %vm218_vm1, %v306_v52, 0.0  ;;  %v307_v60 = vmul.f32 %v1277_v50, %v1277_v50 }
 0x18b   :  { %332 = vadd.xlane.f32.xlu1 %v331_v46  ;;  %335 = vadd.xlane.f32.xlu0 %v334_v57  ;;  %v251_v49 = vpop.xlane.xlu0 %250 }
 0x18c   :  { %v1289_v62 = vsub.f32 %v1210_v59, %v277_v56  ;;  %v278_v63 = vmul.f32 0.0625, %v251_v49  ;;  %v308_v0 = vmul.f32 %v1283_v55, %v1283_v55  ;;  %v337_v54 = vsel %vm218_vm1, %v307_v60, 0.0 }
 0x18d   :  { %v254_v1 = vpop.xlane.xlu1 %253 }
 0x18e   :  { %v1295_v3 = vsub.f32 %v1208_v58, %v278_v63  ;;  %v279_v4 = vmul.f32 0.0625, %v254_v1  ;;  %v340_v5 = vsel %vm218_vm1, %v308_v0, 0.0  ;;  %v309_v8 = vmul.f32 %v1289_v62, %v1289_v62 }
 0x18f   :  { %338 = vadd.xlane.f32.xlu1 %v337_v54  ;;  %341 = vadd.xlane.f32.xlu0 %v340_v5  ;;  %v257_v59 = vpop.xlane.xlu0 %256 }
 0x190   :  { %v1301_v10 = vsub.f32 %v1214_v61, %v279_v4  ;;  %v280_v11 = vmul.f32 0.0625, %v257_v59  ;;  %v310_v12 = vmul.f32 %v1295_v3, %v1295_v3  ;;  %v343_v58 = vsel %vm218_vm1, %v309_v8, 0.0 }
 0x191   :  { %v260_v13 = vpop.xlane.xlu1 %259 }
 0x192   :  { %v1307_v14 = vsub.f32 %v1220_v2, %v280_v11  ;;  %v281_v15 = vmul.f32 0.0625, %v260_v13  ;;  %v346_v16 = vsel %vm218_vm1, %v310_v12, 0.0  ;;  %v311_v19 = vmul.f32 %v1301_v10, %v1301_v10  ;;  %v1341_v11 = vld [vmem:[%s1692_s3] ss:$0 sm:$0xff] }
 0x193   :  { %344 = vadd.xlane.f32.xlu1 %v343_v58  ;;  %347 = vadd.xlane.f32.xlu0 %v346_v16  ;;  %v263_v61 = vpop.xlane.xlu0 %262 }
 0x194   :  { %v1313_v20 = vsub.f32 %v1226_v7, %v281_v15  ;;  %v282_v21 = vmul.f32 0.0625, %v263_v61  ;;  %v312_v22 = vmul.f32 %v1307_v14, %v1307_v14  ;;  %v349_v2 = vsel %vm218_vm1, %v311_v19, 0.0 }
 0x195   :  { %v266_v23 = vpop.xlane.xlu1 %265 }
 0x196   :  { %v1319_v26 = vsub.f32 %v1224_v6, %v282_v21  ;;  %v283_v27 = vmul.f32 0.0625, %v266_v23  ;;  %v352_v28 = vsel %vm218_vm1, %v312_v22, 0.0  ;;  %v313_v29 = vmul.f32 %v1313_v20, %v1313_v20 }
 0x197   :  { %350 = vadd.xlane.f32.xlu1 %v349_v2  ;;  %353 = vadd.xlane.f32.xlu0 %v352_v28  ;;  %v1349_v2 = vld [vmem:[%s1693_s4] ss:$0 sm:$0xff] }
 0x198   :  { %v1325_v7 = vsub.f32 %v1230_v9, %v283_v27  ;;  %v314_v30 = vmul.f32 %v1319_v26, %v1319_v26  ;;  %v355_v31 = vsel %vm218_vm1, %v313_v29, 0.0  ;;  %v988_v9 = vld [vmem:[%s1691_s5] sm:$0xff]  }
 0x199   :  { %966 = vmatprep.subr.bf16.mxu1 %v988_v9 }
 0x19a   :  { %v358_v32 = vsel %vm218_vm1, %v314_v30, 0.0  ;;  %v315_v6 = vmul.f32 %v1325_v7, %v1325_v7  ;;  %967 = vmatpush3.bf16.msra.mxu1 %v988_v9 }
 0x19b   :  { %356 = vadd.xlane.f32.xlu1 %v355_v31  ;;  %359 = vadd.xlane.f32.xlu0 %v358_v32 }
 0x19c   :  { %v361_v34 = vsel %vm218_vm1, %v315_v6, 0.0 }
 0x19f   :  { %362 = vadd.xlane.f32.xlu1 %v361_v34 }
 0x20c   :  { %v318_v35 = vpop.xlane.xlu0 %317 }
 0x20d   :  { %v364_v36 = vmul.f32 0.0625, %v318_v35 }
 0x20f   :  { %v380_v37 = vadd.f32 1e-06, %v364_v36 }
 0x210   :  { %v321_v39 = vpop.xlane.xlu1 %320  ;;  %v324_v40 = vpop.xlane.xlu0 %323 }
 0x211   :  { %989 = vrsqrt.f32 %v380_v37  ;;  %v365_v41 = vmul.f32 0.0625, %v321_v39  ;;  %v366_v42 = vmul.f32 0.0625, %v324_v40 }
 0x213   :  { %v381_v44 = vadd.f32 1e-06, %v365_v41  ;;  %v382_v45 = vadd.f32 1e-06, %v366_v42 }
 0x214   :  { %v327_v48 = vpop.xlane.xlu1 %326  ;;  %v330_v47 = vpop.xlane.xlu0 %329 }
 0x215   :  { %991 = vrsqrt.f32 %v381_v44  ;;  %v367_v51 = vmul.f32 0.0625, %v327_v48  ;;  %v368_v52 = vmul.f32 0.0625, %v330_v47 }
 0x216   :  { %993 = vrsqrt.f32 %v382_v45 }
 0x217   :  { %v383_v53 = vadd.f32 1e-06, %v367_v51  ;;  %v384_v46 = vadd.f32 1e-06, %v368_v52 }
 0x218   :  { %v333_v56 = vpop.xlane.xlu1 %332  ;;  %v336_v57 = vpop.xlane.xlu0 %335 }
 0x219   :  { %995 = vrsqrt.f32 %v383_v53  ;;  %v369_v60 = vmul.f32 0.0625, %v333_v56  ;;  %v370_v49 = vmul.f32 0.0625, %v336_v57 }
 0x21a   :  { %997 = vrsqrt.f32 %v384_v46 }
 0x21b   :  { %v990_v63 = vpop.eup %989  ;;  %v385_v0 = vadd.f32 1e-06, %v369_v60  ;;  %v386_v1 = vadd.f32 1e-06, %v370_v49 }
 0x21c   :  { %v339_v54 = vpop.xlane.xlu1 %338  ;;  %v342_v4 = vpop.xlane.xlu0 %341  ;;  %v412_v5 = vmul.f32 %v990_v63, %v1242_v18 }
 0x21d   :  { %999 = vrsqrt.f32 %v385_v0  ;;  %v371_v8 = vmul.f32 0.0625, %v339_v54  ;;  %v372_v59 = vmul.f32 0.0625, %v342_v4 }
 0x21e   :  { %1001 = vrsqrt.f32 %v386_v1  ;;  %v435_v21 = vmul.f32 %v1341_v11, %v412_v5 }
 0x21f   :  { %v992_v12 = vpop.eup %991  ;;  %v387_v13 = vadd.f32 1e-06, %v371_v8  ;;  %v388_v58 = vadd.f32 1e-06, %v372_v59 }
 0x220   :  { %v994_v15 = vpop.eup %993  ;;  %v345_v16 = vpop.xlane.xlu1 %344  ;;  %v413_v61 = vmul.f32 %v992_v12, %v1250_v25 }
 0x221   :  { %v348_v19 = vpop.xlane.xlu0 %347  ;;  %v414_v18 = vmul.f32 %v994_v15, %v1239_v17  ;;  %1003 = vrsqrt.f32 %v387_v13  ;;  %v373_v22 = vmul.f32 0.0625, %v345_v16  ;;  %v458_v17 = vadd.f32 %v1349_v2, %v435_v21 }
 0x222   :  { %v374_v23 = vmul.f32 0.0625, %v348_v19  ;;  %1005 = vrsqrt.f32 %v388_v58  ;;  %v436_v27 = vmul.f32 %v1341_v11, %v413_v61 }
 0x223   :  { %v996_v28 = vpop.eup %995  ;;  %v389_v29 = vadd.f32 1e-06, %v373_v22  ;;  %v437_v9 = vmul.f32 %v1341_v11, %v414_v18 }
 0x224   :  { %v390_v30 = vadd.f32 1e-06, %v374_v23  ;;  %v998_v31 = vpop.eup %997  ;;  %v415_v25 = vmul.f32 %v996_v28, %v1247_v24  ;;  %v351_v32 = vpop.xlane.xlu1 %350  ;;  %v459_v34 = vadd.f32 %v1349_v2, %v436_v27 }
 0x225   :  { %v354_v6 = vpop.xlane.xlu0 %353  ;;  %v416_v35 = vmul.f32 %v998_v31, %v1260_v33  ;;  %1007 = vrsqrt.f32 %v389_v29  ;;  %v375_v36 = vmul.f32 0.0625, %v351_v32  ;;  %v460_v51 = vadd.f32 %v1349_v2, %v437_v9 }
 0x226   :  { %v376_v37 = vmul.f32 0.0625, %v354_v6  ;;  %1009 = vrsqrt.f32 %v390_v30  ;;  %v474_v39 = vpack.c.bf16 %v459_v34, %v458_v17  ;;  %v438_v40 = vmul.f32 %v1341_v11, %v415_v25 }
 0x227   :  { %v1000_v41 = vpop.eup %999  ;;  %v391_v42 = vadd.f32 1e-06, %v375_v36  ;;  %v439_v52 = vmul.f32 %v1341_v11, %v416_v35 }
 0x228   :  { %v392_v24 = vadd.f32 1e-06, %v376_v37  ;;  %v1002_v44 = vpop.eup %1001  ;;  %v417_v45 = vmul.f32 %v1000_v41, %v1265_v38  ;;  %v357_v48 = vpop.xlane.xlu1 %356  ;;  %968 = vmatprep.mubr.msk.bf16.mxu1 %vm218_vm1, %v474_v39  ;;  %v461_v33 = vadd.f32 %v1349_v2, %v438_v40 }
 0x229   :  { %v360_v47 = vpop.xlane.xlu0 %359  ;;  %v418_v53 = vmul.f32 %v1002_v44, %v1271_v43  ;;  %1011 = vrsqrt.f32 %v391_v42  ;;  %v377_v46 = vmul.f32 0.0625, %v357_v48  ;;  %v462_v4 = vadd.f32 %v1349_v2, %v439_v52 }
 0x22a   :  { %v378_v56 = vmul.f32 0.0625, %v360_v47  ;;  %1013 = vrsqrt.f32 %v392_v24  ;;  %v475_v57 = vpack.c.bf16 %v461_v33, %v460_v51  ;;  %v440_v60 = vmul.f32 %v1341_v11, %v417_v45 }
 0x22b   :  { %v1004_v38 = vpop.eup %1003  ;;  %v393_v49 = vadd.f32 1e-06, %v377_v46  ;;  %v441_v5 = vmul.f32 %v1341_v11, %v418_v53 }
 0x22c   :  { %v394_v63 = vadd.f32 1e-06, %v378_v56  ;;  %v1006_v0 = vpop.eup %1005  ;;  %v419_v1 = vmul.f32 %v1004_v38, %v1277_v50  ;;  %v363_v54 = vpop.xlane.xlu1 %362  ;;  %969 = vmatmul.mubr.msk.bf16.vlgmr.msra.gmra.mrb[0].mxu1 %vm218_vm1, %v475_v57  ;;  %v463_v43 = vadd.f32 %v1349_v2, %v440_v60 }
 0x22d   :  { %v420_v8 = vmul.f32 %v1006_v0, %v1283_v55  ;;  %1015 = vrsqrt.f32 %v393_v49  ;;  %v379_v59 = vmul.f32 0.0625, %v363_v54  ;;  %v464_v19 = vadd.f32 %v1349_v2, %v441_v5 }
 0x22e   :  { %1017 = vrsqrt.f32 %v394_v63  ;;  %v476_v12 = vpack.c.bf16 %v463_v43, %v462_v4  ;;  %v442_v13 = vmul.f32 %v1341_v11, %v419_v1 }
 0x22f   :  { %v1008_v58 = vpop.eup %1007  ;;  %v395_v15 = vadd.f32 1e-06, %v379_v59  ;;  %v443_v21 = vmul.f32 %v1341_v11, %v420_v8 }
 0x230   :  { %v1010_v50 = vpop.eup %1009  ;;  %v421_v16 = vmul.f32 %v1008_v58, %v1289_v62  ;;  %972 = vmatprep.mubr.msk.bf16.mxu1 %vm218_vm1, %v476_v12  ;;  %v465_v61 = vadd.f32 %v1349_v2, %v442_v13 }
 0x231   :  { %v422_v55 = vmul.f32 %v1010_v50, %v1295_v3  ;;  %1019 = vrsqrt.f32 %v395_v15  ;;  %v466_v62 = vadd.f32 %v1349_v2, %v443_v21 }
 0x232   :  { %v477_v18 = vpack.c.bf16 %v465_v61, %v464_v19  ;;  %v444_v22 = vmul.f32 %v1341_v11, %v421_v16 }
 0x233   :  { %v1012_v23 = vpop.eup %1011  ;;  %v445_v30 = vmul.f32 %v1341_v11, %v422_v55 }
 0x234   :  { %v1014_v27 = vpop.eup %1013  ;;  %v423_v28 = vmul.f32 %v1012_v23, %v1301_v10  ;;  %973 = vmatmul.mubr.msk.bf16.gmra.mrb[4].mxu1 %vm218_vm1, %v477_v18  ;;  %v467_v29 = vadd.f32 %v1349_v2, %v444_v22 }
 0x235   :  { %v424_v31 = vmul.f32 %v1014_v27, %v1307_v14  ;;  %v468_v10 = vadd.f32 %v1349_v2, %v445_v30 }
 0x236   :  { %v478_v25 = vpack.c.bf16 %v467_v29, %v466_v62  ;;  %v446_v3 = vmul.f32 %v1341_v11, %v423_v28 }
 0x237   :  { %v1016_v32 = vpop.eup %1015  ;;  %v447_v9 = vmul.f32 %v1341_v11, %v424_v31 }
 0x238   :  { %v1018_v6 = vpop.eup %1017  ;;  %v425_v17 = vmul.f32 %v1016_v32, %v1313_v20  ;;  %976 = vmatprep.mubr.msk.bf16.mxu1 %vm218_vm1, %v478_v25  ;;  %v469_v34 = vadd.f32 %v1349_v2, %v446_v3 }
 0x239   :  { %v426_v35 = vmul.f32 %v1018_v6, %v1319_v26  ;;  %v470_v20 = vadd.f32 %v1349_v2, %v447_v9 }
 0x23a   :  { %v479_v36 = vpack.c.bf16 %v469_v34, %v468_v10  ;;  %v448_v14 = vmul.f32 %v1341_v11, %v425_v17 }
 0x23b   :  { %v1020_v37 = vpop.eup %1019  ;;  %v449_v41 = vmul.f32 %v1341_v11, %v426_v35 }
 0x23c   :  { %v427_v39 = vmul.f32 %v1020_v37, %v1325_v7  ;;  %977 = vmatmul.mubr.msk.bf16.gmra.mrb[8].mxu1 %vm218_vm1, %v479_v36  ;;  %v471_v40 = vadd.f32 %v1349_v2, %v448_v14  ;;  %v909_v7 = vld [vmem:[%s1694_s6] ss:$0 sm:$0xff] }
 0x23d   :  { %v472_v26 = vadd.f32 %v1349_v2, %v449_v41 }
 0x23e   :  { %v480_v42 = vpack.c.bf16 %v471_v40, %v470_v20  ;;  %v450_v24 = vmul.f32 %v1341_v11, %v427_v39 }
 0x240   :  { %980 = vmatprep.mubr.msk.bf16.mxu1 %vm218_vm1, %v480_v42  ;;  %v473_v44 = vadd.f32 %v1349_v2, %v450_v24 }
 0x242   :  { %v481_v45 = vpack.c.bf16 %v473_v44, %v472_v26 }
 0x244   :  { %981 = vmatmul.mubr.msk.bf16.gmra.mrb[12].mxu1 %vm218_vm1, %v481_v45 }
 0x2ff   :  { %v970_v48 = vpop.f32.mrb[0].mxu1 }
 0x300   :  { %v1406_v47 = vadd.f32 %v970_v48, %v909_v7  ;;  %v555_v51 = vpop.f32.mrb[1].mxu1 }
 0x301   :  { %v971_v33 = vpop.f32.mrb[2].mxu1  ;;  %v1408_v11 = vadd.f32 %v909_v7, %v555_v51 }
 0x302   :  { %v1410_v52 = vadd.f32 %v971_v33, %v909_v7  ;;  %v558_v53 = vpop.f32.mrb[3].mxu1  ;;  %v625_v2 = vsel %vm618_vm2, %v1406_v47, 0.0 }
 0x303   :  { %626 = vadd.xlane.f32.xlu0 %v625_v2  ;;  %v1414_v46 = vadd.f32 %v909_v7, %v558_v53  ;;  %v619_v57 = vsel %vm618_vm2, %v1408_v11, 0.0 }
 0x304   :  { %v628_v56 = vsel %vm618_vm2, %v1410_v52, 0.0 }
 0x305   :  { %629 = vadd.xlane.f32.xlu1 %v628_v56  ;;  %v622_v63 = vsel %vm618_vm2, %v1414_v46, 0.0 }
 0x307   :  { %620 = vadd.xlane.f32.xlu0 %v619_v57  ;;  %v974_v60 = vpop.f32.mrb[4].mxu1 }
 0x308   :  { %v1420_v38 = vadd.f32 %v974_v60, %v909_v7  ;;  %v571_v49 = vpop.f32.mrb[5].mxu1 }
 0x309   :  { %623 = vadd.xlane.f32.xlu1 %v622_v63  ;;  %v975_v0 = vpop.f32.mrb[6].mxu1  ;;  %v1424_v1 = vadd.f32 %v909_v7, %v571_v49 }
 0x30a   :  { %v1426_v54 = vadd.f32 %v975_v0, %v909_v7  ;;  %v574_v4 = vpop.f32.mrb[7].mxu1  ;;  %v637_v43 = vsel %vm618_vm2, %v1420_v38, 0.0 }
 0x30b   :  { %638 = vadd.xlane.f32.xlu0 %v637_v43  ;;  %v1430_v5 = vadd.f32 %v909_v7, %v574_v4  ;;  %v631_v59 = vsel %vm618_vm2, %v1424_v1, 0.0 }
 0x30c   :  { %v640_v8 = vsel %vm618_vm2, %v1426_v54, 0.0 }
 0x30d   :  { %641 = vadd.xlane.f32.xlu1 %v640_v8  ;;  %v634_v15 = vsel %vm618_vm2, %v1430_v5, 0.0 }
 0x30f   :  { %632 = vadd.xlane.f32.xlu0 %v631_v59  ;;  %v978_v12 = vpop.f32.mrb[8].mxu1 }
 0x310   :  { %v1436_v13 = vadd.f32 %v978_v12, %v909_v7  ;;  %v587_v58 = vpop.f32.mrb[9].mxu1 }
 0x311   :  { %635 = vadd.xlane.f32.xlu1 %v634_v15  ;;  %v979_v50 = vpop.f32.mrb[10].mxu1  ;;  %v1440_v16 = vadd.f32 %v909_v7, %v587_v58 }
 0x312   :  { %v1442_v19 = vadd.f32 %v979_v50, %v909_v7  ;;  %v590_v61 = vpop.f32.mrb[11].mxu1  ;;  %v649_v21 = vsel %vm618_vm2, %v1436_v13, 0.0 }
 0x313   :  { %650 = vadd.xlane.f32.xlu0 %v649_v21  ;;  %v1446_v55 = vadd.f32 %v909_v7, %v590_v61  ;;  %v643_v22 = vsel %vm618_vm2, %v1440_v16, 0.0 }
 0x314   :  { %v652_v18 = vsel %vm618_vm2, %v1442_v19, 0.0 }
 0x315   :  { %653 = vadd.xlane.f32.xlu1 %v652_v18  ;;  %v646_v28 = vsel %vm618_vm2, %v1446_v55, 0.0 }
 0x317   :  { %644 = vadd.xlane.f32.xlu0 %v643_v22  ;;  %v982_v23 = vpop.f32.mrb[12].mxu1 }
 0x318   :  { %v603_v27 = vpop.f32.mrb[13].mxu1  ;;  %v1456_v31 = vadd.f32 %v982_v23, %v909_v7 }
 0x319   :  { %v1454_v62 = vadd.f32 %v909_v7, %v603_v27  ;;  %647 = vadd.xlane.f32.xlu1 %v646_v28  ;;  %v983_v29 = vpop.f32.mrb[14].mxu1 }
 0x31a   :  { %v606_v30 = vpop.f32.mrb[15].mxu1  ;;  %v1462_v32 = vadd.f32 %v983_v29, %v909_v7  ;;  %v661_v17 = vsel %vm618_vm2, %v1456_v31, 0.0 }
 0x31b   :  { %v1458_v25 = vadd.f32 %v909_v7, %v606_v30  ;;  %v655_v3 = vsel %vm618_vm2, %v1454_v62, 0.0 }
 0x31c   :  { %656 = vadd.xlane.f32.xlu0 %v655_v3  ;;  %v664_v10 = vsel %vm618_vm2, %v1462_v32, 0.0 }
 0x31d   :  { %v658_v6 = vsel %vm618_vm2, %v1458_v25, 0.0 }
 0x31e   :  { %659 = vadd.xlane.f32.xlu1 %v658_v6 }
 0x320   :  { %662 = vadd.xlane.f32.xlu0 %v661_v17 }
 0x322   :  { %665 = vadd.xlane.f32.xlu1 %v664_v10 }
 0x390   :  { %v627_v34 = vpop.xlane.xlu0 %626 }
 0x391   :  { %v670_v9 = vmul.f32 0.03125, %v627_v34 }
 0x392   :  { %v630_v35 = vpop.xlane.xlu1 %629 }
 0x393   :  { %v1471_v36 = vsub.f32 %v1406_v47, %v670_v9  ;;  %v671_v14 = vmul.f32 0.03125, %v630_v35 }
 0x394   :  { %v621_v37 = vpop.xlane.xlu0 %620 }
 0x395   :  { %v1474_v39 = vsub.f32 %v1410_v52, %v671_v14  ;;  %v668_v20 = vmul.f32 0.03125, %v621_v37  ;;  %v702_v40 = vmul.f32 %v1471_v36, %v1471_v36 }
 0x396   :  { %v624_v41 = vpop.xlane.xlu1 %623 }
 0x397   :  { %v1479_v42 = vsub.f32 %v1408_v11, %v668_v20  ;;  %v669_v24 = vmul.f32 0.03125, %v624_v41  ;;  %v722_v26 = vsel %vm618_vm2, %v702_v40, 0.0  ;;  %v703_v44 = vmul.f32 %v1474_v39, %v1474_v39 }
 0x398   :  { %723 = vadd.xlane.f32.xlu0 %v722_v26  ;;  %v639_v45 = vpop.xlane.xlu0 %638 }
 0x399   :  { %v1485_v7 = vsub.f32 %v1414_v46, %v669_v24  ;;  %v674_v48 = vmul.f32 0.03125, %v639_v45  ;;  %v725_v47 = vsel %vm618_vm2, %v703_v44, 0.0  ;;  %v700_v51 = vmul.f32 %v1479_v42, %v1479_v42 }
 0x39a   :  { %v642_v33 = vpop.xlane.xlu1 %641  ;;  %726 = vadd.xlane.f32.xlu1 %v725_v47 }
 0x39b   :  { %v1491_v11 = vsub.f32 %v1420_v38, %v674_v48  ;;  %v675_v52 = vmul.f32 0.03125, %v642_v33  ;;  %v716_v53 = vsel %vm618_vm2, %v700_v51, 0.0  ;;  %v701_v2 = vmul.f32 %v1485_v7, %v1485_v7 }
 0x39c   :  { %717 = vadd.xlane.f32.xlu0 %v716_v53  ;;  %v633_v46 = vpop.xlane.xlu0 %632 }
 0x39d   :  { %v1497_v56 = vsub.f32 %v1426_v54, %v675_v52  ;;  %v672_v57 = vmul.f32 0.03125, %v633_v46  ;;  %v719_v60 = vsel %vm618_vm2, %v701_v2, 0.0  ;;  %v706_v49 = vmul.f32 %v1491_v11, %v1491_v11 }
 0x39e   :  { %v636_v63 = vpop.xlane.xlu1 %635  ;;  %720 = vadd.xlane.f32.xlu1 %v719_v60 }
 0x39f   :  { %v1503_v38 = vsub.f32 %v1424_v1, %v672_v57  ;;  %v673_v0 = vmul.f32 0.03125, %v636_v63  ;;  %v734_v4 = vsel %vm618_vm2, %v706_v49, 0.0  ;;  %v707_v43 = vmul.f32 %v1497_v56, %v1497_v56 }
 0x3a0   :  { %735 = vadd.xlane.f32.xlu0 %v734_v4  ;;  %v651_v54 = vpop.xlane.xlu0 %650 }
 0x3a1   :  { %v1509_v8 = vsub.f32 %v1430_v5, %v673_v0  ;;  %v678_v59 = vmul.f32 0.03125, %v651_v54  ;;  %v737_v12 = vsel %vm618_vm2, %v707_v43, 0.0  ;;  %v704_v58 = vmul.f32 %v1503_v38, %v1503_v38 }
 0x3a2   :  { %v654_v15 = vpop.xlane.xlu1 %653  ;;  %738 = vadd.xlane.f32.xlu1 %v737_v12 }
 0x3a3   :  { %v1515_v1 = vsub.f32 %v1436_v13, %v678_v59  ;;  %v679_v50 = vmul.f32 0.03125, %v654_v15  ;;  %v728_v61 = vsel %vm618_vm2, %v704_v58, 0.0  ;;  %v705_v21 = vmul.f32 %v1509_v8, %v1509_v8 }
 0x3a4   :  { %729 = vadd.xlane.f32.xlu0 %v728_v61  ;;  %v645_v5 = vpop.xlane.xlu0 %644 }
 0x3a5   :  { %v1521_v18 = vsub.f32 %v1442_v19, %v679_v50  ;;  %v676_v22 = vmul.f32 0.03125, %v645_v5  ;;  %v731_v23 = vsel %vm618_vm2, %v705_v21, 0.0  ;;  %v710_v27 = vmul.f32 %v1515_v1, %v1515_v1 }
 0x3a6   :  { %v648_v28 = vpop.xlane.xlu1 %647  ;;  %732 = vadd.xlane.f32.xlu1 %v731_v23 }
 0x3a7   :  { %v1527_v13 = vsub.f32 %v1440_v16, %v676_v22  ;;  %v677_v29 = vmul.f32 0.03125, %v648_v28  ;;  %v746_v30 = vsel %vm618_vm2, %v710_v27, 0.0  ;;  %v711_v3 = vmul.f32 %v1521_v18, %v1521_v18  ;;  %v1569_v27 = vld [vmem:[%s1695_s7] ss:$0 sm:$0xff] }
 0x3a8   :  { %747 = vadd.xlane.f32.xlu0 %v746_v30 }
 0x3a9   :  { %v1533_v19 = vsub.f32 %v1446_v55, %v677_v29  ;;  %v657_v6 = vpop.xlane.xlu0 %656  ;;  %v749_v17 = vsel %vm618_vm2, %v711_v3, 0.0  ;;  %v708_v10 = vmul.f32 %v1527_v13, %v1527_v13 }
 0x3aa   :  { %v680_v34 = vmul.f32 0.03125, %v657_v6  ;;  %750 = vadd.xlane.f32.xlu1 %v749_v17  ;;  %v1575_v17 = vld [vmem:[%s1696_s8] ss:$0 sm:$0xff] }
 0x3ab   :  { %v660_v16 = vpop.xlane.xlu1 %659  ;;  %v740_v9 = vsel %vm618_vm2, %v708_v10, 0.0  ;;  %v709_v35 = vmul.f32 %v1533_v19, %v1533_v19 }
 0x3ac   :  { %v1542_v14 = vsub.f32 %v1454_v62, %v680_v34  ;;  %v681_v37 = vmul.f32 0.03125, %v660_v16  ;;  %741 = vadd.xlane.f32.xlu0 %v740_v9 }
 0x3ad   :  { %v663_v55 = vpop.xlane.xlu0 %662  ;;  %v743_v20 = vsel %vm618_vm2, %v709_v35, 0.0 }
 0x3ae   :  { %v1546_v40 = vsub.f32 %v1458_v25, %v681_v37  ;;  %v682_v41 = vmul.f32 0.03125, %v663_v55  ;;  %744 = vadd.xlane.f32.xlu1 %v743_v20  ;;  %v712_v24 = vmul.f32 %v1542_v14, %v1542_v14 }
 0x3af   :  { %v666_v26 = vpop.xlane.xlu1 %665 }
 0x3b0   :  { %v1551_v44 = vsub.f32 %v1456_v31, %v682_v41  ;;  %v683_v45 = vmul.f32 0.03125, %v666_v26  ;;  %v752_v62 = vsel %vm618_vm2, %v712_v24, 0.0  ;;  %v713_v48 = vmul.f32 %v1546_v40, %v1546_v40 }
 0x3b1   :  { %753 = vadd.xlane.f32.xlu0 %v752_v62 }
 0x3b2   :  { %v1557_v47 = vsub.f32 %v1462_v32, %v683_v45  ;;  %v755_v25 = vsel %vm618_vm2, %v713_v48, 0.0  ;;  %v714_v51 = vmul.f32 %v1551_v44, %v1551_v44 }
 0x3b3   :  { %756 = vadd.xlane.f32.xlu1 %v755_v25 }
 0x3b4   :  { %v758_v33 = vsel %vm618_vm2, %v714_v51, 0.0  ;;  %v715_v31 = vmul.f32 %v1557_v47, %v1557_v47 }
 0x3b5   :  { %759 = vadd.xlane.f32.xlu0 %v758_v33 }
 0x3b6   :  { %v761_v52 = vsel %vm618_vm2, %v715_v31, 0.0 }
 0x3b7   :  { %762 = vadd.xlane.f32.xlu1 %v761_v52 }
 0x425   :  { %v724_v53 = vpop.xlane.xlu0 %723 }
 0x426   :  { %v766_v2 = vmul.f32 0.03125, %v724_v53 }
 0x427   :  { %v727_v46 = vpop.xlane.xlu1 %726 }
 0x428   :  { %v782_v32 = vadd.f32 1e-06, %v766_v2  ;;  %v767_v57 = vmul.f32 0.03125, %v727_v46 }
 0x429   :  { %v718_v60 = vpop.xlane.xlu0 %717 }
 0x42a   :  { %1021 = vrsqrt.f32 %v782_v32  ;;  %v783_v49 = vadd.f32 1e-06, %v767_v57  ;;  %v764_v63 = vmul.f32 0.03125, %v718_v60 }
 0x42b   :  { %v721_v0 = vpop.xlane.xlu1 %720 }
 0x42c   :  { %1023 = vrsqrt.f32 %v783_v49  ;;  %v780_v4 = vadd.f32 1e-06, %v764_v63  ;;  %v765_v43 = vmul.f32 0.03125, %v721_v0 }
 0x42d   :  { %v736_v54 = vpop.xlane.xlu0 %735 }
 0x42e   :  { %1025 = vrsqrt.f32 %v780_v4  ;;  %v781_v59 = vadd.f32 1e-06, %v765_v43  ;;  %v770_v12 = vmul.f32 0.03125, %v736_v54 }
 0x42f   :  { %v739_v58 = vpop.xlane.xlu1 %738 }
 0x430   :  { %1027 = vrsqrt.f32 %v781_v59  ;;  %v786_v15 = vadd.f32 1e-06, %v770_v12  ;;  %v771_v50 = vmul.f32 0.03125, %v739_v58 }
 0x431   :  { %v730_v61 = vpop.xlane.xlu0 %729 }
 0x432   :  { %1029 = vrsqrt.f32 %v786_v15  ;;  %v787_v21 = vadd.f32 1e-06, %v771_v50  ;;  %v768_v5 = vmul.f32 0.03125, %v730_v61 }
 0x433   :  { %v733_v22 = vpop.xlane.xlu1 %732 }
 0x434   :  { %v1022_v23 = vpop.eup %1021  ;;  %1031 = vrsqrt.f32 %v787_v21  ;;  %v784_v28 = vadd.f32 1e-06, %v768_v5  ;;  %v769_v29 = vmul.f32 0.03125, %v733_v22 }
 0x435   :  { %v814_v30 = vmul.f32 %v1022_v23, %v1471_v36  ;;  %v748_v3 = vpop.xlane.xlu0 %747 }
 0x436   :  { %v1024_v6 = vpop.eup %1023  ;;  %1033 = vrsqrt.f32 %v784_v28  ;;  %v785_v10 = vadd.f32 1e-06, %v769_v29  ;;  %v774_v34 = vmul.f32 0.03125, %v748_v3 }
 0x437   :  { %v837_v16 = vmul.f32 %v1569_v27, %v814_v30  ;;  %v815_v9 = vmul.f32 %v1024_v6, %v1474_v39  ;;  %v751_v35 = vpop.xlane.xlu1 %750 }
 0x438   :  { %v1026_v37 = vpop.eup %1025  ;;  %1035 = vrsqrt.f32 %v785_v10  ;;  %v790_v55 = vadd.f32 1e-06, %v774_v34  ;;  %v775_v20 = vmul.f32 0.03125, %v751_v35 }
 0x439   :  { %v860_v36 = vadd.f32 %v1575_v17, %v837_v16  ;;  %v838_v41 = vmul.f32 %v1569_v27, %v815_v9  ;;  %v812_v24 = vmul.f32 %v1026_v37, %v1479_v42  ;;  %v742_v26 = vpop.xlane.xlu0 %741 }
 0x43a   :  { %v1028_v45 = vpop.eup %1027  ;;  %1037 = vrsqrt.f32 %v790_v55  ;;  %v791_v62 = vadd.f32 1e-06, %v775_v20  ;;  %v772_v48 = vmul.f32 0.03125, %v742_v26 }
 0x43b   :  { %876 = vst.msk [vmem:[%s1697_s9 + $0x10] sm:$0xff] %vm618_vm2, %v860_v36  ;;  %v861_v39 = vadd.f32 %v1575_v17, %v838_v41  ;;  %v835_v25 = vmul.f32 %v1569_v27, %v812_v24  ;;  %v813_v51 = vmul.f32 %v1028_v45, %v1485_v7  ;;  %v745_v33 = vpop.xlane.xlu1 %744 }
 0x43c   :  { %v1030_v31 = vpop.eup %1029  ;;  %1039 = vrsqrt.f32 %v791_v62  ;;  %v788_v42 = vadd.f32 1e-06, %v772_v48  ;;  %v773_v52 = vmul.f32 0.03125, %v745_v33 }
 0x43d   :  { %877 = vst.msk [vmem:[%s1697_s9 + $0x18] sm:$0xff] %vm618_vm2, %v861_v39  ;;  %v858_v53 = vadd.f32 %v1575_v17, %v835_v25  ;;  %v836_v2 = vmul.f32 %v1569_v27, %v813_v51  ;;  %v818_v46 = vmul.f32 %v1030_v31, %v1491_v11 }
 0x43e   :  { %v1032_v32 = vpop.eup %1031  ;;  %1041 = vrsqrt.f32 %v788_v42  ;;  %v789_v57 = vadd.f32 1e-06, %v773_v52  ;;  %v754_v7 = vpop.xlane.xlu0 %753 }
 0x43f   :  { %874 = vst.msk [vmem:[%s1697_s9] sm:$0xff] %vm618_vm2, %v858_v53  ;;  %v859_v60 = vadd.f32 %v1575_v17, %v836_v2  ;;  %v841_v49 = vmul.f32 %v1569_v27, %v818_v46  ;;  %v819_v63 = vmul.f32 %v1032_v32, %v1497_v56  ;;  %v776_v0 = vmul.f32 0.03125, %v754_v7 }
 0x440   :  { %v1034_v4 = vpop.eup %1033  ;;  %1043 = vrsqrt.f32 %v789_v57  ;;  %v757_v43 = vpop.xlane.xlu1 %756 }
 0x441   :  { %875 = vst.msk [vmem:[%s1697_s9 + $0x8] sm:$0xff] %vm618_vm2, %v859_v60  ;;  %v864_v11 = vadd.f32 %v1575_v17, %v841_v49  ;;  %v842_v54 = vmul.f32 %v1569_v27, %v819_v63  ;;  %v816_v59 = vmul.f32 %v1034_v4, %v1503_v38  ;;  %v792_v12 = vadd.f32 1e-06, %v776_v0 }
 0x442   :  { %v1036_v58 = vpop.eup %1035  ;;  %v777_v15 = vmul.f32 0.03125, %v757_v43  ;;  %v760_v50 = vpop.xlane.xlu0 %759 }
 0x443   :  { %880 = vst.msk [vmem:[%s1697_s9 + $0x30] sm:$0xff] %vm618_vm2, %v864_v11  ;;  %v865_v56 = vadd.f32 %v1575_v17, %v842_v54  ;;  %v839_v61 = vmul.f32 %v1569_v27, %v816_v59  ;;  %v817_v21 = vmul.f32 %v1036_v58, %v1509_v8  ;;  %1045 = vrsqrt.f32 %v792_v12 }
 0x444   :  { %v1038_v5 = vpop.eup %1037  ;;  %v793_v22 = vadd.f32 1e-06, %v777_v15  ;;  %v778_v23 = vmul.f32 0.03125, %v760_v50  ;;  %v763_v38 = vpop.xlane.xlu1 %762 }
 0x445   :  { %881 = vst.msk [vmem:[%s1697_s9 + $0x38] sm:$0xff] %vm618_vm2, %v865_v56  ;;  %v862_v28 = vadd.f32 %v1575_v17, %v839_v61  ;;  %v840_v29 = vmul.f32 %v1569_v27, %v817_v21  ;;  %v822_v30 = vmul.f32 %v1038_v5, %v1515_v1  ;;  %v779_v3 = vmul.f32 0.03125, %v763_v38 }
 0x446   :  { %v1040_v6 = vpop.eup %1039  ;;  %1047 = vrsqrt.f32 %v793_v22  ;;  %v794_v8 = vadd.f32 1e-06, %v778_v23 }
 0x447   :  { %878 = vst.msk [vmem:[%s1697_s9 + $0x20] sm:$0xff] %vm618_vm2, %v862_v28  ;;  %v863_v10 = vadd.f32 %v1575_v17, %v840_v29  ;;  %v845_v34 = vmul.f32 %v1569_v27, %v822_v30  ;;  %v823_v16 = vmul.f32 %v1040_v6, %v1521_v18  ;;  %v795_v9 = vadd.f32 1e-06, %v779_v3 }
 0x448   :  { %v1042_v35 = vpop.eup %1041  ;;  %1049 = vrsqrt.f32 %v794_v8 }
 0x449   :  { %879 = vst.msk [vmem:[%s1697_s9 + $0x28] sm:$0xff] %vm618_vm2, %v863_v10  ;;  %v868_v1 = vadd.f32 %v1575_v17, %v845_v34  ;;  %v846_v37 = vmul.f32 %v1569_v27, %v823_v16  ;;  %v820_v55 = vmul.f32 %v1042_v35, %v1527_v13  ;;  %1051 = vrsqrt.f32 %v795_v9 }
 0x44a   :  { %v1044_v20 = vpop.eup %1043 }
 0x44b   :  { %884 = vst.msk [vmem:[%s1697_s9 + $0x50] sm:$0xff] %vm618_vm2, %v868_v1  ;;  %v869_v18 = vadd.f32 %v1575_v17, %v846_v37  ;;  %v843_v36 = vmul.f32 %v1569_v27, %v820_v55  ;;  %v821_v41 = vmul.f32 %v1044_v20, %v1533_v19 }
 0x44d   :  { %v1046_v24 = vpop.eup %1045  ;;  %885 = vst.msk [vmem:[%s1697_s9 + $0x58] sm:$0xff] %vm618_vm2, %v869_v18  ;;  %v866_v13 = vadd.f32 %v1575_v17, %v843_v36  ;;  %v844_v26 = vmul.f32 %v1569_v27, %v821_v41 }
 0x44e   :  { %v824_v45 = vmul.f32 %v1046_v24, %v1542_v14 }
 0x44f   :  { %882 = vst.msk [vmem:[%s1697_s9 + $0x40] sm:$0xff] %vm618_vm2, %v866_v13  ;;  %v867_v62 = vadd.f32 %v1575_v17, %v844_v26 }
 0x450   :  { %v1048_v19 = vpop.eup %1047  ;;  %v847_v48 = vmul.f32 %v1569_v27, %v824_v45 }
 0x451   :  { %883 = vst.msk [vmem:[%s1697_s9 + $0x48] sm:$0xff] %vm618_vm2, %v867_v62  ;;  %v825_v39 = vmul.f32 %v1048_v19, %v1546_v40 }
 0x452   :  { %v1050_v25 = vpop.eup %1049  ;;  %v870_v14 = vadd.f32 %v1575_v17, %v847_v48 }
 0x453   :  { %v1052_v51 = vpop.eup %1051  ;;  %v848_v33 = vmul.f32 %v1569_v27, %v825_v39  ;;  %v826_v31 = vmul.f32 %v1050_v25, %v1551_v44 }
 0x454   :  { %886 = vst.msk [vmem:[%s1697_s9 + $0x60] sm:$0xff] %vm618_vm2, %v870_v14  ;;  %v827_v42 = vmul.f32 %v1052_v51, %v1557_v47 }
 0x455   :  { %v871_v52 = vadd.f32 %v1575_v17, %v848_v33  ;;  %v849_v53 = vmul.f32 %v1569_v27, %v826_v31 }
 0x456   :  { %v850_v40 = vmul.f32 %v1569_v27, %v827_v42 }
 0x457   :  { %887 = vst.msk [vmem:[%s1697_s9 + $0x68] sm:$0xff] %vm618_vm2, %v871_v52  ;;  %v872_v44 = vadd.f32 %v1575_v17, %v849_v53 }
 0x458   :  { %v873_v2 = vadd.f32 %v1575_v17, %v850_v40 }
 0x459   :  { %888 = vst.msk [vmem:[%s1697_s9 + $0x70] sm:$0xff] %vm618_vm2, %v872_v44 }
 0x45a   :  { %889 = vst.msk [vmem:[%s1697_s9 + $0x78] sm:$0xff] %vm618_vm2, %v873_v2 }

// kernel: shformer_best_forward.11
= control target key start
LH: loop header
LB: loop body
LE: loop exit
PB: predicated region body
PF: predicated region fallthrough
CT: control target
= control target key end

     0   :  { %s6860_s23 = smov 0   ;;  %s9682_s0 = inlined_call_operand.vmem [shape: f32[2,16,16,32], index: 0, kind: input, shape index: {}]   ;;  %s9683_s1 = inlined_call_operand.vmem [shape: f32[2,16,16,32], index: 1, kind: input, shape index: {}]   ;;  %s9684_s2 = inlined_call_operand.vmem [shape: f32[9,32], index: 2, kind: input, shape index: {}]   ;;  %s9685_s3 = inlined_call_operand.vmem [shape: f32[1,32], index: 3, kind: input, shape index: {}]   ;;  %s9686_s4 = inlined_call_operand.vmem [shape: f32[9,32,1], index: 4, kind: input, shape index: {}]   ;;  %s9687_s5 = inlined_call_operand.<no memory space> [shape: f32[1,1], index: 5, kind: input, shape index: {}]   ;;  %s9688_s6 = inlined_call_operand.vmem [shape: f32[2,1,256], index: 6, kind: output, shape index: {}]  }
   0x1   :  { %v11_v0 = vstv %s9687_s5 }
   0x2   :  { %12 = vst [vmem:[#allocation4] sm:$0x1] %v11_v0 }
   0x3 LB: > { %s5289_s24 = sadd.s32 4294967295, %s6818_s23   ;;  %p5293_p0 = scmp.ge.s32.totalorder %s6818_s23, 1  ;;  %s6818_s23 = sphi %s6860_s23, %s18_s23  }
   0x4   : > { %p224_p1 = scmp.lt.s32.totalorder %s6818_s23, 3 }
   0x6   : > { %p225_p2 = pnand %p5293_p0, %p224_p1 }
   0x8   : > { %228 = sbr.rel (%p225_p2) target bundleno = 957 (0x3bd), region = 44 }
   0xf   : > { %v2367_v1 = vld [vmem:[%s9686_s4 + $0x20] sm:$0xff]  ;;  %v2368_v2 = vld [vmem:[%s9686_s4 + $0x28] sm:$0xff]  ;;  %vm368_vm0 = vcmask 261120   ;;  %v9689_v4 = vlaneseq  ;;  %v6889_v7 = vld [vmem:[%s9686_s4 + $0x30] sm:$0xff]  ;;  %v6820_v9 = vmov 0.0   ;;  %vm371_vm1 = vcmask 254976  }
  0x10   : > { %v6877_v3 = vld [vmem:[%s9686_s4 + $0x80] sm:$0xff]  ;;  %v6879_v5 = vpack.c.bf16 %v2368_v2, %v2367_v1  ;;  %v6884_v6 = vld [vmem:[%s9686_s4 + $0x88] sm:$0xff]  ;;  %v6894_v8 = vld [vmem:[%s9686_s4 + $0x38] sm:$0xff]  ;;  %2222 = vst.msk [vmem:[#allocation3] sm:$0xff] %vm368_vm0, %v6820_v9  ;;  %p7042_p3 = scmp.lt.s32.totalorder %s5289_s24, 1  ;;  %vm720_vm2 = vcmask 1046528  }
  0x11   : > { %2223 = vst.msk [vmem:[#allocation3 + $0x8] sm:$0xff] %vm368_vm0, %v6820_v9  ;;  %369 = vst.msk [vmem:[#allocation2] sm:$0xff] %vm368_vm0, %v6820_v9  ;;  %v7048_v10 = vpack.c.bf16 %v6884_v6, %v6877_v3  ;;  %v7052_v11 = vpack.c.bf16 %v6894_v8, %v6889_v7  ;;  %v2381_v12 = vld [vmem:[%s9686_s4 + $0x90] sm:$0xff]  ;;  %v2382_v13 = vld [vmem:[%s9686_s4 + $0x98] sm:$0xff]  ;;  %v7133_v14 = vshrl.u32 %v9689_v4, 7  ;;  %vm965_vm3 = vcmask 1045504  }
  0x12   : > { %370 = vst.msk [vmem:[#allocation2 + $0x8] sm:$0xff] %vm368_vm0, %v6820_v9  ;;  %373 = vst.msk [vmem:[#allocation2 + $0x18] sm:$0xff] %vm368_vm0, %v6820_v9  ;;  %6423 = vmatprep.subr.bf16.mxu1 %v6879_v5  ;;  %v7136_v15 = vpack.c.bf16 %v2382_v13, %v2381_v12  ;;  %s9912_s24 = smov (!%p7042_p3, %s5289_s24), 1  ;;  %v511_v16 = vld [vmem:[%s9684_s2] sm:$0xff]  ;;  %v2364_v22 = vld [vmem:[%s9686_s4 + $0x8] sm:$0xff] }
  0x13   : > { %374 = vst.msk [vmem:[#allocation2 + $0x20] sm:$0xff] %vm368_vm0, %v6820_v9  ;;  %376 = vst.msk [vmem:[#allocation2 + $0x30] sm:$0xff] %vm368_vm0, %v6820_v9  ;;  %v2363_v17 = vld [vmem:[%s9686_s4] sm:$0xff]  ;;  %6425 = vmatpush3.bf16.msra.mxu1 %v6879_v5  ;;  %6455 = vmatprep.subr.bf16.mxu0 %v7048_v10  ;;  %v554_v18 = vsub.s32 0, %v7133_v14  ;;  %v622_v19 = vsub.s32 1, %v7133_v14  ;;  %v867_v20 = vsub.s32 2, %v7133_v14 }
  0x14   : > { %377 = vst.msk [vmem:[#allocation2 + $0x38] sm:$0xff] %vm368_vm0, %v6820_v9  ;;  %379 = vst.msk [vmem:[#allocation2 + $0x48] sm:$0xff] %vm368_vm0, %v6820_v9  ;;  %v1112_v21 = vsub.s32 3, %v7133_v14  ;;  %v2383_v23 = vld [vmem:[%s9686_s4 + $0xa0] sm:$0xff]  ;;  %6427 = vmatprep.subr.bf16.mxu1 %v7052_v11  ;;  %6457 = vmatpush3.bf16.msra.mxu0 %v7048_v10  ;;  %s5592_s5 = sshll.u32 %s9912_s24, 8  ;;  %v1180_v24 = vsub.s32 4, %v7133_v14  ;;  %v6430_v44 = vpack.c.bf16 %v2364_v22, %v2363_v17 }
  0x15   : > { %380 = vst.msk [vmem:[#allocation2 + $0x50] sm:$0xff] %vm368_vm0, %v6820_v9  ;;  %382 = vst.msk [vmem:[#allocation2 + $0x60] sm:$0xff] %vm368_vm0, %v6820_v9  ;;  %v1424_v25 = vsub.s32 5, %v7133_v14  ;;  %v1668_v26 = vsub.s32 6, %v7133_v14  ;;  %v1736_v27 = vsub.s32 7, %v7133_v14  ;;  %v2384_v28 = vld [vmem:[%s9686_s4 + $0xa8] sm:$0xff]  ;;  %6459 = vmatprep.subr.bf16.mxu0 %v7136_v15  ;;  %s7176_s7 = scalar_lea.vmem %s9682_s0, %s5592_s5  ;;  %s7181_s10 = scalar_lea.vmem %s9683_s1, %s5592_s5  ;;  %v7197_v35 = vrot.slane %v511_v16, %v554_v18 }
  0x16   : > { %383 = vst.msk [vmem:[#allocation2 + $0x68] sm:$0xff] %vm368_vm0, %v6820_v9  ;;  %385 = vst.msk [vmem:[#allocation2 + $0x78] sm:$0xff] %vm368_vm0, %v6820_v9  ;;  %v2385_v29 = vld [vmem:[%s9686_s4 + $0xb0] sm:$0xff]  ;;  %v2386_v30 = vld [vmem:[%s9686_s4 + $0xb8] sm:$0xff]  ;;  %v7199_v36 = vrot.slane %v511_v16, %v622_v19  ;;  %v7201_v37 = vrot.slane %v511_v16, %v867_v20  ;;  %v7203_v38 = vrot.slane %v511_v16, %v1112_v21  ;;  %s5298_s28 = sshll.u32 %s9912_s24, 1 }
  0x17   : > { %386 = vst.msk [vmem:[#allocation2 + $0x80] sm:$0xff] %vm368_vm0, %v6820_v9  ;;  %388 = vst.msk [vmem:[#allocation2 + $0x90] sm:$0xff] %vm368_vm0, %v6820_v9  ;;  %v272_v31 = vld [vmem:[%s7176_s7] sm:$0xff]  ;;  %v273_v32 = vld [vmem:[%s7176_s7 + $0x8] sm:$0xff]  ;;  %6429 = vmatpush3.bf16.msra.mxu1 %v7052_v11  ;;  %v7207_v42 = vrot.slane %v511_v16, %v1180_v24  ;;  %v7209_v43 = vrot.slane %v511_v16, %v1424_v25  ;;  %v7211_v45 = vpack.c.bf16 %v2384_v28, %v2383_v23  ;;  %s271_s8 = scalar_lea.vmem %s9688_s6, %s5298_s28 }
  0x18   : > { %389 = vst.msk [vmem:[#allocation2 + $0x98] sm:$0xff] %vm368_vm0, %v6820_v9  ;;  %391 = vst.msk [vmem:[#allocation2 + $0xa8] sm:$0xff] %vm368_vm0, %v6820_v9  ;;  %v274_v33 = vld [vmem:[%s7176_s7 + $0x10] sm:$0xff]  ;;  %v7195_v34 = vld [vmem:[%s9685_s3] ss:$0 sm:$0xff]  ;;  %6461 = vmatpush3.bf16.msra.mxu0 %v7136_v15  ;;  %v7216_v51 = vrot.slane %v511_v16, %v1668_v26  ;;  %v7218_v52 = vrot.slane %v511_v16, %v1736_v27  ;;  %6431 = vmatprep.subr.bf16.mxu1 %v6430_v44 }
  0x19   : > { %392 = vst.msk [vmem:[#allocation2 + $0xb0] sm:$0xff] %vm368_vm0, %v6820_v9  ;;  %394 = vst.msk [vmem:[#allocation2 + $0xc0] sm:$0xff] %vm368_vm0, %v6820_v9  ;;  %v2309_v39 = vld [vmem:[#allocation3] sm:$0xff]  ;;  %v2310_v40 = vld [vmem:[#allocation3 + $0x8] sm:$0xff]  ;;  %6463 = vmatprep.subr.bf16.mxu0 %v7211_v45  ;;  %v7223_v59 = vpack.c.bf16 %v2386_v30, %v2385_v29 }
  0x1a   : > { %395 = vst.msk [vmem:[#allocation2 + $0xc8] sm:$0xff] %vm368_vm0, %v6820_v9  ;;  %397 = vst.msk [vmem:[#allocation2 + $0xd8] sm:$0xff] %vm368_vm0, %v6820_v9  ;;  %v275_v41 = vld [vmem:[%s7176_s7 + $0x18] sm:$0xff]  ;;  %v2447_v46 = vrot.slane %v2309_v39, 1  ;;  %v2448_v47 = vrot.slane %v2310_v40, 1  ;;  %v304_v49 = vld [vmem:[%s7181_s10] sm:$0xff] }
  0x1b   : > { %398 = vst.msk [vmem:[#allocation2 + $0xe0] sm:$0xff] %vm368_vm0, %v6820_v9  ;;  %400 = vst.msk [vmem:[#allocation2 + $0xf0] sm:$0xff] %vm368_vm0, %v6820_v9  ;;  %v305_v50 = vld [vmem:[%s7181_s10 + $0x8] sm:$0xff]  ;;  %v306_v54 = vld [vmem:[%s7181_s10 + $0x10] sm:$0xff]  ;;  %v336_v56 = vadd.f32 %v304_v49, %v272_v31 }
  0x1c   : > { %401 = vst.msk [vmem:[#allocation2 + $0xf8] sm:$0xff] %vm368_vm0, %v6820_v9  ;;  %403 = vst.msk [vmem:[#allocation2 + $0x108] sm:$0xff] %vm368_vm0, %v6820_v9  ;;  %v307_v55 = vld [vmem:[%s7181_s10 + $0x18] sm:$0xff]  ;;  %v337_v57 = vadd.f32 %v305_v50, %v273_v32  ;;  %v457_v58 = vld [vmem:[#allocation2] sm:$0xff]  ;;  %v2449_v60 = vsel %vm720_vm2, %v2447_v46, %v2448_v47  ;;  %v338_v61 = vadd.f32 %v306_v54, %v274_v33 }
  0x1d   : > { %404 = vst.msk [vmem:[#allocation2 + $0x110] sm:$0xff] %vm368_vm0, %v6820_v9  ;;  %406 = vst.msk [vmem:[#allocation2 + $0x120] sm:$0xff] %vm368_vm0, %v6820_v9  ;;  %v339_v62 = vadd.f32 %v307_v55, %v275_v41  ;;  %v458_v63 = vld [vmem:[#allocation2 + $0x8] sm:$0xff]  ;;  %v556_v1 = vmul.f32 %v7197_v35, %v457_v58  ;;  %5926 = vmatprep.mubr.msk.f32.mxu1 %vm368_vm0, %v2449_v60  ;;  %v520_v3 = vadd.f32 %v7195_v34, %v336_v56  ;;  %v276_v7 = vld [vmem:[%s7176_s7 + $0x20] sm:$0xff] }
  0x1e   : > { %407 = vst.msk [vmem:[#allocation2 + $0x128] sm:$0xff] %vm368_vm0, %v6820_v9  ;;  %409 = vst.msk [vmem:[#allocation2 + $0x138] sm:$0xff] %vm368_vm0, %v6820_v9  ;;  %v521_v5 = vadd.f32 %v7195_v34, %v337_v57  ;;  %v557_v6 = vmul.f32 %v7197_v35, %v458_v63  ;;  %v624_v8 = vmul.f32 %v7199_v36, %v457_v58  ;;  %v277_v13 = vld [vmem:[%s7176_s7 + $0x28] sm:$0xff]  ;;  %v308_v16 = vld [vmem:[%s7181_s10 + $0x20] sm:$0xff] }
  0x1f   : > { %410 = vst.msk [vmem:[#allocation2 + $0x140] sm:$0xff] %vm368_vm0, %v6820_v9  ;;  %412 = vst.msk [vmem:[#allocation2 + $0x150] sm:$0xff] %vm368_vm0, %v6820_v9  ;;  %v869_v12 = vmul.f32 %v7201_v37, %v457_v58  ;;  %v309_v17 = vld [vmem:[%s7181_s10 + $0x28] sm:$0xff]  ;;  %v588_v18 = vadd.f32 %v556_v1, %v520_v3  ;;  %v870_v20 = vmul.f32 %v7201_v37, %v458_v63  ;;  %v278_v26 = vld [vmem:[%s7176_s7 + $0x30] sm:$0xff] }
  0x20   : > { %413 = vst.msk [vmem:[#allocation2 + $0x158] sm:$0xff] %vm368_vm0, %v6820_v9  ;;  %415 = vst.msk [vmem:[#allocation2 + $0x168] sm:$0xff] %vm368_vm0, %v6820_v9  ;;  %v589_v19 = vadd.f32 %v557_v6, %v521_v5  ;;  %v721_v22 = vrot.slane %v624_v8, 1  ;;  %v340_v29 = vadd.f32 %v308_v16, %v276_v7  ;;  %v341_v30 = vadd.f32 %v309_v17, %v277_v13  ;;  %v279_v31 = vld [vmem:[%s7176_s7 + $0x38] sm:$0xff]  ;;  %v310_v32 = vld [vmem:[%s7181_s10 + $0x30] sm:$0xff] }
  0x21   : > { %416 = vst.msk [vmem:[#allocation2 + $0x170] sm:$0xff] %vm368_vm0, %v6820_v9  ;;  %418 = vst.msk [vmem:[#allocation2 + $0x180] sm:$0xff] %vm368_vm0, %v6820_v9  ;;  %v966_v25 = vrot.slane %v869_v12, 2  ;;  %v967_v27 = vrot.slane %v870_v20, 2  ;;  %v311_v33 = vld [vmem:[%s7181_s10 + $0x38] sm:$0xff]  ;;  %v7254_v41 = vadd.f32 %v7195_v34, %v338_v61 }
  0x22   : > { %419 = vst.msk [vmem:[#allocation2 + $0x188] sm:$0xff] %vm368_vm0, %v6820_v9  ;;  %421 = vst.msk [vmem:[#allocation2 + $0x198] sm:$0xff] %vm368_vm0, %v6820_v9  ;;  %v7265_v54 = vadd.f32 %v311_v33, %v279_v31  ;;  %v7268_v55 = vadd.f32 %v7195_v34, %v340_v29 }
  0x23   : > { %422 = vst.msk [vmem:[#allocation2 + $0x1a0] sm:$0xff] %vm368_vm0, %v6820_v9  ;;  %2225 = vst.msk [vmem:[#allocation3 + $0x18] sm:$0xff] %vm368_vm0, %v6820_v9 }
  0x24   : > { %2226 = vst.msk [vmem:[#allocation3 + $0x20] sm:$0xff] %vm368_vm0, %v6820_v9  ;;  %2228 = vst.msk [vmem:[#allocation3 + $0x30] sm:$0xff] %vm368_vm0, %v6820_v9 }
  0x25   : > { %2229 = vst.msk [vmem:[#allocation3 + $0x38] sm:$0xff] %vm368_vm0, %v6820_v9  ;;  %2231 = vst.msk [vmem:[#allocation3 + $0x48] sm:$0xff] %vm368_vm0, %v6820_v9 }
  0x26   : > { %2232 = vst.msk [vmem:[#allocation3 + $0x50] sm:$0xff] %vm368_vm0, %v6820_v9  ;;  %2234 = vst.msk [vmem:[#allocation3 + $0x60] sm:$0xff] %vm368_vm0, %v6820_v9 }
  0x27   : > { %2235 = vst.msk [vmem:[#allocation3 + $0x68] sm:$0xff] %vm368_vm0, %v6820_v9  ;;  %2237 = vst.msk [vmem:[#allocation3 + $0x78] sm:$0xff] %vm368_vm0, %v6820_v9 }
  0x28   : > { %2238 = vst.msk [vmem:[#allocation3 + $0x80] sm:$0xff] %vm368_vm0, %v6820_v9  ;;  %2240 = vst.msk [vmem:[#allocation3 + $0x90] sm:$0xff] %vm368_vm0, %v6820_v9 }
  0x29   : > { %2241 = vst.msk [vmem:[#allocation3 + $0x98] sm:$0xff] %vm368_vm0, %v6820_v9  ;;  %2243 = vst.msk [vmem:[#allocation3 + $0xa8] sm:$0xff] %vm368_vm0, %v6820_v9 }
  0x2a   : > { %2244 = vst.msk [vmem:[#allocation3 + $0xb0] sm:$0xff] %vm368_vm0, %v6820_v9  ;;  %2246 = vst.msk [vmem:[#allocation3 + $0xc0] sm:$0xff] %vm368_vm0, %v6820_v9 }
  0x2b   : > { %2247 = vst.msk [vmem:[#allocation3 + $0xc8] sm:$0xff] %vm368_vm0, %v6820_v9  ;;  %2249 = vst.msk [vmem:[#allocation3 + $0xd8] sm:$0xff] %vm368_vm0, %v6820_v9 }
  0x2c   : > { %2250 = vst.msk [vmem:[#allocation3 + $0xe0] sm:$0xff] %vm368_vm0, %v6820_v9  ;;  %2252 = vst.msk [vmem:[#allocation3 + $0xf0] sm:$0xff] %vm368_vm0, %v6820_v9 }
  0x2d   : > { %2253 = vst.msk [vmem:[#allocation3 + $0xf8] sm:$0xff] %vm368_vm0, %v6820_v9  ;;  %2255 = vst.msk [vmem:[#allocation3 + $0x108] sm:$0xff] %vm368_vm0, %v6820_v9 }
  0x2e   : > { %2256 = vst.msk [vmem:[#allocation3 + $0x110] sm:$0xff] %vm368_vm0, %v6820_v9  ;;  %2258 = vst.msk [vmem:[#allocation3 + $0x120] sm:$0xff] %vm368_vm0, %v6820_v9 }
  0x2f   : > { %2259 = vst.msk [vmem:[#allocation3 + $0x128] sm:$0xff] %vm368_vm0, %v6820_v9  ;;  %2261 = vst.msk [vmem:[#allocation3 + $0x138] sm:$0xff] %vm368_vm0, %v6820_v9 }
  0x30   : > { %2262 = vst.msk [vmem:[#allocation3 + $0x140] sm:$0xff] %vm368_vm0, %v6820_v9  ;;  %2264 = vst.msk [vmem:[#allocation3 + $0x150] sm:$0xff] %vm368_vm0, %v6820_v9 }
  0x31   : > { %2265 = vst.msk [vmem:[#allocation3 + $0x158] sm:$0xff] %vm368_vm0, %v6820_v9  ;;  %2267 = vst.msk [vmem:[#allocation3 + $0x168] sm:$0xff] %vm368_vm0, %v6820_v9 }
  0x32   : > { %2268 = vst.msk [vmem:[#allocation3 + $0x170] sm:$0xff] %vm368_vm0, %v6820_v9  ;;  %2270 = vst.msk [vmem:[#allocation3 + $0x180] sm:$0xff] %vm368_vm0, %v6820_v9 }
  0x33   : > { %2271 = vst.msk [vmem:[#allocation3 + $0x188] sm:$0xff] %vm368_vm0, %v6820_v9  ;;  %2273 = vst.msk [vmem:[#allocation3 + $0x198] sm:$0xff] %vm368_vm0, %v6820_v9 }
  0x34   : > { %2274 = vst.msk [vmem:[#allocation3 + $0x1a0] sm:$0xff] %vm368_vm0, %v6820_v9  ;;  %9781 = vst [vmem:[#allocation5_spill] sm:$0xff] %v7048_v10 }
  0x35   : > { %2224 = vst.msk [vmem:[#allocation3 + $0x10] sm:$0x3] %vm371_vm1, %v6820_v9  ;;  %372 = vst.msk [vmem:[#allocation2 + $0x10] sm:$0x3] %vm371_vm1, %v6820_v9 }
  0x36   : > { %375 = vst.msk [vmem:[#allocation2 + $0x28] sm:$0x3] %vm371_vm1, %v6820_v9  ;;  %378 = vst.msk [vmem:[#allocation2 + $0x40] sm:$0x3] %vm371_vm1, %v6820_v9 }
  0x37   : > { %381 = vst.msk [vmem:[#allocation2 + $0x58] sm:$0x3] %vm371_vm1, %v6820_v9  ;;  %384 = vst.msk [vmem:[#allocation2 + $0x70] sm:$0x3] %vm371_vm1, %v6820_v9 }
  0x38   : > { %387 = vst.msk [vmem:[#allocation2 + $0x88] sm:$0x3] %vm371_vm1, %v6820_v9  ;;  %390 = vst.msk [vmem:[#allocation2 + $0xa0] sm:$0x3] %vm371_vm1, %v6820_v9 }
  0x39   : > { %393 = vst.msk [vmem:[#allocation2 + $0xb8] sm:$0x3] %vm371_vm1, %v6820_v9  ;;  %396 = vst.msk [vmem:[#allocation2 + $0xd0] sm:$0x3] %vm371_vm1, %v6820_v9 }
  0x3a   : > { %399 = vst.msk [vmem:[#allocation2 + $0xe8] sm:$0x3] %vm371_vm1, %v6820_v9  ;;  %402 = vst.msk [vmem:[#allocation2 + $0x100] sm:$0x3] %vm371_vm1, %v6820_v9 }
  0x3b   : > { %405 = vst.msk [vmem:[#allocation2 + $0x118] sm:$0x3] %vm371_vm1, %v6820_v9  ;;  %408 = vst.msk [vmem:[#allocation2 + $0x130] sm:$0x3] %vm371_vm1, %v6820_v9 }
  0x3c   : > { %411 = vst.msk [vmem:[#allocation2 + $0x148] sm:$0x3] %vm371_vm1, %v6820_v9  ;;  %414 = vst.msk [vmem:[#allocation2 + $0x160] sm:$0x3] %vm371_vm1, %v6820_v9  ;;  %v2311_v48 = vld [vmem:[#allocation3 + $0x10] sm:$0x3] }
  0x3d   : > { %417 = vst.msk [vmem:[#allocation2 + $0x178] sm:$0x3] %vm371_vm1, %v6820_v9  ;;  %420 = vst.msk [vmem:[#allocation2 + $0x190] sm:$0x3] %vm371_vm1, %v6820_v9  ;;  %v2450_v53 = vrot.slane %v2311_v48, 1  ;;  %v968_v48 = vsel %vm965_vm3, %v966_v25, %v967_v27 }
  0x3e   : > { %423 = vst.msk [vmem:[#allocation2 + $0x1a8] sm:$0x3] %vm371_vm1, %v6820_v9  ;;  %2227 = vst.msk [vmem:[#allocation3 + $0x28] sm:$0x3] %vm371_vm1, %v6820_v9  ;;  %v459_v0 = vld [vmem:[#allocation2 + $0x10] sm:$0x3] }
  0x3f   : > { %2230 = vst.msk [vmem:[#allocation3 + $0x40] sm:$0x3] %vm371_vm1, %v6820_v9  ;;  %2233 = vst.msk [vmem:[#allocation3 + $0x58] sm:$0x3] %vm371_vm1, %v6820_v9  ;;  %v2451_v2 = vsel %vm720_vm2, %v2448_v47, %v2450_v53  ;;  %v626_v11 = vmul.f32 %v7199_v36, %v459_v0  ;;  %v871_v21 = vmul.f32 %v7201_v37, %v459_v0 }
  0x40   : > { %2236 = vst.msk [vmem:[#allocation3 + $0x70] sm:$0x3] %vm371_vm1, %v6820_v9  ;;  %2239 = vst.msk [vmem:[#allocation3 + $0x88] sm:$0x3] %vm371_vm1, %v6820_v9  ;;  %5927 = vmatmul.mubr.msk.f32.vlgmr.msra.gmra.mrb[0].mxu1 %vm368_vm0, %v2451_v2  ;;  %v7263_v53 = vadd.f32 %v310_v32, %v278_v26 }
  0x41   : > { %2242 = vst.msk [vmem:[#allocation3 + $0xa0] sm:$0x3] %vm371_vm1, %v6820_v9  ;;  %2245 = vst.msk [vmem:[#allocation3 + $0xb8] sm:$0x3] %vm371_vm1, %v6820_v9  ;;  %6433 = vmatpush3.bf16.msra.mxu1 %v6430_v44  ;;  %v724_v24 = vrot.slane %v626_v11, 1  ;;  %v969_v28 = vrot.slane %v871_v21, 2  ;;  %v7257_v44 = vadd.f32 %v7195_v34, %v339_v62 }
  0x42   : > { %2248 = vst.msk [vmem:[#allocation3 + $0xd0] sm:$0x3] %vm371_vm1, %v6820_v9  ;;  %2251 = vst.msk [vmem:[#allocation3 + $0xe8] sm:$0x3] %vm371_vm1, %v6820_v9 }
  0x43   : > { %2254 = vst.msk [vmem:[#allocation3 + $0x100] sm:$0x3] %vm371_vm1, %v6820_v9  ;;  %2257 = vst.msk [vmem:[#allocation3 + $0x118] sm:$0x3] %vm371_vm1, %v6820_v9  ;;  %v970_v49 = vsel %vm965_vm3, %v967_v27, %v969_v28 }
  0x44   : > { %2260 = vst.msk [vmem:[#allocation3 + $0x130] sm:$0x3] %vm371_vm1, %v6820_v9  ;;  %2263 = vst.msk [vmem:[#allocation3 + $0x148] sm:$0x3] %vm371_vm1, %v6820_v9 }
  0x45   : > { %2266 = vst.msk [vmem:[#allocation3 + $0x160] sm:$0x3] %vm371_vm1, %v6820_v9  ;;  %2269 = vst.msk [vmem:[#allocation3 + $0x178] sm:$0x3] %vm371_vm1, %v6820_v9 }
  0x46   : > { %2272 = vst.msk [vmem:[#allocation3 + $0x190] sm:$0x3] %vm371_vm1, %v6820_v9  ;;  %2275 = vst.msk [vmem:[#allocation3 + $0x1a8] sm:$0x3] %vm371_vm1, %v6820_v9  ;;  %v625_v9 = vmul.f32 %v7199_v36, %v458_v63 }
  0x47   : > { %9782 = vst [vmem:[#allocation6_spill] sm:$0xff] %v7133_v14  ;;  %9783 = vst [vmem:[#allocation7_spill] sm:$0xff] %v7136_v15 }
  0x48   : > { %425 = vst.msk [vmem:[#allocation2 + $0x19] sm:$0xff] %vm368_vm0, %v336_v56  ;;  %426 = vst.msk [vmem:[#allocation2 + $0x21] sm:$0xff] %vm368_vm0, %v337_v57  ;;  %v722_v23 = vrot.slane %v625_v9, 1  ;;  %v7271_v56 = vadd.f32 %v7195_v34, %v341_v30 }
  0x49   : > { %427 = vst.msk [vmem:[#allocation2 + $0x31] sm:$0xff] %vm368_vm0, %v338_v61  ;;  %428 = vst.msk [vmem:[#allocation2 + $0x39] sm:$0xff] %vm368_vm0, %v339_v62 }
  0x4a   : > { %v723_v39 = vsel %vm720_vm2, %v721_v22, %v722_v23  ;;  %v725_v40 = vsel %vm720_vm2, %v722_v23, %v724_v24  ;;  %429 = vst.msk [vmem:[#allocation2 + $0x49] sm:$0xff] %vm368_vm0, %v340_v29  ;;  %430 = vst.msk [vmem:[#allocation2 + $0x51] sm:$0xff] %vm368_vm0, %v341_v30  ;;  %v7309_v22 = vld [vmem:[%s9684_s2 + $0x8] ss:$0 sm:$0xff] }
  0x4b   : > { %v833_v46 = vadd.f32 %v723_v39, %v588_v18  ;;  %v834_v47 = vadd.f32 %v725_v40, %v589_v19  ;;  %431 = vst.msk [vmem:[#allocation2 + $0x61] sm:$0xff] %vm368_vm0, %v7263_v53  ;;  %432 = vst.msk [vmem:[#allocation2 + $0x69] sm:$0xff] %vm368_vm0, %v7265_v54 }
  0x4d   : > { %v1078_v62 = vadd.f32 %v968_v48, %v833_v46  ;;  %v1079_v63 = vadd.f32 %v970_v49, %v834_v47 }
  0x4f   : > { %v462_v50 = vld [vmem:[#allocation2 + $0x28] sm:$0x3]  ;;  %v7273_v57 = vld [vmem:[#allocation2 + $0x18] sm:$0xff]  ;;  %v7275_v58 = vld [vmem:[#allocation2 + $0x20] sm:$0xff] }
  0x50   : > { %v7278_v60 = vmul.f32 %v7199_v36, %v462_v50  ;;  %v7281_v61 = vmul.f32 %v7201_v37, %v462_v50  ;;  %v1114_v0 = vmul.f32 %v7203_v38, %v7273_v57  ;;  %v1115_v1 = vmul.f32 %v7203_v38, %v7275_v58  ;;  %v7301_v16 = vld [vmem:[#allocation2 + $0x30] sm:$0xff]  ;;  %v7303_v17 = vld [vmem:[#allocation2 + $0x38] sm:$0xff]  ;;  %v7318_v27 = vld [vmem:[#allocation2 + $0x40] sm:$0x3] }
  0x51   : > { %v1182_v2 = vmul.f32 %v7207_v42, %v7273_v57  ;;  %v1183_v3 = vmul.f32 %v7207_v42, %v7275_v58  ;;  %v1184_v6 = vmul.f32 %v7207_v42, %v462_v50  ;;  %v1426_v7 = vmul.f32 %v7209_v43, %v7273_v57 }
  0x52   : > { %v729_v5 = vrot.slane %v7278_v60, 1  ;;  %v1427_v8 = vmul.f32 %v7209_v43, %v7275_v58  ;;  %v1146_v9 = vadd.f32 %v1114_v0, %v1078_v62  ;;  %v1147_v11 = vadd.f32 %v1115_v1, %v1079_v63 }
  0x53   : > { %v1278_v12 = vrot.slane %v1182_v2, 1  ;;  %v1279_v13 = vrot.slane %v1183_v3, 1  ;;  %v1281_v18 = vrot.slane %v1184_v6, 1  ;;  %v1428_v19 = vmul.f32 %v7209_v43, %v462_v50 }
  0x54   : > { %v1522_v20 = vrot.slane %v1426_v7, 2  ;;  %v1523_v21 = vrot.slane %v1427_v8, 2  ;;  %v1670_v24 = vmul.f32 %v7216_v51, %v7301_v16  ;;  %v1671_v25 = vmul.f32 %v7216_v51, %v7303_v17 }
  0x55   : > { %v1280_v23 = vsel %vm720_vm2, %v1278_v12, %v1279_v13  ;;  %v1738_v26 = vmul.f32 %v7218_v52, %v7301_v16  ;;  %v1282_v28 = vsel %vm720_vm2, %v1279_v13, %v1281_v18  ;;  %v1525_v31 = vrot.slane %v1428_v19, 2 }
  0x56   : > { %v1390_v29 = vadd.f32 %v1280_v23, %v1146_v9  ;;  %v1524_v30 = vsel %vm965_vm3, %v1522_v20, %v1523_v21  ;;  %v1391_v32 = vadd.f32 %v1282_v28, %v1147_v11  ;;  %v1739_v33 = vmul.f32 %v7218_v52, %v7303_v17 }
  0x57   : > { %v1740_v39 = vmul.f32 %v7218_v52, %v7318_v27  ;;  %v1834_v40 = vrot.slane %v1738_v26, 1  ;;  %v1526_v46 = vsel %vm965_vm3, %v1523_v21, %v1525_v31  ;;  %v1982_v48 = vmul.f32 %v7309_v22, %v7301_v16 }
  0x58   : > { %v1634_v47 = vadd.f32 %v1524_v30, %v1390_v29  ;;  %v1983_v49 = vmul.f32 %v7309_v22, %v7303_v17  ;;  %v1635_v50 = vadd.f32 %v1526_v46, %v1391_v32  ;;  %v1835_v62 = vrot.slane %v1739_v33, 1 }
  0x59   : > { %v1837_v63 = vrot.slane %v1740_v39, 1  ;;  %v1984_v0 = vmul.f32 %v7309_v22, %v7318_v27  ;;  %v2078_v2 = vrot.slane %v1982_v48, 2  ;;  %v558_v6 = vmul.f32 %v7197_v35, %v7273_v57 }
  0x5a   : > { %v1702_v1 = vadd.f32 %v1670_v24, %v1634_v47  ;;  %v2079_v3 = vrot.slane %v1983_v49, 2  ;;  %v1703_v7 = vadd.f32 %v1671_v25, %v1635_v50  ;;  %v1836_v8 = vsel %vm720_vm2, %v1834_v40, %v1835_v62 }
  0x5b   : > { %v1838_v9 = vsel %vm720_vm2, %v1835_v62, %v1837_v63  ;;  %v2081_v11 = vrot.slane %v1984_v0, 2  ;;  %v559_v18 = vmul.f32 %v7197_v35, %v7275_v58  ;;  %v590_v19 = vadd.f32 %v558_v6, %v7254_v41 }
  0x5c   : > { %v1946_v12 = vadd.f32 %v1836_v8, %v1702_v1  ;;  %v2080_v13 = vsel %vm965_vm3, %v2078_v2, %v2079_v3  ;;  %v1947_v20 = vadd.f32 %v1838_v9, %v1703_v7  ;;  %v627_v23 = vmul.f32 %v7199_v36, %v7273_v57 }
  0x5d   : > { %v2082_v21 = vsel %vm965_vm3, %v2079_v3, %v2081_v11  ;;  %v628_v24 = vmul.f32 %v7199_v36, %v7275_v58  ;;  %v591_v26 = vadd.f32 %v559_v18, %v7257_v44  ;;  %v872_v28 = vmul.f32 %v7201_v37, %v7273_v57 }
  0x5e   : > { %v2190_v25 = vadd.f32 %v2080_v13, %v1946_v12  ;;  %v873_v29 = vmul.f32 %v7201_v37, %v7275_v58  ;;  %v2191_v30 = vadd.f32 %v2082_v21, %v1947_v20  ;;  %v726_v41 = vrot.slane %v627_v23, 1  ;;  %v7381_v12 = vld [vmem:[#allocation2 + $0x50] sm:$0xff] }
  0x5f   : > { %v727_v31 = vrot.slane %v628_v24, 1  ;;  %v974_v32 = vrot.slane %v7281_v61, 2  ;;  %v971_v33 = vrot.slane %v872_v28, 2  ;;  %v1116_v40 = vmul.f32 %v7203_v38, %v7301_v16 }
  0x60   : > { %2277 = vst.msk [vmem:[#allocation3 + $0x19] sm:$0xff] %vm368_vm0, %v2190_v25  ;;  %v972_v39 = vrot.slane %v873_v29, 2  ;;  %v1117_v44 = vmul.f32 %v7203_v38, %v7303_v17  ;;  %2278 = vst.msk [vmem:[#allocation3 + $0x21] sm:$0xff] %vm368_vm0, %v2191_v30  ;;  %v1185_v61 = vmul.f32 %v7207_v42, %v7301_v16  ;;  %v1186_v46 = vmul.f32 %v7207_v42, %v7303_v17 }
  0x61   : > { %v728_v57 = vsel %vm720_vm2, %v726_v41, %v727_v31  ;;  %v730_v58 = vsel %vm720_vm2, %v727_v31, %v729_v5  ;;  %v1187_v62 = vmul.f32 %v7207_v42, %v7318_v27  ;;  %v1429_v60 = vmul.f32 %v7209_v43, %v7301_v16  ;;  %v7372_v5 = vld [vmem:[#allocation2 + $0x48] sm:$0xff] }
  0x62   : > { %v835_v47 = vadd.f32 %v728_v57, %v590_v19  ;;  %v836_v48 = vadd.f32 %v730_v58, %v591_v26  ;;  %v973_v49 = vsel %vm965_vm3, %v971_v33, %v972_v39  ;;  %v975_v50 = vsel %vm965_vm3, %v972_v39, %v974_v32 }
  0x63   : > { %v1283_v63 = vrot.slane %v1185_v61, 1  ;;  %v1284_v0 = vrot.slane %v1186_v46, 1  ;;  %v1430_v3 = vmul.f32 %v7209_v43, %v7303_v17  ;;  %v1431_v6 = vmul.f32 %v7209_v43, %v7318_v27 }
  0x64   : > { %v1080_v1 = vadd.f32 %v973_v49, %v835_v47  ;;  %v1081_v2 = vadd.f32 %v975_v50, %v836_v48  ;;  %v1286_v8 = vrot.slane %v1187_v62, 1  ;;  %v1527_v9 = vrot.slane %v1429_v60, 2 }
  0x65   : > { %v1285_v7 = vsel %vm720_vm2, %v1283_v63, %v1284_v0  ;;  %v1672_v11 = vmul.f32 %v7216_v51, %v7372_v5  ;;  %v1528_v19 = vrot.slane %v1430_v3, 2  ;;  %v1530_v20 = vrot.slane %v1431_v6, 2 }
  0x66   : > { %v1148_v13 = vadd.f32 %v1116_v40, %v1080_v1  ;;  %v1149_v18 = vadd.f32 %v1117_v44, %v1081_v2  ;;  %v1287_v23 = vsel %vm720_vm2, %v1284_v0, %v1286_v8  ;;  %v1673_v24 = vmul.f32 %v7216_v51, %v7381_v12  ;;  %v7401_v44 = vld [vmem:[#allocation2 + $0x58] sm:$0x3] }
  0x67   : > { %v7383_v21 = vld [vmem:[#allocation3 + $0x18] sm:$0xff]  ;;  %v1741_v25 = vmul.f32 %v7218_v52, %v7372_v5  ;;  %v1742_v26 = vmul.f32 %v7218_v52, %v7381_v12  ;;  %v7392_v28 = vld [vmem:[#allocation3 + $0x20] sm:$0xff]  ;;  %v7395_v30 = vld [vmem:[#allocation3 + $0x28] sm:$0x3]  ;;  %v1529_v32 = vsel %vm965_vm3, %v1527_v9, %v1528_v19  ;;  %v1531_v57 = vsel %vm965_vm3, %v1528_v19, %v1530_v20 }
  0x68   : > { %v2452_v29 = vrot.slane %v7383_v21, 1  ;;  %v1392_v41 = vadd.f32 %v1285_v7, %v1148_v13  ;;  %v1393_v31 = vadd.f32 %v1287_v23, %v1149_v18  ;;  %v2453_v33 = vrot.slane %v7392_v28, 1 }
  0x69   : > { %v2455_v39 = vrot.slane %v7395_v30, 1  ;;  %v1743_v46 = vmul.f32 %v7218_v52, %v7401_v44  ;;  %v1839_v47 = vrot.slane %v1741_v25, 1  ;;  %v1840_v50 = vrot.slane %v1742_v26, 1 }
  0x6a   : > { %v1636_v58 = vadd.f32 %v1529_v32, %v1392_v41  ;;  %v1637_v61 = vadd.f32 %v1531_v57, %v1393_v31  ;;  %v2454_v48 = vsel %vm720_vm2, %v2452_v29, %v2453_v33  ;;  %v1985_v62 = vmul.f32 %v7309_v22, %v7372_v5 }
  0x6b   : > { %v2456_v49 = vsel %vm720_vm2, %v2453_v33, %v2455_v39  ;;  %5929 = vmatprep.mubr.msk.f32.mxu1 %vm368_vm0, %v2454_v48  ;;  %6150 = vmatprep.mubr.msk.f32.mxu0 %vm368_vm0, %v2454_v48  ;;  %v1842_v60 = vrot.slane %v1743_v46, 1  ;;  %v1986_v1 = vmul.f32 %v7309_v22, %v7381_v12  ;;  %v1841_v2 = vsel %vm720_vm2, %v1839_v47, %v1840_v50 }
  0x6c   : > { %v1704_v63 = vadd.f32 %v1672_v11, %v1636_v58  ;;  %v1705_v0 = vadd.f32 %v1673_v24, %v1637_v61  ;;  %5930 = vmatmul.mubr.msk.f32.gmra.mrb[2].mxu1 %vm368_vm0, %v2456_v49  ;;  %6151 = vmatmul.mubr.msk.f32.vlgmr.msra.gmra.mrb[0].mxu0 %vm368_vm0, %v2456_v49  ;;  %v1987_v3 = vmul.f32 %v7309_v22, %v7401_v44  ;;  %v2083_v6 = vrot.slane %v1985_v62, 2 }
  0x6d   : > { %v560_v7 = vmul.f32 %v7197_v35, %v7301_v16  ;;  %6465 = vmatpush3.bf16.msra.mxu0 %v7211_v45  ;;  %v1843_v8 = vsel %vm720_vm2, %v1840_v50, %v1842_v60  ;;  %v2084_v11 = vrot.slane %v1986_v1, 2  ;;  %v561_v13 = vmul.f32 %v7197_v35, %v7303_v17 }
  0x6e   : > { %v1948_v9 = vadd.f32 %v1841_v2, %v1704_v63  ;;  %v1949_v18 = vadd.f32 %v1843_v8, %v1705_v0  ;;  %v2086_v19 = vrot.slane %v1987_v3, 2  ;;  %v630_v23 = vmul.f32 %v7199_v36, %v7301_v16  ;;  %6467 = vmatprep.subr.bf16.mxu0 %v7223_v59 }
  0x6f   : > { %v592_v20 = vadd.f32 %v560_v7, %v7268_v55  ;;  %v2085_v24 = vsel %vm965_vm3, %v2083_v6, %v2084_v11  ;;  %v593_v45 = vadd.f32 %v561_v13, %v7271_v56  ;;  %v631_v25 = vmul.f32 %v7199_v36, %v7303_v17  ;;  %v7463_v7 = vld [vmem:[#allocation2 + $0x60] sm:$0xff] }
  0x70   : > { %v632_v26 = vmul.f32 %v7199_v36, %v7318_v27  ;;  %v2087_v29 = vsel %vm965_vm3, %v2084_v11, %v2086_v19  ;;  %v2192_v41 = vadd.f32 %v2085_v24, %v1948_v9  ;;  %v731_v31 = vrot.slane %v630_v23, 1 }
  0x71   : > { %v875_v55 = vmul.f32 %v7201_v37, %v7301_v16  ;;  %v2193_v32 = vadd.f32 %v2087_v29, %v1949_v18  ;;  %v732_v33 = vrot.slane %v631_v25, 1  ;;  %v876_v57 = vmul.f32 %v7201_v37, %v7303_v17  ;;  %6469 = vmatpush3.bf16.msra.mxu0 %v7223_v59  ;;  %v7467_v18 = vld [vmem:[#allocation2 + $0x68] sm:$0xff] }
  0x72   : > { %v734_v39 = vrot.slane %v632_v26, 1  ;;  %2279 = vst.msk [vmem:[#allocation3 + $0x31] sm:$0xff] %vm368_vm0, %v2192_v41  ;;  %v877_v56 = vmul.f32 %v7201_v37, %v7318_v27  ;;  %v1118_v61 = vmul.f32 %v7203_v38, %v7372_v5  ;;  %v1119_v16 = vmul.f32 %v7203_v38, %v7381_v12 }
  0x73   : > { %v976_v58 = vrot.slane %v875_v55, 2  ;;  %2280 = vst.msk [vmem:[#allocation3 + $0x39] sm:$0xff] %vm368_vm0, %v2193_v32  ;;  %v733_v46 = vsel %vm720_vm2, %v731_v31, %v732_v33  ;;  %v977_v47 = vrot.slane %v876_v57, 2  ;;  %v1188_v59 = vmul.f32 %v7207_v42, %v7372_v5 }
  0x74   : > { %v735_v17 = vsel %vm720_vm2, %v732_v33, %v734_v39  ;;  %v837_v48 = vadd.f32 %v733_v46, %v592_v20  ;;  %v979_v27 = vrot.slane %v877_v56, 2  ;;  %v1189_v50 = vmul.f32 %v7207_v42, %v7381_v12 }
  0x75   : > { %v838_v49 = vadd.f32 %v735_v17, %v593_v45  ;;  %v978_v62 = vsel %vm965_vm3, %v976_v58, %v977_v47  ;;  %v1190_v63 = vmul.f32 %v7207_v42, %v7401_v44  ;;  %v1288_v0 = vrot.slane %v1188_v59, 1 }
  0x76   : > { %v1432_v60 = vmul.f32 %v7209_v43, %v7372_v5  ;;  %v980_v1 = vsel %vm965_vm3, %v977_v47, %v979_v27  ;;  %v1082_v2 = vadd.f32 %v978_v62, %v837_v48  ;;  %v1289_v3 = vrot.slane %v1189_v50, 1  ;;  %v312_v27 = vld [vmem:[%s7181_s10 + $0x40] sm:$0xff] }
  0x77   : > { %v1433_v6 = vmul.f32 %v7209_v43, %v7381_v12  ;;  %v1083_v8 = vadd.f32 %v980_v1, %v838_v49  ;;  %v1291_v9 = vrot.slane %v1190_v63, 1  ;;  %v1434_v11 = vmul.f32 %v7209_v43, %v7401_v44  ;;  %v280_v49 = vld [vmem:[%s7176_s7 + $0x40] sm:$0xff]  ;;  %v313_v1 = vld [vmem:[%s7181_s10 + $0x48] sm:$0xff] }
  0x78   : > { %v1532_v13 = vrot.slane %v1432_v60, 2  ;;  %v1150_v19 = vadd.f32 %v1118_v61, %v1082_v2  ;;  %v1290_v20 = vsel %vm720_vm2, %v1288_v0, %v1289_v3  ;;  %v1674_v24 = vmul.f32 %v7216_v51, %v7463_v7  ;;  %v7484_v61 = vld [vmem:[#allocation2 + $0x70] sm:$0x3]  ;;  %v281_v60 = vld [vmem:[%s7176_s7 + $0x48] sm:$0xff] }
  0x79   : > { %v1533_v23 = vrot.slane %v1433_v6, 2  ;;  %v7472_v45 = vld [vmem:[#allocation3 + $0x30] sm:$0xff]  ;;  %v1151_v25 = vadd.f32 %v1119_v16, %v1083_v8  ;;  %v1292_v26 = vsel %vm720_vm2, %v1289_v3, %v1291_v9  ;;  %v1535_v29 = vrot.slane %v1434_v11, 2 }
  0x7a   : > { %v1675_v41 = vmul.f32 %v7216_v51, %v7467_v18  ;;  %v7477_v31 = vld [vmem:[#allocation3 + $0x38] sm:$0xff]  ;;  %v2457_v55 = vrot.slane %v7472_v45, 1  ;;  %v2317_v32 = vld [vmem:[#allocation3 + $0x40] sm:$0x3]  ;;  %v1394_v33 = vadd.f32 %v1290_v20, %v1150_v19  ;;  %v1744_v57 = vmul.f32 %v7218_v52, %v7463_v7 }
  0x7b   : > { %v1534_v39 = vsel %vm965_vm3, %v1532_v13, %v1533_v23  ;;  %v2458_v56 = vrot.slane %v7477_v31, 1  ;;  %v2460_v58 = vrot.slane %v2317_v32, 1  ;;  %v1395_v16 = vadd.f32 %v1292_v26, %v1151_v25 }
  0x7c   : > { %v1536_v46 = vsel %vm965_vm3, %v1533_v23, %v1535_v29  ;;  %v1638_v17 = vadd.f32 %v1534_v39, %v1394_v33  ;;  %v1745_v47 = vmul.f32 %v7218_v52, %v7467_v18  ;;  %v1746_v59 = vmul.f32 %v7218_v52, %v7484_v61 }
  0x7d   : > { %v1844_v48 = vrot.slane %v1744_v57, 1  ;;  %v7494_v50 = vsel %vm720_vm2, %v2457_v55, %v2458_v56  ;;  %v7497_v62 = vsel %vm720_vm2, %v2458_v56, %v2460_v58  ;;  %v1639_v63 = vadd.f32 %v1536_v46, %v1395_v16 }
  0x7e   : > { %9784 = vst [vmem:[#allocation8_spill] sm:$0xff] %v7494_v50  ;;  %9785 = vst [vmem:[#allocation9_spill] sm:$0xff] %v7497_v62  ;;  %v1988_v0 = vmul.f32 %v7309_v22, %v7463_v7  ;;  %5932 = vmatprep.mubr.msk.f32.mxu1 %vm368_vm0, %v7494_v50  ;;  %6153 = vmatprep.mubr.msk.f32.mxu0 %vm368_vm0, %v7494_v50  ;;  %v1706_v2 = vadd.f32 %v1674_v24, %v1638_v17  ;;  %v1845_v3 = vrot.slane %v1745_v47, 1 }
  0x7f   : > { %v1847_v6 = vrot.slane %v1746_v59, 1  ;;  %v1989_v8 = vmul.f32 %v7309_v22, %v7467_v18  ;;  %5933 = vmatmul.mubr.msk.f32.gmra.mrb[4].mxu1 %vm368_vm0, %v7497_v62  ;;  %6154 = vmatmul.mubr.msk.f32.gmra.mrb[2].mxu0 %vm368_vm0, %v7497_v62  ;;  %v1707_v9 = vadd.f32 %v1675_v41, %v1639_v63  ;;  %v1990_v11 = vmul.f32 %v7309_v22, %v7484_v61 }
  0x80   : > { %v2088_v13 = vrot.slane %v1988_v0, 2  ;;  %v7515_v19 = vadd.f32 %v312_v27, %v280_v49  ;;  %v1846_v20 = vsel %vm720_vm2, %v1844_v48, %v1845_v3  ;;  %v7519_v25 = vadd.f32 %v313_v1, %v281_v60 }
  0x81   : > { %v1848_v23 = vsel %vm720_vm2, %v1845_v3, %v1847_v6  ;;  %v2089_v24 = vrot.slane %v1989_v8, 2  ;;  %v1950_v26 = vadd.f32 %v1846_v20, %v1706_v2  ;;  %v2091_v55 = vrot.slane %v1990_v11, 2 }
  0x82   : > { %v1951_v29 = vadd.f32 %v1848_v23, %v1707_v9  ;;  %433 = vst.msk [vmem:[#allocation2 + $0x79] sm:$0xff] %vm368_vm0, %v7515_v19  ;;  %v526_v41 = vadd.f32 %v7195_v34, %v7263_v53  ;;  %434 = vst.msk [vmem:[#allocation2 + $0x81] sm:$0xff] %vm368_vm0, %v7519_v25  ;;  %v527_v33 = vadd.f32 %v7195_v34, %v7265_v54 }
  0x83   : > { %v2090_v32 = vsel %vm965_vm3, %v2088_v13, %v2089_v24  ;;  %v562_v39 = vmul.f32 %v7197_v35, %v7372_v5  ;;  %v563_v57 = vmul.f32 %v7197_v35, %v7381_v12  ;;  %v2092_v56 = vsel %vm965_vm3, %v2089_v24, %v2091_v55 }
  0x84   : > { %v2194_v58 = vadd.f32 %v2090_v32, %v1950_v26  ;;  %v633_v53 = vmul.f32 %v7199_v36, %v7372_v5  ;;  %v634_v16 = vmul.f32 %v7199_v36, %v7381_v12  ;;  %v2195_v46 = vadd.f32 %v2092_v56, %v1951_v29 }
  0x85   : > { %v594_v17 = vadd.f32 %v562_v39, %v526_v41  ;;  %v595_v47 = vadd.f32 %v563_v57, %v527_v33  ;;  %v635_v54 = vmul.f32 %v7199_v36, %v7401_v44  ;;  %v878_v49 = vmul.f32 %v7201_v37, %v7372_v5 }
  0x86   : > { %2281 = vst.msk [vmem:[#allocation3 + $0x49] sm:$0xff] %vm368_vm0, %v2194_v58  ;;  %v736_v59 = vrot.slane %v633_v53, 1  ;;  %v737_v48 = vrot.slane %v634_v16, 1  ;;  %v879_v27 = vmul.f32 %v7201_v37, %v7381_v12  ;;  %2282 = vst.msk [vmem:[#allocation3 + $0x51] sm:$0xff] %vm368_vm0, %v2195_v46  ;;  %v880_v0 = vmul.f32 %v7201_v37, %v7401_v44 }
  0x87   : > { %v739_v63 = vrot.slane %v635_v54, 1  ;;  %v1120_v60 = vmul.f32 %v7203_v38, %v7463_v7  ;;  %v1121_v1 = vmul.f32 %v7203_v38, %v7467_v18  ;;  %v981_v3 = vrot.slane %v878_v49, 2 }
  0x88   : > { %v738_v2 = vsel %vm720_vm2, %v736_v59, %v737_v48  ;;  %v982_v6 = vrot.slane %v879_v27, 2  ;;  %v1191_v5 = vmul.f32 %v7207_v42, %v7463_v7  ;;  %v984_v9 = vrot.slane %v880_v0, 2 }
  0x89   : > { %v740_v12 = vsel %vm720_vm2, %v737_v48, %v739_v63  ;;  %v839_v8 = vadd.f32 %v738_v2, %v594_v17  ;;  %v1192_v44 = vmul.f32 %v7207_v42, %v7467_v18  ;;  %v1193_v20 = vmul.f32 %v7207_v42, %v7484_v61  ;;  %v7565_v41 = vld [vmem:[#allocation2 + $0x78] sm:$0xff]  ;;  %v7575_v0 = vld [vmem:[#allocation2 + $0x80] sm:$0xff] }
  0x8a   : > { %v840_v11 = vadd.f32 %v740_v12, %v595_v47  ;;  %v983_v13 = vsel %vm965_vm3, %v981_v3, %v982_v6  ;;  %v1293_v23 = vrot.slane %v1191_v5, 1  ;;  %v985_v24 = vsel %vm965_vm3, %v982_v6, %v984_v9  ;;  %v7588_v9 = vld [vmem:[#allocation2 + $0x88] sm:$0x3] }
  0x8b   : > { %v1084_v26 = vadd.f32 %v983_v13, %v839_v8  ;;  %v1294_v29 = vrot.slane %v1192_v44, 1  ;;  %v1435_v55 = vmul.f32 %v7209_v43, %v7463_v7  ;;  %v1296_v33 = vrot.slane %v1193_v20, 1  ;;  %v282_v13 = vld [vmem:[%s7176_s7 + $0x50] sm:$0xff] }
  0x8c   : > { %v1085_v32 = vadd.f32 %v985_v24, %v840_v11  ;;  %v1436_v39 = vmul.f32 %v7209_v43, %v7467_v18  ;;  %v1437_v57 = vmul.f32 %v7209_v43, %v7484_v61  ;;  %v1676_v46 = vmul.f32 %v7216_v51, %v7565_v41 }
  0x8d   : > { %v2318_v56 = vld [vmem:[#allocation3 + $0x48] sm:$0xff]  ;;  %v1152_v58 = vadd.f32 %v1120_v60, %v1084_v26  ;;  %v1295_v53 = vsel %vm720_vm2, %v1293_v23, %v1294_v29  ;;  %v1537_v16 = vrot.slane %v1435_v55, 2  ;;  %v2319_v17 = vld [vmem:[#allocation3 + $0x50] sm:$0xff]  ;;  %v2320_v54 = vld [vmem:[#allocation3 + $0x58] sm:$0x3]  ;;  %v1297_v48 = vsel %vm720_vm2, %v1294_v29, %v1296_v33 }
  0x8e   : > { %v2462_v47 = vrot.slane %v2318_v56, 1  ;;  %v1153_v59 = vadd.f32 %v1121_v1, %v1085_v32  ;;  %v1538_v49 = vrot.slane %v1436_v39, 2  ;;  %v2463_v27 = vrot.slane %v2319_v17, 1  ;;  %v283_v29 = vld [vmem:[%s7176_s7 + $0x58] sm:$0xff]  ;;  %v314_v55 = vld [vmem:[%s7181_s10 + $0x50] sm:$0xff] }
  0x8f   : > { %v2465_v63 = vrot.slane %v2320_v54, 1  ;;  %v1396_v2 = vadd.f32 %v1295_v53, %v1152_v58  ;;  %v1540_v60 = vrot.slane %v1437_v57, 2  ;;  %v1677_v5 = vmul.f32 %v7216_v51, %v7575_v0  ;;  %v315_v32 = vld [vmem:[%s7181_s10 + $0x58] sm:$0xff] }
  0x90   : > { %v1397_v3 = vadd.f32 %v1297_v48, %v1153_v59  ;;  %v1539_v6 = vsel %vm965_vm3, %v1537_v16, %v1538_v49  ;;  %v1747_v1 = vmul.f32 %v7218_v52, %v7565_v41  ;;  %v7583_v12 = vsel %vm720_vm2, %v2462_v47, %v2463_v27 }
  0x91   : > { %9786 = vst [vmem:[#allocation10_spill] sm:$0xff] %v7583_v12  ;;  %v7586_v8 = vsel %vm720_vm2, %v2463_v27, %v2465_v63  ;;  %v1541_v44 = vsel %vm965_vm3, %v1538_v49, %v1540_v60  ;;  %v1640_v11 = vadd.f32 %v1539_v6, %v1396_v2  ;;  %5935 = vmatprep.mubr.msk.f32.mxu1 %vm368_vm0, %v7583_v12 }
  0x92   : > { %9787 = vst [vmem:[#allocation11_spill] sm:$0xff] %v7586_v8  ;;  %6156 = vmatprep.mubr.msk.f32.mxu0 %vm368_vm0, %v7583_v12  ;;  %v1641_v20 = vadd.f32 %v1541_v44, %v1397_v3  ;;  %v1748_v23 = vmul.f32 %v7218_v52, %v7575_v0  ;;  %v1749_v24 = vmul.f32 %v7218_v52, %v7588_v9  ;;  %v1849_v26 = vrot.slane %v1747_v1, 1 }
  0x93   : > { %5936 = vmatmul.mubr.msk.f32.gmra.mrb[6].mxu1 %vm368_vm0, %v7586_v8  ;;  %6157 = vmatmul.mubr.msk.f32.gmra.mrb[4].mxu0 %vm368_vm0, %v7586_v8  ;;  %v1708_v33 = vadd.f32 %v1676_v46, %v1640_v11  ;;  %v1991_v39 = vmul.f32 %v7309_v22, %v7565_v41  ;;  %v1992_v57 = vmul.f32 %v7309_v22, %v7575_v0 }
  0x94   : > { %v1709_v58 = vadd.f32 %v1677_v5, %v1641_v20  ;;  %v1850_v53 = vrot.slane %v1748_v23, 1  ;;  %v1852_v16 = vrot.slane %v1749_v24, 1  ;;  %v1993_v17 = vmul.f32 %v7309_v22, %v7588_v9 }
  0x95   : > { %v2093_v47 = vrot.slane %v1991_v39, 2  ;;  %v2094_v54 = vrot.slane %v1992_v57, 2  ;;  %v7614_v59 = vadd.f32 %v314_v55, %v282_v13  ;;  %v7616_v48 = vadd.f32 %v315_v32, %v283_v29 }
  0x96   : > { %v1851_v46 = vsel %vm720_vm2, %v1849_v26, %v1850_v53  ;;  %v1853_v49 = vsel %vm720_vm2, %v1850_v53, %v1852_v16  ;;  %v2096_v27 = vrot.slane %v1993_v17, 2  ;;  %v528_v63 = vadd.f32 %v7195_v34, %v7515_v19 }
  0x97   : > { %v1952_v2 = vadd.f32 %v1851_v46, %v1708_v33  ;;  %v1953_v60 = vadd.f32 %v1853_v49, %v1709_v58  ;;  %v2095_v3 = vsel %vm965_vm3, %v2093_v47, %v2094_v54  ;;  %435 = vst.msk [vmem:[#allocation2 + $0x91] sm:$0xff] %vm368_vm0, %v7614_v59  ;;  %436 = vst.msk [vmem:[#allocation2 + $0x99] sm:$0xff] %vm368_vm0, %v7616_v48 }
  0x98   : > { %v529_v6 = vadd.f32 %v7195_v34, %v7519_v25  ;;  %v2097_v5 = vsel %vm965_vm3, %v2094_v54, %v2096_v27  ;;  %v564_v1 = vmul.f32 %v7197_v35, %v7463_v7  ;;  %v565_v19 = vmul.f32 %v7197_v35, %v7467_v18 }
  0x99   : > { %v636_v44 = vmul.f32 %v7199_v36, %v7463_v7  ;;  %v2196_v11 = vadd.f32 %v2095_v3, %v1952_v2  ;;  %v2197_v13 = vadd.f32 %v2097_v5, %v1953_v60  ;;  %v637_v20 = vmul.f32 %v7199_v36, %v7467_v18 }
  0x9a   : > { %v638_v23 = vmul.f32 %v7199_v36, %v7484_v61  ;;  %v596_v34 = vadd.f32 %v564_v1, %v528_v63  ;;  %v597_v25 = vadd.f32 %v565_v19, %v529_v6  ;;  %v881_v26 = vmul.f32 %v7201_v37, %v7463_v7 }
  0x9b   : > { %v741_v24 = vrot.slane %v636_v44, 1  ;;  %2283 = vst.msk [vmem:[#allocation3 + $0x61] sm:$0xff] %vm368_vm0, %v2196_v11  ;;  %2284 = vst.msk [vmem:[#allocation3 + $0x69] sm:$0xff] %vm368_vm0, %v2197_v13  ;;  %v742_v29 = vrot.slane %v637_v20, 1  ;;  %v882_v32 = vmul.f32 %v7201_v37, %v7467_v18  ;;  %v883_v33 = vmul.f32 %v7201_v37, %v7484_v61 }
  0x9c   : > { %v744_v55 = vrot.slane %v638_v23, 1  ;;  %v986_v39 = vrot.slane %v881_v26, 2  ;;  %v1122_v57 = vmul.f32 %v7203_v38, %v7565_v41  ;;  %v1123_v58 = vmul.f32 %v7203_v38, %v7575_v0 }
  0x9d   : > { %v1194_v7 = vmul.f32 %v7207_v42, %v7565_v41  ;;  %v743_v53 = vsel %vm720_vm2, %v741_v24, %v742_v29  ;;  %v987_v17 = vrot.slane %v882_v32, 2  ;;  %v989_v47 = vrot.slane %v883_v33, 2 }
  0x9e   : > { %v745_v16 = vsel %vm720_vm2, %v742_v29, %v744_v55  ;;  %v841_v18 = vadd.f32 %v743_v53, %v596_v34  ;;  %v1195_v61 = vmul.f32 %v7207_v42, %v7575_v0  ;;  %v1196_v46 = vmul.f32 %v7207_v42, %v7588_v9  ;;  %v7664_v60 = vld [vmem:[#allocation2 + $0x90] sm:$0xff] }
  0x9f   : > { %v842_v54 = vadd.f32 %v745_v16, %v597_v25  ;;  %v988_v49 = vsel %vm965_vm3, %v986_v39, %v987_v17  ;;  %v990_v27 = vsel %vm965_vm3, %v987_v17, %v989_v47  ;;  %v1298_v63 = vrot.slane %v1194_v7, 1  ;;  %v7674_v39 = vld [vmem:[#allocation2 + $0x98] sm:$0xff] }
  0xa0   : > { %v1438_v2 = vmul.f32 %v7209_v43, %v7565_v41  ;;  %v1086_v3 = vadd.f32 %v988_v49, %v841_v18  ;;  %v1299_v5 = vrot.slane %v1195_v61, 1  ;;  %v1301_v1 = vrot.slane %v1196_v46, 1  ;;  %v7691_v61 = vld [vmem:[#allocation2 + $0xa0] sm:$0x3] }
  0xa1   : > { %v1087_v6 = vadd.f32 %v990_v27, %v842_v54  ;;  %v1439_v19 = vmul.f32 %v7209_v43, %v7575_v0  ;;  %v1440_v44 = vmul.f32 %v7209_v43, %v7588_v9  ;;  %v1678_v13 = vmul.f32 %v7216_v51, %v7664_v60 }
  0xa2   : > { %v1542_v11 = vrot.slane %v1438_v2, 2  ;;  %v2321_v20 = vld [vmem:[#allocation3 + $0x60] sm:$0xff]  ;;  %v2322_v23 = vld [vmem:[#allocation3 + $0x68] sm:$0xff]  ;;  %v2323_v34 = vld [vmem:[#allocation3 + $0x70] sm:$0x3]  ;;  %v1154_v25 = vadd.f32 %v1122_v57, %v1086_v3  ;;  %v1300_v26 = vsel %vm720_vm2, %v1298_v63, %v1299_v5  ;;  %v1302_v29 = vsel %vm720_vm2, %v1299_v5, %v1301_v1 }
  0xa3   : > { %v1155_v24 = vadd.f32 %v1123_v58, %v1087_v6  ;;  %v2467_v55 = vrot.slane %v2321_v20, 1  ;;  %v2468_v32 = vrot.slane %v2322_v23, 1  ;;  %v2470_v33 = vrot.slane %v2323_v34, 1  ;;  %v284_v63 = vld [vmem:[%s7176_s7 + $0x60] sm:$0xff] }
  0xa4   : > { %v1543_v7 = vrot.slane %v1439_v19, 2  ;;  %v1398_v53 = vadd.f32 %v1300_v26, %v1154_v25  ;;  %v1545_v17 = vrot.slane %v1440_v44, 2  ;;  %v1679_v47 = vmul.f32 %v7216_v51, %v7674_v39  ;;  %v316_v2 = vld [vmem:[%s7181_s10 + $0x60] sm:$0xff]  ;;  %v285_v44 = vld [vmem:[%s7176_s7 + $0x68] sm:$0xff] }
  0xa5   : > { %v1399_v16 = vadd.f32 %v1302_v29, %v1155_v24  ;;  %v7679_v57 = vsel %vm720_vm2, %v2467_v55, %v2468_v32  ;;  %v7682_v58 = vsel %vm720_vm2, %v2468_v32, %v2470_v33  ;;  %v1750_v54 = vmul.f32 %v7218_v52, %v7664_v60 }
  0xa6   : > { %9788 = vst [vmem:[#allocation12_spill] sm:$0xff] %v7679_v57  ;;  %9789 = vst [vmem:[#allocation13_spill] sm:$0xff] %v7682_v58  ;;  %v1544_v18 = vsel %vm965_vm3, %v1542_v11, %v1543_v7  ;;  %5938 = vmatprep.mubr.msk.f32.mxu1 %vm368_vm0, %v7679_v57  ;;  %6159 = vmatprep.mubr.msk.f32.mxu0 %vm368_vm0, %v7679_v57  ;;  %v1546_v46 = vsel %vm965_vm3, %v1543_v7, %v1545_v17  ;;  %v317_v11 = vld [vmem:[%s7181_s10 + $0x68] sm:$0xff]  ;;  %v7724_v17 = vld [vmem:[%s9685_s3] ss:$0 sm:$0xff] }
  0xa7   : > { %v1642_v49 = vadd.f32 %v1544_v18, %v1398_v53  ;;  %v1751_v27 = vmul.f32 %v7218_v52, %v7674_v39  ;;  %5939 = vmatmul.mubr.msk.f32.gmra.mrb[8].mxu1 %vm368_vm0, %v7682_v58  ;;  %6160 = vmatmul.mubr.msk.f32.gmra.mrb[6].mxu0 %vm368_vm0, %v7682_v58  ;;  %v1643_v6 = vadd.f32 %v1546_v46, %v1399_v16  ;;  %v1854_v1 = vrot.slane %v1750_v54, 1 }
  0xa8   : > { %v1752_v5 = vmul.f32 %v7218_v52, %v7691_v61  ;;  %v1994_v19 = vmul.f32 %v7309_v22, %v7664_v60  ;;  %v1995_v34 = vmul.f32 %v7309_v22, %v7674_v39  ;;  %v1996_v25 = vmul.f32 %v7309_v22, %v7691_v61 }
  0xa9   : > { %v1710_v20 = vadd.f32 %v1678_v13, %v1642_v49  ;;  %v1855_v23 = vrot.slane %v1751_v27, 1  ;;  %v1711_v24 = vadd.f32 %v1679_v47, %v1643_v6  ;;  %v7713_v55 = vadd.f32 %v316_v2, %v284_v63 }
  0xaa   : > { %v1857_v26 = vrot.slane %v1752_v5, 1  ;;  %v2098_v29 = vrot.slane %v1994_v19, 2  ;;  %v2099_v33 = vrot.slane %v1995_v34, 2  ;;  %v2101_v7 = vrot.slane %v1996_v25, 2 }
  0xab   : > { %v1856_v32 = vsel %vm720_vm2, %v1854_v1, %v1855_v23  ;;  %v7716_v53 = vadd.f32 %v317_v11, %v285_v44  ;;  %437 = vst.msk [vmem:[#allocation2 + $0xa9] sm:$0xff] %vm368_vm0, %v7713_v55  ;;  %v530_v47 = vadd.f32 %v7724_v17, %v7614_v59  ;;  %v531_v18 = vadd.f32 %v7724_v17, %v7616_v48 }
  0xac   : > { %v1858_v13 = vsel %vm720_vm2, %v1855_v23, %v1857_v26  ;;  %v1954_v16 = vadd.f32 %v1856_v32, %v1710_v20  ;;  %v2100_v46 = vsel %vm965_vm3, %v2098_v29, %v2099_v33  ;;  %v2102_v49 = vsel %vm965_vm3, %v2099_v33, %v2101_v7 }
  0xad   : > { %v1955_v54 = vadd.f32 %v1858_v13, %v1711_v24  ;;  %438 = vst.msk [vmem:[#allocation2 + $0xb1] sm:$0xff] %vm368_vm0, %v7716_v53  ;;  %v566_v27 = vmul.f32 %v7197_v35, %v7565_v41  ;;  %v567_v2 = vmul.f32 %v7197_v35, %v7575_v0  ;;  %v639_v59 = vmul.f32 %v7199_v36, %v7565_v41 }
  0xae   : > { %v2198_v63 = vadd.f32 %v2100_v46, %v1954_v16  ;;  %v640_v48 = vmul.f32 %v7199_v36, %v7575_v0  ;;  %v641_v1 = vmul.f32 %v7199_v36, %v7588_v9  ;;  %v884_v19 = vmul.f32 %v7201_v37, %v7565_v41 }
  0xaf   : > { %v2199_v6 = vadd.f32 %v2102_v49, %v1955_v54  ;;  %v598_v5 = vadd.f32 %v566_v27, %v530_v47  ;;  %v599_v44 = vadd.f32 %v567_v2, %v531_v18  ;;  %v746_v11 = vrot.slane %v639_v59, 1 }
  0xb0   : > { %2285 = vst.msk [vmem:[#allocation3 + $0x79] sm:$0xff] %vm368_vm0, %v2198_v63  ;;  %v747_v20 = vrot.slane %v640_v48, 1  ;;  %v885_v23 = vmul.f32 %v7201_v37, %v7575_v0  ;;  %v749_v34 = vrot.slane %v641_v1, 1  ;;  %v886_v25 = vmul.f32 %v7201_v37, %v7588_v9 }
  0xb1   : > { %2286 = vst.msk [vmem:[#allocation3 + $0x81] sm:$0xff] %vm368_vm0, %v2199_v6  ;;  %v991_v24 = vrot.slane %v884_v19, 2  ;;  %v1124_v26 = vmul.f32 %v7203_v38, %v7664_v60  ;;  %v1125_v32 = vmul.f32 %v7203_v38, %v7674_v39  ;;  %v1197_v33 = vmul.f32 %v7207_v42, %v7664_v60 }
  0xb2   : > { %v748_v41 = vsel %vm720_vm2, %v746_v11, %v747_v20  ;;  %v992_v29 = vrot.slane %v885_v23, 2  ;;  %v750_v0 = vsel %vm720_vm2, %v747_v20, %v749_v34  ;;  %v994_v13 = vrot.slane %v886_v25, 2  ;;  %v7768_v2 = vld [vmem:[#allocation2 + $0xa8] sm:$0xff] }
  0xb3   : > { %v843_v7 = vadd.f32 %v748_v41, %v598_v5  ;;  %v1198_v9 = vmul.f32 %v7207_v42, %v7674_v39  ;;  %v844_v16 = vadd.f32 %v750_v0, %v599_v44  ;;  %v1199_v18 = vmul.f32 %v7207_v42, %v7691_v61 }
  0xb4   : > { %v993_v47 = vsel %vm965_vm3, %v991_v24, %v992_v29  ;;  %v1303_v54 = vrot.slane %v1197_v33, 1  ;;  %v995_v46 = vsel %vm965_vm3, %v992_v29, %v994_v13  ;;  %v1441_v63 = vmul.f32 %v7209_v43, %v7664_v60 }
  0xb5   : > { %v1088_v49 = vadd.f32 %v993_v47, %v843_v7  ;;  %v1304_v27 = vrot.slane %v1198_v9, 1  ;;  %v1089_v59 = vadd.f32 %v995_v46, %v844_v16  ;;  %v1306_v48 = vrot.slane %v1199_v18, 1  ;;  %v7778_v7 = vld [vmem:[#allocation2 + $0xb0] sm:$0xff]  ;;  %v7791_v46 = vld [vmem:[#allocation2 + $0xb8] sm:$0x3] }
  0xb6   : > { %v1442_v6 = vmul.f32 %v7209_v43, %v7674_v39  ;;  %v1443_v5 = vmul.f32 %v7209_v43, %v7691_v61  ;;  %v1547_v11 = vrot.slane %v1441_v63, 2  ;;  %v1680_v20 = vmul.f32 %v7216_v51, %v7768_v2  ;;  %v286_v63 = vld [vmem:[%s7176_s7 + $0x70] sm:$0xff] }
  0xb7   : > { %v2324_v1 = vld [vmem:[#allocation3 + $0x78] sm:$0xff]  ;;  %v1156_v19 = vadd.f32 %v1124_v26, %v1088_v49  ;;  %v1305_v44 = vsel %vm720_vm2, %v1303_v54, %v1304_v27  ;;  %v1157_v24 = vadd.f32 %v1125_v32, %v1089_v59  ;;  %v1307_v41 = vsel %vm720_vm2, %v1304_v27, %v1306_v48 }
  0xb8   : > { %v2325_v23 = vld [vmem:[#allocation3 + $0x80] sm:$0xff]  ;;  %v2472_v34 = vrot.slane %v2324_v1, 1  ;;  %v2326_v25 = vld [vmem:[#allocation3 + $0x88] sm:$0x3]  ;;  %v1548_v29 = vrot.slane %v1442_v6, 2  ;;  %v1550_v26 = vrot.slane %v1443_v5, 2  ;;  %v1681_v47 = vmul.f32 %v7216_v51, %v7778_v7 }
  0xb9   : > { %v2473_v33 = vrot.slane %v2325_v23, 1  ;;  %v2475_v0 = vrot.slane %v2326_v25, 1  ;;  %v1400_v13 = vadd.f32 %v1305_v44, %v1156_v19  ;;  %v1401_v9 = vadd.f32 %v1307_v41, %v1157_v24  ;;  %v287_v1 = vld [vmem:[%s7176_s7 + $0x78] sm:$0xff]  ;;  %v318_v19 = vld [vmem:[%s7181_s10 + $0x70] sm:$0xff]  ;;  %v8622_v12 = vld [vmem:[#allocation3 + $0x78] sm:$0xff] }
  0xba   : > { %v1549_v16 = vsel %vm965_vm3, %v1547_v11, %v1548_v29  ;;  %v1753_v32 = vmul.f32 %v7218_v52, %v7768_v2  ;;  %v1551_v49 = vsel %vm965_vm3, %v1548_v29, %v1550_v26  ;;  %v1754_v48 = vmul.f32 %v7218_v52, %v7778_v7  ;;  %v319_v44 = vld [vmem:[%s7181_s10 + $0x78] sm:$0xff] }
  0xbb   : > { %v7786_v18 = vsel %vm720_vm2, %v2472_v34, %v2473_v33  ;;  %v7789_v54 = vsel %vm720_vm2, %v2473_v33, %v2475_v0  ;;  %v1644_v27 = vadd.f32 %v1549_v16, %v1400_v13  ;;  %v1645_v59 = vadd.f32 %v1551_v49, %v1401_v9 }
  0xbc   : > { %9790 = vst [vmem:[#allocation14_spill] sm:$0xff] %v7786_v18  ;;  %9791 = vst [vmem:[#allocation15_spill] sm:$0xff] %v7789_v54  ;;  %5941 = vmatprep.mubr.msk.f32.mxu1 %vm368_vm0, %v7786_v18  ;;  %6162 = vmatprep.mubr.msk.f32.mxu0 %vm368_vm0, %v7786_v18  ;;  %v1755_v6 = vmul.f32 %v7218_v52, %v7791_v46  ;;  %v1859_v5 = vrot.slane %v1753_v32, 1  ;;  %v1997_v23 = vmul.f32 %v7309_v22, %v7768_v2 }
  0xbd   : > { %5942 = vmatmul.mubr.msk.f32.gmra.mrb[10].mxu1 %vm368_vm0, %v7789_v54  ;;  %6163 = vmatmul.mubr.msk.f32.gmra.mrb[8].mxu0 %vm368_vm0, %v7789_v54  ;;  %v1712_v11 = vadd.f32 %v1680_v20, %v1644_v27  ;;  %v1998_v34 = vmul.f32 %v7309_v22, %v7778_v7  ;;  %v1713_v24 = vadd.f32 %v1681_v47, %v1645_v59  ;;  %v1860_v41 = vrot.slane %v1754_v48, 1  ;;  %v8510_v54 = vld [vmem:[#allocation3 + $0x68] sm:$0xff] }
  0xbe   : > { %v1862_v29 = vrot.slane %v1755_v6, 1  ;;  %v1999_v33 = vmul.f32 %v7309_v22, %v7791_v46  ;;  %v2103_v0 = vrot.slane %v1997_v23, 2  ;;  %v7817_v26 = vadd.f32 %v318_v19, %v286_v63 }
  0xbf   : > { %v2104_v13 = vrot.slane %v1998_v34, 2  ;;  %v7819_v9 = vadd.f32 %v319_v44, %v287_v1  ;;  %v1861_v20 = vsel %vm720_vm2, %v1859_v5, %v1860_v41  ;;  %v532_v49 = vadd.f32 %v7724_v17, %v7713_v55 }
  0xc0   : > { %v1863_v16 = vsel %vm720_vm2, %v1860_v41, %v1862_v29  ;;  %v2106_v32 = vrot.slane %v1999_v33, 2  ;;  %v1956_v47 = vadd.f32 %v1861_v20, %v1712_v11  ;;  %439 = vst.msk [vmem:[#allocation2 + $0xc1] sm:$0xff] %vm368_vm0, %v7817_v26  ;;  %v533_v22 = vadd.f32 %v7724_v17, %v7716_v53 }
  0xc1   : > { %v1957_v27 = vadd.f32 %v1863_v16, %v1713_v24  ;;  %v2105_v59 = vsel %vm965_vm3, %v2103_v0, %v2104_v13  ;;  %440 = vst.msk [vmem:[#allocation2 + $0xc9] sm:$0xff] %vm368_vm0, %v7819_v9  ;;  %v568_v48 = vmul.f32 %v7197_v35, %v7664_v60  ;;  %v569_v55 = vmul.f32 %v7197_v35, %v7674_v39 }
  0xc2   : > { %v2107_v63 = vsel %vm965_vm3, %v2104_v13, %v2106_v32  ;;  %v642_v6 = vmul.f32 %v7199_v36, %v7664_v60  ;;  %v2200_v5 = vadd.f32 %v2105_v59, %v1956_v47  ;;  %v643_v19 = vmul.f32 %v7199_v36, %v7674_v39 }
  0xc3   : > { %v2201_v1 = vadd.f32 %v2107_v63, %v1957_v27  ;;  %v644_v44 = vmul.f32 %v7199_v36, %v7691_v61  ;;  %v600_v53 = vadd.f32 %v568_v48, %v532_v49  ;;  %v601_v11 = vadd.f32 %v569_v55, %v533_v22 }
  0xc4   : > { %v751_v23 = vrot.slane %v642_v6, 1  ;;  %v887_v34 = vmul.f32 %v7201_v37, %v7664_v60  ;;  %2287 = vst.msk [vmem:[#allocation3 + $0x91] sm:$0xff] %vm368_vm0, %v2200_v5  ;;  %v752_v24 = vrot.slane %v643_v19, 1  ;;  %v888_v29 = vmul.f32 %v7201_v37, %v7674_v39 }
  0xc5   : > { %2288 = vst.msk [vmem:[#allocation3 + $0x99] sm:$0xff] %vm368_vm0, %v2201_v1  ;;  %v754_v41 = vrot.slane %v644_v44, 1  ;;  %v889_v33 = vmul.f32 %v7201_v37, %v7691_v61  ;;  %v1126_v13 = vmul.f32 %v7203_v38, %v7768_v2  ;;  %v1127_v20 = vmul.f32 %v7203_v38, %v7778_v7 }
  0xc6   : > { %v996_v0 = vrot.slane %v887_v34, 2  ;;  %v1200_v60 = vmul.f32 %v7207_v42, %v7768_v2  ;;  %v753_v16 = vsel %vm720_vm2, %v751_v23, %v752_v24  ;;  %v997_v49 = vrot.slane %v888_v29, 2 }
  0xc7   : > { %v755_v32 = vsel %vm720_vm2, %v752_v24, %v754_v41  ;;  %v999_v47 = vrot.slane %v889_v33, 2  ;;  %v845_v39 = vadd.f32 %v753_v16, %v600_v53  ;;  %v1201_v61 = vmul.f32 %v7207_v42, %v7778_v7  ;;  %v7867_v6 = vld [vmem:[#allocation2 + $0xc0] sm:$0xff] }
  0xc8   : > { %v846_v27 = vadd.f32 %v755_v32, %v601_v11  ;;  %v1202_v59 = vmul.f32 %v7207_v42, %v7791_v46  ;;  %v998_v22 = vsel %vm965_vm3, %v996_v0, %v997_v49  ;;  %v1308_v48 = vrot.slane %v1200_v60, 1 }
  0xc9   : > { %v1000_v63 = vsel %vm965_vm3, %v997_v49, %v999_v47  ;;  %v1444_v55 = vmul.f32 %v7209_v43, %v7768_v2  ;;  %v1090_v5 = vadd.f32 %v998_v22, %v845_v39  ;;  %v1309_v19 = vrot.slane %v1201_v61, 1  ;;  %v7877_v39 = vld [vmem:[#allocation2 + $0xc8] sm:$0xff] }
  0xca   : > { %v1091_v1 = vadd.f32 %v1000_v63, %v846_v27  ;;  %v1311_v44 = vrot.slane %v1202_v59, 1  ;;  %v1445_v53 = vmul.f32 %v7209_v43, %v7778_v7  ;;  %v1446_v11 = vmul.f32 %v7209_v43, %v7791_v46 }
  0xcb   : > { %v1552_v23 = vrot.slane %v1444_v55, 2  ;;  %v1682_v34 = vmul.f32 %v7216_v51, %v7867_v6  ;;  %v2327_v24 = vld [vmem:[#allocation3 + $0x90] sm:$0xff]  ;;  %v1158_v33 = vadd.f32 %v1126_v13, %v1090_v5  ;;  %v1310_v60 = vsel %vm720_vm2, %v1308_v48, %v1309_v19  ;;  %v7894_v5 = vld [vmem:[#allocation2 + $0xd0] sm:$0x3] }
  0xcc   : > { %v2328_v41 = vld [vmem:[#allocation3 + $0x98] sm:$0xff]  ;;  %v2329_v29 = vld [vmem:[#allocation3 + $0xa0] sm:$0x3]  ;;  %v1159_v0 = vadd.f32 %v1127_v20, %v1091_v1  ;;  %v1312_v16 = vsel %vm720_vm2, %v1309_v19, %v1311_v44  ;;  %v2477_v32 = vrot.slane %v2327_v24, 1  ;;  %v1553_v27 = vrot.slane %v1445_v53, 2  ;;  %v288_v53 = vld [vmem:[%s7176_s7 + $0x80] sm:$0xff] }
  0xcd   : > { %v2478_v49 = vrot.slane %v2328_v41, 1  ;;  %v2480_v47 = vrot.slane %v2329_v29, 1  ;;  %v1402_v61 = vadd.f32 %v1310_v60, %v1158_v33  ;;  %v1555_v22 = vrot.slane %v1446_v11, 2  ;;  %v320_v11 = vld [vmem:[%s7181_s10 + $0x80] sm:$0xff]  ;;  %v7911_v33 = vld [vmem:[%s9684_s2 + $0x8] ss:$0 sm:$0xff] }
  0xce   : > { %v1403_v59 = vadd.f32 %v1312_v16, %v1159_v0  ;;  %v1683_v63 = vmul.f32 %v7216_v51, %v7877_v39  ;;  %v1554_v48 = vsel %vm965_vm3, %v1552_v23, %v1553_v27  ;;  %v1756_v55 = vmul.f32 %v7218_v52, %v7867_v6  ;;  %v289_v60 = vld [vmem:[%s7176_s7 + $0x88] sm:$0xff] }
  0xcf   : > { %v7882_v13 = vsel %vm720_vm2, %v2477_v32, %v2478_v49  ;;  %v7885_v20 = vsel %vm720_vm2, %v2478_v49, %v2480_v47  ;;  %v1556_v1 = vsel %vm965_vm3, %v1553_v27, %v1555_v22  ;;  %v1646_v19 = vadd.f32 %v1554_v48, %v1402_v61  ;;  %v321_v16 = vld [vmem:[%s7181_s10 + $0x88] sm:$0xff] }
  0xd0   : > { %9792 = vst [vmem:[#allocation16_spill] sm:$0xff] %v7882_v13  ;;  %9793 = vst [vmem:[#allocation17_spill] sm:$0xff] %v7885_v20  ;;  %5944 = vmatprep.mubr.msk.f32.mxu1 %vm368_vm0, %v7882_v13  ;;  %6165 = vmatprep.mubr.msk.f32.mxu0 %vm368_vm0, %v7882_v13  ;;  %v1757_v44 = vmul.f32 %v7218_v52, %v7877_v39  ;;  %v1647_v24 = vadd.f32 %v1556_v1, %v1403_v59  ;;  %v1864_v29 = vrot.slane %v1756_v55, 1 }
  0xd1   : > { %5945 = vmatmul.mubr.msk.f32.gmra.mrb[12].mxu1 %vm368_vm0, %v7885_v20  ;;  %6166 = vmatmul.mubr.msk.f32.gmra.mrb[10].mxu0 %vm368_vm0, %v7885_v20  ;;  %v1758_v41 = vmul.f32 %v7218_v52, %v7894_v5  ;;  %v2000_v0 = vmul.f32 %v7911_v33, %v7867_v6  ;;  %v1714_v32 = vadd.f32 %v1682_v34, %v1646_v19 }
  0xd2   : > { %v1865_v49 = vrot.slane %v1757_v44, 1  ;;  %v2001_v47 = vmul.f32 %v7911_v33, %v7877_v39  ;;  %v2002_v27 = vmul.f32 %v7911_v33, %v7894_v5  ;;  %v1715_v61 = vadd.f32 %v1683_v63, %v1647_v24 }
  0xd3   : > { %v1867_v59 = vrot.slane %v1758_v41, 1  ;;  %v2108_v22 = vrot.slane %v2000_v0, 2  ;;  %v7921_v48 = vadd.f32 %v320_v11, %v288_v53  ;;  %v7924_v25 = vadd.f32 %v321_v16, %v289_v60 }
  0xd4   : > { %v1866_v55 = vsel %vm720_vm2, %v1864_v29, %v1865_v49  ;;  %v2109_v1 = vrot.slane %v2001_v47, 2  ;;  %v2111_v4 = vrot.slane %v2002_v27, 2  ;;  %v534_v44 = vadd.f32 %v7724_v17, %v7817_v26 }
  0xd5   : > { %v1868_v34 = vsel %vm720_vm2, %v1865_v49, %v1867_v59  ;;  %v1958_v19 = vadd.f32 %v1866_v55, %v1714_v32  ;;  %441 = vst.msk [vmem:[#allocation2 + $0xd9] sm:$0xff] %vm368_vm0, %v7921_v48  ;;  %v535_v63 = vadd.f32 %v7724_v17, %v7819_v9  ;;  %442 = vst.msk [vmem:[#allocation2 + $0xe1] sm:$0xff] %vm368_vm0, %v7924_v25 }
  0xd6   : > { %v1959_v53 = vadd.f32 %v1868_v34, %v1715_v61  ;;  %v2110_v11 = vsel %vm965_vm3, %v2108_v22, %v2109_v1  ;;  %v2112_v24 = vsel %vm965_vm3, %v2109_v1, %v2111_v4  ;;  %v570_v41 = vmul.f32 %v7197_v35, %v7768_v2 }
  0xd7   : > { %v2202_v29 = vadd.f32 %v2110_v11, %v1958_v19  ;;  %v571_v0 = vmul.f32 %v7197_v35, %v7778_v7  ;;  %v645_v26 = vmul.f32 %v7199_v36, %v7768_v2  ;;  %v646_v9 = vmul.f32 %v7199_v36, %v7778_v7 }
  0xd8   : > { %v2203_v60 = vadd.f32 %v2112_v24, %v1959_v53  ;;  %v602_v16 = vadd.f32 %v570_v41, %v534_v44  ;;  %v647_v4 = vmul.f32 %v7199_v36, %v7791_v46  ;;  %v890_v32 = vmul.f32 %v7201_v37, %v7768_v2 }
  0xd9   : > { %2289 = vst.msk [vmem:[#allocation3 + $0xa9] sm:$0xff] %vm368_vm0, %v2202_v29  ;;  %v603_v49 = vadd.f32 %v571_v0, %v535_v63  ;;  %v756_v47 = vrot.slane %v645_v26, 1  ;;  %v757_v27 = vrot.slane %v646_v9, 1  ;;  %v891_v61 = vmul.f32 %v7201_v37, %v7778_v7 }
  0xda   : > { %2290 = vst.msk [vmem:[#allocation3 + $0xb1] sm:$0xff] %vm368_vm0, %v2203_v60  ;;  %v759_v59 = vrot.slane %v647_v4, 1  ;;  %v892_v22 = vmul.f32 %v7201_v37, %v7791_v46  ;;  %v1001_v55 = vrot.slane %v890_v32, 2  ;;  %v1128_v1 = vmul.f32 %v7203_v38, %v7867_v6 }
  0xdb   : > { %v758_v2 = vsel %vm720_vm2, %v756_v47, %v757_v27  ;;  %v1002_v34 = vrot.slane %v891_v61, 2  ;;  %v1129_v19 = vmul.f32 %v7203_v38, %v7877_v39  ;;  %v1203_v44 = vmul.f32 %v7207_v42, %v7867_v6 }
  0xdc   : > { %v760_v7 = vsel %vm720_vm2, %v757_v27, %v759_v59  ;;  %v847_v63 = vadd.f32 %v758_v2, %v602_v16  ;;  %v1004_v53 = vrot.slane %v892_v22, 2  ;;  %v1204_v46 = vmul.f32 %v7207_v42, %v7877_v39  ;;  %v7971_v4 = vld [vmem:[#allocation2 + $0xd8] sm:$0xff] }
  0xdd   : > { %v848_v11 = vadd.f32 %v760_v7, %v603_v49  ;;  %v1003_v24 = vsel %vm965_vm3, %v1001_v55, %v1002_v34  ;;  %v1205_v41 = vmul.f32 %v7207_v42, %v7894_v5  ;;  %v1313_v29 = vrot.slane %v1203_v44, 1 }
  0xde   : > { %v1005_v0 = vsel %vm965_vm3, %v1002_v34, %v1004_v53  ;;  %v1092_v26 = vadd.f32 %v1003_v24, %v847_v63  ;;  %v1314_v9 = vrot.slane %v1204_v46, 1  ;;  %v1447_v60 = vmul.f32 %v7209_v43, %v7867_v6  ;;  %v7981_v24 = vld [vmem:[#allocation2 + $0xe0] sm:$0xff] }
  0xdf   : > { %v1093_v16 = vadd.f32 %v1005_v0, %v848_v11  ;;  %v1316_v32 = vrot.slane %v1205_v41, 1  ;;  %v1448_v49 = vmul.f32 %v7209_v43, %v7877_v39  ;;  %v1449_v47 = vmul.f32 %v7209_v43, %v7894_v5 }
  0xe0   : > { %v2330_v27 = vld [vmem:[#allocation3 + $0xa8] sm:$0xff]  ;;  %v1160_v61 = vadd.f32 %v1128_v1, %v1092_v26  ;;  %v1315_v59 = vsel %vm720_vm2, %v1313_v29, %v1314_v9  ;;  %v1557_v22 = vrot.slane %v1447_v60, 2  ;;  %v1684_v55 = vmul.f32 %v7216_v51, %v7971_v4 }
  0xe1   : > { %v2331_v2 = vld [vmem:[#allocation3 + $0xb0] sm:$0xff]  ;;  %v2482_v34 = vrot.slane %v2330_v27, 1  ;;  %v2332_v44 = vld [vmem:[#allocation3 + $0xb8] sm:$0x3]  ;;  %v1161_v7 = vadd.f32 %v1129_v19, %v1093_v16  ;;  %v1317_v63 = vsel %vm720_vm2, %v1314_v9, %v1316_v32  ;;  %v1558_v53 = vrot.slane %v1448_v49, 2 }
  0xe2   : > { %v2483_v46 = vrot.slane %v2331_v2, 1  ;;  %v2485_v11 = vrot.slane %v2332_v44, 1  ;;  %v1404_v41 = vadd.f32 %v1315_v59, %v1160_v61  ;;  %v1560_v1 = vrot.slane %v1449_v47, 2  ;;  %v7994_v16 = vld [vmem:[#allocation2 + $0xe8] sm:$0x3]  ;;  %v290_v47 = vld [vmem:[%s7176_s7 + $0x90] sm:$0xff] }
  0xe3   : > { %v1405_v0 = vadd.f32 %v1317_v63, %v1161_v7  ;;  %v1559_v29 = vsel %vm965_vm3, %v1557_v22, %v1558_v53  ;;  %v1685_v26 = vmul.f32 %v7216_v51, %v7981_v24  ;;  %v1759_v19 = vmul.f32 %v7218_v52, %v7971_v4  ;;  %v291_v2 = vld [vmem:[%s7176_s7 + $0x98] sm:$0xff] }
  0xe4   : > { %v7989_v9 = vsel %vm720_vm2, %v2482_v34, %v2483_v46  ;;  %v7992_v60 = vsel %vm720_vm2, %v2483_v46, %v2485_v11  ;;  %v1561_v32 = vsel %vm965_vm3, %v1558_v53, %v1560_v1  ;;  %v1648_v49 = vadd.f32 %v1559_v29, %v1404_v41  ;;  %v322_v34 = vld [vmem:[%s7181_s10 + $0x90] sm:$0xff]  ;;  %v323_v44 = vld [vmem:[%s7181_s10 + $0x98] sm:$0xff] }
  0xe5   : > { %9794 = vst [vmem:[#allocation18_spill] sm:$0xff] %v7989_v9  ;;  %9795 = vst [vmem:[#allocation19_spill] sm:$0xff] %v7992_v60  ;;  %5947 = vmatprep.mubr.msk.f32.mxu1 %vm368_vm0, %v7989_v9  ;;  %6168 = vmatprep.mubr.msk.f32.mxu0 %vm368_vm0, %v7989_v9  ;;  %v1649_v27 = vadd.f32 %v1561_v32, %v1405_v0  ;;  %v1760_v61 = vmul.f32 %v7218_v52, %v7981_v24  ;;  %v1869_v22 = vrot.slane %v1759_v19, 1  ;;  %v8017_v46 = vld [vmem:[#allocation3 + $0x40] sm:$0x3]  ;;  %v331_v9 = vld [vmem:[%s7181_s10 + $0xd8] sm:$0xff] }
  0xe6   : > { %v1761_v59 = vmul.f32 %v7218_v52, %v7994_v16  ;;  %5948 = vmatmul.mubr.msk.f32.gmra.mrb[14].mxu1 %vm368_vm0, %v7992_v60  ;;  %6169 = vmatmul.mubr.msk.f32.gmra.mrb[12].mxu0 %vm368_vm0, %v7992_v60  ;;  %v1716_v7 = vadd.f32 %v1684_v55, %v1648_v49  ;;  %v2003_v63 = vmul.f32 %v7911_v33, %v7971_v4  ;;  %v325_v60 = vld [vmem:[%s7181_s10 + $0xa8] sm:$0xff] }
  0xe7   : > { %v2004_v53 = vmul.f32 %v7911_v33, %v7981_v24  ;;  %v1717_v41 = vadd.f32 %v1685_v26, %v1649_v27  ;;  %v1870_v1 = vrot.slane %v1760_v61, 1  ;;  %v2005_v29 = vmul.f32 %v7911_v33, %v7994_v16 }
  0xe8   : > { %v1872_v0 = vrot.slane %v1761_v59, 1  ;;  %v2113_v19 = vrot.slane %v2003_v63, 2  ;;  %v8022_v23 = vadd.f32 %v322_v34, %v290_v47  ;;  %v8024_v55 = vadd.f32 %v323_v44, %v291_v2 }
  0xe9   : > { %v2114_v32 = vrot.slane %v2004_v53, 2  ;;  %v1871_v49 = vsel %vm720_vm2, %v1869_v22, %v1870_v1  ;;  %v2116_v56 = vrot.slane %v2005_v29, 2  ;;  %v536_v11 = vadd.f32 %v7724_v17, %v7921_v48 }
  0xea   : > { %v1873_v40 = vsel %vm720_vm2, %v1870_v1, %v1872_v0  ;;  %v1960_v26 = vadd.f32 %v1871_v49, %v1716_v7  ;;  %443 = vst.msk [vmem:[#allocation2 + $0xf1] sm:$0xff] %vm368_vm0, %v8022_v23  ;;  %444 = vst.msk [vmem:[#allocation2 + $0xf9] sm:$0xff] %vm368_vm0, %v8024_v55  ;;  %v537_v47 = vadd.f32 %v7724_v17, %v7924_v25 }
  0xeb   : > { %v1961_v27 = vadd.f32 %v1873_v40, %v1717_v41  ;;  %v2115_v61 = vsel %vm965_vm3, %v2113_v19, %v2114_v32  ;;  %v2117_v59 = vsel %vm965_vm3, %v2114_v32, %v2116_v56  ;;  %v572_v22 = vmul.f32 %v7197_v35, %v7867_v6 }
  0xec   : > { %v573_v48 = vmul.f32 %v7197_v35, %v7877_v39  ;;  %v648_v40 = vmul.f32 %v7199_v36, %v7867_v6  ;;  %v2204_v2 = vadd.f32 %v2115_v61, %v1960_v26  ;;  %v649_v44 = vmul.f32 %v7199_v36, %v7877_v39 }
  0xed   : > { %v2205_v34 = vadd.f32 %v2117_v59, %v1961_v27  ;;  %v650_v7 = vmul.f32 %v7199_v36, %v7894_v5  ;;  %v604_v25 = vadd.f32 %v572_v22, %v536_v11  ;;  %v893_v53 = vmul.f32 %v7201_v37, %v7867_v6 }
  0xee   : > { %v605_v63 = vadd.f32 %v573_v48, %v537_v47  ;;  %v761_v56 = vrot.slane %v648_v40, 1  ;;  %2291 = vst.msk [vmem:[#allocation3 + $0xc1] sm:$0xff] %vm368_vm0, %v2204_v2  ;;  %v762_v41 = vrot.slane %v649_v44, 1  ;;  %v894_v0 = vmul.f32 %v7201_v37, %v7877_v39 }
  0xef   : > { %2292 = vst.msk [vmem:[#allocation3 + $0xc9] sm:$0xff] %vm368_vm0, %v2205_v34  ;;  %v764_v1 = vrot.slane %v650_v7, 1  ;;  %v895_v29 = vmul.f32 %v7201_v37, %v7894_v5  ;;  %v1006_v19 = vrot.slane %v893_v53, 2  ;;  %v1130_v11 = vmul.f32 %v7203_v38, %v7971_v4 }
  0xf0   : > { %v1131_v32 = vmul.f32 %v7203_v38, %v7981_v24  ;;  %v1206_v6 = vmul.f32 %v7207_v42, %v7971_v4  ;;  %v763_v49 = vsel %vm720_vm2, %v761_v56, %v762_v41  ;;  %v1007_v27 = vrot.slane %v894_v0, 2 }
  0xf1   : > { %v765_v26 = vsel %vm720_vm2, %v762_v41, %v764_v1  ;;  %v1009_v61 = vrot.slane %v895_v29, 2  ;;  %v849_v39 = vadd.f32 %v763_v49, %v604_v25  ;;  %v1207_v5 = vmul.f32 %v7207_v42, %v7981_v24  ;;  %v8072_v34 = vld [vmem:[#allocation2 + $0xf0] sm:$0xff] }
  0xf2   : > { %v850_v47 = vadd.f32 %v765_v26, %v605_v63  ;;  %v1208_v59 = vmul.f32 %v7207_v42, %v7994_v16  ;;  %v1008_v22 = vsel %vm965_vm3, %v1006_v19, %v1007_v27  ;;  %v1318_v40 = vrot.slane %v1206_v6, 1 }
  0xf3   : > { %v1010_v48 = vsel %vm965_vm3, %v1007_v27, %v1009_v61  ;;  %v1450_v2 = vmul.f32 %v7209_v43, %v7971_v4  ;;  %v1094_v44 = vadd.f32 %v1008_v22, %v849_v39  ;;  %v1319_v25 = vrot.slane %v1207_v5, 1  ;;  %v8082_v5 = vld [vmem:[#allocation2 + $0xf8] sm:$0xff] }
  0xf4   : > { %v1095_v7 = vadd.f32 %v1010_v48, %v850_v47  ;;  %v1321_v63 = vrot.slane %v1208_v59, 1  ;;  %v1451_v56 = vmul.f32 %v7209_v43, %v7981_v24  ;;  %v1452_v53 = vmul.f32 %v7209_v43, %v7994_v16 }
  0xf5   : > { %v1562_v41 = vrot.slane %v1450_v2, 2  ;;  %v1686_v1 = vmul.f32 %v7216_v51, %v8072_v34  ;;  %v2333_v0 = vld [vmem:[#allocation3 + $0xc0] sm:$0xff]  ;;  %v1162_v6 = vadd.f32 %v1130_v11, %v1094_v44  ;;  %v1320_v26 = vsel %vm720_vm2, %v1318_v40, %v1319_v25  ;;  %v8099_v44 = vld [vmem:[#allocation2 + $0x100] sm:$0x3] }
  0xf6   : > { %v2334_v29 = vld [vmem:[#allocation3 + $0xc8] sm:$0xff]  ;;  %v2335_v19 = vld [vmem:[#allocation3 + $0xd0] sm:$0x3]  ;;  %v1163_v49 = vadd.f32 %v1131_v32, %v1095_v7  ;;  %v1322_v27 = vsel %vm720_vm2, %v1319_v25, %v1321_v63  ;;  %v2487_v61 = vrot.slane %v2333_v0, 1  ;;  %v1563_v59 = vrot.slane %v1451_v56, 2  ;;  %v2365_v56 = vld [vmem:[%s9686_s4 + $0x10] sm:$0xff] }
  0xf7   : > { %v2488_v39 = vrot.slane %v2334_v29, 1  ;;  %v2490_v47 = vrot.slane %v2335_v19, 1  ;;  %v1406_v22 = vadd.f32 %v1320_v26, %v1162_v6  ;;  %v1565_v2 = vrot.slane %v1452_v53, 2  ;;  %v2366_v53 = vld [vmem:[%s9686_s4 + $0x18] sm:$0xff] }
  0xf8   : > { %v1407_v48 = vadd.f32 %v1322_v27, %v1163_v49  ;;  %v1687_v3 = vmul.f32 %v7216_v51, %v8082_v5  ;;  %v1564_v32 = vsel %vm965_vm3, %v1562_v41, %v1563_v59  ;;  %v1762_v40 = vmul.f32 %v7218_v52, %v8072_v34  ;;  %v8110_v41 = vld [vmem:[#allocation3 + $0x48] sm:$0xff] }
  0xf9   : > { %v8087_v14 = vsel %vm720_vm2, %v2487_v61, %v2488_v39  ;;  %v8090_v11 = vsel %vm720_vm2, %v2488_v39, %v2490_v47  ;;  %v1566_v7 = vsel %vm965_vm3, %v1563_v59, %v1565_v2  ;;  %v1650_v25 = vadd.f32 %v1564_v32, %v1406_v22  ;;  %v2387_v47 = vld [vmem:[%s9686_s4 + $0xc0] sm:$0xff]  ;;  %v2388_v59 = vld [vmem:[%s9686_s4 + $0xc8] sm:$0xff] }
  0xfa   : > { %9796 = vst [vmem:[#allocation20_spill] sm:$0xff] %v8087_v14  ;;  %9797 = vst [vmem:[#allocation21_spill] sm:$0xff] %v8090_v11  ;;  %5950 = vmatprep.mubr.msk.f32.mxu1 %vm368_vm0, %v8087_v14  ;;  %6171 = vmatprep.mubr.msk.f32.mxu0 %vm368_vm0, %v8087_v14  ;;  %v1763_v63 = vmul.f32 %v7218_v52, %v8082_v5  ;;  %v1651_v29 = vadd.f32 %v1566_v7, %v1407_v48  ;;  %v1874_v6 = vrot.slane %v1762_v40, 1  ;;  %v292_v32 = vld [vmem:[%s7176_s7 + $0xa0] sm:$0xff] }
  0xfb   : > { %5951 = vmatmul.mubr.msk.f32.gmra.mrb[16].mxu1 %vm368_vm0, %v8090_v11  ;;  %6172 = vmatmul.mubr.msk.f32.gmra.mrb[14].mxu0 %vm368_vm0, %v8090_v11  ;;  %v1764_v19 = vmul.f32 %v7218_v52, %v8099_v44  ;;  %v2006_v49 = vmul.f32 %v7911_v33, %v8072_v34  ;;  %v1718_v26 = vadd.f32 %v1686_v1, %v1650_v25  ;;  %v9799_v0 = vrot.slane %v7383_v21, 2  ;;  %v293_v11 = vld [vmem:[%s7176_s7 + $0xa8] sm:$0xff]  ;;  %v324_v14 = vld [vmem:[%s7181_s10 + $0xa0] sm:$0xff] }
  0xfc   : > { %v1875_v27 = vrot.slane %v1763_v63, 1  ;;  %v2007_v61 = vmul.f32 %v7911_v33, %v8082_v5  ;;  %v2008_v39 = vmul.f32 %v7911_v33, %v8099_v44  ;;  %v1719_v22 = vadd.f32 %v1687_v3, %v1651_v29 }
  0xfd   : > { %v1877_v48 = vrot.slane %v1764_v19, 1  ;;  %v2118_v1 = vrot.slane %v2006_v49, 2  ;;  %v6434_v2 = vpack.c.bf16 %v2366_v53, %v2365_v56  ;;  %v9798_v63 = vrot.slane %v7392_v28, 2  ;;  %v8146_v53 = vld [vmem:[#allocation3 + $0x50] sm:$0xff] }
  0xfe   : > { %v1876_v40 = vsel %vm720_vm2, %v1874_v6, %v1875_v27  ;;  %v2119_v7 = vrot.slane %v2007_v61, 2  ;;  %v2121_v25 = vrot.slane %v2008_v39, 2  ;;  %v6470_v56 = vpack.c.bf16 %v2388_v59, %v2387_v47  ;;  %v8164_v59 = vld [vmem:[#allocation3 + $0x58] sm:$0x3] }
  0xff   : > { %v8138_v15 = vsel %vm965_vm3, %v9799_v0, %v9798_v63  ;;  %v1878_v3 = vsel %vm720_vm2, %v1875_v27, %v1877_v48  ;;  %v1962_v29 = vadd.f32 %v1876_v40, %v1718_v26  ;;  %6435 = vmatprep.subr.bf16.mxu1 %v6434_v2  ;;  %v9800_v49 = vrot.slane %v7395_v30, 2 }
 0x100   : > { %6206 = vmatprep.mubr.msk.f32.mxu0 %vm368_vm0, %v8138_v15  ;;  %v1963_v6 = vadd.f32 %v1878_v3, %v1719_v22  ;;  %v2120_v21 = vsel %vm965_vm3, %v2118_v1, %v2119_v7  ;;  %v2122_v0 = vsel %vm965_vm3, %v2119_v7, %v2121_v25  ;;  %6437 = vmatpush3.bf16.msra.mxu1 %v6434_v2 }
 0x101   : > { %v9801_v27 = vmov %v9798_v63  ;;  %v2206_v61 = vadd.f32 %v2120_v21, %v1962_v29  ;;  %6471 = vmatprep.subr.bf16.mxu0 %v6470_v56  ;;  %v8160_v39 = vadd.f32 %v324_v14, %v292_v32  ;;  %v8162_v47 = vadd.f32 %v325_v60, %v293_v11 }
 0x102   : > { %v8156_v26 = vsel %vm965_vm3, %v9801_v27, %v9800_v49  ;;  %v2207_v48 = vadd.f32 %v2122_v0, %v1963_v6  ;;  %v538_v28 = vadd.f32 %v7724_v17, %v8022_v23  ;;  %v539_v30 = vadd.f32 %v7724_v17, %v8024_v55 }
 0x103   : > { %9802 = vst [vmem:[#allocation22_spill] sm:$0xff] %v8156_v26  ;;  %6207 = vmatmul.mubr.msk.f32.vlgmr.msra.gmra.mrb[0].mxu0 %vm368_vm0, %v8156_v26  ;;  %v574_v1 = vmul.f32 %v7197_v35, %v7971_v4  ;;  %2293 = vst.msk [vmem:[#allocation3 + $0xd9] sm:$0xff] %vm368_vm0, %v2206_v61  ;;  %v575_v14 = vmul.f32 %v7197_v35, %v7981_v24  ;;  %v651_v23 = vmul.f32 %v7199_v36, %v7971_v4 }
 0x104   : > { %6473 = vmatpush3.bf16.msra.mxu0 %v6470_v56  ;;  %445 = vst.msk [vmem:[#allocation2 + $0x109] sm:$0xff] %vm368_vm0, %v8160_v39  ;;  %446 = vst.msk [vmem:[#allocation2 + $0x111] sm:$0xff] %vm368_vm0, %v8162_v47  ;;  %v652_v17 = vmul.f32 %v7199_v36, %v7981_v24  ;;  %v653_v60 = vmul.f32 %v7199_v36, %v7994_v16  ;;  %v896_v11 = vmul.f32 %v7201_v37, %v7971_v4 }
 0x105   : > { %2294 = vst.msk [vmem:[#allocation3 + $0xe1] sm:$0xff] %vm368_vm0, %v2207_v48  ;;  %v606_v55 = vadd.f32 %v574_v1, %v538_v28  ;;  %v897_v2 = vmul.f32 %v7201_v37, %v7981_v24  ;;  %v898_v32 = vmul.f32 %v7201_v37, %v7994_v16  ;;  %v607_v40 = vadd.f32 %v575_v14, %v539_v30 }
 0x106   : > { %v766_v7 = vrot.slane %v651_v23, 1  ;;  %v767_v25 = vrot.slane %v652_v17, 1  ;;  %v769_v63 = vrot.slane %v653_v60, 1  ;;  %v1011_v3 = vrot.slane %v896_v11, 2 }
 0x107   : > { %v1012_v29 = vrot.slane %v897_v2, 2  ;;  %v1014_v56 = vrot.slane %v898_v32, 2  ;;  %v1132_v6 = vmul.f32 %v7203_v38, %v8072_v34  ;;  %v1133_v24 = vmul.f32 %v7203_v38, %v8082_v5 }
 0x108   : > { %v768_v21 = vsel %vm720_vm2, %v766_v7, %v767_v25  ;;  %v770_v4 = vsel %vm720_vm2, %v767_v25, %v769_v63  ;;  %v1209_v16 = vmul.f32 %v7207_v42, %v8072_v34  ;;  %v1210_v48 = vmul.f32 %v7207_v42, %v8082_v5 }
 0x109   : > { %v851_v0 = vadd.f32 %v768_v21, %v606_v55  ;;  %v852_v49 = vadd.f32 %v770_v4, %v607_v40  ;;  %v1013_v27 = vsel %vm965_vm3, %v1011_v3, %v1012_v29  ;;  %v1015_v61 = vsel %vm965_vm3, %v1012_v29, %v1014_v56 }
 0x10a   : > { %v1211_v28 = vmul.f32 %v7207_v42, %v8099_v44  ;;  %v1323_v30 = vrot.slane %v1209_v16, 1  ;;  %v1453_v1 = vmul.f32 %v7209_v43, %v8072_v34  ;;  %v2336_v14 = vld [vmem:[#allocation3 + $0xd8] sm:$0xff]  ;;  %v1454_v11 = vmul.f32 %v7209_v43, %v8082_v5 }
 0x10b   : > { %v8209_v23 = vld [vmem:[#allocation2 + $0x108] sm:$0xff]  ;;  %v8211_v17 = vld [vmem:[#allocation2 + $0x110] sm:$0xff]  ;;  %v1096_v60 = vadd.f32 %v1013_v27, %v851_v0  ;;  %v1097_v55 = vadd.f32 %v1015_v61, %v852_v49  ;;  %v1455_v2 = vmul.f32 %v7209_v43, %v8099_v44  ;;  %v2492_v40 = vrot.slane %v2336_v14, 1  ;;  %v8229_v22 = vld [vmem:[#allocation2 + $0x118] sm:$0x3] }
 0x10c   : > { %v2337_v32 = vld [vmem:[#allocation3 + $0xe0] sm:$0xff]  ;;  %v2338_v7 = vld [vmem:[#allocation3 + $0xe8] sm:$0x3]  ;;  %v1688_v25 = vmul.f32 %v7216_v51, %v8209_v23  ;;  %v1689_v63 = vmul.f32 %v7216_v51, %v8211_v17  ;;  %v1765_v3 = vmul.f32 %v7218_v52, %v8209_v23  ;;  %v1324_v16 = vrot.slane %v1210_v48, 1 }
 0x10d   : > { %v2493_v29 = vrot.slane %v2337_v32, 1  ;;  %v2495_v56 = vrot.slane %v2338_v7, 1  ;;  %v1164_v21 = vadd.f32 %v1132_v6, %v1096_v60  ;;  %v1165_v4 = vadd.f32 %v1133_v24, %v1097_v55 }
 0x10e   : > { %v1326_v0 = vrot.slane %v1211_v28, 1  ;;  %v1567_v49 = vrot.slane %v1453_v1, 2  ;;  %v1568_v27 = vrot.slane %v1454_v11, 2  ;;  %v1570_v19 = vrot.slane %v1455_v2, 2 }
 0x10f   : > { %v8224_v61 = vsel %vm720_vm2, %v2492_v40, %v2493_v29  ;;  %v8227_v14 = vsel %vm720_vm2, %v2493_v29, %v2495_v56  ;;  %v1766_v32 = vmul.f32 %v7218_v52, %v8211_v17  ;;  %v1325_v6 = vsel %vm720_vm2, %v1323_v30, %v1324_v16  ;;  %v294_v29 = vld [vmem:[%s7176_s7 + $0xb0] sm:$0xff] }
 0x110   : > { %9803 = vst [vmem:[#allocation23_spill] sm:$0xff] %v8224_v61  ;;  %9804 = vst [vmem:[#allocation24_spill] sm:$0xff] %v8227_v14  ;;  %5953 = vmatprep.mubr.msk.f32.mxu1 %vm368_vm0, %v8224_v61  ;;  %v1327_v24 = vsel %vm720_vm2, %v1324_v16, %v1326_v0  ;;  %v1569_v48 = vsel %vm965_vm3, %v1567_v49, %v1568_v27  ;;  %v1767_v28 = vmul.f32 %v7218_v52, %v8229_v22  ;;  %v326_v49 = vld [vmem:[%s7181_s10 + $0xb0] sm:$0xff] }
 0x111   : > { %5954 = vmatmul.mubr.msk.f32.gmra.mrb[18].mxu1 %vm368_vm0, %v8227_v14  ;;  %v1408_v1 = vadd.f32 %v1325_v6, %v1164_v21  ;;  %v1409_v60 = vadd.f32 %v1327_v24, %v1165_v4  ;;  %v1571_v55 = vsel %vm965_vm3, %v1568_v27, %v1570_v19  ;;  %v1879_v11 = vrot.slane %v1765_v3, 1  ;;  %v295_v3 = vld [vmem:[%s7176_s7 + $0xb8] sm:$0xff] }
 0x112   : > { %v1880_v2 = vrot.slane %v1766_v32, 1  ;;  %v1882_v30 = vrot.slane %v1767_v28, 1  ;;  %v2009_v40 = vmul.f32 %v7911_v33, %v8209_v23  ;;  %v2010_v7 = vmul.f32 %v7911_v33, %v8211_v17  ;;  %v327_v27 = vld [vmem:[%s7181_s10 + $0xb8] sm:$0xff] }
 0x113   : > { %v1652_v56 = vadd.f32 %v1569_v48, %v1408_v1  ;;  %v1653_v16 = vadd.f32 %v1571_v55, %v1409_v60  ;;  %v2011_v0 = vmul.f32 %v7911_v33, %v8229_v22  ;;  %v9805_v21 = vrot.slane %v7477_v31, 2 }
 0x114   : > { %v9806_v4 = vrot.slane %v7472_v45, 2  ;;  %v1881_v32 = vsel %vm720_vm2, %v1879_v11, %v1880_v2  ;;  %v1883_v6 = vsel %vm720_vm2, %v1880_v2, %v1882_v30  ;;  %v2123_v24 = vrot.slane %v2009_v40, 2 }
 0x115   : > { %v2124_v48 = vrot.slane %v2010_v7, 2  ;;  %v1720_v28 = vadd.f32 %v1688_v25, %v1652_v56  ;;  %v1721_v1 = vadd.f32 %v1689_v63, %v1653_v16  ;;  %v2126_v60 = vrot.slane %v2011_v0, 2  ;;  %v8281_v25 = vld [vmem:[%s9685_s3] ss:$0 sm:$0xff] }
 0x116   : > { %v8255_v19 = vsel %vm965_vm3, %v9806_v4, %v9805_v21  ;;  %v9808_v45 = vrot.slane %v8017_v46, 2  ;;  %v9809_v55 = vmov %v9805_v21  ;;  %v8274_v11 = vadd.f32 %v326_v49, %v294_v29 }
 0x117   : > { %9807 = vst [vmem:[#allocation25_spill] sm:$0xff] %v8255_v19  ;;  %6209 = vmatprep.mubr.msk.f32.mxu0 %vm368_vm0, %v8255_v19  ;;  %v2125_v4 = vsel %vm965_vm3, %v2123_v24, %v2124_v48  ;;  %v8276_v2 = vadd.f32 %v327_v27, %v295_v3  ;;  %v540_v31 = vadd.f32 %v8281_v25, %v8160_v39 }
 0x118   : > { %v8269_v21 = vsel %vm965_vm3, %v9809_v55, %v9808_v45  ;;  %v1964_v46 = vadd.f32 %v1881_v32, %v1720_v28  ;;  %v1965_v63 = vadd.f32 %v1883_v6, %v1721_v1  ;;  %v2127_v30 = vsel %vm965_vm3, %v2124_v48, %v2126_v60  ;;  %447 = vst.msk [vmem:[#allocation2 + $0x121] sm:$0xff] %vm368_vm0, %v8274_v11 }
 0x119   : > { %9810 = vst [vmem:[#allocation26_spill] sm:$0xff] %v8269_v21  ;;  %6210 = vmatmul.mubr.msk.f32.gmra.mrb[2].mxu0 %vm368_vm0, %v8269_v21  ;;  %v541_v40 = vadd.f32 %v8281_v25, %v8162_v47  ;;  %448 = vst.msk [vmem:[#allocation2 + $0x129] sm:$0xff] %vm368_vm0, %v8276_v2  ;;  %v576_v7 = vmul.f32 %v7197_v35, %v8072_v34  ;;  %v577_v29 = vmul.f32 %v7197_v35, %v8082_v5  ;;  %v8748_v21 = vld [vmem:[#allocation3 + $0x98] sm:$0xff] }
 0x11a   : > { %v654_v39 = vmul.f32 %v7199_v36, %v8072_v34  ;;  %v655_v56 = vmul.f32 %v7199_v36, %v8082_v5  ;;  %v2208_v16 = vadd.f32 %v2125_v4, %v1964_v46  ;;  %v2209_v47 = vadd.f32 %v2127_v30, %v1965_v63 }
 0x11b   : > { %v656_v0 = vmul.f32 %v7199_v36, %v8099_v44  ;;  %v899_v3 = vmul.f32 %v7201_v37, %v8072_v34  ;;  %v608_v49 = vadd.f32 %v576_v7, %v540_v31  ;;  %v609_v27 = vadd.f32 %v577_v29, %v541_v40 }
 0x11c   : > { %v771_v32 = vrot.slane %v654_v39, 1  ;;  %v772_v6 = vrot.slane %v655_v56, 1  ;;  %2295 = vst.msk [vmem:[#allocation3 + $0xf1] sm:$0xff] %vm368_vm0, %v2208_v16  ;;  %2296 = vst.msk [vmem:[#allocation3 + $0xf9] sm:$0xff] %vm368_vm0, %v2209_v47  ;;  %v900_v48 = vmul.f32 %v7201_v37, %v8082_v5  ;;  %v901_v28 = vmul.f32 %v7201_v37, %v8099_v44 }
 0x11d   : > { %v774_v24 = vrot.slane %v656_v0, 1  ;;  %v1016_v1 = vrot.slane %v899_v3, 2  ;;  %v1134_v34 = vmul.f32 %v7203_v38, %v8209_v23  ;;  %v1135_v45 = vmul.f32 %v7203_v38, %v8211_v17 }
 0x11e   : > { %v773_v60 = vsel %vm720_vm2, %v771_v32, %v772_v6  ;;  %v1212_v55 = vmul.f32 %v7207_v42, %v8209_v23  ;;  %v1017_v46 = vrot.slane %v900_v48, 2  ;;  %v1019_v5 = vrot.slane %v901_v28, 2 }
 0x11f   : > { %v775_v4 = vsel %vm720_vm2, %v772_v6, %v774_v24  ;;  %v853_v31 = vadd.f32 %v773_v60, %v608_v49  ;;  %v1213_v44 = vmul.f32 %v7207_v42, %v8211_v17  ;;  %v1214_v30 = vmul.f32 %v7207_v42, %v8229_v22  ;;  %v8328_v16 = vld [vmem:[#allocation2 + $0x120] sm:$0xff] }
 0x120   : > { %v854_v63 = vadd.f32 %v775_v4, %v609_v27  ;;  %v1328_v40 = vrot.slane %v1212_v55, 1  ;;  %v1018_v7 = vsel %vm965_vm3, %v1016_v1, %v1017_v46  ;;  %v1020_v29 = vsel %vm965_vm3, %v1017_v46, %v1019_v5 }
 0x121   : > { %v1456_v39 = vmul.f32 %v7209_v43, %v8209_v23  ;;  %v1457_v56 = vmul.f32 %v7209_v43, %v8211_v17  ;;  %v1098_v47 = vadd.f32 %v1018_v7, %v853_v31  ;;  %v1329_v3 = vrot.slane %v1213_v44, 1  ;;  %v8345_v44 = vld [vmem:[#allocation2 + $0x128] sm:$0xff] }
 0x122   : > { %v1099_v0 = vadd.f32 %v1020_v29, %v854_v63  ;;  %v1331_v49 = vrot.slane %v1214_v30, 1  ;;  %v1458_v27 = vmul.f32 %v7209_v43, %v8229_v22  ;;  %v1690_v24 = vmul.f32 %v7216_v51, %v8328_v16 }
 0x123   : > { %v1572_v32 = vrot.slane %v1456_v39, 2  ;;  %v1573_v6 = vrot.slane %v1457_v56, 2  ;;  %v8334_v48 = vld [vmem:[#allocation3 + $0xf0] sm:$0xff]  ;;  %v8336_v28 = vld [vmem:[#allocation3 + $0xf8] sm:$0xff]  ;;  %v8338_v1 = vld [vmem:[#allocation3 + $0x100] sm:$0x3]  ;;  %v1166_v60 = vadd.f32 %v1134_v34, %v1098_v47  ;;  %v1330_v4 = vsel %vm720_vm2, %v1328_v40, %v1329_v3 }
 0x124   : > { %v1167_v55 = vadd.f32 %v1135_v45, %v1099_v0  ;;  %v1332_v31 = vsel %vm720_vm2, %v1329_v3, %v1331_v49  ;;  %v2497_v46 = vrot.slane %v8334_v48, 1  ;;  %v2498_v5 = vrot.slane %v8336_v28, 1  ;;  %v8356_v56 = vld [vmem:[#allocation2 + $0x130] sm:$0x3] }
 0x125   : > { %v2500_v63 = vrot.slane %v8338_v1, 1  ;;  %v1574_v30 = vsel %vm965_vm3, %v1572_v32, %v1573_v6  ;;  %v1410_v7 = vadd.f32 %v1330_v4, %v1166_v60  ;;  %v1575_v39 = vrot.slane %v1458_v27, 2 }
 0x126   : > { %v1411_v29 = vadd.f32 %v1332_v31, %v1167_v55  ;;  %v1691_v34 = vmul.f32 %v7216_v51, %v8345_v44  ;;  %v8351_v45 = vsel %vm720_vm2, %v2497_v46, %v2498_v5  ;;  %v1768_v47 = vmul.f32 %v7218_v52, %v8328_v16  ;;  %v296_v46 = vld [vmem:[%s7176_s7 + $0xc0] sm:$0xff] }
 0x127   : > { %9811 = vst [vmem:[#allocation27_spill] sm:$0xff] %v8351_v45  ;;  %v8354_v40 = vsel %vm720_vm2, %v2498_v5, %v2500_v63  ;;  %v1769_v0 = vmul.f32 %v7218_v52, %v8345_v44  ;;  %5956 = vmatprep.mubr.msk.f32.mxu1 %vm368_vm0, %v8351_v45  ;;  %v1576_v3 = vsel %vm965_vm3, %v1573_v6, %v1575_v39  ;;  %v328_v39 = vld [vmem:[%s7181_s10 + $0xc0] sm:$0xff]  ;;  %v329_v45 = vld [vmem:[%s7181_s10 + $0xc8] sm:$0xff] }
 0x128   : > { %9812 = vst [vmem:[#allocation28_spill] sm:$0xff] %v8354_v40  ;;  %v1654_v49 = vadd.f32 %v1574_v30, %v1410_v7  ;;  %v1770_v27 = vmul.f32 %v7218_v52, %v8356_v56  ;;  %v2012_v32 = vmul.f32 %v7911_v33, %v8328_v16  ;;  %5957 = vmatmul.mubr.msk.f32.gmra.mrb[20].mxu1 %vm368_vm0, %v8354_v40  ;;  %v1884_v55 = vrot.slane %v1768_v47, 1  ;;  %v297_v7 = vld [vmem:[%s7176_s7 + $0xc8] sm:$0xff] }
 0x129   : > { %v1655_v60 = vadd.f32 %v1576_v3, %v1411_v29  ;;  %v1885_v4 = vrot.slane %v1769_v0, 1  ;;  %v2013_v31 = vmul.f32 %v7911_v33, %v8345_v44  ;;  %v2014_v63 = vmul.f32 %v7911_v33, %v8356_v56 }
 0x12a   : > { %v1722_v5 = vadd.f32 %v1690_v24, %v1654_v49  ;;  %v1887_v6 = vrot.slane %v1770_v27, 1  ;;  %v2128_v30 = vrot.slane %v2012_v32, 2  ;;  %v9813_v29 = vrot.slane %v8146_v53, 2 }
 0x12b   : > { %v1723_v14 = vadd.f32 %v1691_v34, %v1655_v60  ;;  %v1886_v61 = vsel %vm720_vm2, %v1884_v55, %v1885_v4  ;;  %v2129_v40 = vrot.slane %v2013_v31, 2  ;;  %v9814_v47 = vrot.slane %v8110_v41, 2 }
 0x12c   : > { %v1888_v24 = vsel %vm720_vm2, %v1885_v4, %v1887_v6  ;;  %v1966_v3 = vadd.f32 %v1886_v61, %v1722_v5  ;;  %v2131_v49 = vrot.slane %v2014_v63, 2  ;;  %v9816_v33 = vrot.slane %v8164_v59, 2 }
 0x12d   : > { %v8385_v0 = vsel %vm965_vm3, %v9814_v47, %v9813_v29  ;;  %v9817_v34 = vmov %v9813_v29  ;;  %v1967_v32 = vadd.f32 %v1888_v24, %v1723_v14  ;;  %v2130_v41 = vsel %vm965_vm3, %v2128_v30, %v2129_v40 }
 0x12e   : > { %9815 = vst [vmem:[#allocation29_spill] sm:$0xff] %v8385_v0  ;;  %6212 = vmatprep.mubr.msk.f32.mxu0 %vm368_vm0, %v8385_v0  ;;  %v8395_v27 = vsel %vm965_vm3, %v9817_v34, %v9816_v33  ;;  %v8400_v60 = vadd.f32 %v328_v39, %v296_v46  ;;  %v8402_v61 = vadd.f32 %v329_v45, %v297_v7 }
 0x12f   : > { %9818 = vst [vmem:[#allocation30_spill] sm:$0xff] %v8395_v27  ;;  %6213 = vmatmul.mubr.msk.f32.gmra.mrb[4].mxu0 %vm368_vm0, %v8395_v27  ;;  %v2132_v55 = vsel %vm965_vm3, %v2129_v40, %v2131_v49  ;;  %v2210_v4 = vadd.f32 %v2130_v41, %v1966_v3  ;;  %v542_v59 = vadd.f32 %v8281_v25, %v8274_v11 }
 0x130   : > { %v543_v53 = vadd.f32 %v8281_v25, %v8276_v2  ;;  %v2211_v31 = vadd.f32 %v2132_v55, %v1967_v32  ;;  %449 = vst.msk [vmem:[#allocation2 + $0x139] sm:$0xff] %vm368_vm0, %v8400_v60  ;;  %450 = vst.msk [vmem:[#allocation2 + $0x141] sm:$0xff] %vm368_vm0, %v8402_v61  ;;  %v578_v14 = vmul.f32 %v7197_v35, %v8209_v23 }
 0x131   : > { %v579_v45 = vmul.f32 %v7197_v35, %v8211_v17  ;;  %v657_v40 = vmul.f32 %v7199_v36, %v8209_v23  ;;  %2297 = vst.msk [vmem:[#allocation3 + $0x109] sm:$0xff] %vm368_vm0, %v2210_v4  ;;  %v658_v11 = vmul.f32 %v7199_v36, %v8211_v17  ;;  %v659_v2 = vmul.f32 %v7199_v36, %v8229_v22 }
 0x132   : > { %v902_v46 = vmul.f32 %v7201_v37, %v8209_v23  ;;  %v903_v5 = vmul.f32 %v7201_v37, %v8211_v17  ;;  %2298 = vst.msk [vmem:[#allocation3 + $0x111] sm:$0xff] %vm368_vm0, %v2211_v31  ;;  %v610_v6 = vadd.f32 %v578_v14, %v542_v59  ;;  %v904_v7 = vmul.f32 %v7201_v37, %v8229_v22 }
 0x133   : > { %v611_v63 = vadd.f32 %v579_v45, %v543_v53  ;;  %v776_v30 = vrot.slane %v657_v40, 1  ;;  %v777_v39 = vrot.slane %v658_v11, 1  ;;  %v779_v29 = vrot.slane %v659_v2, 1 }
 0x134   : > { %v1021_v47 = vrot.slane %v902_v46, 2  ;;  %v1022_v24 = vrot.slane %v903_v5, 2  ;;  %v1024_v3 = vrot.slane %v904_v7, 2  ;;  %v1136_v49 = vmul.f32 %v7203_v38, %v8328_v16 }
 0x135   : > { %v1137_v23 = vmul.f32 %v7203_v38, %v8345_v44  ;;  %v1215_v17 = vmul.f32 %v7207_v42, %v8328_v16  ;;  %v778_v33 = vsel %vm720_vm2, %v776_v30, %v777_v39  ;;  %v780_v34 = vsel %vm720_vm2, %v777_v39, %v779_v29 }
 0x136   : > { %v1023_v22 = vsel %vm965_vm3, %v1021_v47, %v1022_v24  ;;  %v1216_v32 = vmul.f32 %v7207_v42, %v8345_v44  ;;  %v855_v41 = vadd.f32 %v778_v33, %v610_v6  ;;  %v856_v55 = vadd.f32 %v780_v34, %v611_v63 }
 0x137   : > { %v1025_v4 = vsel %vm965_vm3, %v1022_v24, %v1024_v3  ;;  %v1217_v59 = vmul.f32 %v7207_v42, %v8356_v56  ;;  %v1333_v53 = vrot.slane %v1215_v17, 1  ;;  %v1459_v14 = vmul.f32 %v7209_v43, %v8328_v16  ;;  %v8461_v3 = vld [vmem:[#allocation2 + $0x138] sm:$0xff] }
 0x138   : > { %v1334_v31 = vrot.slane %v1216_v32, 1  ;;  %v1460_v45 = vmul.f32 %v7209_v43, %v8345_v44  ;;  %v8449_v40 = vld [vmem:[#allocation3 + $0x108] sm:$0xff]  ;;  %v1100_v11 = vadd.f32 %v1023_v22, %v855_v41  ;;  %v1101_v2 = vadd.f32 %v1025_v4, %v856_v55 }
 0x139   : > { %v1336_v46 = vrot.slane %v1217_v59, 1  ;;  %v1461_v5 = vmul.f32 %v7209_v43, %v8356_v56  ;;  %v8453_v6 = vld [vmem:[#allocation3 + $0x110] sm:$0xff]  ;;  %v2502_v63 = vrot.slane %v8449_v40, 1  ;;  %v8456_v30 = vld [vmem:[#allocation3 + $0x118] sm:$0x3]  ;;  %v1577_v39 = vrot.slane %v1459_v14, 2 }
 0x13a   : > { %v1335_v7 = vsel %vm720_vm2, %v1333_v53, %v1334_v31  ;;  %v1578_v29 = vrot.slane %v1460_v45, 2  ;;  %v2503_v47 = vrot.slane %v8453_v6, 1  ;;  %v2505_v24 = vrot.slane %v8456_v30, 1  ;;  %v8473_v59 = vld [vmem:[#allocation2 + $0x140] sm:$0xff] }
 0x13b   : > { %v1168_v17 = vadd.f32 %v1136_v49, %v1100_v11  ;;  %v1169_v33 = vadd.f32 %v1137_v23, %v1101_v2  ;;  %v1337_v34 = vsel %vm720_vm2, %v1334_v31, %v1336_v46  ;;  %v1580_v32 = vrot.slane %v1461_v5, 2  ;;  %v8477_v49 = vld [vmem:[#allocation2 + $0x148] sm:$0x3] }
 0x13c   : > { %v1579_v22 = vsel %vm965_vm3, %v1577_v39, %v1578_v29  ;;  %v1692_v41 = vmul.f32 %v7216_v51, %v8461_v3  ;;  %v8468_v55 = vsel %vm720_vm2, %v2502_v63, %v2503_v47  ;;  %v8471_v4 = vsel %vm720_vm2, %v2503_v47, %v2505_v24  ;;  %v8493_v63 = vld [vmem:[%s9684_s2 + $0x8] ss:$0 sm:$0xff] }
 0x13d   : > { %9819 = vst [vmem:[#allocation31_spill] sm:$0xff] %v8468_v55  ;;  %9820 = vst [vmem:[#allocation32_spill] sm:$0xff] %v8471_v4  ;;  %v1412_v53 = vadd.f32 %v1335_v7, %v1168_v17  ;;  %v1413_v14 = vadd.f32 %v1337_v34, %v1169_v33  ;;  %5959 = vmatprep.mubr.msk.f32.mxu1 %vm368_vm0, %v8468_v55  ;;  %v1581_v23 = vsel %vm965_vm3, %v1578_v29, %v1580_v32  ;;  %v298_v32 = vld [vmem:[%s7176_s7 + $0xd0] sm:$0xff] }
 0x13e   : > { %v1693_v31 = vmul.f32 %v7216_v51, %v8473_v59  ;;  %v1771_v45 = vmul.f32 %v7218_v52, %v8461_v3  ;;  %v1772_v11 = vmul.f32 %v7218_v52, %v8473_v59  ;;  %5960 = vmatmul.mubr.msk.f32.gmra.mrb[22].mxu1 %vm368_vm0, %v8471_v4  ;;  %v1773_v5 = vmul.f32 %v7218_v52, %v8477_v49  ;;  %v8504_v55 = vld [vmem:[#allocation3 + $0x60] sm:$0xff] }
 0x13f   : > { %v1656_v2 = vadd.f32 %v1579_v22, %v1412_v53  ;;  %v1657_v46 = vadd.f32 %v1581_v23, %v1413_v14  ;;  %v2015_v7 = vmul.f32 %v8493_v63, %v8461_v3  ;;  %v2016_v47 = vmul.f32 %v8493_v63, %v8473_v59  ;;  %v330_v53 = vld [vmem:[%s7181_s10 + $0xd0] sm:$0xff] }
 0x140   : > { %v1889_v39 = vrot.slane %v1771_v45, 1  ;;  %v1890_v29 = vrot.slane %v1772_v11, 1  ;;  %v2017_v24 = vmul.f32 %v8493_v63, %v8477_v49  ;;  %v1892_v34 = vrot.slane %v1773_v5, 1  ;;  %v299_v11 = vld [vmem:[%s7176_s7 + $0xd8] sm:$0xff] }
 0x141   : > { %v1724_v17 = vadd.f32 %v1692_v41, %v1656_v2  ;;  %v1725_v33 = vadd.f32 %v1693_v31, %v1657_v46  ;;  %v2133_v22 = vrot.slane %v2015_v7, 2  ;;  %v2134_v23 = vrot.slane %v2016_v47, 2  ;;  %v6774_v31 = vld [vmem:[#allocation3 + $0x70] sm:$0x3] }
 0x142   : > { %v1891_v14 = vsel %vm720_vm2, %v1889_v39, %v1890_v29  ;;  %v2136_v4 = vrot.slane %v2017_v24, 2  ;;  %v3125_v45 = vrot.slane %v8504_v55, 2  ;;  %v1893_v20 = vsel %vm720_vm2, %v1890_v29, %v1892_v34 }
 0x143   : > { %v1968_v13 = vadd.f32 %v1891_v14, %v1724_v17  ;;  %v3126_v41 = vrot.slane %v8510_v54, 2  ;;  %v3128_v2 = vrot.slane %v6774_v31, 2  ;;  %v1969_v46 = vadd.f32 %v1893_v20, %v1725_v33 }
 0x144   : > { %v2135_v5 = vsel %vm965_vm3, %v2133_v22, %v2134_v23  ;;  %v2137_v7 = vsel %vm965_vm3, %v2134_v23, %v2136_v4  ;;  %v8515_v39 = vadd.f32 %v330_v53, %v298_v32  ;;  %v8523_v17 = vadd.f32 %v331_v9, %v299_v11 }
 0x145   : > { %v2212_v47 = vadd.f32 %v2135_v5, %v1968_v13  ;;  %v8518_v24 = vsel %vm965_vm3, %v3125_v45, %v3126_v41  ;;  %v8521_v29 = vsel %vm965_vm3, %v3126_v41, %v3128_v2  ;;  %v2213_v34 = vadd.f32 %v2137_v7, %v1969_v46 }
 0x146   : > { %9821 = vst [vmem:[#allocation33_spill] sm:$0xff] %v8518_v24  ;;  %9822 = vst [vmem:[#allocation34_spill] sm:$0xff] %v8521_v29  ;;  %6215 = vmatprep.mubr.msk.f32.mxu0 %vm368_vm0, %v8518_v24  ;;  %v544_v20 = vadd.f32 %v8281_v25, %v8400_v60  ;;  %v545_v13 = vadd.f32 %v8281_v25, %v8402_v61  ;;  %v580_v4 = vmul.f32 %v7197_v35, %v8328_v16  ;;  %v335_v24 = vld [vmem:[%s7181_s10 + $0xf8] sm:$0xff] }
 0x147   : > { %451 = vst.msk [vmem:[#allocation2 + $0x151] sm:$0xff] %vm368_vm0, %v8515_v39  ;;  %2299 = vst.msk [vmem:[#allocation3 + $0x121] sm:$0xff] %vm368_vm0, %v2212_v47  ;;  %6216 = vmatmul.mubr.msk.f32.gmra.mrb[6].mxu0 %vm368_vm0, %v8521_v29  ;;  %v581_v9 = vmul.f32 %v7197_v35, %v8345_v44  ;;  %v660_v60 = vmul.f32 %v7199_v36, %v8328_v16  ;;  %v661_v61 = vmul.f32 %v7199_v36, %v8345_v44 }
 0x148   : > { %452 = vst.msk [vmem:[#allocation2 + $0x159] sm:$0xff] %vm368_vm0, %v8523_v17  ;;  %v662_v33 = vmul.f32 %v7199_v36, %v8356_v56  ;;  %2300 = vst.msk [vmem:[#allocation3 + $0x129] sm:$0xff] %vm368_vm0, %v2213_v34  ;;  %v612_v22 = vadd.f32 %v580_v4, %v544_v20  ;;  %v905_v32 = vmul.f32 %v7201_v37, %v8328_v16 }
 0x149   : > { %v906_v53 = vmul.f32 %v7201_v37, %v8345_v44  ;;  %v907_v14 = vmul.f32 %v7201_v37, %v8356_v56  ;;  %v613_v23 = vadd.f32 %v581_v9, %v545_v13  ;;  %v781_v45 = vrot.slane %v660_v60, 1 }
 0x14a   : > { %v782_v11 = vrot.slane %v661_v61, 1  ;;  %v784_v41 = vrot.slane %v662_v33, 1  ;;  %v1026_v31 = vrot.slane %v905_v32, 2  ;;  %v1138_v5 = vmul.f32 %v7203_v38, %v8461_v3 }
 0x14b   : > { %v1027_v2 = vrot.slane %v906_v53, 2  ;;  %v1029_v46 = vrot.slane %v907_v14, 2  ;;  %v1139_v44 = vmul.f32 %v7203_v38, %v8473_v59  ;;  %v1218_v56 = vmul.f32 %v7207_v42, %v8461_v3 }
 0x14c   : > { %v783_v7 = vsel %vm720_vm2, %v781_v45, %v782_v11  ;;  %v785_v16 = vsel %vm720_vm2, %v782_v11, %v784_v41  ;;  %v1219_v4 = vmul.f32 %v7207_v42, %v8473_v59  ;;  %v1220_v9 = vmul.f32 %v7207_v42, %v8477_v49 }
 0x14d   : > { %v857_v47 = vadd.f32 %v783_v7, %v612_v22  ;;  %v858_v34 = vadd.f32 %v785_v16, %v613_v23  ;;  %v1028_v20 = vsel %vm965_vm3, %v1026_v31, %v1027_v2  ;;  %v1030_v13 = vsel %vm965_vm3, %v1027_v2, %v1029_v46 }
 0x14e   : > { %v1338_v60 = vrot.slane %v1218_v56, 1  ;;  %v1462_v61 = vmul.f32 %v7209_v43, %v8461_v3  ;;  %v8571_v33 = vld [vmem:[#allocation3 + $0x120] sm:$0xff]  ;;  %v1463_v14 = vmul.f32 %v7209_v43, %v8473_v59  ;;  %v1464_v23 = vmul.f32 %v7209_v43, %v8477_v49 }
 0x14f   : > { %v8573_v32 = vld [vmem:[#allocation2 + $0x150] sm:$0xff]  ;;  %v1102_v22 = vadd.f32 %v1028_v20, %v857_v47  ;;  %v1103_v53 = vadd.f32 %v1030_v13, %v858_v34  ;;  %v8579_v45 = vld [vmem:[#allocation3 + $0x128] sm:$0xff]  ;;  %v2507_v11 = vrot.slane %v8571_v33, 1  ;;  %v8582_v41 = vld [vmem:[#allocation3 + $0x130] sm:$0x3]  ;;  %v1339_v31 = vrot.slane %v1219_v4, 1 }
 0x150   : > { %v1341_v2 = vrot.slane %v1220_v9, 1  ;;  %v1694_v46 = vmul.f32 %v7216_v51, %v8573_v32  ;;  %v2508_v7 = vrot.slane %v8579_v45, 1  ;;  %v2510_v16 = vrot.slane %v8582_v41, 1  ;;  %v8596_v9 = vld [vmem:[#allocation2 + $0x158] sm:$0xff] }
 0x151   : > { %v1170_v56 = vadd.f32 %v1138_v5, %v1102_v22  ;;  %v1171_v47 = vadd.f32 %v1139_v44, %v1103_v53  ;;  %v1340_v34 = vsel %vm720_vm2, %v1338_v60, %v1339_v31  ;;  %v1582_v13 = vrot.slane %v1462_v61, 2  ;;  %v8600_v5 = vld [vmem:[#allocation2 + $0x160] sm:$0x3] }
 0x152   : > { %v1342_v20 = vsel %vm720_vm2, %v1339_v31, %v1341_v2  ;;  %v1583_v18 = vrot.slane %v1463_v14, 2  ;;  %v8591_v58 = vsel %vm720_vm2, %v2507_v11, %v2508_v7  ;;  %v8594_v4 = vsel %vm720_vm2, %v2508_v7, %v2510_v16 }
 0x153   : > { %9823 = vst [vmem:[#allocation35_spill] sm:$0xff] %v8591_v58  ;;  %9824 = vst [vmem:[#allocation36_spill] sm:$0xff] %v8594_v4  ;;  %v1414_v57 = vadd.f32 %v1340_v34, %v1170_v56  ;;  %v1415_v8 = vadd.f32 %v1342_v20, %v1171_v47  ;;  %5962 = vmatprep.mubr.msk.f32.mxu1 %vm368_vm0, %v8591_v58  ;;  %v1585_v60 = vrot.slane %v1464_v23, 2  ;;  %v300_v20 = vld [vmem:[%s7176_s7 + $0xe0] sm:$0xff] }
 0x154   : > { %v1584_v44 = vsel %vm965_vm3, %v1582_v13, %v1583_v18  ;;  %v1695_v61 = vmul.f32 %v7216_v51, %v8596_v9  ;;  %v1774_v22 = vmul.f32 %v7218_v52, %v8573_v32  ;;  %5963 = vmatmul.mubr.msk.f32.gmra.mrb[24].mxu1 %vm368_vm0, %v8594_v4  ;;  %v1775_v14 = vmul.f32 %v7218_v52, %v8596_v9  ;;  %v301_v13 = vld [vmem:[%s7176_s7 + $0xe8] sm:$0xff] }
 0x155   : > { %v1658_v53 = vadd.f32 %v1584_v44, %v1414_v57  ;;  %v1776_v11 = vmul.f32 %v7218_v52, %v8600_v5  ;;  %v2018_v23 = vmul.f32 %v8493_v63, %v8573_v32  ;;  %v1586_v31 = vsel %vm965_vm3, %v1583_v18, %v1585_v60  ;;  %v332_v60 = vld [vmem:[%s7181_s10 + $0xe0] sm:$0xff] }
 0x156   : > { %v1894_v2 = vrot.slane %v1774_v22, 1  ;;  %v2019_v7 = vmul.f32 %v8493_v63, %v8596_v9  ;;  %v2020_v57 = vmul.f32 %v8493_v63, %v8600_v5  ;;  %v1659_v16 = vadd.f32 %v1586_v31, %v1415_v8  ;;  %v333_v22 = vld [vmem:[%s7181_s10 + $0xe8] sm:$0xff]  ;;  %v8629_v8 = vld [vmem:[#allocation3 + $0x80] sm:$0xff] }
 0x157   : > { %v1726_v56 = vadd.f32 %v1694_v46, %v1658_v53  ;;  %v1895_v47 = vrot.slane %v1775_v14, 1  ;;  %v1897_v34 = vrot.slane %v1776_v11, 1  ;;  %v2138_v44 = vrot.slane %v2018_v23, 2  ;;  %v6777_v23 = vld [vmem:[#allocation3 + $0x88] sm:$0x3] }
 0x158   : > { %v2139_v4 = vrot.slane %v2019_v7, 2  ;;  %v2141_v58 = vrot.slane %v2020_v57, 2  ;;  %v3130_v18 = vrot.slane %v8622_v12, 2  ;;  %v1727_v62 = vadd.f32 %v1695_v61, %v1659_v16 }
 0x159   : > { %v1896_v50 = vsel %vm720_vm2, %v1894_v2, %v1895_v47  ;;  %v1898_v29 = vsel %vm720_vm2, %v1895_v47, %v1897_v34  ;;  %v3131_v46 = vrot.slane %v8629_v8, 2  ;;  %v3133_v31 = vrot.slane %v6777_v23, 2 }
 0x15a   : > { %v1970_v53 = vadd.f32 %v1896_v50, %v1726_v56  ;;  %v2140_v14 = vsel %vm965_vm3, %v2138_v44, %v2139_v4  ;;  %v2142_v11 = vsel %vm965_vm3, %v2139_v4, %v2141_v58  ;;  %v1971_v7 = vadd.f32 %v1898_v29, %v1727_v62 }
 0x15b   : > { %v8635_v57 = vsel %vm965_vm3, %v3130_v18, %v3131_v46  ;;  %v8637_v61 = vadd.f32 %v332_v60, %v300_v20  ;;  %v8639_v2 = vadd.f32 %v333_v22, %v301_v13  ;;  %v8644_v50 = vsel %vm965_vm3, %v3131_v46, %v3133_v31 }
 0x15c   : > { %9825 = vst [vmem:[#allocation37_spill] sm:$0xff] %v8635_v57  ;;  %v2214_v16 = vadd.f32 %v2140_v14, %v1970_v53  ;;  %6218 = vmatprep.mubr.msk.f32.mxu0 %vm368_vm0, %v8635_v57  ;;  %9826 = vst [vmem:[#allocation38_spill] sm:$0xff] %v8644_v50  ;;  %v546_v58 = vadd.f32 %v8281_v25, %v8515_v39  ;;  %v547_v62 = vadd.f32 %v8281_v25, %v8523_v17 }
 0x15d   : > { %v2215_v29 = vadd.f32 %v2142_v11, %v1971_v7  ;;  %6219 = vmatmul.mubr.msk.f32.gmra.mrb[8].mxu0 %vm368_vm0, %v8644_v50  ;;  %453 = vst.msk [vmem:[#allocation2 + $0x169] sm:$0xff] %vm368_vm0, %v8637_v61  ;;  %454 = vst.msk [vmem:[#allocation2 + $0x171] sm:$0xff] %vm368_vm0, %v8639_v2  ;;  %v582_v4 = vmul.f32 %v7197_v35, %v8461_v3  ;;  %v583_v56 = vmul.f32 %v7197_v35, %v8473_v59 }
 0x15e   : > { %v663_v39 = vmul.f32 %v7199_v36, %v8461_v3  ;;  %2301 = vst.msk [vmem:[#allocation3 + $0x139] sm:$0xff] %vm368_vm0, %v2214_v16  ;;  %v664_v17 = vmul.f32 %v7199_v36, %v8473_v59  ;;  %v665_v47 = vmul.f32 %v7199_v36, %v8477_v49  ;;  %v908_v34 = vmul.f32 %v7201_v37, %v8461_v3 }
 0x15f   : > { %v909_v20 = vmul.f32 %v7201_v37, %v8473_v59  ;;  %2302 = vst.msk [vmem:[#allocation3 + $0x141] sm:$0xff] %vm368_vm0, %v2215_v29  ;;  %v614_v13 = vadd.f32 %v582_v4, %v546_v58  ;;  %v615_v44 = vadd.f32 %v583_v56, %v547_v62  ;;  %v910_v60 = vmul.f32 %v7201_v37, %v8477_v49 }
 0x160   : > { %v786_v18 = vrot.slane %v663_v39, 1  ;;  %v787_v22 = vrot.slane %v664_v17, 1  ;;  %v789_v46 = vrot.slane %v665_v47, 1  ;;  %v1031_v53 = vrot.slane %v908_v34, 2 }
 0x161   : > { %v1032_v14 = vrot.slane %v909_v20, 2  ;;  %v1034_v11 = vrot.slane %v910_v60, 2  ;;  %v1140_v23 = vmul.f32 %v7203_v38, %v8573_v32  ;;  %v1141_v3 = vmul.f32 %v7203_v38, %v8596_v9 }
 0x162   : > { %v1221_v59 = vmul.f32 %v7207_v42, %v8573_v32  ;;  %v788_v31 = vsel %vm720_vm2, %v786_v18, %v787_v22  ;;  %v790_v7 = vsel %vm720_vm2, %v787_v22, %v789_v46  ;;  %v1222_v16 = vmul.f32 %v7207_v42, %v8596_v9 }
 0x163   : > { %v1033_v49 = vsel %vm965_vm3, %v1031_v53, %v1032_v14  ;;  %v859_v58 = vadd.f32 %v788_v31, %v614_v13  ;;  %v860_v62 = vadd.f32 %v790_v7, %v615_v44  ;;  %v1035_v29 = vsel %vm965_vm3, %v1032_v14, %v1034_v11 }
 0x164   : > { %v1223_v4 = vmul.f32 %v7207_v42, %v8600_v5  ;;  %v1343_v56 = vrot.slane %v1221_v59, 1  ;;  %v1344_v39 = vrot.slane %v1222_v16, 1  ;;  %v1465_v17 = vmul.f32 %v7209_v43, %v8573_v32  ;;  %v8704_v7 = vld [vmem:[#allocation2 + $0x168] sm:$0xff] }
 0x165   : > { %v1466_v47 = vmul.f32 %v7209_v43, %v8596_v9  ;;  %v8692_v34 = vld [vmem:[#allocation3 + $0x138] sm:$0xff]  ;;  %v1104_v20 = vadd.f32 %v1033_v49, %v859_v58  ;;  %v1105_v18 = vadd.f32 %v1035_v29, %v860_v62  ;;  %v1467_v13 = vmul.f32 %v7209_v43, %v8600_v5 }
 0x166   : > { %v1346_v60 = vrot.slane %v1223_v4, 1  ;;  %v8696_v44 = vld [vmem:[#allocation3 + $0x140] sm:$0xff]  ;;  %v2512_v22 = vrot.slane %v8692_v34, 1  ;;  %v8699_v46 = vld [vmem:[#allocation3 + $0x148] sm:$0x3]  ;;  %v1345_v53 = vsel %vm720_vm2, %v1343_v56, %v1344_v39  ;;  %v1587_v14 = vrot.slane %v1465_v17, 2 }
 0x167   : > { %v1588_v11 = vrot.slane %v1466_v47, 2  ;;  %v2513_v59 = vrot.slane %v8696_v44, 1  ;;  %v2515_v31 = vrot.slane %v8699_v46, 1  ;;  %v1172_v49 = vadd.f32 %v1140_v23, %v1104_v20  ;;  %v8716_v47 = vld [vmem:[#allocation2 + $0x170] sm:$0xff]  ;;  %v8720_v23 = vld [vmem:[#allocation2 + $0x178] sm:$0x3] }
 0x168   : > { %v1173_v16 = vadd.f32 %v1141_v3, %v1105_v18  ;;  %v1347_v58 = vsel %vm720_vm2, %v1344_v39, %v1346_v60  ;;  %v1590_v29 = vrot.slane %v1467_v13, 2  ;;  %v1696_v4 = vmul.f32 %v7216_v51, %v8704_v7 }
 0x169   : > { %v1589_v62 = vsel %vm965_vm3, %v1587_v14, %v1588_v11  ;;  %v8711_v56 = vsel %vm720_vm2, %v2512_v22, %v2513_v59  ;;  %v8714_v17 = vsel %vm720_vm2, %v2513_v59, %v2515_v31  ;;  %v1416_v50 = vadd.f32 %v1345_v53, %v1172_v49 }
 0x16a   : > { %9827 = vst [vmem:[#allocation39_spill] sm:$0xff] %v8711_v56  ;;  %9828 = vst [vmem:[#allocation40_spill] sm:$0xff] %v8714_v17  ;;  %v1417_v57 = vadd.f32 %v1347_v58, %v1173_v16  ;;  %5965 = vmatprep.mubr.msk.f32.mxu1 %vm368_vm0, %v8711_v56  ;;  %v1591_v3 = vsel %vm965_vm3, %v1588_v11, %v1590_v29  ;;  %v1697_v39 = vmul.f32 %v7216_v51, %v8716_v47  ;;  %v302_v58 = vld [vmem:[%s7176_s7 + $0xf0] sm:$0xff]  ;;  %v8742_v56 = vld [vmem:[#allocation3 + $0x90] sm:$0xff] }
 0x16b   : > { %v1777_v20 = vmul.f32 %v7218_v52, %v8704_v7  ;;  %v1778_v18 = vmul.f32 %v7218_v52, %v8716_v47  ;;  %5966 = vmatmul.mubr.msk.f32.gmra.mrb[26].mxu1 %vm368_vm0, %v8714_v17  ;;  %v1660_v60 = vadd.f32 %v1589_v62, %v1416_v50  ;;  %v1779_v22 = vmul.f32 %v7218_v52, %v8720_v23  ;;  %v334_v62 = vld [vmem:[%s7181_s10 + $0xf0] sm:$0xff] }
 0x16c   : > { %v1661_v13 = vadd.f32 %v1591_v3, %v1417_v57  ;;  %v2021_v53 = vmul.f32 %v8493_v63, %v8704_v7  ;;  %v2022_v59 = vmul.f32 %v8493_v63, %v8716_v47  ;;  %v2023_v31 = vmul.f32 %v8493_v63, %v8720_v23 }
 0x16d   : > { %v1899_v14 = vrot.slane %v1777_v20, 1  ;;  %v1900_v11 = vrot.slane %v1778_v18, 1  ;;  %v1728_v49 = vadd.f32 %v1696_v4, %v1660_v60  ;;  %v1902_v50 = vrot.slane %v1779_v22, 1  ;;  %v303_v18 = vld [vmem:[%s7176_s7 + $0xf8] sm:$0xff] }
 0x16e   : > { %v1729_v16 = vadd.f32 %v1697_v39, %v1661_v13  ;;  %v2143_v57 = vrot.slane %v2021_v53, 2  ;;  %v2144_v3 = vrot.slane %v2022_v59, 2  ;;  %v2146_v17 = vrot.slane %v2023_v31, 2  ;;  %v6780_v39 = vld [vmem:[#allocation3 + $0xa0] sm:$0x3] }
 0x16f   : > { %v1901_v29 = vsel %vm720_vm2, %v1899_v14, %v1900_v11  ;;  %v3135_v20 = vrot.slane %v8742_v56, 2  ;;  %v1903_v27 = vsel %vm720_vm2, %v1900_v11, %v1902_v50  ;;  %v3136_v4 = vrot.slane %v8748_v21, 2 }
 0x170   : > { %v1972_v0 = vadd.f32 %v1901_v29, %v1728_v49  ;;  %v3138_v60 = vrot.slane %v6780_v39, 2  ;;  %v1973_v13 = vadd.f32 %v1903_v27, %v1729_v16  ;;  %v2145_v22 = vsel %vm965_vm3, %v2143_v57, %v2144_v3 }
 0x171   : > { %v2147_v53 = vsel %vm965_vm3, %v2144_v3, %v2146_v17  ;;  %v8753_v14 = vadd.f32 %v334_v62, %v302_v58  ;;  %v8756_v31 = vsel %vm965_vm3, %v3135_v20, %v3136_v4  ;;  %v8761_v49 = vadd.f32 %v335_v24, %v303_v18 }
 0x172   : > { %v2216_v59 = vadd.f32 %v2145_v22, %v1972_v0  ;;  %9829 = vst [vmem:[#allocation41_spill] sm:$0xff] %v8756_v31  ;;  %v8759_v11 = vsel %vm965_vm3, %v3136_v4, %v3138_v60  ;;  %v2217_v50 = vadd.f32 %v2147_v53, %v1973_v13  ;;  %6221 = vmatprep.mubr.msk.f32.mxu0 %vm368_vm0, %v8756_v31 }
 0x173   : > { %9830 = vst [vmem:[#allocation42_spill] sm:$0xff] %v8759_v11  ;;  %455 = vst.msk [vmem:[#allocation2 + $0x181] sm:$0xff] %vm368_vm0, %v8753_v14  ;;  %v548_v27 = vadd.f32 %v8281_v25, %v8637_v61  ;;  %v549_v0 = vadd.f32 %v8281_v25, %v8639_v2  ;;  %v584_v17 = vmul.f32 %v7197_v35, %v8573_v32  ;;  %6222 = vmatmul.mubr.msk.f32.gmra.mrb[10].mxu0 %vm368_vm0, %v8759_v11 }
 0x174   : > { %2303 = vst.msk [vmem:[#allocation3 + $0x151] sm:$0xff] %vm368_vm0, %v2216_v59  ;;  %456 = vst.msk [vmem:[#allocation2 + $0x189] sm:$0xff] %vm368_vm0, %v8761_v49  ;;  %v585_v24 = vmul.f32 %v7197_v35, %v8596_v9  ;;  %v666_v61 = vmul.f32 %v7199_v36, %v8573_v32  ;;  %v667_v25 = vmul.f32 %v7199_v36, %v8596_v9 }
 0x175   : > { %v668_v2 = vmul.f32 %v7199_v36, %v8600_v5  ;;  %2304 = vst.msk [vmem:[#allocation3 + $0x159] sm:$0xff] %vm368_vm0, %v2217_v50  ;;  %v616_v16 = vadd.f32 %v584_v17, %v548_v27  ;;  %v911_v57 = vmul.f32 %v7201_v37, %v8573_v32  ;;  %v912_v58 = vmul.f32 %v7201_v37, %v8596_v9 }
 0x176   : > { %v913_v62 = vmul.f32 %v7201_v37, %v8600_v5  ;;  %v617_v29 = vadd.f32 %v585_v24, %v549_v0  ;;  %v791_v3 = vrot.slane %v666_v61, 1  ;;  %v792_v20 = vrot.slane %v667_v25, 1 }
 0x177   : > { %v794_v18 = vrot.slane %v668_v2, 1  ;;  %v1036_v4 = vrot.slane %v911_v57, 2  ;;  %v1037_v39 = vrot.slane %v912_v58, 2  ;;  %v1142_v13 = vmul.f32 %v7203_v38, %v8704_v7 }
 0x178   : > { %v1039_v60 = vrot.slane %v913_v62, 2  ;;  %v793_v22 = vsel %vm720_vm2, %v791_v3, %v792_v20  ;;  %v1143_v9 = vmul.f32 %v7203_v38, %v8716_v47  ;;  %v1224_v5 = vmul.f32 %v7207_v42, %v8704_v7 }
 0x179   : > { %v795_v32 = vsel %vm720_vm2, %v792_v20, %v794_v18  ;;  %v861_v53 = vadd.f32 %v793_v22, %v616_v16  ;;  %v1038_v50 = vsel %vm965_vm3, %v1036_v4, %v1037_v39  ;;  %v1225_v17 = vmul.f32 %v7207_v42, %v8716_v47 }
 0x17a   : > { %v862_v59 = vadd.f32 %v795_v32, %v617_v29  ;;  %v1040_v27 = vsel %vm965_vm3, %v1037_v39, %v1039_v60  ;;  %v8803_v0 = vld [vmem:[#allocation2 + $0x180] sm:$0xff]  ;;  %v1226_v24 = vmul.f32 %v7207_v42, %v8720_v23  ;;  %v1348_v61 = vrot.slane %v1224_v5, 1 }
 0x17b   : > { %v1468_v25 = vmul.f32 %v7209_v43, %v8704_v7  ;;  %v8811_v2 = vld [vmem:[#allocation3 + $0x150] sm:$0xff]  ;;  %v1106_v16 = vadd.f32 %v1038_v50, %v861_v53  ;;  %v1469_v58 = vmul.f32 %v7209_v43, %v8716_v47  ;;  %v1470_v62 = vmul.f32 %v7209_v43, %v8720_v23  ;;  %v8826_v32 = vld [vmem:[#allocation2 + $0x188] sm:$0xff] }
 0x17c   : > { %v1107_v57 = vadd.f32 %v1040_v27, %v862_v59  ;;  %v8817_v29 = vld [vmem:[#allocation3 + $0x158] sm:$0xff]  ;;  %v2517_v3 = vrot.slane %v8811_v2, 1  ;;  %v8820_v20 = vld [vmem:[#allocation3 + $0x160] sm:$0x3]  ;;  %v1349_v18 = vrot.slane %v1225_v17, 1  ;;  %v1351_v4 = vrot.slane %v1226_v24, 1 }
 0x17d   : > { %v1698_v39 = vmul.f32 %v7216_v51, %v8803_v0  ;;  %v2518_v60 = vrot.slane %v8817_v29, 1  ;;  %v2520_v22 = vrot.slane %v8820_v20, 1  ;;  %v1174_v5 = vadd.f32 %v1142_v13, %v1106_v16  ;;  %v8828_v59 = vld [vmem:[#allocation2 + $0x190] sm:$0x3] }
 0x17e   : > { %v1175_v53 = vadd.f32 %v1143_v9, %v1107_v57  ;;  %v1350_v50 = vsel %vm720_vm2, %v1348_v61, %v1349_v18  ;;  %v1352_v27 = vsel %vm720_vm2, %v1349_v18, %v1351_v4  ;;  %v1592_v11 = vrot.slane %v1468_v25, 2 }
 0x17f   : > { %v1593_v17 = vrot.slane %v1469_v58, 2  ;;  %v8833_v24 = vsel %vm720_vm2, %v2517_v3, %v2518_v60  ;;  %v8836_v31 = vsel %vm720_vm2, %v2518_v60, %v2520_v22  ;;  %v1418_v10 = vadd.f32 %v1350_v50, %v1174_v5 }
 0x180   : > { %9831 = vst [vmem:[#allocation43_spill] sm:$0xff] %v8833_v24  ;;  %9832 = vst [vmem:[#allocation44_spill] sm:$0xff] %v8836_v31  ;;  %v1419_v19 = vadd.f32 %v1352_v27, %v1175_v53  ;;  %5968 = vmatprep.mubr.msk.f32.mxu1 %vm368_vm0, %v8833_v24  ;;  %v1595_v9 = vrot.slane %v1470_v62, 2  ;;  %v1699_v61 = vmul.f32 %v7216_v51, %v8826_v32 }
 0x181   : > { %v1594_v13 = vsel %vm965_vm3, %v1592_v11, %v1593_v17  ;;  %v1780_v25 = vmul.f32 %v7218_v52, %v8803_v0  ;;  %5969 = vmatmul.mubr.msk.f32.gmra.mrb[28].mxu1 %vm368_vm0, %v8836_v31  ;;  %v1781_v57 = vmul.f32 %v7218_v52, %v8826_v32  ;;  %v1782_v58 = vmul.f32 %v7218_v52, %v8828_v59 }
 0x182   : > { %v1662_v16 = vadd.f32 %v1594_v13, %v1418_v10  ;;  %v2024_v11 = vmul.f32 %v8493_v63, %v8803_v0  ;;  %v1596_v62 = vsel %vm965_vm3, %v1593_v17, %v1595_v9  ;;  %v2025_v18 = vmul.f32 %v8493_v63, %v8826_v32  ;;  %v8858_v13 = vld [vmem:[#allocation3 + $0xa8] sm:$0xff] }
 0x183   : > { %v1904_v3 = vrot.slane %v1780_v25, 1  ;;  %v2026_v4 = vmul.f32 %v8493_v63, %v8828_v59  ;;  %v1663_v60 = vadd.f32 %v1596_v62, %v1419_v19  ;;  %v1905_v22 = vrot.slane %v1781_v57, 1  ;;  %v8863_v25 = vld [vmem:[#allocation3 + $0xb0] sm:$0xff] }
 0x184   : > { %v1730_v10 = vadd.f32 %v1698_v39, %v1662_v16  ;;  %v1907_v5 = vrot.slane %v1782_v58, 1  ;;  %v2148_v53 = vrot.slane %v2024_v11, 2  ;;  %v2149_v50 = vrot.slane %v2025_v18, 2  ;;  %v2371_v19 = vld [vmem:[%s9686_s4 + $0x40] sm:$0xff]  ;;  %v2372_v39 = vld [vmem:[%s9686_s4 + $0x48] sm:$0xff]  ;;  %v8877_v18 = vld [vmem:[#allocation3 + $0xc0] sm:$0xff] }
 0x185   : > { %v2151_v27 = vrot.slane %v2026_v4, 2  ;;  %v3140_v31 = vrot.slane %v8858_v13, 2  ;;  %v1731_v24 = vadd.f32 %v1699_v61, %v1663_v60  ;;  %v1906_v17 = vsel %vm720_vm2, %v1904_v3, %v1905_v22  ;;  %v6783_v58 = vld [vmem:[#allocation3 + $0xb8] sm:$0x3]  ;;  %v8880_v60 = vld [vmem:[#allocation3 + $0xc8] sm:$0xff] }
 0x186   : > { %v1908_v9 = vsel %vm720_vm2, %v1905_v22, %v1907_v5  ;;  %v3141_v26 = vrot.slane %v8863_v25, 2  ;;  %v1974_v16 = vadd.f32 %v1906_v17, %v1730_v10  ;;  %v2150_v57 = vsel %vm965_vm3, %v2148_v53, %v2149_v50  ;;  %v2389_v10 = vld [vmem:[%s9686_s4 + $0xd0] sm:$0xff]  ;;  %v2390_v5 = vld [vmem:[%s9686_s4 + $0xd8] sm:$0xff]  ;;  %v6786_v53 = vld [vmem:[#allocation3 + $0xd0] sm:$0x3] }
 0x187   : > { %v2152_v61 = vsel %vm965_vm3, %v2149_v50, %v2151_v27  ;;  %v3143_v11 = vrot.slane %v6783_v58, 2  ;;  %v1975_v62 = vadd.f32 %v1908_v9, %v1731_v24  ;;  %v3145_v4 = vrot.slane %v8877_v18, 2  ;;  %v8901_v58 = vld [vmem:[#allocation3 + $0xd8] sm:$0xff] }
 0x188   : > { %v8875_v3 = vsel %vm965_vm3, %v3140_v31, %v3141_v26  ;;  %v3146_v22 = vrot.slane %v8880_v60, 2  ;;  %v2218_v24 = vadd.f32 %v2150_v57, %v1974_v16  ;;  %v3148_v50 = vrot.slane %v6786_v53, 2  ;;  %v8904_v57 = vld [vmem:[#allocation3 + $0xe0] sm:$0xff] }
 0x189   : > { %6224 = vmatprep.mubr.msk.f32.mxu0 %vm368_vm0, %v8875_v3  ;;  %v8892_v31 = vsel %vm965_vm3, %v3141_v26, %v3143_v11  ;;  %v8894_v27 = vpack.c.bf16 %v2372_v39, %v2371_v19  ;;  %v2219_v17 = vadd.f32 %v2152_v61, %v1975_v62  ;;  %v3150_v16 = vrot.slane %v8901_v58, 2  ;;  %v6789_v61 = vld [vmem:[#allocation3 + $0xe8] sm:$0x3] }
 0x18a   : > { %9833 = vst [vmem:[#allocation45_spill] sm:$0xff] %v8892_v31  ;;  %6225 = vmatmul.mubr.msk.f32.gmra.mrb[12].mxu0 %vm368_vm0, %v8892_v31  ;;  %v8899_v9 = vsel %vm965_vm3, %v3145_v4, %v3146_v22  ;;  %v3151_v26 = vrot.slane %v8904_v57, 2  ;;  %2305 = vst.msk [vmem:[#allocation3 + $0x169] sm:$0xff] %vm368_vm0, %v2218_v24  ;;  %v8911_v19 = vsel %vm965_vm3, %v3146_v22, %v3148_v50  ;;  %v3153_v11 = vrot.slane %v6789_v61, 2 }
 0x18b   : > { %9834 = vst [vmem:[#allocation46_spill] sm:$0xff] %v8899_v9  ;;  %6227 = vmatprep.mubr.msk.f32.mxu0 %vm368_vm0, %v8899_v9  ;;  %9835 = vst [vmem:[#allocation47_spill] sm:$0xff] %v8911_v19  ;;  %6439 = vmatprep.subr.bf16.mxu1 %v8894_v27  ;;  %v6474_v39 = vpack.c.bf16 %v2390_v5, %v2389_v10  ;;  %v3155_v62 = vrot.slane %v8334_v48, 2  ;;  %v3156_v24 = vrot.slane %v8336_v28, 2  ;;  %v3158_v53 = vrot.slane %v8338_v1, 2 }
 0x18c   : > { %2306 = vst.msk [vmem:[#allocation3 + $0x171] sm:$0xff] %vm368_vm0, %v2219_v17  ;;  %v8917_v4 = vsel %vm965_vm3, %v3150_v16, %v3151_v26  ;;  %v3160_v9 = vrot.slane %v8449_v40, 2  ;;  %v3161_v22 = vrot.slane %v8453_v6, 2  ;;  %v3163_v10 = vrot.slane %v8456_v30, 2 }
 0x18d   : > { %9836 = vst [vmem:[#allocation48_spill] sm:$0xff] %v8917_v4  ;;  %6475 = vmatprep.subr.bf16.mxu0 %v6474_v39  ;;  %v3165_v5 = vrot.slane %v8571_v33, 2  ;;  %v8928_v48 = vsel %vm965_vm3, %v3151_v26, %v3153_v11  ;;  %v8931_v50 = vsel %vm965_vm3, %v3155_v62, %v3156_v24  ;;  %v3166_v28 = vrot.slane %v8579_v45, 2  ;;  %v6790_v62 = vld [vmem:[%s9685_s3] ss:$0 sm:$0xff] }
 0x18e   : > { %6228 = vmatmul.mubr.msk.f32.gmra.mrb[14].mxu0 %vm368_vm0, %v8911_v19  ;;  %9837 = vst [vmem:[#allocation49_spill] sm:$0xff] %v8928_v48  ;;  %9838 = vst [vmem:[#allocation50_spill] sm:$0xff] %v8931_v50  ;;  %v3168_v1 = vrot.slane %v8582_v41, 2  ;;  %v8938_v40 = vsel %vm965_vm3, %v3156_v24, %v3158_v53  ;;  %v8941_v6 = vsel %vm965_vm3, %v3160_v9, %v3161_v22  ;;  %v3170_v30 = vrot.slane %v8692_v34, 2  ;;  %v508_v19 = vld [vmem:[#allocation2 + $0x198] sm:$0xff] }
 0x18f   : > { %6230 = vmatprep.mubr.msk.f32.mxu0 %vm368_vm0, %v8917_v4  ;;  %6477 = vmatpush3.bf16.msra.mxu0 %v6474_v39  ;;  %v3171_v17 = vrot.slane %v8696_v44, 2  ;;  %v8946_v16 = vsel %vm965_vm3, %v3161_v22, %v3163_v10  ;;  %v8949_v26 = vsel %vm965_vm3, %v3165_v5, %v3166_v28  ;;  %v3173_v41 = vrot.slane %v8699_v46, 2 }
 0x190   : > { %9839 = vst [vmem:[#allocation51_spill] sm:$0xff] %v8949_v26  ;;  %v3175_v39 = vrot.slane %v8811_v2, 2  ;;  %v8954_v61 = vsel %vm965_vm3, %v3166_v28, %v3168_v1  ;;  %v3176_v9 = vrot.slane %v8817_v29, 2  ;;  %v3178_v11 = vrot.slane %v8820_v20, 2 }
 0x191   : > { %v550_v24 = vadd.f32 %v6790_v62, %v8753_v14  ;;  %v8962_v53 = vld [vmem:[#allocation3 + $0x168] sm:$0xff]  ;;  %v8967_v46 = vsel %vm965_vm3, %v3170_v30, %v3171_v17  ;;  %v551_v22 = vadd.f32 %v6790_v62, %v8761_v49  ;;  %v586_v10 = vmul.f32 %v7197_v35, %v8704_v7 }
 0x192   : > { %6231 = vmatmul.mubr.msk.f32.gmra.mrb[16].mxu0 %vm368_vm0, %v8928_v48  ;;  %v587_v20 = vmul.f32 %v7197_v35, %v8716_v47  ;;  %v2522_v14 = vrot.slane %v8962_v53, 1  ;;  %v8982_v1 = vsel %vm965_vm3, %v3171_v17, %v3173_v41  ;;  %v8985_v49 = vsel %vm965_vm3, %v3175_v39, %v3176_v9 }
 0x193   : > { %v8974_v5 = vld [vmem:[#allocation3 + $0x170] sm:$0xff]  ;;  %v8977_v28 = vld [vmem:[#allocation3 + $0x178] sm:$0x3]  ;;  %6233 = vmatprep.mubr.msk.f32.mxu0 %vm368_vm0, %v8931_v50  ;;  %9841 = vst [vmem:[#allocation53_spill] sm:$0xff] %v8985_v49  ;;  %v3180_v30 = vrot.slane %v8962_v53, 2  ;;  %v8991_v48 = vsel %vm965_vm3, %v3176_v9, %v3178_v11  ;;  %v618_v50 = vadd.f32 %v586_v10, %v550_v24  ;;  %v669_v17 = vmul.f32 %v7199_v36, %v8704_v7 }
 0x194   : > { %9840 = vst [vmem:[#allocation52_spill] sm:$0xff] %v8974_v5  ;;  %v2523_v62 = vrot.slane %v8974_v5, 1  ;;  %v2525_v35 = vrot.slane %v8977_v28, 1  ;;  %9842 = vst [vmem:[#allocation54_spill] sm:$0xff] %v8991_v48  ;;  %v9766_v4 = vrot.slane %v8974_v5, 2  ;;  %v670_v41 = vmul.f32 %v7199_v36, %v8716_v47 }
 0x195   : > { %v619_v11 = vadd.f32 %v587_v20, %v551_v22  ;;  %v671_v24 = vmul.f32 %v7199_v36, %v8720_v23  ;;  %v796_v10 = vrot.slane %v669_v17, 1  ;;  %v915_v22 = vmul.f32 %v7201_v37, %v8716_v47 }
 0x196   : > { %v9000_v39 = vsel %vm720_vm2, %v2522_v14, %v2523_v62  ;;  %v9003_v31 = vsel %vm720_vm2, %v2523_v62, %v2525_v35  ;;  %6234 = vmatmul.mubr.msk.f32.gmra.mrb[18].mxu0 %vm368_vm0, %v8938_v40  ;;  %v9010_v9 = vsel %vm965_vm3, %v3180_v30, %v9766_v4  ;;  %v797_v14 = vrot.slane %v670_v41, 1  ;;  %v9030_v35 = vld [vmem:[#allocation3] sm:$0xff] }
 0x197   : > { %9843 = vst [vmem:[#allocation55_spill] sm:$0xff] %v9000_v39  ;;  %9844 = vst [vmem:[#allocation56_spill] sm:$0xff] %v9003_v31  ;;  %5971 = vmatprep.mubr.msk.f32.mxu1 %vm368_vm0, %v9000_v39  ;;  %6236 = vmatprep.mubr.msk.f32.mxu0 %vm368_vm0, %v8941_v6  ;;  %v914_v62 = vmul.f32 %v7201_v37, %v8704_v7  ;;  %v916_v20 = vmul.f32 %v7201_v37, %v8720_v23  ;;  %v799_v17 = vrot.slane %v671_v24, 1  ;;  %v9048_v39 = vld [vmem:[#allocation3 + $0x8] sm:$0xff] }
 0x198   : > { %9845 = vst [vmem:[#allocation57_spill] sm:$0xff] %v9010_v9  ;;  %5972 = vmatmul.mubr.msk.f32.gmra.mrb[30].mxu1 %vm368_vm0, %v9003_v31  ;;  %v1144_v30 = vmul.f32 %v7203_v38, %v8803_v0  ;;  %v1145_v36 = vmul.f32 %v7203_v38, %v8826_v32  ;;  %v798_v7 = vsel %vm720_vm2, %v796_v10, %v797_v14  ;;  %v1042_v23 = vrot.slane %v915_v22, 2 }
 0x199   : > { %5982 = vmatprep.mubr.msk.f32.mxu1 %vm368_vm0, %v9030_v35  ;;  %v1041_v41 = vrot.slane %v914_v62, 2  ;;  %v1227_v47 = vmul.f32 %v7207_v42, %v8803_v0  ;;  %v863_v37 = vadd.f32 %v798_v7, %v618_v50  ;;  %v1044_v4 = vrot.slane %v916_v20, 2 }
 0x19a   : > { %6237 = vmatmul.mubr.msk.f32.gmra.mrb[20].mxu0 %vm368_vm0, %v8946_v16  ;;  %v1228_v38 = vmul.f32 %v7207_v42, %v8826_v32  ;;  %v800_v10 = vsel %vm720_vm2, %v797_v14, %v799_v17  ;;  %v1229_v24 = vmul.f32 %v7207_v42, %v8828_v59  ;;  %v1471_v31 = vmul.f32 %v7209_v43, %v8803_v0  ;;  %v509_v42 = vld [vmem:[#allocation2 + $0x1a0] sm:$0xff] }
 0x19b   : > { %6239 = vmatprep.mubr.msk.f32.mxu0 %vm368_vm0, %v8949_v26  ;;  %v1353_v62 = vrot.slane %v1227_v47, 1  ;;  %v864_v50 = vadd.f32 %v800_v10, %v619_v11  ;;  %v1043_v22 = vsel %vm965_vm3, %v1041_v41, %v1042_v23  ;;  %v1045_v20 = vsel %vm965_vm3, %v1042_v23, %v1044_v4  ;;  %v9054_v26 = vld [vmem:[#allocation3 + $0x18] sm:$0xff] }
 0x19c   : > { %5983 = vmatmul.mubr.msk.f32.vlgmr.msra.gmra.mrb[0].mxu1 %vm368_vm0, %v9048_v39  ;;  %v1354_v7 = vrot.slane %v1228_v38, 1  ;;  %v1108_v0 = vadd.f32 %v1043_v22, %v863_v37  ;;  %v1356_v14 = vrot.slane %v1229_v24, 1  ;;  %v1472_v17 = vmul.f32 %v7209_v43, %v8826_v32  ;;  %v510_v4 = vld [vmem:[#allocation2 + $0x1a8] sm:$0x3]  ;;  %v9070_v24 = vld [vmem:[#allocation3 + $0x20] sm:$0xff] }
 0x19d   : > { %5985 = vmatprep.mubr.msk.f32.mxu1 %vm368_vm0, %v9054_v26  ;;  %6441 = vmatpush3.bf16.msra.mxu1 %v8894_v27  ;;  %v1473_v11 = vmul.f32 %v7209_v43, %v8828_v59  ;;  %v1109_v41 = vadd.f32 %v1045_v20, %v864_v50  ;;  %v1597_v23 = vrot.slane %v1471_v31, 2  ;;  %v1700_v38 = vmul.f32 %v7216_v51, %v508_v19  ;;  %v9077_v50 = vld [vmem:[#allocation3 + $0x30] sm:$0xff] }
 0x19e   : > { %6240 = vmatmul.mubr.msk.f32.gmra.mrb[22].mxu0 %vm368_vm0, %v8954_v61  ;;  %v1355_v47 = vsel %vm720_vm2, %v1353_v62, %v1354_v7  ;;  %v1176_v27 = vadd.f32 %v1144_v30, %v1108_v0  ;;  %v1357_v37 = vsel %vm720_vm2, %v1354_v7, %v1356_v14  ;;  %v1598_v32 = vrot.slane %v1472_v17, 2 }
 0x19f   : > { %6242 = vmatprep.mubr.msk.f32.mxu0 %vm368_vm0, %v8967_v46  ;;  %v1600_v10 = vrot.slane %v1473_v11, 2  ;;  %v1177_v43 = vadd.f32 %v1145_v36, %v1109_v41  ;;  %v1701_v59 = vmul.f32 %v7216_v51, %v509_v42  ;;  %v1783_v31 = vmul.f32 %v7218_v52, %v508_v19  ;;  %v2373_v51 = vld [vmem:[%s9686_s4 + $0x50] sm:$0xff]  ;;  %v2374_v36 = vld [vmem:[%s9686_s4 + $0x58] sm:$0xff] }
 0x1a0   : > { %5986 = vmatmul.mubr.msk.f32.gmra.mrb[2].mxu1 %vm368_vm0, %v9070_v24  ;;  %v1784_v62 = vmul.f32 %v7218_v52, %v509_v42  ;;  %v1420_v30 = vadd.f32 %v1355_v47, %v1176_v27  ;;  %v1599_v22 = vsel %vm965_vm3, %v1597_v23, %v1598_v32  ;;  %v1785_v7 = vmul.f32 %v7218_v52, %v510_v4  ;;  %v2391_v27 = vld [vmem:[%s9686_s4 + $0xe0] sm:$0xff] }
 0x1a1   : > { %5988 = vmatprep.mubr.msk.f32.mxu1 %vm368_vm0, %v9077_v50  ;;  %v1601_v20 = vsel %vm965_vm3, %v1598_v32, %v1600_v10  ;;  %v1421_v0 = vadd.f32 %v1357_v37, %v1177_v43  ;;  %v1909_v14 = vrot.slane %v1783_v31, 1  ;;  %v2027_v11 = vmul.f32 %v8493_v63, %v508_v19  ;;  %v2392_v37 = vld [vmem:[%s9686_s4 + $0xe8] sm:$0xff]  ;;  %v9108_v31 = vld [vmem:[#allocation3 + $0x48] sm:$0xff] }
 0x1a2   : > { %6243 = vmatmul.mubr.msk.f32.gmra.mrb[24].mxu0 %vm368_vm0, %v8982_v1  ;;  %v1910_v17 = vrot.slane %v1784_v62, 1  ;;  %v1664_v52 = vadd.f32 %v1599_v22, %v1420_v30  ;;  %v1912_v41 = vrot.slane %v1785_v7, 1  ;;  %v2028_v47 = vmul.f32 %v8493_v63, %v509_v42  ;;  %v9103_v32 = vld [vmem:[#allocation3 + $0x38] sm:$0xff] }
 0x1a3   : > { %6245 = vmatprep.mubr.msk.f32.mxu0 %vm368_vm0, %v8985_v49  ;;  %v2029_v23 = vmul.f32 %v8493_v63, %v510_v4  ;;  %v1665_v19 = vadd.f32 %v1601_v20, %v1421_v0  ;;  %v2153_v43 = vrot.slane %v2027_v11, 2  ;;  %v6442_v42 = vpack.c.bf16 %v2374_v36, %v2373_v51  ;;  %v2376_v0 = vld [vmem:[%s9686_s4 + $0x68] sm:$0xff] }
 0x1a4   : > { %5989 = vmatmul.mubr.msk.f32.gmra.mrb[4].mxu1 %vm368_vm0, %v9103_v32  ;;  %v1911_v10 = vsel %vm720_vm2, %v1909_v14, %v1910_v17  ;;  %v1732_v63 = vadd.f32 %v1700_v38, %v1664_v52  ;;  %v1913_v4 = vsel %vm720_vm2, %v1910_v17, %v1912_v41  ;;  %v2154_v62 = vrot.slane %v2028_v47, 2  ;;  %v2375_v38 = vld [vmem:[%s9686_s4 + $0x60] sm:$0xff] }
 0x1a5   : > { %5991 = vmatprep.mubr.msk.f32.mxu1 %vm368_vm0, %v9108_v31  ;;  %v2156_v30 = vrot.slane %v2029_v23, 2  ;;  %v9846_v22 = vrot.slane %v8977_v28, 2  ;;  %v9847_v20 = vrot.slane %v8974_v5, 2  ;;  %v1733_v51 = vadd.f32 %v1701_v59, %v1665_v19  ;;  %6443 = vmatprep.subr.bf16.mxu1 %v6442_v42  ;;  %v9132_v59 = vld [vmem:[#allocation3 + $0x50] sm:$0xff] }
 0x1a6   : > { %6246 = vmatmul.mubr.msk.f32.gmra.mrb[26].mxu0 %vm368_vm0, %v8991_v48  ;;  %v6478_v36 = vpack.c.bf16 %v2392_v37, %v2391_v27  ;;  %v1976_v28 = vadd.f32 %v1911_v10, %v1732_v63  ;;  %v2155_v14 = vsel %vm965_vm3, %v2153_v43, %v2154_v62  ;;  %6445 = vmatpush3.bf16.msra.mxu1 %v6442_v42  ;;  %v2393_v42 = vld [vmem:[%s9686_s4 + $0xf0] sm:$0xff]  ;;  %v2394_v63 = vld [vmem:[%s9686_s4 + $0xf8] sm:$0xff] }
 0x1a7   : > { %v9120_v7 = vsel %vm965_vm3, %v9847_v20, %v9846_v22  ;;  %6248 = vmatprep.mubr.msk.f32.mxu0 %vm368_vm0, %v9010_v9  ;;  %v2157_v17 = vsel %vm965_vm3, %v2154_v62, %v2156_v30  ;;  %v1977_v11 = vadd.f32 %v1913_v4, %v1733_v51  ;;  %v9138_v41 = vpack.c.bf16 %v2376_v0, %v2375_v38  ;;  %v2395_v62 = vld [vmem:[%s9686_s4 + $0x100] sm:$0xff]  ;;  %v2396_v30 = vld [vmem:[%s9686_s4 + $0x108] sm:$0xff]  ;;  %v9212_v51 = vld [vmem:[#allocation3 + $0x60] sm:$0xff] }
 0x1a8   : > { %9848 = vst [vmem:[#allocation58_spill] sm:$0xff] %v9120_v7  ;;  %5992 = vmatmul.mubr.msk.f32.gmra.mrb[6].mxu1 %vm368_vm0, %v9132_v59  ;;  %6479 = vmatprep.subr.bf16.mxu0 %v6478_v36  ;;  %v2220_v52 = vadd.f32 %v2155_v14, %v1976_v28  ;;  %v6482_v4 = vpack.c.bf16 %v2394_v63, %v2393_v42  ;;  %v9208_v20 = vld [vmem:[#allocation3 + $0xf0] sm:$0xff]  ;;  %v9221_v38 = vld [vmem:[#allocation3 + $0x68] sm:$0xff]  ;;  %v9856_v42 = vld [vmem:[#allocation30_spill] sm:$0xff] }
 0x1a9   : > { %5994 = vmatprep.mubr.msk.f32.mxu1 %vm368_vm0, %v8504_v55  ;;  %v2221_v47 = vadd.f32 %v2157_v17, %v1977_v11  ;;  %6447 = vmatprep.subr.bf16.mxu1 %v9138_v41  ;;  %v9202_v22 = vpack.c.bf16 %v2396_v30, %v2395_v62  ;;  %v9225_v0 = vld [vmem:[#allocation3 + $0x108] sm:$0xff]  ;;  %v9231_v28 = vld [vmem:[#allocation3 + $0x110] sm:$0xff]  ;;  %v9335_v30 = vld [vmem:[#allocation3 + $0x198] sm:$0xff] }
 0x1aa   : > { %6249 = vmatmul.mubr.msk.f32.gmra.mrb[28].mxu0 %vm368_vm0, %v9120_v7  ;;  %2307 = vst.msk [vmem:[#allocation3 + $0x181] sm:$0xff] %vm368_vm0, %v2220_v52  ;;  %v9851_v52 = vld [vmem:[#allocation22_spill] sm:$0xff]  ;;  %v9857_v63 = vld [vmem:[#allocation33_spill] sm:$0xff] }
 0x1ab   : > { %2308 = vst.msk [vmem:[#allocation3 + $0x189] sm:$0xff] %vm368_vm0, %v2221_v47  ;;  %v9852_v47 = vld [vmem:[#allocation25_spill] sm:$0xff] }
 0x1ac   : > { %5995 = vmatmul.mubr.msk.f32.gmra.mrb[8].mxu1 %vm368_vm0, %v8510_v54  ;;  %v9859_v62 = vld [vmem:[#allocation37_spill] sm:$0xff] }
 0x1ad   : > { %5997 = vmatprep.mubr.msk.f32.mxu1 %vm368_vm0, %v8622_v12 }
 0x1b0   : > { %5998 = vmatmul.mubr.msk.f32.gmra.mrb[10].mxu1 %vm368_vm0, %v8629_v8 }
 0x1b1   : > { %6000 = vmatprep.mubr.msk.f32.mxu1 %vm368_vm0, %v8742_v56  ;;  %v9153_v55 = vld [vmem:[#allocation3 + $0x180] sm:$0xff] }
 0x1b2   : > { %v9155_v23 = vld [vmem:[#allocation3 + $0x188] sm:$0xff]  ;;  %v4036_v27 = vrot.slane %v9153_v55, 2  ;;  %v9158_v37 = vld [vmem:[#allocation3 + $0x190] sm:$0x3] }
 0x1b3   : > { %v4037_v54 = vrot.slane %v9155_v23, 2  ;;  %v4039_v19 = vrot.slane %v9158_v37, 2 }
 0x1b4   : > { %6001 = vmatmul.mubr.msk.f32.gmra.mrb[12].mxu1 %vm368_vm0, %v8748_v21 }
 0x1b5   : > { %6003 = vmatprep.mubr.msk.f32.mxu1 %vm368_vm0, %v8858_v13  ;;  %v9167_v10 = vsel %vm965_vm3, %v4036_v27, %v4037_v54  ;;  %v9170_v43 = vsel %vm965_vm3, %v4037_v54, %v4039_v19  ;;  %v9296_v27 = vld [vmem:[#allocation3 + $0x120] sm:$0xff]  ;;  %v9303_v54 = vld [vmem:[#allocation3 + $0x128] sm:$0xff]  ;;  %v9855_v19 = vld [vmem:[#allocation29_spill] sm:$0xff] }
 0x1b6   : > { %9849 = vst [vmem:[#allocation59_spill] sm:$0xff] %v9167_v10  ;;  %9850 = vst [vmem:[#allocation60_spill] sm:$0xff] %v9170_v43  ;;  %6251 = vmatprep.mubr.msk.f32.mxu0 %vm368_vm0, %v9167_v10  ;;  %v9869_v10 = vld [vmem:[#allocation10_spill] sm:$0xff] }
 0x1b7   : > { %6252 = vmatmul.mubr.msk.f32.gmra.mrb[30].mxu0 %vm368_vm0, %v9170_v43  ;;  %v9868_v43 = vld [vmem:[#allocation48_spill] sm:$0xff] }
 0x1b8   : > { %6004 = vmatmul.mubr.msk.f32.gmra.mrb[14].mxu1 %vm368_vm0, %v8863_v25  ;;  %6262 = vmatprep.mubr.msk.f32.mxu0 %vm368_vm0, %v9077_v50 }
 0x1b9   : > { %6006 = vmatprep.mubr.msk.f32.mxu1 %vm368_vm0, %v8877_v18 }
 0x1bb   : > { %6263 = vmatmul.mubr.msk.f32.vlgmr.msra.gmra.mrb[0].mxu0 %vm368_vm0, %v9103_v32 }
 0x1bc   : > { %6007 = vmatmul.mubr.msk.f32.gmra.mrb[16].mxu1 %vm368_vm0, %v8880_v60  ;;  %6481 = vmatpush3.bf16.msra.mxu0 %v6478_v36  ;;  %v9217_v36 = vld [vmem:[#allocation3 + $0xf8] sm:$0xff] }
 0x1bd   : > { %6009 = vmatprep.mubr.msk.f32.mxu1 %vm368_vm0, %v8901_v58  ;;  %6265 = vmatprep.mubr.msk.f32.mxu0 %vm368_vm0, %v9108_v31 }
 0x1be   : > { %6483 = vmatprep.subr.bf16.mxu0 %v6482_v4 }
 0x1bf   : > { %6266 = vmatmul.mubr.msk.f32.gmra.mrb[2].mxu0 %vm368_vm0, %v9132_v59 }
 0x1c0   : > { %6010 = vmatmul.mubr.msk.f32.gmra.mrb[18].mxu1 %vm368_vm0, %v8904_v57  ;;  %6268 = vmatprep.mubr.msk.f32.mxu0 %vm368_vm0, %v9212_v51 }
 0x1c1   : > { %6012 = vmatprep.mubr.msk.f32.mxu1 %vm368_vm0, %v9208_v20  ;;  %6485 = vmatpush3.bf16.msra.mxu0 %v6482_v4  ;;  %v9858_v4 = vld [vmem:[#allocation34_spill] sm:$0xff] }
 0x1c2   : > { %6487 = vmatprep.subr.bf16.mxu0 %v9202_v22 }
 0x1c3   : > { %6269 = vmatmul.mubr.msk.f32.gmra.mrb[4].mxu0 %vm368_vm0, %v9221_v38 }
 0x1c4   : > { %6013 = vmatmul.mubr.msk.f32.gmra.mrb[20].mxu1 %vm368_vm0, %v9217_v36  ;;  %6271 = vmatprep.mubr.msk.f32.mxu0 %vm368_vm0, %v8622_v12  ;;  %v3105_v12 = vrot.slane %v9030_v35, 2  ;;  %v2378_v35 = vld [vmem:[%s9686_s4 + $0x78] sm:$0xff] }
 0x1c5   : > { %6015 = vmatprep.mubr.msk.f32.mxu1 %vm368_vm0, %v9225_v0 }
 0x1c7   : > { %6272 = vmatmul.mubr.msk.f32.gmra.mrb[6].mxu0 %vm368_vm0, %v8629_v8 }
 0x1c8   : > { %6016 = vmatmul.mubr.msk.f32.gmra.mrb[22].mxu1 %vm368_vm0, %v9231_v28  ;;  %6274 = vmatprep.mubr.msk.f32.mxu0 %vm368_vm0, %v8742_v56 }
 0x1c9   : > { %6018 = vmatprep.mubr.msk.f32.mxu1 %vm368_vm0, %v8571_v33  ;;  %v3106_v33 = vrot.slane %v9048_v39, 2  ;;  %v2377_v39 = vld [vmem:[%s9686_s4 + $0x70] sm:$0xff] }
 0x1ca   : > { %v6450_v11 = vpack.c.bf16 %v2378_v35, %v2377_v39  ;;  %v9864_v39 = vld [vmem:[#allocation46_spill] sm:$0xff]  ;;  %v9865_v35 = vld [vmem:[#allocation8_spill] sm:$0xff] }
 0x1cb   : > { %6275 = vmatmul.mubr.msk.f32.gmra.mrb[8].mxu0 %vm368_vm0, %v8748_v21  ;;  %v3107_v14 = vsel %vm965_vm3, %v3105_v12, %v3106_v33  ;;  %v9862_v12 = vld [vmem:[#allocation42_spill] sm:$0xff] }
 0x1cc   : > { %6019 = vmatmul.mubr.msk.f32.gmra.mrb[24].mxu1 %vm368_vm0, %v8579_v45  ;;  %6277 = vmatprep.mubr.msk.f32.mxu0 %vm368_vm0, %v8858_v13  ;;  %v6805_v45 = vld [vmem:[#allocation3 + $0x10] sm:$0x3] }
 0x1cd   : > { %6021 = vmatprep.mubr.msk.f32.mxu1 %vm368_vm0, %v8692_v34  ;;  %v3108_v8 = vrot.slane %v6805_v45, 2  ;;  %v2397_v45 = vld [vmem:[%s9686_s4 + $0x110] sm:$0xff] }
 0x1cf   : > { %6278 = vmatmul.mubr.msk.f32.gmra.mrb[10].mxu0 %vm368_vm0, %v8863_v25  ;;  %v3109_v17 = vsel %vm965_vm3, %v3106_v33, %v3108_v8  ;;  %v9345_v33 = vld [vmem:[#allocation3 + $0x1a0] sm:$0xff]  ;;  %v2398_v8 = vld [vmem:[%s9686_s4 + $0x118] sm:$0xff] }
 0x1d0   : > { %6022 = vmatmul.mubr.msk.f32.gmra.mrb[26].mxu1 %vm368_vm0, %v8696_v44  ;;  %6280 = vmatprep.mubr.msk.f32.mxu0 %vm368_vm0, %v8877_v18 }
 0x1d1   : > { %6024 = vmatprep.mubr.msk.f32.mxu1 %vm368_vm0, %v8811_v2 }
 0x1d3   : > { %6281 = vmatmul.mubr.msk.f32.gmra.mrb[12].mxu0 %vm368_vm0, %v8880_v60 }
 0x1d4   : > { %6025 = vmatmul.mubr.msk.f32.gmra.mrb[28].mxu1 %vm368_vm0, %v8817_v29  ;;  %6283 = vmatprep.mubr.msk.f32.mxu0 %vm368_vm0, %v8901_v58 }
 0x1d5   : > { %6027 = vmatprep.mubr.msk.f32.mxu1 %vm368_vm0, %v8962_v53 }
 0x1d7   : > { %6284 = vmatmul.mubr.msk.f32.gmra.mrb[14].mxu0 %vm368_vm0, %v8904_v57 }
 0x1d8   : > { %6028 = vmatmul.mubr.msk.f32.gmra.mrb[30].mxu1 %vm368_vm0, %v8974_v5  ;;  %6286 = vmatprep.mubr.msk.f32.mxu0 %vm368_vm0, %v9208_v20 }
 0x1d9   : > { %6038 = vmatprep.mubr.msk.f32.mxu1 %vm368_vm0, %v3107_v14  ;;  %v9863_v14 = vld [vmem:[#allocation45_spill] sm:$0xff] }
 0x1db   : > { %6287 = vmatmul.mubr.msk.f32.gmra.mrb[16].mxu0 %vm368_vm0, %v9217_v36 }
 0x1dc   : > { %6039 = vmatmul.mubr.msk.f32.vlgmr.msra.gmra.mrb[0].mxu1 %vm368_vm0, %v3109_v17  ;;  %6289 = vmatprep.mubr.msk.f32.mxu0 %vm368_vm0, %v9225_v0  ;;  %v6490_v17 = vpack.c.bf16 %v2398_v8, %v2397_v45  ;;  %v9872_v45 = vld [vmem:[#allocation50_spill] sm:$0xff]  ;;  %v9873_v8 = vld [vmem:[#allocation12_spill] sm:$0xff] }
 0x1dd   : > { %6041 = vmatprep.mubr.msk.f32.mxu1 %vm368_vm0, %v8138_v15  ;;  %6449 = vmatpush3.bf16.msra.mxu1 %v9138_v41  ;;  %v9853_v15 = vld [vmem:[#allocation5_spill] sm:$0xff]  ;;  %v9854_v41 = vld [vmem:[#allocation26_spill] sm:$0xff] }
 0x1de   : > { %6451 = vmatprep.subr.bf16.mxu1 %v6450_v11 }
 0x1df   : > { %6290 = vmatmul.mubr.msk.f32.gmra.mrb[18].mxu0 %vm368_vm0, %v9231_v28 }
 0x1e0   : > { %6042 = vmatmul.mubr.msk.f32.gmra.mrb[2].mxu1 %vm368_vm0, %v9851_v52  ;;  %6292 = vmatprep.mubr.msk.f32.mxu0 %vm368_vm0, %v9296_v27  ;;  %v9867_v52 = vld [vmem:[#allocation9_spill] sm:$0xff] }
 0x1e1   : > { %6044 = vmatprep.mubr.msk.f32.mxu1 %vm368_vm0, %v9852_v47  ;;  %6453 = vmatpush3.bf16.msra.mxu1 %v6450_v11  ;;  %v9866_v11 = vld [vmem:[#allocation47_spill] sm:$0xff] }
 0x1e2   : > { %6494 = vmatprep.subr.bf16.mxu1 %v9853_v15 }
 0x1e3   : > { %6293 = vmatmul.mubr.msk.f32.gmra.mrb[20].mxu0 %vm368_vm0, %v9303_v54 }
 0x1e4   : > { %6045 = vmatmul.mubr.msk.f32.gmra.mrb[4].mxu1 %vm368_vm0, %v9854_v41  ;;  %6295 = vmatprep.mubr.msk.f32.mxu0 %vm368_vm0, %v8692_v34  ;;  %v9860_v34 = vld [vmem:[#allocation38_spill] sm:$0xff] }
 0x1e5   : > { %6047 = vmatprep.mubr.msk.f32.mxu1 %vm368_vm0, %v9855_v19 }
 0x1e7   : > { %6296 = vmatmul.mubr.msk.f32.gmra.mrb[22].mxu0 %vm368_vm0, %v8696_v44  ;;  %v9861_v44 = vld [vmem:[#allocation41_spill] sm:$0xff] }
 0x1e8   : > { %6048 = vmatmul.mubr.msk.f32.gmra.mrb[6].mxu1 %vm368_vm0, %v9856_v42  ;;  %6298 = vmatprep.mubr.msk.f32.mxu0 %vm368_vm0, %v8811_v2 }
 0x1e9   : > { %6050 = vmatprep.mubr.msk.f32.mxu1 %vm368_vm0, %v9857_v63 }
 0x1eb   : > { %6299 = vmatmul.mubr.msk.f32.gmra.mrb[24].mxu0 %vm368_vm0, %v8817_v29 }
 0x1ec   : > { %6051 = vmatmul.mubr.msk.f32.gmra.mrb[8].mxu1 %vm368_vm0, %v9858_v4  ;;  %6301 = vmatprep.mubr.msk.f32.mxu0 %vm368_vm0, %v8962_v53 }
 0x1ed   : > { %6053 = vmatprep.mubr.msk.f32.mxu1 %vm368_vm0, %v9859_v62 }
 0x1ef   : > { %6302 = vmatmul.mubr.msk.f32.gmra.mrb[26].mxu0 %vm368_vm0, %v8974_v5  ;;  %v9870_v5 = vld [vmem:[#allocation49_spill] sm:$0xff] }
 0x1f0   : > { %6054 = vmatmul.mubr.msk.f32.gmra.mrb[10].mxu1 %vm368_vm0, %v9860_v34  ;;  %6304 = vmatprep.mubr.msk.f32.mxu0 %vm368_vm0, %v9153_v55 }
 0x1f1   : > { %6056 = vmatprep.mubr.msk.f32.mxu1 %vm368_vm0, %v9861_v44 }
 0x1f3   : > { %6305 = vmatmul.mubr.msk.f32.gmra.mrb[28].mxu0 %vm368_vm0, %v9155_v23 }
 0x1f4   : > { %6057 = vmatmul.mubr.msk.f32.gmra.mrb[12].mxu1 %vm368_vm0, %v9862_v12  ;;  %6307 = vmatprep.mubr.msk.f32.mxu0 %vm368_vm0, %v9335_v30 }
 0x1f5   : > { %6059 = vmatprep.mubr.msk.f32.mxu1 %vm368_vm0, %v8875_v3 }
 0x1f7   : > { %6308 = vmatmul.mubr.msk.f32.gmra.mrb[30].mxu0 %vm368_vm0, %v9345_v33 }
 0x1f8   : > { %6060 = vmatmul.mubr.msk.f32.gmra.mrb[14].mxu1 %vm368_vm0, %v9863_v14  ;;  %6318 = vmatprep.mubr.msk.f32.mxu0 %vm368_vm0, %v9865_v35  ;;  %v9871_v35 = vld [vmem:[#allocation11_spill] sm:$0xff] }
 0x1f9   : > { %6062 = vmatprep.mubr.msk.f32.mxu1 %vm368_vm0, %v9864_v39 }
 0x1fb   : > { %6319 = vmatmul.mubr.msk.f32.vlgmr.msra.gmra.mrb[0].mxu0 %vm368_vm0, %v9867_v52  ;;  %v9876_v52 = vld [vmem:[#allocation15_spill] sm:$0xff] }
 0x1fc   : > { %6063 = vmatmul.mubr.msk.f32.gmra.mrb[16].mxu1 %vm368_vm0, %v9866_v11  ;;  %6489 = vmatpush3.bf16.msra.mxu0 %v9202_v22  ;;  %v9874_v22 = vld [vmem:[#allocation13_spill] sm:$0xff] }
 0x1fd   : > { %6065 = vmatprep.mubr.msk.f32.mxu1 %vm368_vm0, %v9868_v43  ;;  %6321 = vmatprep.mubr.msk.f32.mxu0 %vm368_vm0, %v9869_v10  ;;  %v9875_v10 = vld [vmem:[#allocation14_spill] sm:$0xff] }
 0x1fe   : > { %6491 = vmatprep.subr.bf16.mxu0 %v6490_v17 }
 0x1ff   : > { %6322 = vmatmul.mubr.msk.f32.gmra.mrb[2].mxu0 %vm368_vm0, %v9871_v35  ;;  %v9877_v35 = vld [vmem:[#allocation51_spill] sm:$0xff] }
 0x200   : > { %6066 = vmatmul.mubr.msk.f32.gmra.mrb[18].mxu1 %vm368_vm0, %v9870_v5  ;;  %6324 = vmatprep.mubr.msk.f32.mxu0 %vm368_vm0, %v9873_v8  ;;  %v9879_v8 = vld [vmem:[#allocation17_spill] sm:$0xff] }
 0x201   : > { %6068 = vmatprep.mubr.msk.f32.mxu1 %vm368_vm0, %v9872_v45  ;;  %6493 = vmatpush3.bf16.msra.mxu0 %v6490_v17  ;;  %v9878_v17 = vld [vmem:[#allocation16_spill] sm:$0xff] }
 0x203   : > { %6325 = vmatmul.mubr.msk.f32.gmra.mrb[4].mxu0 %vm368_vm0, %v9874_v22  ;;  %v9880_v22 = vld [vmem:[#allocation18_spill] sm:$0xff] }
 0x204   : > { %6069 = vmatmul.mubr.msk.f32.gmra.mrb[20].mxu1 %vm368_vm0, %v8938_v40  ;;  %6327 = vmatprep.mubr.msk.f32.mxu0 %vm368_vm0, %v9875_v10  ;;  %v9881_v10 = vld [vmem:[#allocation19_spill] sm:$0xff] }
 0x205   : > { %6071 = vmatprep.mubr.msk.f32.mxu1 %vm368_vm0, %v8941_v6 }
 0x207   : > { %6328 = vmatmul.mubr.msk.f32.gmra.mrb[6].mxu0 %vm368_vm0, %v9876_v52  ;;  %v9882_v52 = vld [vmem:[#allocation20_spill] sm:$0xff] }
 0x208   : > { %6072 = vmatmul.mubr.msk.f32.gmra.mrb[22].mxu1 %vm368_vm0, %v8946_v16  ;;  %6330 = vmatprep.mubr.msk.f32.mxu0 %vm368_vm0, %v9878_v17  ;;  %v9883_v17 = vld [vmem:[#allocation21_spill] sm:$0xff] }
 0x209   : > { %6074 = vmatprep.mubr.msk.f32.mxu1 %vm368_vm0, %v9877_v35 }
 0x20b   : > { %6331 = vmatmul.mubr.msk.f32.gmra.mrb[8].mxu0 %vm368_vm0, %v9879_v8  ;;  %v9884_v8 = vld [vmem:[#allocation23_spill] sm:$0xff] }
 0x20c   : > { %6075 = vmatmul.mubr.msk.f32.gmra.mrb[24].mxu1 %vm368_vm0, %v8954_v61  ;;  %6333 = vmatprep.mubr.msk.f32.mxu0 %vm368_vm0, %v9880_v22  ;;  %v9885_v22 = vld [vmem:[#allocation24_spill] sm:$0xff] }
 0x20d   : > { %6077 = vmatprep.mubr.msk.f32.mxu1 %vm368_vm0, %v8967_v46 }
 0x20f   : > { %6334 = vmatmul.mubr.msk.f32.gmra.mrb[10].mxu0 %vm368_vm0, %v9881_v10  ;;  %v9886_v10 = vld [vmem:[#allocation27_spill] sm:$0xff] }
 0x210   : > { %6078 = vmatmul.mubr.msk.f32.gmra.mrb[26].mxu1 %vm368_vm0, %v8982_v1  ;;  %6336 = vmatprep.mubr.msk.f32.mxu0 %vm368_vm0, %v9882_v52  ;;  %v9887_v52 = vld [vmem:[#allocation28_spill] sm:$0xff] }
 0x211   : > { %6080 = vmatprep.mubr.msk.f32.mxu1 %vm368_vm0, %v8985_v49 }
 0x213   : > { %6337 = vmatmul.mubr.msk.f32.gmra.mrb[12].mxu0 %vm368_vm0, %v9883_v17  ;;  %v9888_v17 = vld [vmem:[#allocation31_spill] sm:$0xff] }
 0x214   : > { %6081 = vmatmul.mubr.msk.f32.gmra.mrb[28].mxu1 %vm368_vm0, %v8991_v48  ;;  %6339 = vmatprep.mubr.msk.f32.mxu0 %vm368_vm0, %v9884_v8  ;;  %v9896_v48 = vld [vmem:[#allocation44_spill] sm:$0xff] }
 0x215   : > { %6083 = vmatprep.mubr.msk.f32.mxu1 %vm368_vm0, %v9010_v9  ;;  %v3771_v9 = vrot.slane %v9155_v23, 1 }
 0x217   : > { %6340 = vmatmul.mubr.msk.f32.gmra.mrb[14].mxu0 %vm368_vm0, %v9885_v22 }
 0x218   : > { %6084 = vmatmul.mubr.msk.f32.gmra.mrb[30].mxu1 %vm368_vm0, %v9120_v7  ;;  %6342 = vmatprep.mubr.msk.f32.mxu0 %vm368_vm0, %v9886_v10  ;;  %v9889_v7 = vld [vmem:[#allocation7_spill] sm:$0xff] }
 0x219   : > { %6094 = vmatprep.mubr.msk.f32.mxu1 %vm368_vm0, %v9054_v26  ;;  %v9890_v26 = vld [vmem:[#allocation32_spill] sm:$0xff] }
 0x21b   : > { %6343 = vmatmul.mubr.msk.f32.gmra.mrb[16].mxu0 %vm368_vm0, %v9887_v52 }
 0x21c   : > { %6095 = vmatmul.mubr.msk.f32.vlgmr.msra.gmra.mrb[0].mxu1 %vm368_vm0, %v9070_v24  ;;  %6345 = vmatprep.mubr.msk.f32.mxu0 %vm368_vm0, %v9888_v17  ;;  %v9891_v24 = vld [vmem:[#allocation35_spill] sm:$0xff] }
 0x21d   : > { %6097 = vmatprep.mubr.msk.f32.mxu1 %vm368_vm0, %v9077_v50  ;;  %6496 = vmatpush3.bf16.msra.mxu1 %v9853_v15  ;;  %v9892_v50 = vld [vmem:[#allocation36_spill] sm:$0xff]  ;;  %v6808_v15 = vld [vmem:[#allocation3 + $0x78] sm:$0xff] }
 0x21e   : > { %6495 = vmatprep.subr.bf16.mxu1 %v9889_v7 }
 0x21f   : > { %6346 = vmatmul.mubr.msk.f32.gmra.mrb[18].mxu0 %vm368_vm0, %v9890_v26 }
 0x220   : > { %6098 = vmatmul.mubr.msk.f32.gmra.mrb[2].mxu1 %vm368_vm0, %v9103_v32  ;;  %6348 = vmatprep.mubr.msk.f32.mxu0 %vm368_vm0, %v9891_v24  ;;  %v9893_v32 = vld [vmem:[#allocation39_spill] sm:$0xff] }
 0x221   : > { %6100 = vmatprep.mubr.msk.f32.mxu1 %vm368_vm0, %v9108_v31  ;;  %6497 = vmatpush3.bf16.msra.mxu1 %v9889_v7  ;;  %v9894_v31 = vld [vmem:[#allocation40_spill] sm:$0xff]  ;;  %v9895_v7 = vld [vmem:[#allocation43_spill] sm:$0xff] }
 0x223   : > { %6349 = vmatmul.mubr.msk.f32.gmra.mrb[20].mxu0 %vm368_vm0, %v9892_v50 }
 0x224   : > { %6101 = vmatmul.mubr.msk.f32.gmra.mrb[4].mxu1 %vm368_vm0, %v9132_v59  ;;  %6351 = vmatprep.mubr.msk.f32.mxu0 %vm368_vm0, %v9893_v32  ;;  %v3770_v59 = vrot.slane %v9153_v55, 1  ;;  %v9475_v32 = vld [vmem:[#allocation3 + $0x1a8] sm:$0x3] }
 0x225   : > { %6103 = vmatprep.mubr.msk.f32.mxu1 %vm368_vm0, %v9212_v51  ;;  %v6809_v51 = vld [vmem:[#allocation3 + $0x80] sm:$0xff] }
 0x226   : > { %v9473_v49 = vsel %vm720_vm2, %v3770_v59, %v3771_v9 }
 0x227   : > { %6352 = vmatmul.mubr.msk.f32.gmra.mrb[22].mxu0 %vm368_vm0, %v9894_v31  ;;  %v4567_v31 = vrot.slane %v9345_v33, 1 }
 0x228   : > { %6104 = vmatmul.mubr.msk.f32.gmra.mrb[6].mxu1 %vm368_vm0, %v9221_v38  ;;  %6354 = vmatprep.mubr.msk.f32.mxu0 %vm368_vm0, %v9895_v7  ;;  %v9897_v38 = vld [vmem:[#allocation55_spill] sm:$0xff]  ;;  %v4566_v7 = vrot.slane %v9335_v30, 1 }
 0x229   : > { %6106 = vmatprep.mubr.msk.f32.mxu1 %vm368_vm0, %v6808_v15  ;;  %v3773_v15 = vrot.slane %v9158_v37, 1  ;;  %v4569_v37 = vrot.slane %v9475_v32, 1 }
 0x22a   : > { %v4568_v59 = vsel %vm720_vm2, %v4566_v7, %v4567_v31 }
 0x22b   : > { %6355 = vmatmul.mubr.msk.f32.gmra.mrb[24].mxu0 %vm368_vm0, %v9896_v48 }
 0x22c   : > { %6107 = vmatmul.mubr.msk.f32.gmra.mrb[8].mxu1 %vm368_vm0, %v6809_v51  ;;  %6357 = vmatprep.mubr.msk.f32.mxu0 %vm368_vm0, %v9897_v38  ;;  %v9898_v51 = vld [vmem:[#allocation56_spill] sm:$0xff] }
 0x22d   : > { %6109 = vmatprep.mubr.msk.f32.mxu1 %vm368_vm0, %v8742_v56  ;;  %v9486_v56 = vsel %vm720_vm2, %v3771_v9, %v3773_v15 }
 0x22f   : > { %6358 = vmatmul.mubr.msk.f32.gmra.mrb[26].mxu0 %vm368_vm0, %v9898_v51 }
 0x230   : > { %6110 = vmatmul.mubr.msk.f32.gmra.mrb[10].mxu1 %vm368_vm0, %v8748_v21  ;;  %6360 = vmatprep.mubr.msk.f32.mxu0 %vm368_vm0, %v9473_v49  ;;  %v4570_v21 = vsel %vm720_vm2, %v4567_v31, %v4569_v37 }
 0x231   : > { %6112 = vmatprep.mubr.msk.f32.mxu1 %vm368_vm0, %v8858_v13  ;;  %v6810_v13 = vld [vmem:[#allocation3 + $0x138] sm:$0xff] }
 0x233   : > { %6361 = vmatmul.mubr.msk.f32.gmra.mrb[28].mxu0 %vm368_vm0, %v9486_v56 }
 0x234   : > { %6113 = vmatmul.mubr.msk.f32.gmra.mrb[12].mxu1 %vm368_vm0, %v8863_v25  ;;  %6363 = vmatprep.mubr.msk.f32.mxu0 %vm368_vm0, %v4568_v59  ;;  %v6811_v25 = vld [vmem:[#allocation3 + $0x140] sm:$0xff] }
 0x235   : > { %6115 = vmatprep.mubr.msk.f32.mxu1 %vm368_vm0, %v8877_v18  ;;  %v9899_v18 = vld [vmem:[#allocation52_spill] sm:$0xff] }
 0x237   : > { %6364 = vmatmul.mubr.msk.f32.gmra.mrb[30].mxu0 %vm368_vm0, %v4570_v21 }
 0x238   : > { %6116 = vmatmul.mubr.msk.f32.gmra.mrb[14].mxu1 %vm368_vm0, %v8880_v60  ;;  %6374 = vmatprep.mubr.msk.f32.mxu0 %vm368_vm0, %v9852_v47  ;;  %v9903_v60 = vld [vmem:[#allocation54_spill] sm:$0xff] }
 0x239   : > { %6118 = vmatprep.mubr.msk.f32.mxu1 %vm368_vm0, %v8901_v58  ;;  %v9904_v58 = vld [vmem:[#allocation43_spill] sm:$0xff] }
 0x23b   : > { %6375 = vmatmul.mubr.msk.f32.vlgmr.msra.gmra.mrb[0].mxu0 %vm368_vm0, %v9854_v41 }
 0x23c   : > { %6119 = vmatmul.mubr.msk.f32.gmra.mrb[16].mxu1 %vm368_vm0, %v8904_v57  ;;  %6377 = vmatprep.mubr.msk.f32.mxu0 %vm368_vm0, %v9855_v19  ;;  %v9905_v57 = vld [vmem:[#allocation57_spill] sm:$0xff] }
 0x23d   : > { %6121 = vmatprep.mubr.msk.f32.mxu1 %vm368_vm0, %v9208_v20 }
 0x23f   : > { %6378 = vmatmul.mubr.msk.f32.gmra.mrb[2].mxu0 %vm368_vm0, %v9856_v42 }
 0x240   : > { %6122 = vmatmul.mubr.msk.f32.gmra.mrb[18].mxu1 %vm368_vm0, %v9217_v36  ;;  %6380 = vmatprep.mubr.msk.f32.mxu0 %vm368_vm0, %v9857_v63 }
 0x241   : > { %6124 = vmatprep.mubr.msk.f32.mxu1 %vm368_vm0, %v9225_v0 }
 0x243   : > { %6381 = vmatmul.mubr.msk.f32.gmra.mrb[4].mxu0 %vm368_vm0, %v9858_v4 }
 0x244   : > { %6125 = vmatmul.mubr.msk.f32.gmra.mrb[20].mxu1 %vm368_vm0, %v9231_v28  ;;  %6383 = vmatprep.mubr.msk.f32.mxu0 %vm368_vm0, %v9859_v62 }
 0x245   : > { %6127 = vmatprep.mubr.msk.f32.mxu1 %vm368_vm0, %v9296_v27 }
 0x247   : > { %6384 = vmatmul.mubr.msk.f32.gmra.mrb[6].mxu0 %vm368_vm0, %v9860_v34  ;;  %v9630_v34 = vld [vmem:[#allocation4] ss:$0 sm:$0xff] }
 0x248   : > { %6128 = vmatmul.mubr.msk.f32.gmra.mrb[22].mxu1 %vm368_vm0, %v9303_v54  ;;  %6386 = vmatprep.mubr.msk.f32.mxu0 %vm368_vm0, %v9861_v44 }
 0x249   : > { %6130 = vmatprep.mubr.msk.f32.mxu1 %vm368_vm0, %v6810_v13 }
 0x24b   : > { %6387 = vmatmul.mubr.msk.f32.gmra.mrb[8].mxu0 %vm368_vm0, %v9862_v12 }
 0x24c   : > { %6131 = vmatmul.mubr.msk.f32.gmra.mrb[24].mxu1 %vm368_vm0, %v6811_v25  ;;  %6389 = vmatprep.mubr.msk.f32.mxu0 %vm368_vm0, %v8875_v3  ;;  %v9902_v3 = vld [vmem:[#allocation40_spill] sm:$0xff] }
 0x24d   : > { %6133 = vmatprep.mubr.msk.f32.mxu1 %vm368_vm0, %v8811_v2  ;;  %v9900_v2 = vld [vmem:[#allocation39_spill] sm:$0xff] }
 0x24f   : > { %6390 = vmatmul.mubr.msk.f32.gmra.mrb[10].mxu0 %vm368_vm0, %v9863_v14 }
 0x250   : > { %6134 = vmatmul.mubr.msk.f32.gmra.mrb[26].mxu1 %vm368_vm0, %v8817_v29  ;;  %6392 = vmatprep.mubr.msk.f32.mxu0 %vm368_vm0, %v9864_v39  ;;  %v9901_v29 = vld [vmem:[#allocation53_spill] sm:$0xff] }
 0x251   : > { %6136 = vmatprep.mubr.msk.f32.mxu1 %vm368_vm0, %v8962_v53  ;;  %v4835_v53 = vrot.slane %v9475_v32, 2 }
 0x253   : > { %6393 = vmatmul.mubr.msk.f32.gmra.mrb[12].mxu0 %vm368_vm0, %v9866_v11 }
 0x254   : > { %6137 = vmatmul.mubr.msk.f32.gmra.mrb[28].mxu1 %vm368_vm0, %v9899_v18  ;;  %6395 = vmatprep.mubr.msk.f32.mxu0 %vm368_vm0, %v9868_v43 }
 0x255   : > { %6139 = vmatprep.mubr.msk.f32.mxu1 %vm368_vm0, %v9153_v55 }
 0x257   : > { %6396 = vmatmul.mubr.msk.f32.gmra.mrb[14].mxu0 %vm368_vm0, %v9870_v5  ;;  %v9908_v5 = vld [vmem:[#allocation60_spill] sm:$0xff] }
 0x258   : > { %6140 = vmatmul.mubr.msk.f32.gmra.mrb[30].mxu1 %vm368_vm0, %v9155_v23  ;;  %6398 = vmatprep.mubr.msk.f32.mxu0 %vm368_vm0, %v9872_v45 }
 0x259   : > { %6174 = vmatprep.mubr.msk.f32.mxu1 %vm368_vm0, %v9884_v8 }
 0x25b   : > { %6399 = vmatmul.mubr.msk.f32.gmra.mrb[16].mxu0 %vm368_vm0, %v8938_v40  ;;  %v4832_v40 = vrot.slane %v9335_v30, 2 }
 0x25c   : > { %6175 = vmatmul.mubr.msk.f32.vlgmr.msra.gmra.mrb[16].mxu1 %vm368_vm0, %v9885_v22  ;;  %6401 = vmatprep.mubr.msk.f32.mxu0 %vm368_vm0, %v8941_v6  ;;  %v4833_v6 = vrot.slane %v9345_v33, 2 }
 0x25d   : > { %6177 = vmatprep.mubr.msk.f32.mxu1 %vm368_vm0, %v9886_v10 }
 0x25f   : > { %6402 = vmatmul.mubr.msk.f32.gmra.mrb[18].mxu0 %vm368_vm0, %v8946_v16  ;;  %v9906_v16 = vld [vmem:[#allocation58_spill] sm:$0xff] }
 0x260   : > { %6178 = vmatmul.mubr.msk.f32.gmra.mrb[18].mxu1 %vm368_vm0, %v9887_v52  ;;  %6404 = vmatprep.mubr.msk.f32.mxu0 %vm368_vm0, %v9877_v35 }
 0x261   : > { %6180 = vmatprep.mubr.msk.f32.mxu1 %vm368_vm0, %v9888_v17 }
 0x263   : > { %6405 = vmatmul.mubr.msk.f32.gmra.mrb[20].mxu0 %vm368_vm0, %v8954_v61  ;;  %v9907_v61 = vld [vmem:[#allocation59_spill] sm:$0xff] }
 0x264   : > { %6181 = vmatmul.mubr.msk.f32.gmra.mrb[20].mxu1 %vm368_vm0, %v9890_v26  ;;  %6407 = vmatprep.mubr.msk.f32.mxu0 %vm368_vm0, %v8967_v46  ;;  %v4834_v46 = vsel %vm965_vm3, %v4832_v40, %v4833_v6 }
 0x265   : > { %6183 = vmatprep.mubr.msk.f32.mxu1 %vm368_vm0, %v9891_v24 }
 0x267   : > { %6408 = vmatmul.mubr.msk.f32.gmra.mrb[22].mxu0 %vm368_vm0, %v8982_v1 }
 0x268   : > { %6184 = vmatmul.mubr.msk.f32.gmra.mrb[22].mxu1 %vm368_vm0, %v9892_v50  ;;  %6410 = vmatprep.mubr.msk.f32.mxu0 %vm368_vm0, %v9901_v29 }
 0x269   : > { %6186 = vmatprep.mubr.msk.f32.mxu1 %vm368_vm0, %v9900_v2 }
 0x26b   : > { %6411 = vmatmul.mubr.msk.f32.gmra.mrb[24].mxu0 %vm368_vm0, %v9903_v60 }
 0x26c   : > { %6187 = vmatmul.mubr.msk.f32.gmra.mrb[24].mxu1 %vm368_vm0, %v9902_v3  ;;  %6413 = vmatprep.mubr.msk.f32.mxu0 %vm368_vm0, %v9905_v57 }
 0x26d   : > { %6189 = vmatprep.mubr.msk.f32.mxu1 %vm368_vm0, %v9904_v58 }
 0x26f   : > { %6414 = vmatmul.mubr.msk.f32.gmra.mrb[26].mxu0 %vm368_vm0, %v9906_v16 }
 0x270   : > { %6190 = vmatmul.mubr.msk.f32.gmra.mrb[26].mxu1 %vm368_vm0, %v9896_v48  ;;  %6416 = vmatprep.mubr.msk.f32.mxu0 %vm368_vm0, %v9907_v61  ;;  %v4836_v48 = vsel %vm965_vm3, %v4833_v6, %v4835_v53 }
 0x271   : > { %6192 = vmatprep.mubr.msk.f32.mxu1 %vm368_vm0, %v9897_v38 }
 0x273   : > { %6417 = vmatmul.mubr.msk.f32.gmra.mrb[28].mxu0 %vm368_vm0, %v9908_v5 }
 0x274   : > { %6193 = vmatmul.mubr.msk.f32.gmra.mrb[28].mxu1 %vm368_vm0, %v9898_v51  ;;  %6419 = vmatprep.mubr.msk.f32.mxu0 %vm368_vm0, %v4834_v46 }
 0x275   : > { %6195 = vmatprep.mubr.msk.f32.mxu1 %vm368_vm0, %v9473_v49 }
 0x277   : > { %6420 = vmatmul.mubr.msk.f32.gmra.mrb[30].mxu0 %vm368_vm0, %v4836_v48 }
 0x278   : > { %6196 = vmatmul.mubr.msk.f32.gmra.mrb[30].mxu1 %vm368_vm0, %v9486_v56 }
 0x2ef   : > { %v6096_v1 = vpop.f32.mrb[0].mxu1 }
 0x2f0   : > { %v3578_v9 = vpop.f32.mrb[1].mxu1 }
 0x2f3   : > { %v6099_v55 = vpop.f32.mrb[2].mxu1 }
 0x2f4   : > { %v3588_v23 = vpop.f32.mrb[3].mxu1 }
 0x2f7   : > { %v6102_v43 = vpop.f32.mrb[4].mxu1 }
 0x2f8   : > { %v3598_v20 = vpop.f32.mrb[5].mxu1 }
 0x2fb   : > { %v6105_v36 = vpop.f32.mrb[6].mxu1 }
 0x2fc   : > { %v3608_v0 = vpop.f32.mrb[7].mxu1 }
 0x2ff   : > { %v6108_v28 = vpop.f32.mrb[8].mxu1 }
 0x300   : > { %v3618_v47 = vpop.f32.mrb[9].mxu1 }
 0x303   : > { %v6111_v49 = vpop.f32.mrb[10].mxu1 }
 0x304   : > { %v3628_v27 = vpop.f32.mrb[11].mxu1 }
 0x307   : > { %v6114_v41 = vpop.f32.mrb[12].mxu1 }
 0x308   : > { %v3638_v54 = vpop.f32.mrb[13].mxu1 }
 0x30b   : > { %v6117_v19 = vpop.f32.mrb[14].mxu1 }
 0x30c   : > { %v3648_v42 = vpop.f32.mrb[15].mxu1 }
 0x30e   : > { %v6376_v63 = vpop.f32.mrb[0].mxu0 }
 0x30f   : > { %v6498_v4 = vadd.f32 %v6376_v63, %v6096_v1  ;;  %v4907_v62 = vpop.f32.mrb[1].mxu0 }
 0x310   : > { %v6499_v44 = vadd.f32 %v4907_v62, %v3578_v9 }
 0x311   : > { %v5106_v45 = vadd.f32 %v6498_v4, %v9630_v34 }
 0x312   : > { %v6379_v30 = vpop.f32.mrb[2].mxu0  ;;  %v5105_v12 = vadd.f32 %v6499_v44, %v9630_v34 }
 0x313   : > { %v6500_v33 = vadd.f32 %v6379_v30, %v6099_v55  ;;  %v4917_v14 = vpop.f32.mrb[3].mxu0 }
 0x314   : > { %v6501_v39 = vadd.f32 %v4917_v14, %v3588_v23  ;;  %5137 = vxpose.xlu0.b32.start [1/16] (narrow) %v5105_v12, 8 }
 0x315   : > { %v5108_v32 = vadd.f32 %v6500_v33, %v9630_v34 }
 0x316   : > { %v6382_v11 = vpop.f32.mrb[4].mxu0  ;;  %v5107_v52 = vadd.f32 %v6501_v39, %v9630_v34 }
 0x317   : > { %v6502_v35 = vadd.f32 %v6382_v11, %v6102_v43  ;;  %v4927_v8 = vpop.f32.mrb[5].mxu0 }
 0x318   : > { %v6503_v22 = vadd.f32 %v4927_v8, %v3598_v20  ;;  %5138 = vxpose.xlu0.b32.cont [2/16] (narrow) %v5106_v45, 8 }
 0x319   : > { %v5110_v13 = vadd.f32 %v6502_v35, %v9630_v34 }
 0x31a   : > { %v6385_v10 = vpop.f32.mrb[6].mxu0  ;;  %v5109_v51 = vadd.f32 %v6503_v22, %v9630_v34 }
 0x31b   : > { %v6504_v17 = vadd.f32 %v6385_v10, %v6105_v36  ;;  %v4937_v26 = vpop.f32.mrb[7].mxu0 }
 0x31c   : > { %v6505_v24 = vadd.f32 %v4937_v26, %v3608_v0  ;;  %5139 = vxpose.xlu0.b32.cont [3/16] (narrow) %v5107_v52, 8 }
 0x31d   : > { %v5112_v16 = vadd.f32 %v6504_v17, %v9630_v34 }
 0x31e   : > { %v6388_v50 = vpop.f32.mrb[8].mxu0  ;;  %v5111_v3 = vadd.f32 %v6505_v24, %v9630_v34 }
 0x31f   : > { %v6506_v31 = vadd.f32 %v6388_v50, %v6108_v28  ;;  %v4947_v7 = vpop.f32.mrb[9].mxu0 }
 0x320   : > { %v6507_v38 = vadd.f32 %v4947_v7, %v3618_v47  ;;  %5140 = vxpose.xlu0.b32.cont [4/16] (narrow) %v5108_v32, 8 }
 0x321   : > { %v5114_v47 = vadd.f32 %v6506_v31, %v9630_v34 }
 0x322   : > { %v6391_v15 = vpop.f32.mrb[10].mxu0  ;;  %v5113_v9 = vadd.f32 %v6507_v38, %v9630_v34 }
 0x323   : > { %v6508_v56 = vadd.f32 %v6391_v15, %v6111_v49  ;;  %v4957_v37 = vpop.f32.mrb[11].mxu0 }
 0x324   : > { %v6509_v59 = vadd.f32 %v4957_v37, %v3628_v27  ;;  %5141 = vxpose.xlu0.b32.cont [5/16] (narrow) %v5109_v51, 8 }
 0x325   : > { %v5116_v11 = vadd.f32 %v6508_v56, %v9630_v34 }
 0x326   : > { %v6394_v21 = vpop.f32.mrb[12].mxu0  ;;  %v5115_v4 = vadd.f32 %v6509_v59, %v9630_v34 }
 0x327   : > { %v9638_v25 = vadd.f32 %v6394_v21, %v6114_v41  ;;  %v4967_v18 = vpop.f32.mrb[13].mxu0 }
 0x328   : > { %v6511_v2 = vadd.f32 %v4967_v18, %v3638_v54  ;;  %5142 = vxpose.xlu0.b32.cont [6/16] (narrow) %v5110_v13, 8 }
 0x329   : > { %v5118_v59 = vadd.f32 %v9638_v25, %v9630_v34 }
 0x32a   : > { %v6397_v29 = vpop.f32.mrb[14].mxu0  ;;  %v5117_v24 = vadd.f32 %v6511_v2, %v9630_v34 }
 0x32b   : > { %v9641_v60 = vadd.f32 %v6397_v29, %v6117_v19  ;;  %v4977_v58 = vpop.f32.mrb[15].mxu0 }
 0x32c   : > { %v9643_v57 = vadd.f32 %v4977_v58, %v3648_v42  ;;  %5143 = vxpose.xlu0.b32.cont [7/16] (narrow) %v5111_v3, 8 }
 0x32e   : > { %v6400_v6 = vpop.f32.mrb[16].mxu0 }
 0x32f   : > { %v6176_v40 = vpop.f32.mrb[16].mxu1  ;;  %v4987_v46 = vpop.f32.mrb[17].mxu0 }
 0x330   : > { %v3925_v61 = vpop.f32.mrb[17].mxu1  ;;  %v6514_v53 = vadd.f32 %v6400_v6, %v6176_v40  ;;  %5144 = vxpose.xlu0.b32.cont [8/16] (narrow) %v5112_v16, 8  ;;  %v5119_v16 = vadd.f32 %v9643_v57, %v9630_v34  ;;  %v6821_v57 = vmov 1966171168  }
 0x331   : > { %v6515_v5 = vadd.f32 %v4987_v46, %v3925_v61 }
 0x332   : > { %v6403_v1 = vpop.f32.mrb[18].mxu0  ;;  %v5122_v49 = vadd.f32 %v6514_v53, %v9630_v34 }
 0x333   : > { %v6179_v48 = vpop.f32.mrb[18].mxu1  ;;  %v5121_v55 = vadd.f32 %v6515_v5, %v9630_v34  ;;  %v4997_v20 = vpop.f32.mrb[19].mxu0 }
 0x334   : > { %v3935_v23 = vpop.f32.mrb[19].mxu1  ;;  %v6516_v43 = vadd.f32 %v6403_v1, %v6179_v48  ;;  %5145 = vxpose.xlu0.b32.cont [9/16] (narrow) %v5113_v9, 8  ;;  %v5120_v9 = vadd.f32 %v9641_v60, %v9630_v34  ;;  %v9909_v60 = vld [vmem:[#allocation6_spill] sm:$0xff] }
 0x335   : > { %v6517_v36 = vadd.f32 %v4997_v20, %v3935_v23  ;;  %5169 = vxpose.xlu1.b32.start [1/16] (narrow) %v5121_v55, 8 }
 0x336   : > { %v6406_v28 = vpop.f32.mrb[20].mxu0  ;;  %v5124_v45 = vadd.f32 %v6516_v43, %v9630_v34  ;;  %v5205_v43 = vunpack.c.l.s4 %v6821_v57 }
 0x337   : > { %v6182_v0 = vpop.f32.mrb[20].mxu1  ;;  %v5007_v54 = vpop.f32.mrb[21].mxu0  ;;  %v5123_v62 = vadd.f32 %v6517_v36, %v9630_v34 }
 0x338   : > { %v3945_v27 = vpop.f32.mrb[21].mxu1  ;;  %v6518_v41 = vadd.f32 %v6406_v28, %v6182_v0  ;;  %5146 = vxpose.xlu0.b32.cont [10/16] (narrow) %v5114_v47, 8  ;;  %v5206_v20 = vunpack.c.0.s8 %v5205_v43 }
 0x339   : > { %v6519_v19 = vadd.f32 %v5007_v54, %v3945_v27  ;;  %5170 = vxpose.xlu1.b32.cont [2/16] (narrow) %v5122_v49, 8  ;;  %v9910_v49 = vlaneseq }
 0x33a   : > { %v6409_v63 = vpop.f32.mrb[22].mxu0  ;;  %v5126_v21 = vadd.f32 %v6518_v41, %v9630_v34  ;;  %v5209_v0 = vsub.s32 %v5206_v20, %v9909_v60 }
 0x33b   : > { %v6185_v42 = vpop.f32.mrb[22].mxu1  ;;  %v5017_v12 = vpop.f32.mrb[23].mxu0  ;;  %v5125_v50 = vadd.f32 %v6519_v19, %v9630_v34  ;;  %vm5221_vm4 = vcmp.lt.s32.totalorder %v9910_v49, 256 }
 0x33c   : > { %v3955_v44 = vpop.f32.mrb[23].mxu1  ;;  %v6520_v30 = vadd.f32 %v6409_v63, %v6185_v42  ;;  %5147 = vxpose.xlu0.b32.cont [11/16] (narrow) %v5115_v4, 8 }
 0x33d   : > { %v6521_v33 = vadd.f32 %v5017_v12, %v3955_v44  ;;  %5171 = vxpose.xlu1.b32.cont [3/16] (narrow) %v5123_v62, 8 }
 0x33e   : > { %v6412_v39 = vpop.f32.mrb[24].mxu0  ;;  %v5128_v55 = vadd.f32 %v6520_v30, %v9630_v34 }
 0x33f   : > { %v6188_v14 = vpop.f32.mrb[24].mxu1  ;;  %v5027_v22 = vpop.f32.mrb[25].mxu0  ;;  %v5127_v61 = vadd.f32 %v6521_v33, %v9630_v34 }
 0x340   : > { %v3965_v35 = vpop.f32.mrb[25].mxu1  ;;  %v6522_v8 = vadd.f32 %v6412_v39, %v6188_v14  ;;  %5148 = vxpose.xlu0.b32.cont [12/16] (narrow) %v5116_v11, 8 }
 0x341   : > { %v6523_v10 = vadd.f32 %v5027_v22, %v3965_v35  ;;  %5172 = vxpose.xlu1.b32.cont [4/16] (narrow) %v5124_v45, 8 }
 0x342   : > { %v5130_v52 = vadd.f32 %v6522_v8, %v9630_v34  ;;  %v6415_v26 = vpop.f32.mrb[26].mxu0 }
 0x343   : > { %v6191_v17 = vpop.f32.mrb[26].mxu1  ;;  %v5129_v32 = vadd.f32 %v6523_v10, %v9630_v34  ;;  %v5037_v38 = vpop.f32.mrb[27].mxu0 }
 0x344   : > { %v3975_v31 = vpop.f32.mrb[27].mxu1  ;;  %v6524_v7 = vadd.f32 %v6415_v26, %v6191_v17  ;;  %5149 = vxpose.xlu0.b32.cont [13/16] (narrow) %v5117_v24, 8 }
 0x345   : > { %v6525_v15 = vadd.f32 %v5037_v38, %v3975_v31  ;;  %5173 = vxpose.xlu1.b32.cont [5/16] (narrow) %v5125_v50, 8 }
 0x346   : > { %v5132_v51 = vadd.f32 %v6524_v7, %v9630_v34  ;;  %v6418_v37 = vpop.f32.mrb[28].mxu0 }
 0x347   : > { %v6194_v56 = vpop.f32.mrb[28].mxu1  ;;  %v5131_v13 = vadd.f32 %v6525_v15, %v9630_v34  ;;  %v5047_v29 = vpop.f32.mrb[29].mxu0 }
 0x348   : > { %v3985_v18 = vpop.f32.mrb[29].mxu1  ;;  %v6526_v2 = vadd.f32 %v6418_v37, %v6194_v56  ;;  %5150 = vxpose.xlu0.b32.cont [14/16] (narrow) %v5118_v59, 8 }
 0x349   : > { %v6527_v3 = vadd.f32 %v5047_v29, %v3985_v18  ;;  %5174 = vxpose.xlu1.b32.cont [6/16] (narrow) %v5126_v21, 8 }
 0x34a   : > { %v5134_v58 = vadd.f32 %v6526_v2, %v9630_v34  ;;  %v6421_v6 = vpop.f32.mrb[30].mxu0 }
 0x34b   : > { %v6197_v40 = vpop.f32.mrb[30].mxu1  ;;  %v5133_v25 = vadd.f32 %v6527_v3, %v9630_v34  ;;  %v5057_v5 = vpop.f32.mrb[31].mxu0 }
 0x34c   : > { %v3995_v53 = vpop.f32.mrb[31].mxu1  ;;  %v6528_v46 = vadd.f32 %v6421_v6, %v6197_v40  ;;  %5151 = vxpose.xlu0.b32.cont [15/16] (narrow) %v5119_v16, 8 }
 0x34d   : > { %v6529_v48 = vadd.f32 %v5057_v5, %v3995_v53  ;;  %5175 = vxpose.xlu1.b32.cont [7/16] (narrow) %v5127_v61, 8 }
 0x34e   : > { %v5136_v1 = vadd.f32 %v6528_v46, %v9630_v34 }
 0x34f   : > { %v5135_v23 = vadd.f32 %v6529_v48, %v9630_v34 }
 0x350   : > { %5152 = vxpose.xlu0.b32.end [16/16] (narrow) %v5120_v9, 8 }
 0x351   : > { %5176 = vxpose.xlu1.b32.cont [8/16] (narrow) %v5128_v55, 8 }
 0x355   : > { %5177 = vxpose.xlu1.b32.cont [9/16] (narrow) %v5129_v32, 8 }
 0x359   : > { %5178 = vxpose.xlu1.b32.cont [10/16] (narrow) %v5130_v52, 8 }
 0x35d   : > { %5179 = vxpose.xlu1.b32.cont [11/16] (narrow) %v5131_v13, 8 }
 0x361   : > { %5180 = vxpose.xlu1.b32.cont [12/16] (narrow) %v5132_v51, 8 }
 0x365   : > { %5181 = vxpose.xlu1.b32.cont [13/16] (narrow) %v5133_v25, 8 }
 0x369   : > { %5182 = vxpose.xlu1.b32.cont [14/16] (narrow) %v5134_v58, 8 }
 0x36d   : > { %5183 = vxpose.xlu1.b32.cont [15/16] (narrow) %v5135_v23, 8 }
 0x371   : > { %5184 = vxpose.xlu1.b32.end [16/16] (narrow) %v5136_v1, 8 }
 0x394   : > { %v5153_v36 = vpop.trf.xlu0 }
 0x3b5   : > { %v5185_v28 = vpop.trf.xlu1 }
 0x3b6   : > { %v5203_v34 = vcombine.low %v5153_v36, %v5185_v28 }
 0x3b8   : > { %v5210_v47 = vrot.slane %v5203_v34, %v5209_v0 }
 0x3ba   : > { %v5217_v27 = vrot.slane %v5210_v47, %v5209_v0 }
 0x3bc   : > { %5223 = vst.msk [vmem:[%s271_s8] sm:$0x3] %vm5221_vm4, %v5217_v27 }
 0x3bd PF: > { %s18_s23 = sadd.s32 1, %s6818_s23  }
 0x3be   : > { %p15_p4 = scmp.ge.s32.totalorder %s18_s23, 4  }
 0x3c0   :  { %17 = sbr.rel (!%p15_p4) target bundleno = 3 (0x3), region = 79 }

</bundles_post_ra>
